<compile_context>
chip_gen: v7x
topology: tpu7x:2x2x1
jax: 0.10.0
libtpu: 0.0.40
codegen_flags: <defaults>
</compile_context>

<pallas_src>
import functools

import jax
import jax.numpy as jnp
from jax import lax
from jax.experimental import pallas as pl
from jax.experimental.pallas import tpu as pltpu


def _next_pow2(v: int, minimum: int = 16) -> int:
    p = minimum
    while p < v:
        p *= 2
    return p


def _round_up(v: int, m: int) -> int:
    return ((v + m - 1) // m) * m


# ----------------------------------------------------------------------------
# Fused Pallas kernel
# ----------------------------------------------------------------------------
def _bottleneck_kernel(xp_ref, w1_ref, w2_ref, w3_ref, b1_ref, b2_ref, b3_ref,
                       o_ref, c2_ref, *, H, W, Wp, P):
    """Fused conv1x1+bn+relu -> conv3x3+bn+relu -> conv1x1+bn+residual+relu.

    xp_ref : (1, Mp, Cin) bf16  zero-padded image plane, flattened; Mp=(H+3)*Wp
    w1_ref : (Cin, P)      bf16  conv1 weight, BN1 scale folded, width padded
    w2_ref : (3, 3P, P)    bf16  conv2 weight in kx-im2col layout (per ky)
    w3_ref : (P, Cout)     bf16  conv3 weight, BN3 scale folded
    b*_ref : (1, C)        f32   folded BN biases
    o_ref  : (1, H*Wp, Cout) bf16 extended output (junk pad columns per row,
             sliced away by the wrapper)
    c2_ref : (Mp, 3P) bf16 VMEM scratch; row r = [h1[r], h1[r+1], h1[r+2]]
    """
    Mp = xp_ref.shape[1]
    m_out = H * Wp
    wp_log2 = Wp.bit_length() - 1          # Wp is a power of two

    # ---- conv1 (1x1) + bias + relu over the full padded plane -------------
    xp = xp_ref[0]                                           # (Mp, Cin) bf16
    h1 = jnp.dot(xp, w1_ref[...], preferred_element_type=jnp.float32)
    h1 = jnp.maximum(h1 + b1_ref[...], 0.0)

    # Interior mask computed in-kernel (zero the padding ring so conv2 taps
    # over pad positions contribute nothing).
    rows = lax.broadcasted_iota(jnp.int32, (Mp, 1), 0)
    col = rows & (Wp - 1)
    rw = rows >> wp_log2
    interior = (col >= 1) & (col <= W) & (rw >= 1) & (rw <= H)
    h1 = jnp.where(interior, h1, 0.0).astype(jnp.bfloat16)   # (Mp, P)

    # ---- build kx-im2col buffer (the only sublane-shifted copies) ---------
    c2_ref[:, 0:P] = h1
    c2_ref[0:Mp - 1, P:2 * P] = h1[1:Mp]
    c2_ref[0:Mp - 2, 2 * P:3 * P] = h1[2:Mp]

    # ---- conv2 (3x3, stride 1, pad 1): 3 matmuls with K = 3*P -------------
    # Output row q reads c2 row q + ky*Wp; all three offsets are tile-aligned.
    acc = jnp.dot(c2_ref[0:m_out, :], w2_ref[0],
                  preferred_element_type=jnp.float32)
    acc = acc + jnp.dot(c2_ref[Wp:Wp + m_out, :], w2_ref[1],
                        preferred_element_type=jnp.float32)
    acc = acc + jnp.dot(c2_ref[2 * Wp:2 * Wp + m_out, :], w2_ref[2],
                        preferred_element_type=jnp.float32)
    h2 = jnp.maximum(acc + b2_ref[...], 0.0).astype(jnp.bfloat16)

    # ---- conv3 (1x1) + bias + residual + relu ------------------------------
    h3 = jnp.dot(h2, w3_ref[...], preferred_element_type=jnp.float32)
    identity = xp_ref[0, Wp + 1:Wp + 1 + m_out, :].astype(jnp.float32)
    out = jnp.maximum(h3 + b3_ref[...] + identity, 0.0)
    o_ref[0] = out.astype(o_ref.dtype)


# ----------------------------------------------------------------------------
# Glue: BN folding, weight reshaping, host-side layout
# ----------------------------------------------------------------------------
def fold_bn(gamma, beta, mean, var, eps=1e-5):
    scale = gamma / jnp.sqrt(var + eps)
    bias = beta - mean * scale
    return scale, bias


def bottleneck_forward(x_nchw, p):
    n, cin, h, w = x_nchw.shape
    width = p["w1"].shape[0]
    cout = p["w3"].shape[0]
    assert cout == cin, "default Bottleneck (stride=1, no downsample) needs Cin == planes*4"

    P = _round_up(width, 128)           # lane-dense bottleneck width
    Wp = _next_pow2(w + 2, 16)          # aligned padded-plane width (power of 2)
    Mp = (h + 3) * Wp                   # 1 top pad row + >=2 bottom guard rows
    m_out = h * Wp

    # Input: NCHW -> NHWC, zero-pad to the aligned plane, flatten, bf16.
    x_nhwc = jnp.transpose(x_nchw, (0, 2, 3, 1)).astype(jnp.float32)
    xp = jnp.pad(x_nhwc, ((0, 0), (1, 2), (1, Wp - 1 - w), (0, 0)))
    xp = xp.reshape(n, Mp, cin).astype(jnp.bfloat16)

    # Fold eval-mode BN scale into weights (f32, before bf16 cast); keep bias.
    s1, b1 = fold_bn(p["g1"], p["be1"], p["m1"], p["v1"])
    s2, b2 = fold_bn(p["g2"], p["be2"], p["m2"], p["v2"])
    s3, b3 = fold_bn(p["g3"], p["be3"], p["m3"], p["v3"])

    w1m = jnp.transpose(p["w1"][:, :, 0, 0], (1, 0)) * s1[None, :]       # (Cin, width)
    w1m = jnp.pad(w1m, ((0, 0), (0, P - width))).astype(jnp.bfloat16)     # (Cin, P)

    w2m = jnp.transpose(p["w2"], (2, 3, 1, 0)) * s2[None, None, None, :]  # (3,3,in,out)
    w2m = jnp.pad(w2m, ((0, 0), (0, 0), (0, P - width), (0, P - width)))
    w2c = w2m.reshape(3, 3 * P, P).astype(jnp.bfloat16)                   # kx-im2col layout

    w3m = jnp.transpose(p["w3"][:, :, 0, 0], (1, 0)) * s3[None, :]        # (width, Cout)
    w3m = jnp.pad(w3m, ((0, P - width), (0, 0))).astype(jnp.bfloat16)     # (P, Cout)

    b1v = jnp.pad(b1, (0, P - width)).reshape(1, P).astype(jnp.float32)
    b2v = jnp.pad(b2, (0, P - width)).reshape(1, P).astype(jnp.float32)
    b3v = b3.reshape(1, cout).astype(jnp.float32)

    kernel = functools.partial(_bottleneck_kernel, H=h, W=w, Wp=Wp, P=P)

    flops = 2 * n * (Mp * cin * P + m_out * 3 * (3 * P) * P + m_out * P * cout)
    bytes_accessed = (n * (Mp * cin + m_out * cout) * 2
                      + (cin * P + 9 * P * P + P * cout) * 2
                      + (2 * P + cout) * 4)

    out_ext = pl.pallas_call(
        kernel,
        out_shape=jax.ShapeDtypeStruct((n, m_out, cout), jnp.bfloat16),
        grid_spec=pltpu.PrefetchScalarGridSpec(
            num_scalar_prefetch=0,
            grid=(n,),
            in_specs=[
                pl.BlockSpec((1, Mp, cin), lambda i: (i, 0, 0)),       # padded x (bf16)
                pl.BlockSpec((cin, P), lambda i: (0, 0)),              # w1 (BN1 folded)
                pl.BlockSpec((3, 3 * P, P), lambda i: (0, 0, 0)),      # w2 kx-im2col
                pl.BlockSpec((P, cout), lambda i: (0, 0)),             # w3 (BN3 folded)
                pl.BlockSpec((1, P), lambda i: (0, 0)),                # b1
                pl.BlockSpec((1, P), lambda i: (0, 0)),                # b2
                pl.BlockSpec((1, cout), lambda i: (0, 0)),             # b3
            ],
            out_specs=pl.BlockSpec((1, m_out, cout), lambda i: (i, 0, 0)),
            scratch_shapes=[pltpu.VMEM((Mp, 3 * P), jnp.bfloat16)],    # im2col buffer
        ),
        compiler_params=pltpu.CompilerParams(
            dimension_semantics=("parallel",),
            vmem_limit_bytes=48 * 1024 * 1024),
        cost_estimate=pl.CostEstimate(flops=int(flops), transcendentals=0,
                                      bytes_accessed=int(bytes_accessed)),
    )(xp, w1m, w2c, w3m, b1v, b2v, b3v)

    # Boundary epilogue (only because this script must return NCHW): drop the
    # junk padding columns, back to NCHW f32.
    out = out_ext.reshape(n, h, Wp, cout)[:, :, :w, :].astype(jnp.float32)
    return jnp.transpose(out, (0, 3, 1, 2))


# ----------------------------------------------------------------------------
# Pure-JAX reference (mirrors PyTorch eval-mode forward) for validation
# ----------------------------------------------------------------------------
def _conv(x, w, stride=1, padding=0):
    return lax.conv_general_dilated(
        x, w, (stride, stride), ((padding, padding), (padding, padding)),
        dimension_numbers=("NCHW", "OIHW", "NCHW"))


def _bn(x, g, b, m, v, eps=1e-5):
    shp = (1, -1, 1, 1)
    return (x - m.reshape(shp)) / jnp.sqrt(v.reshape(shp) + eps) * g.reshape(shp) + b.reshape(shp)


def bottleneck_reference(x, p):
    identity = x
    out = jnp.maximum(_bn(_conv(x, p["w1"]), p["g1"], p["be1"], p["m1"], p["v1"]), 0.0)
    out = jnp.maximum(_bn(_conv(out, p["w2"], padding=1), p["g2"], p["be2"], p["m2"], p["v2"]), 0.0)
    out = _bn(_conv(out, p["w3"]), p["g3"], p["be3"], p["m3"], p["v3"])
    return jnp.maximum(out + identity, 0.0)


# ----------------------------------------------------------------------------
if __name__ == "__main__":
    key = jax.random.PRNGKey(0)
    N, inplanes, H, W = 2, 16, 16, 16
    planes, groups, base_width, expansion = 4, 1, 64, 4
    width = int(planes * (base_width / 64.0)) * groups           # = 4
    out_ch = planes * expansion                                  # = 16 == inplanes

    ks = jax.random.split(key, 16)

    def nrm(k, shape, s=0.1):
        return (s * jax.random.normal(k, shape)).astype(jnp.float32)

    params = {
        # conv weights in PyTorch OIHW layout
        "w1": nrm(ks[0], (width, inplanes, 1, 1)),
        "w2": nrm(ks[1], (width, width, 3, 3)),
        "w3": nrm(ks[2], (out_ch, width, 1, 1)),
        # BN (eval-mode) parameters
        "g1": 1.0 + nrm(ks[3], (width,)),  "be1": nrm(ks[4], (width,)),
        "m1": nrm(ks[5], (width,)),        "v1": 0.5 + jnp.abs(nrm(ks[6], (width,))),
        "g2": 1.0 + nrm(ks[7], (width,)),  "be2": nrm(ks[8], (width,)),
        "m2": nrm(ks[9], (width,)),        "v2": 0.5 + jnp.abs(nrm(ks[10], (width,))),
        "g3": 1.0 + nrm(ks[11], (out_ch,)), "be3": nrm(ks[12], (out_ch,)),
        "m3": nrm(ks[13], (out_ch,)),       "v3": 0.5 + jnp.abs(nrm(ks[14], (out_ch,))),
    }

    x = jax.random.normal(ks[15], (N, inplanes, H, W), dtype=jnp.float32)

    fwd = jax.jit(bottleneck_forward)
    out = jax.block_until_ready(fwd(x, params))
    ref = jax.block_until_ready(bottleneck_reference(x, params))

    assert out.shape == (N, out_ch, H, W)
    max_err = float(jnp.max(jnp.abs(out - ref)))
    # bf16 I/O + bf16 MXU inputs with f32 accumulation -> loosened tolerance
    assert jnp.allclose(out, ref, rtol=3e-2, atol=5e-2), max_err
    print("KERNEL_OK")
</pallas_src>

<mosaic_0001>
module attributes {stable_mosaic.version = 11 : i64} {
  func.func @_bottleneck_kernel(%arg0: i32, %arg1: memref<1x608x16xbf16, #tpu.memory_space<vmem>>, %arg2: memref<16x128xbf16, #tpu.memory_space<vmem>>, %arg3: memref<3x384x128xbf16, #tpu.memory_space<vmem>>, %arg4: memref<128x16xbf16, #tpu.memory_space<vmem>>, %arg5: memref<1x128xf32, #tpu.memory_space<vmem>>, %arg6: memref<1x128xf32, #tpu.memory_space<vmem>>, %arg7: memref<1x16xf32, #tpu.memory_space<vmem>>, %arg8: memref<1x512x16xbf16, #tpu.memory_space<vmem>>, %arg9: memref<608x384xbf16, #tpu.memory_space<vmem>>) attributes {dimension_semantics = [#tpu.dimension_semantics<parallel>], iteration_bounds = array<i64: 2>, scalar_prefetch = 0 : i64, scratch_operands = 1 : i64, tpu.core_type = #tpu.core_type<tc>, window_params = [{transform_indices = @transform_0, window_bounds = array<i64: 1, 608, 16>}, {pipeline_mode = #tpu.pipeline_mode<synchronous>, transform_indices = @transform_1, window_bounds = array<i64: 16, 128>}, {pipeline_mode = #tpu.pipeline_mode<synchronous>, transform_indices = @transform_2, window_bounds = array<i64: 3, 384, 128>}, {pipeline_mode = #tpu.pipeline_mode<synchronous>, transform_indices = @transform_3, window_bounds = array<i64: 128, 16>}, {pipeline_mode = #tpu.pipeline_mode<synchronous>, transform_indices = @transform_4, window_bounds = array<i64: 1, 128>}, {pipeline_mode = #tpu.pipeline_mode<synchronous>, transform_indices = @transform_5, window_bounds = array<i64: 1, 128>}, {pipeline_mode = #tpu.pipeline_mode<synchronous>, transform_indices = @transform_6, window_bounds = array<i64: 1, 16>}, {transform_indices = @transform_7, window_bounds = array<i64: 1, 512, 16>}]} {
    %c0 = arith.constant 0 : index
    %c0_0 = arith.constant 0 : index
    %c0_1 = arith.constant 0 : index
    %0 = vector.load %arg1[%c0, %c0_0, %c0_1] : memref<1x608x16xbf16, #tpu.memory_space<vmem>>, vector<1x608x16xbf16>
    %1 = vector.shape_cast %0 : vector<1x608x16xbf16> to vector<608x16xbf16>
    %c0_2 = arith.constant 0 : index
    %c0_3 = arith.constant 0 : index
    %2 = vector.load %arg2[%c0_2, %c0_3] : memref<16x128xbf16, #tpu.memory_space<vmem>>, vector<16x128xbf16>
    %cst = arith.constant dense<0.000000e+00> : vector<608x128xf32>
    %3 = tpu.matmul %1, %2, %cst {dimension_numbers = #tpu.dot_dimension_numbers<[1], [0], [0], [1], [0, 0, 1, 1], [], []>} : vector<608x16xbf16>, vector<16x128xbf16>, vector<608x128xf32> -> vector<608x128xf32>
    %c0_4 = arith.constant 0 : index
    %c0_5 = arith.constant 0 : index
    %4 = vector.load %arg5[%c0_4, %c0_5] : memref<1x128xf32, #tpu.memory_space<vmem>>, vector<1x128xf32>
    %5 = vector.broadcast %4 : vector<1x128xf32> to vector<608x128xf32>
    %6 = arith.addf %3, %5 : vector<608x128xf32>
    %cst_6 = arith.constant 0.000000e+00 : f32
    %7 = vector.broadcast %cst_6 : f32 to vector<608x128xf32>
    %8 = arith.maximumf %6, %7 : vector<608x128xf32>
    %9 = tpu.iota {dimensions = array<i32: 0>} : vector<608x1xi32>
    %c31_i32 = arith.constant 31 : i32
    %10 = vector.broadcast %c31_i32 : i32 to vector<608x1xi32>
    %11 = arith.andi %9, %10 : vector<608x1xi32>
    %c5_i32 = arith.constant 5 : i32
    %12 = vector.broadcast %c5_i32 : i32 to vector<608x1xi32>
    %13 = arith.shrsi %9, %12 : vector<608x1xi32>
    %c1_i32 = arith.constant 1 : i32
    %14 = vector.broadcast %c1_i32 : i32 to vector<608x1xi32>
    %15 = arith.cmpi sge, %11, %14 : vector<608x1xi32>
    %c16_i32 = arith.constant 16 : i32
    %16 = vector.broadcast %c16_i32 : i32 to vector<608x1xi32>
    %17 = arith.cmpi sle, %11, %16 : vector<608x1xi32>
    %18 = arith.andi %15, %17 : vector<608x1xi1>
    %c1_i32_7 = arith.constant 1 : i32
    %19 = vector.broadcast %c1_i32_7 : i32 to vector<608x1xi32>
    %20 = arith.cmpi sge, %13, %19 : vector<608x1xi32>
    %21 = arith.andi %18, %20 : vector<608x1xi1>
    %c16_i32_8 = arith.constant 16 : i32
    %22 = vector.broadcast %c16_i32_8 : i32 to vector<608x1xi32>
    %23 = arith.cmpi sle, %13, %22 : vector<608x1xi32>
    %24 = arith.andi %21, %23 : vector<608x1xi1>
    %cst_9 = arith.constant 0.000000e+00 : f32
    %25 = vector.shape_cast %24 : vector<608x1xi1> to vector<608x1xi1>
    %26 = vector.broadcast %25 : vector<608x1xi1> to vector<608x128xi1>
    %27 = vector.broadcast %cst_9 : f32 to vector<608x128xf32>
    %28 = arith.select %26, %8, %27 : vector<608x128xi1>, vector<608x128xf32>
    %29 = arith.truncf %28 : vector<608x128xf32> to vector<608x128xbf16>
    %c0_10 = arith.constant 0 : index
    %c0_11 = arith.constant 0 : index
    %30 = vector.load %arg9[%c0_10, %c0_11] : memref<608x384xbf16, #tpu.memory_space<vmem>>, vector<608x128xbf16>
    tpu.vector_store %arg9[%c0_10, %c0_11], %29 {strides = array<i32>} : memref<608x384xbf16, #tpu.memory_space<vmem>>, vector<608x128xbf16>,
    %31 = vector.extract_strided_slice %29 {offsets = [1, 0], sizes = [607, 128], strides = [1, 1]} : vector<608x128xbf16> to vector<607x128xbf16>
    %c0_12 = arith.constant 0 : index
    %c128 = arith.constant 128 : index
    %32 = vector.load %arg9[%c0_12, %c128] : memref<608x384xbf16, #tpu.memory_space<vmem>>, vector<607x128xbf16>
    tpu.vector_store %arg9[%c0_12, %c128], %31 {strides = array<i32>} : memref<608x384xbf16, #tpu.memory_space<vmem>>, vector<607x128xbf16>,
    %33 = vector.extract_strided_slice %29 {offsets = [2, 0], sizes = [606, 128], strides = [1, 1]} : vector<608x128xbf16> to vector<606x128xbf16>
    %c0_13 = arith.constant 0 : index
    %c256 = arith.constant 256 : index
    %34 = vector.load %arg9[%c0_13, %c256] : memref<608x384xbf16, #tpu.memory_space<vmem>>, vector<606x128xbf16>
    tpu.vector_store %arg9[%c0_13, %c256], %33 {strides = array<i32>} : memref<608x384xbf16, #tpu.memory_space<vmem>>, vector<606x128xbf16>,
    %c0_14 = arith.constant 0 : index
    %c0_15 = arith.constant 0 : index
    %35 = vector.load %arg9[%c0_14, %c0_15] : memref<608x384xbf16, #tpu.memory_space<vmem>>, vector<512x384xbf16>
    %c0_16 = arith.constant 0 : index
    %c0_17 = arith.constant 0 : index
    %c0_18 = arith.constant 0 : index
    %36 = vector.load %arg3[%c0_16, %c0_17, %c0_18] : memref<3x384x128xbf16, #tpu.memory_space<vmem>>, vector<1x384x128xbf16>
    %37 = vector.shape_cast %36 : vector<1x384x128xbf16> to vector<384x128xbf16>
    %cst_19 = arith.constant dense<0.000000e+00> : vector<512x128xf32>
    %38 = tpu.matmul %35, %37, %cst_19 {dimension_numbers = #tpu.dot_dimension_numbers<[1], [0], [0], [1], [0, 0, 1, 1], [], []>} : vector<512x384xbf16>, vector<384x128xbf16>, vector<512x128xf32> -> vector<512x128xf32>
    %c32 = arith.constant 32 : index
    %c0_20 = arith.constant 0 : index
    %39 = vector.load %arg9[%c32, %c0_20] : memref<608x384xbf16, #tpu.memory_space<vmem>>, vector<512x384xbf16>
    %c1 = arith.constant 1 : index
    %c0_21 = arith.constant 0 : index
    %c0_22 = arith.constant 0 : index
    %40 = vector.load %arg3[%c1, %c0_21, %c0_22] : memref<3x384x128xbf16, #tpu.memory_space<vmem>>, vector<1x384x128xbf16>
    %41 = vector.shape_cast %40 : vector<1x384x128xbf16> to vector<384x128xbf16>
    %cst_23 = arith.constant dense<0.000000e+00> : vector<512x128xf32>
    %42 = tpu.matmul %39, %41, %cst_23 {dimension_numbers = #tpu.dot_dimension_numbers<[1], [0], [0], [1], [0, 0, 1, 1], [], []>} : vector<512x384xbf16>, vector<384x128xbf16>, vector<512x128xf32> -> vector<512x128xf32>
    %43 = arith.addf %38, %42 : vector<512x128xf32>
    %c64 = arith.constant 64 : index
    %c0_24 = arith.constant 0 : index
    %44 = vector.load %arg9[%c64, %c0_24] : memref<608x384xbf16, #tpu.memory_space<vmem>>, vector<512x384xbf16>
    %c2 = arith.constant 2 : index
    %c0_25 = arith.constant 0 : index
    %c0_26 = arith.constant 0 : index
    %45 = vector.load %arg3[%c2, %c0_25, %c0_26] : memref<3x384x128xbf16, #tpu.memory_space<vmem>>, vector<1x384x128xbf16>
    %46 = vector.shape_cast %45 : vector<1x384x128xbf16> to vector<384x128xbf16>
    %cst_27 = arith.constant dense<0.000000e+00> : vector<512x128xf32>
    %47 = tpu.matmul %44, %46, %cst_27 {dimension_numbers = #tpu.dot_dimension_numbers<[1], [0], [0], [1], [0, 0, 1, 1], [], []>} : vector<512x384xbf16>, vector<384x128xbf16>, vector<512x128xf32> -> vector<512x128xf32>
    %48 = arith.addf %43, %47 : vector<512x128xf32>
    %c0_28 = arith.constant 0 : index
    %c0_29 = arith.constant 0 : index
    %49 = vector.load %arg6[%c0_28, %c0_29] : memref<1x128xf32, #tpu.memory_space<vmem>>, vector<1x128xf32>
    %50 = vector.broadcast %49 : vector<1x128xf32> to vector<512x128xf32>
    %51 = arith.addf %48, %50 : vector<512x128xf32>
    %cst_30 = arith.constant 0.000000e+00 : f32
    %52 = vector.broadcast %cst_30 : f32 to vector<512x128xf32>
    %53 = arith.maximumf %51, %52 : vector<512x128xf32>
    %54 = arith.truncf %53 : vector<512x128xf32> to vector<512x128xbf16>
    %c0_31 = arith.constant 0 : index
    %c0_32 = arith.constant 0 : index
    %55 = vector.load %arg4[%c0_31, %c0_32] : memref<128x16xbf16, #tpu.memory_space<vmem>>, vector<128x16xbf16>
    %cst_33 = arith.constant dense<0.000000e+00> : vector<512x16xf32>
    %56 = tpu.matmul %54, %55, %cst_33 {dimension_numbers = #tpu.dot_dimension_numbers<[1], [0], [0], [1], [0, 0, 1, 1], [], []>} : vector<512x128xbf16>, vector<128x16xbf16>, vector<512x16xf32> -> vector<512x16xf32>
    %c0_34 = arith.constant 0 : index
    %c33 = arith.constant 33 : index
    %c0_35 = arith.constant 0 : index
    %57 = vector.load %arg1[%c0_34, %c33, %c0_35] : memref<1x608x16xbf16, #tpu.memory_space<vmem>>, vector<1x512x16xbf16>
    %58 = vector.shape_cast %57 : vector<1x512x16xbf16> to vector<512x16xbf16>
    %59 = arith.extf %58 : vector<512x16xbf16> to vector<512x16xf32>
    %c0_36 = arith.constant 0 : index
    %c0_37 = arith.constant 0 : index
    %60 = vector.load %arg7[%c0_36, %c0_37] : memref<1x16xf32, #tpu.memory_space<vmem>>, vector<1x16xf32>
    %61 = vector.broadcast %60 : vector<1x16xf32> to vector<512x16xf32>
    %62 = arith.addf %56, %61 : vector<512x16xf32>
    %63 = arith.addf %62, %59 : vector<512x16xf32>
    %cst_38 = arith.constant 0.000000e+00 : f32
    %64 = vector.broadcast %cst_38 : f32 to vector<512x16xf32>
    %65 = arith.maximumf %63, %64 : vector<512x16xf32>
    %66 = arith.truncf %65 : vector<512x16xf32> to vector<512x16xbf16>
    %c0_39 = arith.constant 0 : index
    %c0_40 = arith.constant 0 : index
    %c0_41 = arith.constant 0 : index
    %67 = vector.load %arg8[%c0_39, %c0_40, %c0_41] : memref<1x512x16xbf16, #tpu.memory_space<vmem>>, vector<1x512x16xbf16>
    %68 = vector.shape_cast %67 : vector<1x512x16xbf16> to vector<512x16xbf16>
    %69 = vector.shape_cast %66 : vector<512x16xbf16> to vector<1x512x16xbf16>
    tpu.vector_store %arg8[%c0_39, %c0_40, %c0_41], %69 {strides = array<i32>} : memref<1x512x16xbf16, #tpu.memory_space<vmem>>, vector<1x512x16xbf16>,
    return
  }
  func.func @transform_0(%arg0: i32) -> (i32, i32, i32) {
    %c0_i32 = arith.constant 0 : i32
    %c0_i32_0 = arith.constant 0 : i32
    %c0_i32_1 = arith.constant 0 : i32
    return %arg0, %c0_i32, %c0_i32_0 : i32, i32, i32
  }
  func.func @transform_1(%arg0: i32) -> (i32, i32) {
    %c0_i32 = arith.constant 0 : i32
    %c0_i32_0 = arith.constant 0 : i32
    %c0_i32_1 = arith.constant 0 : i32
    return %c0_i32, %c0_i32_0 : i32, i32
  }
  func.func @transform_2(%arg0: i32) -> (i32, i32, i32) {
    %c0_i32 = arith.constant 0 : i32
    %c0_i32_0 = arith.constant 0 : i32
    %c0_i32_1 = arith.constant 0 : i32
    %c0_i32_2 = arith.constant 0 : i32
    return %c0_i32, %c0_i32_0, %c0_i32_1 : i32, i32, i32
  }
  func.func @transform_3(%arg0: i32) -> (i32, i32) {
    %c0_i32 = arith.constant 0 : i32
    %c0_i32_0 = arith.constant 0 : i32
    %c0_i32_1 = arith.constant 0 : i32
    return %c0_i32, %c0_i32_0 : i32, i32
  }
  func.func @transform_4(%arg0: i32) -> (i32, i32) {
    %c0_i32 = arith.constant 0 : i32
    %c0_i32_0 = arith.constant 0 : i32
    %c0_i32_1 = arith.constant 0 : i32
    return %c0_i32, %c0_i32_0 : i32, i32
  }
  func.func @transform_5(%arg0: i32) -> (i32, i32) {
    %c0_i32 = arith.constant 0 : i32
    %c0_i32_0 = arith.constant 0 : i32
    %c0_i32_1 = arith.constant 0 : i32
    return %c0_i32, %c0_i32_0 : i32, i32
  }
  func.func @transform_6(%arg0: i32) -> (i32, i32) {
    %c0_i32 = arith.constant 0 : i32
    %c0_i32_0 = arith.constant 0 : i32
    %c0_i32_1 = arith.constant 0 : i32
    return %c0_i32, %c0_i32_0 : i32, i32
  }
  func.func @transform_7(%arg0: i32) -> (i32, i32, i32) {
    %c0_i32 = arith.constant 0 : i32
    %c0_i32_0 = arith.constant 0 : i32
    %c0_i32_1 = arith.constant 0 : i32
    return %arg0, %c0_i32, %c0_i32_0 : i32, i32, i32
  }
}

</mosaic_0001>

<bundles_post_ra>
// kernel: bottleneck_forward.1
= control target key start
LH: loop header
LB: loop body
LE: loop exit
PB: predicated region body
PF: predicated region fallthrough
CT: control target
= control target key end

     0   :  { %s8177_s24 = smov 0   ;;  %s12770_s0 = inlined_call_operand.vmem [shape: bf16[2,608,16], index: 0, kind: input, shape index: {}]   ;;  %s12771_s1 = inlined_call_operand.vmem [shape: bf16[16,128], index: 1, kind: input, shape index: {}]   ;;  %s12772_s2 = inlined_call_operand.vmem [shape: bf16[3,384,128], index: 2, kind: input, shape index: {}]   ;;  %s12773_s3 = inlined_call_operand.vmem [shape: bf16[128,16], index: 3, kind: input, shape index: {}]   ;;  %s12774_s4 = inlined_call_operand.vmem [shape: f32[1,128], index: 4, kind: input, shape index: {}]   ;;  %s12775_s5 = inlined_call_operand.vmem [shape: f32[1,128], index: 5, kind: input, shape index: {}]   ;;  %s12776_s6 = inlined_call_operand.vmem [shape: f32[1,16], index: 6, kind: input, shape index: {}]   ;;  %s12777_s7 = inlined_call_operand.vmem [shape: bf16[2,512,16], index: 7, kind: output, shape index: {}]  }
   0x1 LB: > { %s6722_s25 = sadd.s32 4294967295, %s8132_s24   ;;  %p6726_p0 = scmp.ge.s32.totalorder %s8132_s24, 1  ;;  %s8132_s24 = sphi %s8177_s24, %s17_s24  }
   0x2   : > { %p237_p1 = scmp.lt.s32.totalorder %s8132_s24, 3 }
   0x4   : > { %p238_p2 = pnand %p6726_p0, %p237_p1 }
   0x6   : > { %241 = sbr.rel (%p238_p2) target bundleno = 1480 (0x5c8), region = 48 }
   0xd   : > { %v7887_v0 = vld [vmem:[%s12771_s1] sm:$0xff]   ;;  %p269_p3 = scmp.lt.s32.totalorder %s6722_s25, 1  ;;  %v12778_v1 = vmov 0   ;;  %vm561_vm0 = vcmask 130048   ;;  %v7925_v13 = vld [vmem:[%s12772_s2 + $0xc8] sm:$0xff]   ;;  %v7926_v16 = vld [vmem:[%s12772_s2 + $0xd0] sm:$0xff]  }
   0xe   : > { %7476 = vmatprep.subr.bf16.mxu0 %v7887_v0  ;;  %7874 = vmatprep.subr.bf16.mxu1 %v7887_v0  ;;  %v7924_v9 = vld [vmem:[%s12772_s2 + $0xc0] sm:$0xff]   ;;  %v7927_v19 = vld [vmem:[%s12772_s2 + $0xd8] sm:$0xff]   ;;  %v7929_v27 = vld [vmem:[%s12772_s2 + $0xe8] sm:$0xff]  }
   0xf   : > { %s14089_s25 = smov (!%p269_p3, %s6722_s25), 1  ;;  %7477 = vmatpush3.bf16.msra.mxu0 %v7887_v0  ;;  %7875 = vmatpush3.bf16.msra.mxu1 %v7887_v0  ;;  %v7928_v22 = vld [vmem:[%s12772_s2 + $0xe0] sm:$0xff]   ;;  %v7930_v30 = vld [vmem:[%s12772_s2 + $0xf0] sm:$0xff]   ;;  %v7931_v33 = vld [vmem:[%s12772_s2 + $0xf8] sm:$0xff]  }
  0x10   : > { %s7876_s28 = smul.u32 304, %s14089_s25  ;;  %3071 = vmatprep.subr.bf16.mxu1 %v12778_v1  ;;  %v7932_v36 = vld [vmem:[%s12772_s2 + $0x100] sm:$0xff]   ;;  %v7933_v48 = vld [vmem:[%s12772_s2 + $0x108] sm:$0xff]   ;;  %v7935_v50 = vld [vmem:[%s12772_s2 + $0x110] sm:$0xff]   ;;  %s7052_s17 = sshll.u32 %s14089_s25, 8 }
  0x11   : > { %v7934_v47 = vld [vmem:[%s12772_s2 + $0x140] sm:$0xff]   ;;  %v7936_v49 = vld [vmem:[%s12772_s2 + $0x148] sm:$0xff]   ;;  %v7938_v51 = vld [vmem:[%s12772_s2 + $0x150] sm:$0xff]   ;;  %s12460_s21 = scalar_lea.vmem %s12777_s7, %s7052_s17 }
  0x12   : > { %s8195_s8 = scalar_lea.vmem %s12770_s0, %s7876_s28  ;;  %7554 = vmatprep.subr.bf16.mxu0 %v7934_v47  ;;  %v7937_v53 = vld [vmem:[%s12772_s2 + $0x118] sm:$0xff]   ;;  %v7941_v56 = vld [vmem:[%s12772_s2 + $0x120] sm:$0xff]   ;;  %v7943_v58 = vld [vmem:[%s12772_s2 + $0x128] sm:$0xff]  }
  0x13   : > { %v7888_v2 = vld [vmem:[%s8195_s8] sm:$0xff]   ;;  %v7889_v3 = vld [vmem:[%s8195_s8 + $0x8] sm:$0xff]   ;;  %v7890_v4 = vld [vmem:[%s8195_s8 + $0x10] sm:$0xff]  }
  0x14   : > { %7478 = vmatprep.mubr.msk.bf16.mxu0 %vm561_vm0, %v7888_v2  ;;  %v7891_v5 = vld [vmem:[%s8195_s8 + $0x18] sm:$0xff]   ;;  %v7892_v6 = vld [vmem:[%s8195_s8 + $0x20] sm:$0xff]   ;;  %v7893_v7 = vld [vmem:[%s8195_s8 + $0x28] sm:$0xff]   ;;  %v1089_v2 = vlaneseq }
  0x15   : > { %7479 = vmatmul.mubr.msk.bf16.vlgmr.msra.gmra.mrb[0].mxu0 %vm561_vm0, %v7889_v3  ;;  %v7894_v8 = vld [vmem:[%s8195_s8 + $0x30] sm:$0xff]   ;;  %v7908_v10 = vld [vmem:[%s8195_s8 + $0xa0] sm:$0xff]   ;;  %v7909_v11 = vld [vmem:[%s8195_s8 + $0xa8] sm:$0xff]  }
  0x16   : > { %7482 = vmatprep.mubr.msk.bf16.mxu0 %vm561_vm0, %v7890_v4  ;;  %7518 = vmatprep.mubr.msk.bf16.mxu1 %vm561_vm0, %v7908_v10  ;;  %v7910_v12 = vld [vmem:[%s8195_s8 + $0xb0] sm:$0xff]   ;;  %v7895_v14 = vld [vmem:[%s8195_s8 + $0x38] sm:$0xff]   ;;  %v7896_v15 = vld [vmem:[%s8195_s8 + $0x40] sm:$0xff]   ;;  %v8367_v3 = vshrl.u32 %v1089_v2, 7 }
  0x17   : > { %7519 = vmatmul.mubr.msk.bf16.vlgmr.msra.gmra.mrb[0].mxu1 %vm561_vm0, %v7909_v11  ;;  %v7911_v17 = vld [vmem:[%s8195_s8 + $0xb8] sm:$0xff]   ;;  %v7912_v18 = vld [vmem:[%s8195_s8 + $0xc0] sm:$0xff]   ;;  %v7897_v20 = vld [vmem:[%s8195_s8 + $0x48] sm:$0xff]   ;;  %7555 = vmatpush3.bf16.msra.mxu0 %v7934_v47 }
  0x18   : > { %7522 = vmatprep.mubr.msk.bf16.mxu1 %vm561_vm0, %v7910_v12  ;;  %3072 = vmatpush1.bf16.msra.mxu1 %v7924_v9  ;;  %v7898_v21 = vld [vmem:[%s8195_s8 + $0x50] sm:$0xff]   ;;  %v7913_v23 = vld [vmem:[%s8195_s8 + $0xc8] sm:$0xff]   ;;  %v7899_v25 = vld [vmem:[%s8195_s8 + $0x58] sm:$0xff]   ;;  %12976 = vst [vmem:[#allocation3_spill] sm:$0xff] %v8367_v3  ;;  %v8370_v4 = vadd.s32 16, %v8367_v3  ;;  %v8383_v9 = vadd.s32 40, %v8367_v3 }
  0x19   : > { %3073 = vmatprep.subr.bf16.mxu1 %v12778_v1  ;;  %v7914_v24 = vld [vmem:[%s8195_s8 + $0xd0] sm:$0xff]   ;;  %v7900_v26 = vld [vmem:[%s8195_s8 + $0x60] sm:$0xff]   ;;  %v7915_v28 = vld [vmem:[%s8195_s8 + $0xd8] sm:$0xff]   ;;  %7556 = vmatprep.subr.bf16.mxu0 %v7936_v49  ;;  %v1166_v11 = vand.u32 31, %v8367_v3  ;;  %v1242_v12 = vshra.s32 %v8367_v3, 5  ;;  %v8449_v47 = vadd.s32 208, %v8367_v3 }
  0x1a   : > { %v7916_v29 = vld [vmem:[%s8195_s8 + $0xe0] sm:$0xff]   ;;  %v7901_v31 = vld [vmem:[%s8195_s8 + $0x68] sm:$0xff]   ;;  %v7902_v32 = vld [vmem:[%s8195_s8 + $0x70] sm:$0xff]   ;;  %v1244_v10 = vshra.s32 %v8370_v4, 5 }
  0x1b   : > { %v7917_v34 = vld [vmem:[%s8195_s8 + $0xe8] sm:$0xff]   ;;  %v7918_v35 = vld [vmem:[%s8195_s8 + $0xf0] sm:$0xff]   ;;  %v7903_v37 = vld [vmem:[%s8195_s8 + $0x78] sm:$0xff]   ;;  %7557 = vmatpush3.bf16.msra.mxu0 %v7936_v49  ;;  %vm8500_vm3 = vcmp.ge.s32.totalorder %v1166_v11, 1  ;;  %vm8506_vm4 = vcmp.ge.s32.totalorder %v1242_v12, 1  ;;  %vm8538_vm6 = vcmp.le.s32.totalorder %v1242_v12, 16 }
  0x1c   : > { %3074 = vmatpush1.bf16.msra.mxu1 %v7925_v13  ;;  %v7904_v38 = vld [vmem:[%s8195_s8 + $0x80] sm:$0xff]   ;;  %v7919_v39 = vld [vmem:[%s8195_s8 + $0xf8] sm:$0xff]   ;;  %v7905_v41 = vld [vmem:[%s8195_s8 + $0x88] sm:$0xff]   ;;  %7558 = vmatprep.subr.bf16.mxu0 %v7938_v51  ;;  %v8389_v13 = vadd.s32 80, %v8367_v3  ;;  %vm8482_vm2 = vcmp.ge.s32.totalorder %v1244_v10, 1  ;;  %vm8518_vm5 = vcmp.le.s32.totalorder %v1244_v10, 16 }
  0x1d   : > { %7483 = vmatmul.mubr.msk.bf16.gmra.mrb[4].mxu0 %vm561_vm0, %v7891_v5  ;;  %3075 = vmatprep.subr.bf16.mxu1 %v12778_v1  ;;  %v7920_v40 = vld [vmem:[%s8195_s8 + $0x100] sm:$0xff]   ;;  %v7906_v42 = vld [vmem:[%s8195_s8 + $0x90] sm:$0xff]   ;;  %v7921_v43 = vld [vmem:[%s8195_s8 + $0x108] sm:$0xff]   ;;  %v8373_v5 = vadd.s32 8, %v8367_v3  ;;  %v13063_v12 = vmov 0 }
  0x1e   : > { %7486 = vmatprep.mubr.msk.bf16.mxu0 %vm561_vm0, %v7892_v6  ;;  %v7922_v44 = vld [vmem:[%s8195_s8 + $0x110] sm:$0xff]   ;;  %v7907_v45 = vld [vmem:[%s8195_s8 + $0x98] sm:$0xff]   ;;  %v7939_v52 = vld [vmem:[%s8195_s8 + $0x120] sm:$0xff]   ;;  %v8376_v6 = vadd.s32 48, %v8367_v3 }
  0x1f   : > { %7523 = vmatmul.mubr.msk.bf16.gmra.mrb[4].mxu1 %vm561_vm0, %v7911_v17  ;;  %v7923_v46 = vld [vmem:[%s8195_s8 + $0x118] sm:$0xff]   ;;  %v7940_v54 = vld [vmem:[%s8195_s8 + $0x128] sm:$0xff]   ;;  %7559 = vmatpush3.bf16.msra.mxu0 %v7938_v51  ;;  %v7944_v57 = vld [vmem:[%s12772_s2 + $0x160] sm:$0xff]   ;;  %v8546_v51 = vadd.s32 352, %v8367_v3 }
  0x20   : > { %7526 = vmatprep.mubr.msk.bf16.mxu1 %vm561_vm0, %v7912_v18  ;;  %3076 = vmatpush1.bf16.msra.mxu1 %v7926_v16  ;;  %v7942_v55 = vld [vmem:[%s12772_s2 + $0x158] sm:$0xff]   ;;  %v7946_v59 = vld [vmem:[%s12772_s2 + $0x168] sm:$0xff]   ;;  %v7945_v60 = vld [vmem:[%s12772_s2 + $0x130] sm:$0xff]   ;;  %v8396_v16 = vadd.s32 72, %v8367_v3  ;;  %v1172_v17 = vand.u32 31, %v8376_v6  ;;  %v1248_v18 = vshra.s32 %v8376_v6, 5 }
  0x21   : > { %3077 = vmatprep.subr.bf16.mxu1 %v12778_v1  ;;  %7560 = vmatprep.subr.bf16.mxu0 %v7942_v55  ;;  %v7947_v61 = vld [vmem:[%s12772_s2 + $0x170] sm:$0xff]   ;;  %v7948_v62 = vld [vmem:[%s12772_s2 + $0x138] sm:$0xff]   ;;  %v8364_v0 = vld [vmem:[%s12772_s2 + $0x80] sm:$0xff]   ;;  %12998 = vst [vmem:[#allocation13_spill] sm:$0xff] %v8546_v51  ;;  %v13027_v6 = vshra.s32 %v8383_v9, 5  ;;  %v8697_v9 = vadd.s32 488, %v8367_v3 }
  0x22   : > { %v7949_v63 = vld [vmem:[%s12772_s2 + $0x178] sm:$0xff]   ;;  %vm8578_vm9 = vcmp.le.s32.totalorder %v1172_v17, 16  ;;  %vm8584_vm10 = vcmp.ge.s32.totalorder %v1248_v18, 1  ;;  %vm8631_vm14 = vcmp.le.s32.totalorder %v1248_v18, 16  ;;  %v13022_v17 = vmov 0 }
  0x23   : > { %7561 = vmatpush3.bf16.msra.mxu0 %v7942_v55  ;;  %v8463_v55 = vadd.s32 240, %v8367_v3  ;;  %v8659_v18 = vadd.s32 448, %v8367_v3  ;;  %v13030_v11 = vmov %v13027_v6  ;;  %13036 = vst [vmem:[#allocation26_spill] sm:$0xff] %v8697_v9 }
  0x24   : > { %3078 = vmatpush1.bf16.msra.mxu1 %v7927_v19  ;;  %7562 = vmatprep.subr.bf16.mxu0 %v7944_v57 }
  0x25   : > { %7487 = vmatmul.mubr.msk.bf16.gmra.mrb[8].mxu0 %vm561_vm0, %v7893_v7  ;;  %3079 = vmatprep.subr.bf16.mxu1 %v12778_v1  ;;  %v8379_v7 = vadd.s32 32, %v8367_v3  ;;  %12978 = vst [vmem:[#allocation5_spill] sm:$0xff] %v8463_v55  ;;  %13024 = vst [vmem:[#allocation22_spill] sm:$0xff] %v8659_v18 }
  0x26   : > { %7490 = vmatprep.mubr.msk.bf16.mxu0 %vm561_vm0, %v7894_v8  ;;  %v1168_v8 = vand.u32 31, %v8370_v4  ;;  %v8534_v4 = vadd.s32 328, %v8367_v3 }
  0x27   : > { %7527 = vmatmul.mubr.msk.bf16.gmra.mrb[8].mxu1 %vm561_vm0, %v7913_v23  ;;  %7563 = vmatpush3.bf16.msra.mxu0 %v7944_v57  ;;  %v1170_v19 = vand.u32 31, %v8379_v7  ;;  %v8407_v23 = vadd.s32 112, %v8367_v3  ;;  %v8490_v57 = vadd.s32 272, %v8367_v3 }
  0x28   : > { %7530 = vmatprep.mubr.msk.bf16.mxu1 %vm561_vm0, %v7914_v24  ;;  %3080 = vmatpush1.bf16.msra.mxu1 %v7928_v22  ;;  %v8410_v24 = vadd.s32 104, %v8367_v3  ;;  %vm8476_vm1 = vcmp.le.s32.totalorder %v1168_v8, 16  ;;  %v8526_v8 = vadd.s32 320, %v8367_v3 }
  0x29   : > { %3081 = vmatprep.subr.bf16.mxu1 %v12778_v1  ;;  %7564 = vmatprep.subr.bf16.mxu0 %v7946_v59  ;;  %12986 = vst [vmem:[#allocation9_spill] sm:$0xff] %v8490_v57  ;;  %vm8609_vm11 = vcmp.ge.s32.totalorder %v1170_v19, 1  ;;  %vm1624_vm13 = vmand %vm8476_vm1, %vm8482_vm2  ;;  %v13018_v19 = vmov 0 }
  0x2a   : > { %v13019_v19 = vsel %vm8631_vm14, 4294967295, %v13018_v19  ;;  %vm8668_vm15 = vmand %vm1624_vm13, %vm8518_vm5  ;;  %vm8675_vm14 = vcmp.ge.s32.totalorder %v13027_v6, 1  ;;  %v13040_v6 = vand.u32 31, %v8389_v13 }
  0x2b   : > { %7565 = vmatpush3.bf16.msra.mxu0 %v7946_v59  ;;  %v8471_v59 = vadd.s32 256, %v8367_v3  ;;  %vm13037_vm1 = vmand %vm8500_vm3, %vm8506_vm4 }
  0x2c   : > { %3082 = vmatpush1.bf16.msra.mxu1 %v7929_v27  ;;  %7566 = vmatprep.subr.bf16.mxu0 %v7947_v61  ;;  %v8415_v27 = vadd.s32 128, %v8367_v3  ;;  %vm8706_vm2 = vmand %vm13037_vm1, %vm8538_vm6  ;;  %vm8713_vm5 = vcmp.le.s32.totalorder %v13040_v6, 16 }
  0x2d   : > { %7491 = vmatmul.mubr.msk.bf16.gmra.mrb[12].mxu0 %vm561_vm0, %v7895_v14  ;;  %3083 = vmatprep.subr.bf16.mxu1 %v12778_v1  ;;  %v1243_v14 = vshra.s32 %v8373_v5, 5  ;;  %12980 = vst [vmem:[#allocation7_spill] sm:$0xff] %v8471_v59  ;;  %v8571_v5 = vadd.s32 400, %v8367_v3  ;;  %vm1628_vm1 = vmand %vm8578_vm9, %vm8584_vm10 }
  0x2e   : > { %7494 = vmatprep.mubr.msk.bf16.mxu0 %vm561_vm0, %v7896_v15  ;;  %v8393_v15 = vadd.s32 64, %v8367_v3 }
  0x2f   : > { %7531 = vmatmul.mubr.msk.bf16.gmra.mrb[12].mxu1 %vm561_vm0, %v7915_v28  ;;  %7567 = vmatpush3.bf16.msra.mxu0 %v7947_v61  ;;  %v8418_v28 = vadd.s32 136, %v8367_v3  ;;  %vm8550_vm7 = vcmp.ge.s32.totalorder %v1243_v14, 1  ;;  %vm8556_vm8 = vcmp.le.s32.totalorder %v1243_v14, 16  ;;  %13004 = vst [vmem:[#allocation15_spill] sm:$0xff] %v8571_v5  ;;  %v8574_v14 = vadd.s32 384, %v8367_v3 }
  0x30   : > { %7534 = vmatprep.mubr.msk.bf16.mxu1 %vm561_vm0, %v7916_v29  ;;  %3084 = vmatpush1.bf16.msra.mxu1 %v7930_v30  ;;  %v8623_v30 = vadd.s32 424, %v8367_v3  ;;  %v8639_v29 = vadd.s32 464, %v8367_v3  ;;  %v13031_v61 = vmov 0  ;;  %vm1775_vm3 = vmand %vm8550_vm7, %vm8556_vm8  ;;  %v13047_v6 = vand.u32 31, %v8393_v15 }
  0x31   : > { %3085 = vmatprep.subr.bf16.mxu1 %v12778_v1  ;;  %7568 = vmatprep.subr.bf16.mxu0 %v7949_v63  ;;  %13005 = vst [vmem:[#allocation16_spill] sm:$0xff] %v8574_v14  ;;  %vm13068_vm8 = vnez %v13019_v19  ;;  %v8839_v5 = vadd.s32 544, %v8367_v3 }
  0x32   : > { %13017 = vst [vmem:[#allocation20_spill] sm:$0xff] %v8623_v30  ;;  %13020 = vst [vmem:[#allocation21_spill] sm:$0xff] %v8639_v29  ;;  %vm8735_vm4 = vcmp.ge.s32.totalorder %v13047_v6, 1  ;;  %v8748_v29 = vadd.s32 512, %v8367_v3  ;;  %v13131_v30 = vmov 0 }
  0x33   : > { %7569 = vmatpush3.bf16.msra.mxu0 %v7949_v63  ;;  %v8514_v63 = vadd.s32 304, %v8367_v3  ;;  %13078 = vst [vmem:[#allocation31_spill] sm:$0xff] %v8839_v5 }
  0x34   : > { %3086 = vmatpush1.bf16.msra.mxu1 %v7931_v33  ;;  %3793 = vmatprep.subr.bf16.mxu0 %v12778_v1  ;;  %v8600_v33 = vadd.s32 416, %v8367_v3  ;;  %13053 = vst [vmem:[#allocation28_spill] sm:$0xff] %v8748_v29  ;;  %v8918_v29 = vadd.s32 552, %v8367_v3 }
  0x35   : > { %7495 = vmatmul.mubr.msk.bf16.gmra.mrb[16].mxu0 %vm561_vm0, %v7897_v20  ;;  %3087 = vmatprep.subr.bf16.mxu1 %v12778_v1  ;;  %v8402_v20 = vadd.s32 96, %v8367_v3  ;;  %12993 = vst [vmem:[#allocation12_spill] sm:$0xff] %v8514_v63 }
  0x36   : > { %7498 = vmatprep.mubr.msk.bf16.mxu0 %vm561_vm0, %v7898_v21  ;;  %v12780_v21 = vshra.s32 %v8379_v7, 5  ;;  %13012 = vst [vmem:[#allocation19_spill] sm:$0xff] %v8600_v33  ;;  %v13050_v33 = vshra.s32 %v8393_v15, 5  ;;  %13108 = vst [vmem:[#allocation32_spill] sm:$0xff] %v8918_v29 }
  0x37   : > { %7535 = vmatmul.mubr.msk.bf16.gmra.mrb[16].mxu1 %vm561_vm0, %v7917_v34  ;;  %v13074_v19 = vshra.s32 %v8402_v20, 5 }
  0x38   : > { %7538 = vmatprep.mubr.msk.bf16.mxu1 %vm561_vm0, %v7918_v35  ;;  %3088 = vmatpush1.bf16.msra.mxu1 %v7932_v36  ;;  %v8429_v35 = vadd.s32 160, %v8367_v3  ;;  %v8432_v36 = vadd.s32 168, %v8367_v3  ;;  %vm8615_vm12 = vcmp.ge.s32.totalorder %v12780_v21, 1  ;;  %vm8741_vm6 = vcmp.ge.s32.totalorder %v13050_v33, 1 }
  0x39   : > { %3089 = vmatprep.subr.bf16.mxu1 %v12778_v1 }
  0x3c   : > { %3090 = vmatpush1.bf16.msra.mxu1 %v7933_v48  ;;  %v8452_v48 = vadd.s32 200, %v8367_v3 }
  0x3d   : > { %7499 = vmatmul.mubr.msk.bf16.gmra.mrb[20].mxu0 %vm561_vm0, %v7899_v25  ;;  %3091 = vmatprep.subr.bf16.mxu1 %v12778_v1  ;;  %v8687_v25 = vadd.s32 456, %v8367_v3 }
  0x3e   : > { %7502 = vmatprep.mubr.msk.bf16.mxu0 %vm561_vm0, %v7900_v26 }
  0x3f   : > { %7539 = vmatmul.mubr.msk.bf16.gmra.mrb[20].mxu1 %vm561_vm0, %v7919_v39  ;;  %v8605_v39 = vld [vmem:[%s12774_s4] ss:$0 sm:$0xff]  ;;  %13033 = vst [vmem:[#allocation23_spill] sm:$0xff] %v8687_v25 }
  0x40   : > { %7542 = vmatprep.mubr.msk.bf16.mxu1 %vm561_vm0, %v7920_v40  ;;  %3092 = vmatpush1.bf16.msra.mxu1 %v7935_v50  ;;  %v8438_v40 = vadd.s32 176, %v8367_v3  ;;  %v8498_v50 = vadd.s32 296, %v8367_v3 }
  0x41   : > { %3093 = vmatprep.subr.bf16.mxu1 %v12778_v1 }
  0x42   : > { %12988 = vst [vmem:[#allocation11_spill] sm:$0xff] %v8498_v50 }
  0x44   : > { %3094 = vmatpush1.bf16.msra.mxu1 %v7937_v53  ;;  %v7953_v53 = vld [vmem:[%s12772_s2] sm:$0xff]  }
  0x45   : > { %7503 = vmatmul.mubr.msk.bf16.gmra.mrb[24].mxu0 %vm561_vm0, %v7901_v31  ;;  %3095 = vmatprep.subr.bf16.mxu1 %v12778_v1  ;;  %v13021_v31 = vshra.s32 %v8379_v7, 5 }
  0x46   : > { %7506 = vmatprep.mubr.msk.bf16.mxu0 %vm561_vm0, %v7902_v32  ;;  %v8424_v32 = vadd.s32 144, %v8367_v3 }
  0x47   : > { %7543 = vmatmul.mubr.msk.bf16.gmra.mrb[24].mxu1 %vm561_vm0, %v7921_v43  ;;  %v8836_v43 = vadd.s32 560, %v8367_v3 }
  0x48   : > { %7546 = vmatprep.mubr.msk.bf16.mxu1 %vm561_vm0, %v7922_v44  ;;  %3096 = vmatpush1.bf16.msra.mxu1 %v7941_v56  ;;  %v8444_v44 = vadd.s32 192, %v8367_v3  ;;  %v8466_v56 = vadd.s32 232, %v8367_v3  ;;  %v13139_v49 = vand.u32 31, %v8424_v32 }
  0x49   : > { %3097 = vmatprep.subr.bf16.mxu1 %v12778_v1  ;;  %13077 = vst [vmem:[#allocation30_spill] sm:$0xff] %v8836_v43 }
  0x4a   : > { %12979 = vst [vmem:[#allocation6_spill] sm:$0xff] %v8466_v56  ;;  %v13121_v56 = vmov 0 }
  0x4c   : > { %3098 = vmatpush1.bf16.msra.mxu1 %v7943_v58  ;;  %v8725_v58 = vadd.s32 528, %v8367_v3 }
  0x4d   : > { %7507 = vmatmul.mubr.msk.bf16.gmra.mrb[28].mxu0 %vm561_vm0, %v7903_v37  ;;  %3099 = vmatprep.subr.bf16.mxu1 %v12778_v1 }
  0x4e   : > { %7510 = vmatprep.mubr.msk.bf16.mxu0 %vm561_vm0, %v7904_v38  ;;  %v8594_v38 = vadd.s32 432, %v8367_v3  ;;  %13046 = vst [vmem:[#allocation27_spill] sm:$0xff] %v8725_v58 }
  0x4f   : > { %7547 = vmatmul.mubr.msk.bf16.gmra.mrb[28].mxu1 %vm561_vm0, %v7923_v46  ;;  %v8591_v46 = vadd.s32 392, %v8367_v3 }
  0x50   : > { %7550 = vmatprep.mubr.msk.bf16.mxu1 %vm561_vm0, %v7939_v52  ;;  %3100 = vmatpush1.bf16.msra.mxu1 %v7945_v60  ;;  %v8458_v52 = vadd.s32 224, %v8367_v3  ;;  %v8474_v60 = vadd.s32 264, %v8367_v3  ;;  %13011 = vst [vmem:[#allocation18_spill] sm:$0xff] %v8594_v38  ;;  %v12798_v38 = vmov 0.0  }
  0x51   : > { %3101 = vmatprep.subr.bf16.mxu1 %v12778_v1  ;;  %v8495_v1 = vadd.s32 288, %v8367_v3  ;;  %13010 = vst [vmem:[#allocation17_spill] sm:$0xff] %v8591_v46  ;;  %v8694_v46 = vadd.s32 480, %v8367_v3 }
  0x52   : > { %12977 = vst [vmem:[#allocation4_spill] sm:$0xff] %v8458_v52  ;;  %12981 = vst [vmem:[#allocation8_spill] sm:$0xff] %v8474_v60 }
  0x53   : > { %12987 = vst [vmem:[#allocation10_spill] sm:$0xff] %v8495_v1  ;;  %13035 = vst [vmem:[#allocation25_spill] sm:$0xff] %v8694_v46 }
  0x54   : > { %3102 = vmatpush1.bf16.msra.mxu1 %v7948_v62 }
  0x55   : > { %7511 = vmatmul.mubr.msk.bf16.gmra.mrb[32].mxu0 %vm561_vm0, %v7905_v41  ;;  %7634 = vmatprep.subr.bf16.mxu1 %v8364_v0  ;;  %v8566_v41 = vadd.s32 360, %v8367_v3 }
  0x56   : > { %7514 = vmatprep.mubr.msk.bf16.mxu0 %vm561_vm0, %v7906_v42  ;;  %v8531_v42 = vadd.s32 336, %v8367_v3 }
  0x57   : > { %7551 = vmatmul.mubr.msk.bf16.gmra.mrb[32].mxu1 %vm561_vm0, %v7940_v54  ;;  %v8563_v54 = vadd.s32 368, %v8367_v3  ;;  %13003 = vst [vmem:[#allocation14_spill] sm:$0xff] %v8566_v41 }
  0x58   : > { %v13079_v25 = vand.u32 31, %v8531_v42  ;;  %v13082_v46 = vshra.s32 %v8531_v42, 5 }
  0x5a   : > { %vm8845_vm9 = vcmp.le.s32.totalorder %v13079_v25, 16  ;;  %vm8851_vm10 = vcmp.ge.s32.totalorder %v13082_v46, 1  ;;  %v13087_v25 = vmov 0  ;;  %v13089_v46 = vand.u32 31, %v8407_v23 }
  0x5d   : > { %7515 = vmatmul.mubr.msk.bf16.gmra.mrb[36].mxu0 %vm561_vm0, %v7907_v45  ;;  %v13013_v45 = vmov 0  ;;  %vm8652_vm0 = vcmp.le.s32.totalorder %v13021_v31, 16 }
  0x5e   : > { %v13014_v45 = vsel %vm8609_vm11, 4294967295, %v13013_v45  ;;  %v13023_v17 = vsel %vm8652_vm0, 4294967295, %v13022_v17  ;;  %vm8681_vm11 = vcmp.le.s32.totalorder %v13030_v11, 16 }
  0x5f   : > { %v13032_v61 = vsel %vm8681_vm11, 4294967295, %v13031_v61  ;;  %vm13061_vm7 = vnez %v13014_v45  ;;  %v13189_v45 = vmov 0 }
  0xe8   : > { %v7480_v26 = vpop.f32.mrb[0].mxu0 }
  0xe9   : > { %v719_v21 = vadd.f32 %v7480_v26, %v8605_v39  ;;  %v710_v50 = vpop.f32.mrb[1].mxu0 }
  0xea   : > { %v711_v26 = vadd.f32 %v8605_v39, %v710_v50  ;;  %v7481_v31 = vpop.f32.mrb[2].mxu0  ;;  %v8690_v50 = vadd.s32 496, %v8367_v3  ;;  %v7520_v10 = vpop.f32.mrb[0].mxu1 }
  0xeb   : > { %v1015_v31 = vmax.f32 %v719_v21, 0.0  ;;  %v713_v34 = vpop.f32.mrb[3].mxu0 }
  0xec   : > { %13034 = vst [vmem:[#allocation24_spill] sm:$0xff] %v8690_v50  ;;  %v1013_v11 = vmax.f32 %v711_v26, 0.0  ;;  %v714_v21 = vadd.f32 %v8605_v39, %v713_v34  ;;  %v13043_v26 = vshra.s32 %v8389_v13, 5  ;;  %v13083_v50 = vmov 0 }
  0xed   : > { %v2004_v34 = vsel %vm8668_vm15, %v1015_v31, 0.0  ;;  %v13054_v31 = vshra.s32 %v8389_v13, 5  ;;  %v13084_v50 = vsel %vm8851_vm10, 4294967295, %v13083_v50 }
  0xee   : > { %vm8719_vm13 = vcmp.ge.s32.totalorder %v13043_v26, 1  ;;  %v8751_v14 = vpack.c.bf16 %v12798_v38, %v2004_v34  ;;  %v1014_v6 = vmax.f32 %v714_v21, 0.0  ;;  %v2002_v33 = vsel %vm8706_vm2, %v1013_v11, 0.0 }
  0xef   : > { %vm8761_vm0 = vcmp.le.s32.totalorder %v13054_v31, 16  ;;  %v13057_v34 = vshra.s32 %v8393_v15, 5  ;;  %v13058_v21 = vmov 0  ;;  %v8785_v38 = vadd.s32 520, %v8367_v3 }
  0xf0   : > { %2117 = vst [vmem:[#allocation2 + $0x18] sm:$0xff] %v8751_v14  ;;  %v2003_v13 = vsel %vm1775_vm3, %v1014_v6, 0.0  ;;  %v7484_v31 = vpop.f32.mrb[4].mxu0  ;;  %v13062_v15 = vshra.s32 %v8396_v16, 5  ;;  %v2167_v37 = vshrl.u32 %v8751_v14, 16  ;;  %v13140_v26 = vmov 0 }
  0xf1   : > { %vm8779_vm15 = vcmp.le.s32.totalorder %v13057_v34, 16  ;;  %13060 = vst [vmem:[#allocation29_spill] sm:$0xff] %v8785_v38  ;;  %v2078_v62 = vpack.c.bf16 %v2003_v13, %v2002_v33  ;;  %v8788_v11 = vadd.f32 %v7484_v31, %v8605_v39  ;;  %v726_v2 = vpop.f32.mrb[5].mxu0  ;;  %v13066_v34 = vmov 0 }
  0xf2   : > { %v13059_v21 = vsel %vm8779_vm15, 4294967295, %v13058_v21  ;;  %vm8796_vm2 = vcmp.ge.s32.totalorder %v13062_v15, 1  ;;  %v13065_v6 = vmov %v13062_v15  ;;  %v2163_v31 = vshll.u32 %v8751_v14, 16 }
  0xf3   : > { %v13064_v12 = vsel %vm8796_vm2, 4294967295, %v13063_v12  ;;  %vm8802_vm3 = vcmp.le.s32.totalorder %v13065_v6, 16  ;;  %vm8816_vm2 = vmand %vm1628_vm1, %vm13068_vm8  ;;  %v13069_v15 = vmov 0  ;;  %v8821_v16 = vadd.f32 %v8605_v39, %v726_v2  ;;  %v7485_v6 = vpop.f32.mrb[6].mxu0  ;;  %2116 = vst [vmem:[#allocation2] sm:$0xff] %v2078_v62 }
  0xf4   : > { %v13067_v34 = vsel %vm8802_vm3, 4294967295, %v13066_v34  ;;  %v13070_v15 = vsel %vm8816_vm2, 4294967295, %v13069_v15  ;;  %v13071_v33 = vand.u32 31, %v8402_v20  ;;  %v13072_v13 = vmov 0  ;;  %v729_v9 = vpop.f32.mrb[7].mxu0  ;;  %vm13086_vm8 = vmand %vm13061_vm7, %vm8615_vm12 }
  0xf5   : > { %vm8831_vm15 = vcmp.ge.s32.totalorder %v13074_v19, 1  ;;  %v2158_v6 = vshll.u32 %v2078_v62, 16  ;;  %v13080_v19 = vmov 0  ;;  %vm13085_vm1 = vnez %v13023_v17  ;;  %vm13114_vm7 = vmand %vm8675_vm14, %vm8681_vm11 }
  0xf6   : > { %vm8825_vm3 = vcmp.ge.s32.totalorder %v13071_v33, 1  ;;  %v2577_v33 = vrot.slane %v2078_v62, 1  ;;  %v13081_v19 = vsel %vm8845_vm9, 4294967295, %v13080_v19  ;;  %v8868_v58 = vadd.f32 %v8605_v39, %v729_v9 }
  0xf7   : > { %v13073_v13 = vsel %vm8825_vm3, 4294967295, %v13072_v13  ;;  %vm8863_vm3 = vmand %vm13086_vm8, %vm13085_vm1  ;;  %vm8872_vm9 = vcmp.le.s32.totalorder %v13089_v46, 16  ;;  %v13092_v17 = vshra.s32 %v8407_v23, 5  ;;  %v2156_v63 = vshrl.u32 %v2078_v62, 16 }
  0xf8   : > { %v13088_v25 = vsel %vm8863_vm3, 4294967295, %v13087_v25  ;;  %v2160_v1 = vrot.slane %v2158_v6, 1  ;;  %v13095_v9 = vrot.slane %v8751_v14, 1  ;;  %vm13096_vm12 = vcmask 1046528  }
  0xf9   : > { %vm8878_vm10 = vcmp.ge.s32.totalorder %v13092_v17, 1  ;;  %v13097_v46 = vmax.f32 %v8788_v11, 0.0  ;;  %v13098_v17 = vand.u32 31, %v8526_v8  ;;  %v13101_v62 = vshra.s32 %v8526_v8, 5 }
  0xfa   : > { %v2579_v60 = vsel %vm13096_vm12, %v2577_v33, %v13095_v9  ;;  %v2165_v33 = vrot.slane %v2163_v31, 1  ;;  %v13104_v9 = vmov 0.0   ;;  %v13105_v38 = vshra.s32 %v8531_v42, 5  ;;  %v7488_v31 = vpop.f32.mrb[8].mxu0 }
  0xfb   : > { %v2008_v59 = vsel %vm8816_vm2, %v13097_v46, 0.0  ;;  %vm8897_vm1 = vcmp.ge.s32.totalorder %v13098_v17, 1  ;;  %vm8903_vm8 = vcmp.ge.s32.totalorder %v13101_v62, 1  ;;  %2690 = vst [vmem:[#allocation2 + $0x10] sm:$0xff] %v2579_v60  ;;  %v13106_v17 = vmov 0  ;;  %v742_v41 = vpop.f32.mrb[9].mxu0 }
  0xfc   : > { %v8908_v46 = vpack.c.bf16 %v13104_v9, %v2008_v59  ;;  %vm8913_vm12 = vcmp.le.s32.totalorder %v13105_v38, 16  ;;  %v2161_v62 = vor.u32 %v2160_v1, %v2156_v63  ;;  %v13109_v59 = vshra.s32 %v8407_v23, 5 }
  0xfd   : > { %v13107_v17 = vsel %vm8913_vm12, 4294967295, %v13106_v17  ;;  %v13110_v60 = vmov 0  ;;  %v13112_v63 = vmax.f32 %v8821_v16, 0.0  ;;  %v13115_v38 = vshra.s32 %v8402_v20, 5 }
  0xfe   : > { %vm8926_vm2 = vcmp.le.s32.totalorder %v13109_v59, 16  ;;  %2119 = vst [vmem:[#allocation2 + $0x48] sm:$0xff] %v8908_v46  ;;  %v2179_v1 = vshll.u32 %v8908_v46, 16  ;;  %v13113_v59 = vmax.f32 %v8868_v58, 0.0  ;;  %v8959_v57 = vadd.f32 %v7488_v31, %v8605_v39 }
  0xff   : > { %v13111_v60 = vsel %vm8926_vm2, 4294967295, %v13110_v60  ;;  %v2006_v23 = vsel %vm8863_vm3, %v13112_v63, 0.0  ;;  %vm8953_vm12 = vcmp.le.s32.totalorder %v13115_v38, 16  ;;  %vm13118_vm3 = vsmask.f32 7424 }
 0x100   : > { %v2007_v42 = vsel %vm13114_vm7, %v13113_v59, 0.0  ;;  %v2166_v63 = vsel %vm13118_vm3, %v2161_v62, %v2165_v33  ;;  %13119 = vst [vmem:[#allocation33_spill] sm:$0xff] %v8959_v57  ;;  %v13120_v59 = vshra.s32 %v8526_v8, 5  ;;  %v2169_v20 = vor.u32 %v2167_v37, %v2165_v33  ;;  %vm13123_vm3 = vmand %vm8713_vm5, %vm8719_vm13 }
 0x101   : > { %v2080_v43 = vpack.c.bf16 %v2007_v42, %v2006_v23  ;;  %2496 = vst [vmem:[#allocation2 + $0x8] sm:$0xff] %v2166_v63  ;;  %v12850_v38 = vrot.slane %v8908_v46, 1  ;;  %vm8976_vm2 = vmand %vm13123_vm3, %vm8761_vm0  ;;  %v13124_v62 = vmov 0  ;;  %v8981_v8 = vadd.f32 %v8605_v39, %v742_v41  ;;  %v7489_v42 = vpop.f32.mrb[10].mxu0 }
 0x102   : > { %vm8963_vm7 = vcmp.le.s32.totalorder %v13120_v59, 16  ;;  %v13125_v62 = vsel %vm8976_vm2, 4294967295, %v13124_v62  ;;  %v13127_v37 = vshra.s32 %v8410_v24, 5  ;;  %v13128_v33 = vmov 0  ;;  %vm13134_vm5 = vmand %vm8735_vm4, %vm8741_vm6  ;;  %v745_v59 = vpop.f32.mrb[11].mxu0 }
 0x103   : > { %v13122_v56 = vsel %vm8963_vm7, 4294967295, %v13121_v56  ;;  %13126 = vst [vmem:[#allocation34_spill] sm:$0xff] %v13125_v62  ;;  %v2181_v31 = vrot.slane %v2179_v1, 1  ;;  %2118 = vst [vmem:[#allocation2 + $0x30] sm:$0xff] %v2080_v43  ;;  %v2171_v23 = vshll.u32 %v2080_v43, 16  ;;  %v2580_v41 = vrot.slane %v2080_v43, 1 }
 0x104   : > { %vm8985_vm7 = vcmp.ge.s32.totalorder %v13127_v37, 1  ;;  %v13130_v7 = vmov %v13127_v37  ;;  %vm13133_vm0 = vnez %v13059_v21  ;;  %v13135_v24 = vmov 0 }
 0x105   : > { %v13129_v33 = vsel %vm8985_vm7, 4294967295, %v13128_v33  ;;  %vm8991_vm11 = vcmp.le.s32.totalorder %v13130_v7, 16  ;;  %vm9004_vm13 = vmand %vm13134_vm5, %vm13133_vm0  ;;  %v2183_v42 = vshrl.u32 %v8908_v46, 16  ;;  %v2175_v1 = vshrl.u32 %v2080_v43, 16 }
 0x106   : > { %v13132_v30 = vsel %vm8991_vm11, 4294967295, %v13131_v30  ;;  %v13136_v24 = vsel %vm9004_vm13, 4294967295, %v13135_v24  ;;  %v9011_v7 = vadd.f32 %v8605_v39, %v745_v59  ;;  %vm13137_vm3 = vnez %v13067_v34 }
 0x107   : > { %vm13138_vm7 = vnez %v13064_v12  ;;  %vm9019_vm4 = vcmp.le.s32.totalorder %v13139_v49, 16  ;;  %v13142_v21 = vshra.s32 %v8424_v32, 5  ;;  %v13143_v43 = vmov 0 }
 0x108   : > { %v13141_v26 = vsel %vm9019_vm4, 4294967295, %v13140_v26  ;;  %v2173_v59 = vrot.slane %v2171_v23, 1  ;;  %v13145_v51 = vrot.slane %v8751_v14, 1  ;;  %vm13146_vm0 = vcmask 1046528  }
 0x109   : > { %vm9025_vm6 = vcmp.ge.s32.totalorder %v13142_v21, 1  ;;  %vm13147_vm5 = vmmov %vm13146_vm0  ;;  %v13148_v49 = vmax.f32 %v8959_v57, 0.0  ;;  %vm13149_vm11 = vnez %v13073_v13  ;;  %v13150_v23 = vand.u32 31, %v8415_v27  ;;  %v870_v21 = vpop.f32.mrb[1].mxu1 }
 0x10a   : > { %v13144_v43 = vsel %vm9025_vm6, 4294967295, %v13143_v43  ;;  %v2581_v37 = vsel %vm13146_vm0, %v13145_v51, %v2580_v41  ;;  %v2583_v63 = vsel %vm13147_vm5, %v2580_v41, %v12850_v38  ;;  %v13151_v14 = vmov 0 }
 0x10b   : > { %v2012_v29 = vsel %vm8976_vm2, %v13148_v49, 0.0  ;;  %vm9045_vm6 = vcmp.ge.s32.totalorder %v13150_v23, 1  ;;  %v13153_v51 = vshra.s32 %v8415_v27, 5  ;;  %v13154_v41 = vmov 0  ;;  %2691 = vst [vmem:[#allocation2 + $0x28] sm:$0xff] %v2581_v37  ;;  %2692 = vst [vmem:[#allocation2 + $0x40] sm:$0xff] %v2583_v63  ;;  %7570 = vmatprep.mubr.bf16.mxu0 %v2583_v63 }
 0x10c   : > { %v13152_v14 = vsel %vm9045_vm6, 4294967295, %v13151_v14  ;;  %v9056_v49 = vpack.c.bf16 %v13104_v9, %v2012_v29  ;;  %v13156_v38 = vmax.f32 %v8981_v8, 0.0  ;;  %v12874_v5 = vmax.f32 %v9011_v7, 0.0  ;;  %v7521_v37 = vpop.f32.mrb[2].mxu1 }
 0x10d   : > { %vm9051_vm0 = vcmp.ge.s32.totalorder %v13153_v51, 1  ;;  %v879_v57 = vadd.f32 %v7520_v10, %v8605_v39  ;;  %vm13157_vm5 = vnez %v13084_v50  ;;  %vm13158_vm4 = vnez %v13081_v19  ;;  %v873_v37 = vpop.f32.mrb[3].mxu1 }
 0x10e   : > { %v13155_v41 = vsel %vm9051_vm0, 4294967295, %v13154_v41  ;;  %v2010_v23 = vsel %vm9004_vm13, %v13156_v38, 0.0  ;;  %v9068_v51 = vor.u32 %v2183_v42, %v2181_v31  ;;  %vm13159_vm6 = vsmask.f32 7424  ;;  %2121 = vst [vmem:[#allocation2 + $0x78] sm:$0xff] %v9056_v49  ;;  %vm13170_vm2 = vmand %vm13158_vm4, %vm13157_vm5 }
 0x10f   : > { %v2174_v29 = vsel %vm13159_vm6, %v2169_v20, %v2173_v59  ;;  %v2177_v62 = vor.u32 %v2175_v1, %v2173_v59  ;;  %v13160_v38 = vshra.s32 %v8424_v32, 5  ;;  %v13161_v10 = vmov 0  ;;  %vm13163_vm6 = vmand %vm13138_vm7, %vm13137_vm3  ;;  %v7492_v59 = vpop.f32.mrb[12].mxu0 }
 0x110   : > { %v9082_v63 = vadd.f32 %v8605_v39, %v870_v21  ;;  %2497 = vst [vmem:[#allocation2 + $0x20] sm:$0xff] %v2174_v29  ;;  %v2195_v20 = vshll.u32 %v9056_v49, 16  ;;  %v2199_v42 = vshrl.u32 %v9056_v49, 16  ;;  %v2011_v32 = vsel %vm13163_vm6, %v12874_v5, 0.0  ;;  %v758_v55 = vpop.f32.mrb[13].mxu0  ;;  %vm13180_vm4 = vmand %vm8872_vm9, %vm8878_vm10 }
 0x111   : > { %vm9077_vm0 = vcmp.le.s32.totalorder %v13160_v38, 16  ;;  %v13164_v21 = vshra.s32 %v8415_v27, 5  ;;  %v2082_v1 = vpack.c.bf16 %v2011_v32, %v2010_v23  ;;  %v9107_v52 = vadd.f32 %v7492_v59, %v8605_v39  ;;  %v9112_v27 = vld [vmem:[%s12772_s2 + $0x88] sm:$0xff]   ;;  %vm13191_vm9 = vmand %vm13149_vm11, %vm8831_vm15 }
 0x112   : > { %v13162_v10 = vsel %vm9077_vm0, 4294967295, %v13161_v10  ;;  %vm13167_vm0 = vsmask.f32 7424  ;;  %vm13169_vm6 = vnez %v13107_v17  ;;  %v13174_v23 = vmov 0  ;;  %v7493_v17 = vpop.f32.mrb[14].mxu0  ;;  %vm9177_vm10 = vmand %vm13191_vm9, %vm8953_vm12 }
 0x113   : > { %vm9097_vm13 = vcmp.le.s32.totalorder %v13164_v21, 16  ;;  %v2182_v38 = vsel %vm13167_vm0, %v2177_v62, %v2181_v31  ;;  %13168 = vst [vmem:[#allocation35_spill] sm:$0xff] %v9107_v52  ;;  %v1055_v21 = vmax.f32 %v879_v57, 0.0  ;;  %vm9121_vm3 = vmand %vm13170_vm2, %vm13169_vm6  ;;  %v13173_v31 = vshra.s32 %v8534_v4, 5 }
 0x114   : > { %2498 = vst [vmem:[#allocation2 + $0x38] sm:$0xff] %v2182_v38  ;;  %v9137_v19 = vrot.slane %v2195_v20, 1  ;;  %vm13179_vm2 = vnez %v13111_v60  ;;  %v13181_v50 = vmov 0  ;;  %v9151_v4 = vadd.f32 %v8605_v39, %v758_v55  ;;  %3103 = vmatprep.mubr.bf16.mxu1 %v2182_v38  ;;  %2120 = vst [vmem:[#allocation2 + $0x60] sm:$0xff] %v2082_v1 }
 0x115   : > { %vm9127_vm0 = vcmp.ge.s32.totalorder %v13173_v31, 1  ;;  %v13176_v32 = vmov %v13173_v31  ;;  %vm9146_vm5 = vmand %vm13180_vm4, %vm13179_vm2  ;;  %v13185_v59 = vshra.s32 %v8418_v28, 5  ;;  %v13186_v20 = vmov 0 }
 0x116   : > { %v13175_v23 = vsel %vm9127_vm0, 4294967295, %v13174_v23  ;;  %vm9133_vm7 = vcmp.le.s32.totalorder %v13176_v32, 16  ;;  %v13182_v50 = vsel %vm9146_vm5, 4294967295, %v13181_v50  ;;  %13184 = vst [vmem:[#allocation37_spill] sm:$0xff] %v9151_v4  ;;  %v1053_v60 = vmax.f32 %v9082_v63, 0.0  ;;  %v761_v63 = vpop.f32.mrb[15].mxu0  ;;  %vm13207_vm12 = vmand %vm8897_vm1, %vm8903_vm8 }
 0x117   : > { %13183 = vst [vmem:[#allocation36_spill] sm:$0xff] %v13182_v50  ;;  %vm9155_vm6 = vcmp.ge.s32.totalorder %v13185_v59, 1  ;;  %v13188_v18 = vmov %v13185_v59  ;;  %v9167_v31 = vadd.f32 %v8605_v39, %v873_v37  ;;  %v2187_v55 = vshll.u32 %v2082_v1, 16 }
 0x118   : > { %v13187_v20 = vsel %vm9155_vm6, 4294967295, %v13186_v20  ;;  %vm9161_vm0 = vcmp.le.s32.totalorder %v13188_v18, 16  ;;  %v2191_v38 = vshrl.u32 %v2082_v1, 16  ;;  %v2584_v32 = vrot.slane %v2082_v1, 1  ;;  %v9228_v18 = vpop.f32.mrb[4].mxu1 }
 0x119   : > { %v13190_v45 = vsel %vm9161_vm0, 4294967295, %v13189_v45  ;;  %v12868_v17 = vmax.f32 %v9107_v52, 0.0  ;;  %v13192_v28 = vmov 0  ;;  %vm13194_vm2 = vnez %v13088_v25 }
 0x11a   : > { %v13193_v28 = vsel %vm9177_vm10, 4294967295, %v13192_v28  ;;  %vm13195_vm4 = vnez %v13032_v61  ;;  %v13197_v3 = vmax.f32 %v8821_v16, 0.0  ;;  %v13198_v13 = vmax.f32 %v8868_v58, 0.0 }
 0x11b   : > { %vm13196_vm6 = vmand %vm8675_vm14, %vm13195_vm4  ;;  %v9196_v1 = vor.u32 %v2199_v42, %v9137_v19  ;;  %v12869_v25 = vmax.f32 %v9151_v4, 0.0  ;;  %v9200_v22 = vadd.f32 %v8605_v39, %v761_v63  ;;  %v13200_v61 = vand.u32 31, %v8438_v40 }
 0x11c   : > { %vm8075_vm0 = vmpackc.low %vm13196_vm6, %vm13194_vm2  ;;  %v8076_v37 = vpack.c.bf16 %v13198_v13, %v13197_v3  ;;  %v13203_v16 = vshra.s32 %v8438_v40, 5  ;;  %v2044_v42 = vsel %vm9121_vm3, %v1055_v21, 0.0  ;;  %vm13206_vm15 = vnez %v13122_v56 }
 0x11d   : > { %13199 = vst [vmem:[#allocation38_spill] sm:$0xff] %v9200_v22  ;;  %vm9205_vm11 = vcmp.le.s32.totalorder %v13200_v61, 16  ;;  %v2189_v63 = vrot.slane %v2187_v55, 1  ;;  %v13210_v3 = vrot.slane %v8908_v46, 1  ;;  %vm13211_vm6 = vcmask 1046528   ;;  %v7957_v55 = vld [vmem:[%s12772_s2 + $0x20] sm:$0xff]  }
 0x11e   : > { %8077 = vmatmul.mubr.msk.bf16.vlgmr.msra.gmra.mrb[36].mxu1 %vm8075_vm0, %v8076_v37  ;;  %vm9211_vm14 = vcmp.ge.s32.totalorder %v13203_v16, 1  ;;  %vm9224_vm0 = vmand %vm13207_vm12, %vm13206_vm15  ;;  %v13212_v21 = vrot.slane %v9056_v49, 1  ;;  %v2016_v2 = vsel %vm9146_vm5, %v12868_v17, 0.0  ;;  %vm13214_vm1 = vnez %v13132_v30  ;;  %v9262_v37 = vld [vmem:[%s12772_s2 + $0x90] sm:$0xff]  }
 0x11f   : > { %7635 = vmatpush3.bf16.msra.mxu1 %v8364_v0  ;;  %v2585_v13 = vsel %vm13211_vm6, %v13210_v3, %v2584_v32  ;;  %vm13213_vm3 = vmmov %vm13211_vm6  ;;  %vm13215_vm8 = vnez %v13129_v33  ;;  %v13216_v6 = vand.u32 31, %v8429_v35  ;;  %v13219_v62 = vshra.s32 %v8429_v35, 5 }
 0x120   : > { %v2587_v56 = vsel %vm13213_vm3, %v2584_v32, %v13212_v21  ;;  %7636 = vmatprep.subr.bf16.mxu1 %v9112_v27  ;;  %v9257_v32 = vpop.f32.mrb[5].mxu1  ;;  %2693 = vst [vmem:[#allocation2 + $0x58] sm:$0xff] %v2585_v13  ;;  %v9265_v61 = vpack.c.bf16 %v13104_v9, %v2016_v2  ;;  %v2014_v16 = vsel %vm9177_vm10, %v12869_v25, 0.0  ;;  %v12873_v3 = vmax.f32 %v9200_v22, 0.0  ;;  %7571 = vmatmul.mubr.bf16.vlgmr.msra.gmra.mrb[40].mxu0 %v2585_v13 }
 0x121   : > { %vm9246_vm2 = vcmp.ge.s32.totalorder %v13216_v6, 1  ;;  %vm9252_vm4 = vcmp.ge.s32.totalorder %v13219_v62, 1  ;;  %2694 = vst [vmem:[#allocation2 + $0x70] sm:$0xff] %v2587_v56  ;;  %v9273_v21 = vpack.c.bf16 %v13104_v9, %v2044_v42  ;;  %v7525_v6 = vpop.f32.mrb[6].mxu1  ;;  %vm13222_vm15 = vsmask.f32 7424  ;;  %7574 = vmatprep.mubr.bf16.mxu0 %v2587_v56  ;;  %3794 = vmatpush1.bf16.msra.mxu0 %v7953_v53 }
 0x122   : > { %v2190_v62 = vsel %vm13222_vm15, %v9068_v51, %v2189_v63  ;;  %v2193_v17 = vor.u32 %v2191_v38, %v2189_v63  ;;  %vm13223_vm12 = vnez %v13144_v43  ;;  %vm13224_vm6 = vnez %v13141_v26  ;;  %v9292_v51 = vpop.f32.mrb[7].mxu1  ;;  %v7954_v38 = vld [vmem:[%s12772_s2 + $0x8] sm:$0xff]   ;;  %2123 = vst [vmem:[#allocation2 + $0xa8] sm:$0xff] %v9265_v61  ;;  %v7496_v53 = vpop.f32.mrb[16].mxu0 }
 0x123   : > { %v13225_v2 = vshra.s32 %v8438_v40, 5  ;;  %v9289_v42 = vsel %vm9224_vm0, %v1053_v60, 0.0  ;;  %2499 = vst [vmem:[#allocation2 + $0x50] sm:$0xff] %v2190_v62  ;;  %v2211_v40 = vshll.u32 %v9265_v61, 16  ;;  %v2215_v63 = vshrl.u32 %v9265_v61, 16  ;;  %vm13228_vm0 = vmand %vm13215_vm8, %vm13214_vm1  ;;  %3111 = vmatprep.mubr.bf16.mxu1 %v2190_v62  ;;  %7637 = vmatpush3.bf16.msra.mxu1 %v9112_v27  ;;  %v774_v13 = vpop.f32.mrb[17].mxu0 }
 0x124   : > { %v2015_v60 = vsel %vm13228_vm0, %v12873_v3, 0.0  ;;  %vm13229_vm15 = vnez %v13155_v41  ;;  %vm13230_vm3 = vnez %v13152_v14  ;;  %v13231_v56 = vshra.s32 %v8429_v35, 5  ;;  %2137 = vst [vmem:[#allocation2 + $0x1f8] sm:$0xff] %v9273_v21  ;;  %7638 = vmatprep.subr.bf16.mxu1 %v9262_v37  ;;  %vm13244_vm8 = vmand %vm13224_vm6, %vm13223_vm12 }
 0x125   : > { %vm9283_vm9 = vcmp.le.s32.totalorder %v13225_v2, 16  ;;  %v13232_v6 = vmov 0  ;;  %vm13234_vm1 = vsmask.f32 7424  ;;  %v9322_v3 = vpack.c.bf16 %v2015_v60, %v2014_v16 }
 0x126   : > { %vm9314_vm10 = vcmp.le.s32.totalorder %v13231_v56, 16  ;;  %v2198_v2 = vsel %vm13234_vm1, %v2193_v17, %v9137_v19  ;;  %v9325_v5 = vadd.f32 %v7496_v53, %v8605_v39  ;;  %v2323_v62 = vshll.u32 %v9273_v21, 16  ;;  %v9345_v17 = vld [vmem:[%s12772_s2 + $0x98] sm:$0xff]  }
 0x127   : > { %v13233_v6 = vsel %vm9314_vm10, 4294967295, %v13232_v6  ;;  %v13236_v35 = vand.u32 31, %v8563_v54  ;;  %v13237_v56 = vmov 0  ;;  %v13239_v27 = vshra.s32 %v8563_v54, 5  ;;  %2500 = vst [vmem:[#allocation2 + $0x68] sm:$0xff] %v2198_v2  ;;  %2122 = vst [vmem:[#allocation2 + $0x90] sm:$0xff] %v9322_v3  ;;  %7639 = vmatpush3.bf16.msra.mxu1 %v9262_v37 }
 0x128   : > { %13235 = vst [vmem:[#allocation39_spill] sm:$0xff] %v9325_v5  ;;  %v13240_v0 = vmov 0  ;;  %v13242_v19 = vmov 0   ;;  %v9347_v16 = vrot.slane %v2211_v40, 1  ;;  %vm13243_vm1 = vnez %v13162_v10  ;;  %7640 = vmatprep.subr.bf16.mxu1 %v9345_v17 }
 0x129   : > { %vm9330_vm0 = vcmp.le.s32.totalorder %v13236_v35, 16  ;;  %vm9336_vm5 = vcmp.ge.s32.totalorder %v13239_v27, 1  ;;  %3795 = vmatprep.subr.bf16.mxu0 %v13242_v19  ;;  %v13245_v60 = vmov 0  ;;  %v9361_v53 = vadd.f32 %v8605_v39, %v774_v13  ;;  %v7497_v35 = vpop.f32.mrb[18].mxu0 }
 0x12a   : > { %v13238_v56 = vsel %vm9330_vm0, 4294967295, %v13237_v56  ;;  %v13241_v0 = vsel %vm9336_vm5, 4294967295, %v13240_v0  ;;  %vm9356_vm0 = vmand %vm13244_vm8, %vm13243_vm1  ;;  %v13248_v27 = vshra.s32 %v8432_v36, 5  ;;  %v13249_v40 = vmov 0  ;;  %3796 = vmatpush1.bf16.msra.mxu0 %v7954_v38 }
 0x12b   : > { %v13246_v60 = vsel %vm9356_vm0, 4294967295, %v13245_v60  ;;  %v13253_v26 = vmov 0  ;;  %v2327_v43 = vshrl.u32 %v9273_v21, 16  ;;  %v2203_v13 = vshll.u32 %v9322_v3, 16  ;;  %vm13256_vm8 = vmand %vm13230_vm3, %vm13229_vm15  ;;  %3797 = vmatprep.subr.bf16.mxu0 %v13242_v19  ;;  %7641 = vmatpush3.bf16.msra.mxu1 %v9345_v17 }
 0x12c   : > { %13247 = vst [vmem:[#allocation40_spill] sm:$0xff] %v13246_v60  ;;  %vm9365_vm5 = vcmp.ge.s32.totalorder %v13248_v27, 1  ;;  %v13252_v10 = vmov %v13248_v27  ;;  %v2207_v35 = vshrl.u32 %v9322_v3, 16  ;;  %v2588_v27 = vrot.slane %v9322_v3, 1  ;;  %vm9389_vm12 = vmand %vm13256_vm8, %vm9097_vm13 }
 0x12d   : > { %v13250_v40 = vsel %vm9365_vm5, 4294967295, %v13249_v40  ;;  %vm9371_vm10 = vcmp.le.s32.totalorder %v13252_v10, 16  ;;  %v13257_v36 = vmov 0  ;;  %v777_v10 = vpop.f32.mrb[19].mxu0  ;;  %vm12884_vm6 = vmmov 1  }
 0x12e   : > { %13251 = vst [vmem:[#allocation41_spill] sm:$0xff] %v13250_v40  ;;  %v13254_v26 = vsel %vm9371_vm10, 4294967295, %v13253_v26  ;;  %v13258_v36 = vsel %vm9389_vm12, 4294967295, %v13257_v36  ;;  %vm13259_vm1 = vnez %v13070_v15  ;;  %v13260_v3 = vmax.f32 %v8788_v11, 0.0  ;;  %v7955_v11 = vld [vmem:[%s12772_s2 + $0x10] sm:$0xff]  }
 0x12f   : > { %13255 = vst [vmem:[#allocation42_spill] sm:$0xff] %v13254_v26  ;;  %vm8078_vm5 = vmpackc.low %vm12884_vm6, %vm13259_vm1  ;;  %v13261_v14 = vand.u32 31, %v8449_v47  ;;  %v13262_v41 = vmov 0  ;;  %v13264_v29 = vshra.s32 %v8449_v47, 5  ;;  %v9415_v15 = vor.u32 %v2215_v63, %v9347_v16  ;;  %v9433_v63 = vpop.f32.mrb[8].mxu1  ;;  %3798 = vmatpush1.bf16.msra.mxu0 %v7955_v11 }
 0x130   : > { %v8079_v52 = vpack.c.bf16 %v13104_v9, %v13260_v3  ;;  %v9419_v3 = vadd.f32 %v8605_v39, %v777_v10  ;;  %v13268_v38 = vshra.s32 %v8563_v54, 5  ;;  %13271 = vst [vmem:[#allocation43_spill] sm:$0xff] %v9433_v63  ;;  %v2205_v10 = vrot.slane %v2203_v13, 1  ;;  %3799 = vmatprep.subr.bf16.mxu0 %v13242_v19 }
 0x131   : > { %vm9401_vm10 = vcmp.le.s32.totalorder %v13261_v14, 16  ;;  %vm9407_vm13 = vcmp.ge.s32.totalorder %v13264_v29, 1  ;;  %v9421_v14 = vrot.slane %v2323_v62, 1  ;;  %v13269_v29 = vmov 0 }
 0x132   : > { %8080 = vmatmul.mubr.msk.bf16.gmra.mrb[40].mxu1 %vm8078_vm5, %v8079_v52  ;;  %v13263_v41 = vsel %vm9401_vm10, 4294967295, %v13262_v41  ;;  %vm13267_vm5 = vnez %v13175_v23  ;;  %vm9429_vm15 = vcmp.le.s32.totalorder %v13268_v38, 16  ;;  %vm13273_vm8 = vcmask 1046528  }
 0x133   : > { %3119 = vmatprep.mubr.bf16.mxu1 %v2198_v2  ;;  %v13270_v29 = vsel %vm9429_vm15, 4294967295, %v13269_v29  ;;  %v13272_v2 = vrot.slane %v9056_v49, 1  ;;  %v13274_v52 = vrot.slane %v9265_v61, 1  ;;  %vm13275_vm1 = vmmov %vm13273_vm8  ;;  %v13276_v4 = vmax.f32 %v9325_v5, 0.0  ;;  %v13392_v49 = vld [vmem:[#allocation14_spill] sm:$0xff] }
 0x134   : > { %vm13277_vm6 = vnez %v13190_v45  ;;  %vm13278_vm3 = vnez %v13187_v20  ;;  %v13279_v37 = vand.u32 31, %v8444_v44  ;;  %v13282_v13 = vshra.s32 %v8444_v44, 5 }
 0x135   : > { %v2589_v62 = vsel %vm13273_vm8, %v13272_v2, %v2588_v27  ;;  %v2591_v22 = vsel %vm13275_vm1, %v2588_v27, %v13274_v52  ;;  %v2020_v54 = vsel %vm9356_vm0, %v13276_v4, 0.0  ;;  %v9462_v52 = vpop.f32.mrb[9].mxu1  ;;  %v9469_v4 = vld [vmem:[%s12772_s2 + $0xa0] sm:$0xff]   ;;  %v13286_v2 = vmax.f32 %v9361_v53, 0.0 }
 0x136   : > { %vm9452_vm10 = vcmp.ge.s32.totalorder %v13279_v37, 1  ;;  %vm9458_vm8 = vcmp.ge.s32.totalorder %v13282_v13, 1  ;;  %13285 = vst [vmem:[#allocation44_spill] sm:$0xff] %v9462_v52  ;;  %2695 = vst [vmem:[#allocation2 + $0x88] sm:$0xff] %v2589_v62  ;;  %v9472_v38 = vpack.c.bf16 %v13104_v9, %v2020_v54  ;;  %v12890_v13 = vmax.f32 %v9419_v3, 0.0  ;;  %7575 = vmatmul.mubr.bf16.gmra.mrb[44].mxu0 %v2589_v62  ;;  %v7529_v60 = vpop.f32.mrb[10].mxu1  ;;  %7642 = vmatprep.subr.bf16.mxu1 %v9469_v4 }
 0x137   : > { %2696 = vst [vmem:[#allocation2 + $0xa0] sm:$0xff] %v2591_v22  ;;  %v2018_v37 = vsel %vm9389_vm12, %v13286_v2, 0.0  ;;  %v9480_v5 = vor.u32 %v2327_v43, %v9421_v14  ;;  %vm13287_vm1 = vsmask.f32 7424  ;;  %v2209_v63 = vor.u32 %v2207_v35, %v2205_v10  ;;  %7578 = vmatprep.mubr.bf16.mxu0 %v2591_v22  ;;  %v9505_v35 = vpop.f32.mrb[11].mxu1  ;;  %7643 = vmatpush3.bf16.msra.mxu1 %v9469_v4  ;;  %v13344_v4 = vld [vmem:[#allocation13_spill] sm:$0xff] }
 0x138   : > { %v2206_v52 = vsel %vm13287_vm1, %v9196_v1, %v2205_v10  ;;  %v13288_v54 = vshra.s32 %v8449_v47, 5  ;;  %v13291_v43 = vmax.f32 %v9167_v31, 0.0  ;;  %vm13292_vm1 = vmand %vm13267_vm5, %vm9133_vm7  ;;  %v9503_v60 = vadd.f32 %v9228_v18, %v8605_v39  ;;  %v7956_v47 = vld [vmem:[%s12772_s2 + $0x18] sm:$0xff]   ;;  %2125 = vst [vmem:[#allocation2 + $0xd8] sm:$0xff] %v9472_v38  ;;  %v7500_v18 = vpop.f32.mrb[20].mxu0 }
 0x139   : > { %2501 = vst [vmem:[#allocation2 + $0x80] sm:$0xff] %v2206_v52  ;;  %v2227_v23 = vshll.u32 %v9472_v38, 16  ;;  %v2231_v57 = vshrl.u32 %v9472_v38, 16  ;;  %vm13293_vm7 = vmand %vm13278_vm3, %vm13277_vm6  ;;  %v13294_v11 = vshra.s32 %v8444_v44, 5  ;;  %vm13297_vm15 = vsmask.f32 7424  ;;  %3800 = vmatpush1.bf16.msra.mxu0 %v7956_v47 }
 0x13a   : > { %vm9490_vm0 = vcmp.le.s32.totalorder %v13288_v54, 16  ;;  %v2043_v1 = vsel %vm13292_vm1, %v13291_v43, 0.0  ;;  %v2019_v22 = vsel %vm13293_vm7, %v12890_v13, 0.0  ;;  %v9535_v62 = vsel %vm13297_vm15, %v2209_v63, %v9347_v16  ;;  %v790_v13 = vpop.f32.mrb[21].mxu0  ;;  %vm13298_vm15 = vmand %vm9205_vm11, %vm9211_vm14  ;;  %3801 = vmatprep.subr.bf16.mxu0 %v13242_v19 }
 0x13b   : > { %vm9527_vm1 = vcmp.le.s32.totalorder %v13294_v11, 16  ;;  %v2086_v54 = vpack.c.bf16 %v2019_v22, %v2018_v37  ;;  %v799_v43 = vadd.f32 %v7500_v18, %v8605_v39  ;;  %v9539_v31 = vpack.c.bf16 %v2043_v1, %v9289_v42  ;;  %2502 = vst [vmem:[#allocation2 + $0x98] sm:$0xff] %v9535_v62  ;;  %vm9552_vm7 = vmand %vm13298_vm15, %vm9283_vm9  ;;  %v7501_v16 = vpop.f32.mrb[22].mxu0 }
 0x13c   : > { %v9543_v44 = vrot.slane %v2227_v23, 1  ;;  %v9557_v42 = vadd.f32 %v8605_v39, %v790_v13  ;;  %v13302_v63 = vshra.s32 %v8452_v48, 5  ;;  %v13303_v37 = vmov 0  ;;  %vm13309_vm14 = vmand %vm9246_vm2, %vm9252_vm4  ;;  %v793_v11 = vpop.f32.mrb[23].mxu0 }
 0x13d   : > { %v13306_v58 = vmov 0  ;;  %v9574_v1 = vadd.f32 %v8605_v39, %v9257_v32  ;;  %2124 = vst [vmem:[#allocation2 + $0xc0] sm:$0xff] %v2086_v54  ;;  %v2219_v13 = vshll.u32 %v2086_v54, 16  ;;  %v2223_v23 = vshrl.u32 %v2086_v54, 16  ;;  %2136 = vst [vmem:[#allocation2 + $0x1e0] sm:$0xff] %v9539_v31  ;;  %3802 = vmatpush1.bf16.msra.mxu0 %v7957_v55 }
 0x13e   : > { %13301 = vst [vmem:[#allocation45_spill] sm:$0xff] %v9557_v42  ;;  %vm9561_vm5 = vcmp.ge.s32.totalorder %v13302_v63, 1  ;;  %v13305_v25 = vmov %v13302_v63  ;;  %v2592_v22 = vrot.slane %v2086_v54, 1  ;;  %v1035_v18 = vmax.f32 %v799_v43, 0.0  ;;  %3803 = vmatprep.subr.bf16.mxu0 %v13242_v19 }
 0x13f   : > { %v13304_v37 = vsel %vm9561_vm5, 4294967295, %v13303_v37  ;;  %vm9567_vm6 = vcmp.le.s32.totalorder %v13305_v25, 16  ;;  %vm13308_vm11 = vnez %v13233_v6  ;;  %v13310_v48 = vmov 0 }
 0x140   : > { %v13307_v58 = vsel %vm9567_vm6, 4294967295, %v13306_v58  ;;  %vm9583_vm9 = vmand %vm13309_vm14, %vm13308_vm11  ;;  %vm13313_vm15 = vnez %v13136_v24  ;;  %vm13314_vm3 = vnez %v13064_v12  ;;  %vm13315_vm12 = vnez %v13067_v34 }
 0x141   : > { %v13311_v48 = vsel %vm9583_vm9, 4294967295, %v13310_v48  ;;  %vm13316_vm5 = vmand %vm13314_vm3, %vm13315_vm12  ;;  %v13317_v32 = vmax.f32 %v8981_v8, 0.0  ;;  %v13318_v46 = vmax.f32 %v9011_v7, 0.0  ;;  %v9603_v24 = vor.u32 %v2231_v57, %v9543_v44  ;;  %v13320_v8 = vld [vmem:[#allocation5_spill] sm:$0xff] }
 0x142   : > { %13312 = vst [vmem:[#allocation46_spill] sm:$0xff] %v13311_v48  ;;  %vm8081_vm6 = vmpackc.low %vm13316_vm5, %vm13313_vm15  ;;  %v12898_v12 = vmax.f32 %v9557_v42, 0.0  ;;  %v9607_v34 = vadd.f32 %v8605_v39, %v793_v11  ;;  %v13321_v7 = vand.u32 31, %v13320_v8  ;;  %v13322_v54 = vmov 0 }
 0x143   : > { %v8082_v6 = vpack.c.bf16 %v13318_v46, %v13317_v32  ;;  %v13324_v47 = vshra.s32 %v13320_v8, 5  ;;  %v2315_v57 = vshll.u32 %v9539_v31, 16  ;;  %vm13327_vm12 = vnez %v13241_v0 }
 0x144   : > { %13319 = vst [vmem:[#allocation47_spill] sm:$0xff] %v9607_v34  ;;  %vm9611_vm2 = vcmp.le.s32.totalorder %v13321_v7, 16  ;;  %v2221_v16 = vrot.slane %v2219_v13, 1  ;;  %v13329_v63 = vrot.slane %v9265_v61, 1  ;;  %vm13330_vm5 = vcmask 1046528  }
 0x145   : > { %8083 = vmatmul.mubr.msk.bf16.gmra.mrb[44].mxu1 %vm8081_vm6, %v8082_v6  ;;  %v13323_v54 = vsel %vm9611_vm2, 4294967295, %v13322_v54  ;;  %vm9617_vm4 = vcmp.ge.s32.totalorder %v13324_v47, 1  ;;  %vm13328_vm6 = vnez %v13238_v56  ;;  %v13331_v11 = vrot.slane %v9472_v38, 1  ;;  %vm13332_vm11 = vmmov %vm13330_vm5  ;;  %v13335_v6 = vld [vmem:[#allocation4_spill] sm:$0xff]  ;;  %v13455_v47 = vld [vmem:[#allocation10_spill] sm:$0xff] }
 0x146   : > { %3127 = vmatprep.mubr.bf16.mxu1 %v2206_v52  ;;  %v9626_v52 = vpop.f32.mrb[12].mxu1  ;;  %v2593_v25 = vsel %vm13330_vm5, %v13329_v63, %v2592_v22  ;;  %v2024_v46 = vsel %vm9552_vm7, %v1035_v18, 0.0  ;;  %vm13333_vm14 = vnez %v13254_v26  ;;  %vm13334_vm15 = vnez %v13250_v40 }
 0x147   : > { %v2595_v32 = vsel %vm13332_vm11, %v2592_v22, %v13331_v11  ;;  %v13336_v7 = vand.u32 31, %v13335_v6  ;;  %v13337_v13 = vmov 0  ;;  %v13339_v61 = vshra.s32 %v13335_v6, 5  ;;  %v9653_v22 = vpop.f32.mrb[13].mxu1  ;;  %2697 = vst [vmem:[#allocation2 + $0xb8] sm:$0xff] %v2593_v25  ;;  %7579 = vmatmul.mubr.bf16.gmra.mrb[48].mxu0 %v2593_v25 }
 0x148   : > { %13342 = vst [vmem:[#allocation5_spill] sm:$0xff] %v9653_v22  ;;  %2698 = vst [vmem:[#allocation2 + $0xd0] sm:$0xff] %v2595_v32  ;;  %v9657_v17 = vpack.c.bf16 %v13104_v9, %v2024_v46  ;;  %v2022_v18 = vsel %vm9583_vm9, %v12898_v12, 0.0  ;;  %vm13343_vm7 = vnez %v13263_v41  ;;  %v9668_v11 = vrot.slane %v2315_v57, 1  ;;  %v7533_v59 = vpop.f32.mrb[14].mxu1  ;;  %7582 = vmatprep.mubr.bf16.mxu0 %v2595_v32 }
 0x149   : > { %vm9643_vm2 = vcmp.ge.s32.totalorder %v13336_v7, 1  ;;  %vm9649_vm5 = vcmp.ge.s32.totalorder %v13339_v61, 1  ;;  %v13345_v7 = vand.u32 31, %v13344_v4  ;;  %v13346_v46 = vmov 0  ;;  %v9705_v59 = vpop.f32.mrb[15].mxu1 }
 0x14a   : > { %v13338_v13 = vsel %vm9643_vm2, 4294967295, %v13337_v13  ;;  %v13348_v61 = vshra.s32 %v13344_v4, 5  ;;  %v13349_v12 = vmov 0  ;;  %vm13351_vm9 = vsmask.f32 7424  ;;  %13359 = vst [vmem:[#allocation4_spill] sm:$0xff] %v9705_v59 }
 0x14b   : > { %vm9672_vm3 = vcmp.ge.s32.totalorder %v13345_v7, 1  ;;  %v9684_v63 = vsel %vm13351_vm9, %v9415_v15, %v2221_v16  ;;  %v2225_v25 = vor.u32 %v2223_v23, %v2221_v16  ;;  %v13352_v57 = vshra.s32 %v13320_v8, 5  ;;  %vm13356_vm9 = vmand %vm13328_vm6, %vm13327_vm12  ;;  %v7958_v23 = vld [vmem:[%s12772_s2 + $0x28] sm:$0xff]   ;;  %2127 = vst [vmem:[#allocation2 + $0x108] sm:$0xff] %v9657_v17  ;;  %v7504_v16 = vpop.f32.mrb[24].mxu0  ;;  %v13390_v15 = vld [vmem:[#allocation33_spill] sm:$0xff] }
 0x14c   : > { %v13347_v46 = vsel %vm9672_vm3, 4294967295, %v13346_v46  ;;  %vm9678_vm2 = vcmp.ge.s32.totalorder %v13348_v61, 1  ;;  %v2319_v7 = vshrl.u32 %v9539_v31, 16  ;;  %vm13355_vm3 = vnez %v13270_v29  ;;  %2503 = vst [vmem:[#allocation2 + $0xb0] sm:$0xff] %v9684_v63  ;;  %vm13361_vm12 = vmand %vm13334_vm15, %vm13333_vm14  ;;  %3804 = vmatpush1.bf16.msra.mxu0 %v7958_v23 }
 0x14d   : > { %v13350_v12 = vsel %vm9678_vm2, 4294967295, %v13349_v12  ;;  %vm9688_vm11 = vcmp.le.s32.totalorder %v13352_v57, 16  ;;  %vm9701_vm2 = vmand %vm13356_vm9, %vm13355_vm3  ;;  %v2243_v56 = vshll.u32 %v9657_v17, 16  ;;  %v2247_v0 = vshrl.u32 %v9657_v17, 16  ;;  %3805 = vmatprep.subr.bf16.mxu0 %v13242_v19 }
 0x14e   : > { %v13360_v8 = vmax.f32 %v9607_v34, 0.0  ;;  %v13362_v32 = vshra.s32 %v13335_v6, 5  ;;  %vm13365_vm9 = vsmask.f32 7424  ;;  %v806_v34 = vpop.f32.mrb[25].mxu0  ;;  %v2321_v26 = vor.u32 %v2319_v7, %v9668_v11 }
 0x14f   : > { %v9735_v29 = vsel %vm13365_vm9, %v2225_v25, %v9543_v44  ;;  %v13366_v40 = vshra.s32 %v13344_v4, 5  ;;  %vm13369_vm9 = vmand %vm13343_vm7, %vm9407_vm13  ;;  %v13372_v4 = vld [vmem:[#allocation6_spill] sm:$0xff]  ;;  %v13374_v7 = vmov 0  ;;  %v13379_v50 = vrot.slane %v9273_v21, 1 }
 0x150   : > { %v2023_v55 = vsel %vm13361_vm12, %v13360_v8, 0.0  ;;  %vm9728_vm3 = vcmp.le.s32.totalorder %v13362_v32, 16  ;;  %v815_v8 = vadd.f32 %v7504_v16, %v8605_v39  ;;  %2504 = vst [vmem:[#allocation2 + $0xc8] sm:$0xff] %v9735_v29  ;;  %v9746_v32 = vrot.slane %v2243_v56, 1  ;;  %vm9755_vm6 = vmand %vm13369_vm9, %vm9490_vm0 }
 0x151   : > { %v2088_v61 = vpack.c.bf16 %v2023_v55, %v2022_v18  ;;  %vm9741_vm12 = vcmp.le.s32.totalorder %v13366_v40, 16  ;;  %v807_v40 = vadd.f32 %v8605_v39, %v806_v34  ;;  %v7505_v18 = vpop.f32.mrb[26].mxu0  ;;  %v13373_v25 = vshra.s32 %v13372_v4, 5  ;;  %vm13384_vm13 = vmand %vm9452_vm10, %vm9458_vm8 }
 0x152   : > { %v13380_v56 = vrot.slane %v9539_v31, 1  ;;  %vm13381_vm0 = vcmask 1046528   ;;  %v13383_v34 = vmax.f32 %v9503_v60, 0.0  ;;  %vm9790_vm7 = vmand %vm13384_vm13, %vm9527_vm1  ;;  %v809_v60 = vpop.f32.mrb[27].mxu0  ;;  %v13393_v10 = vshra.s32 %v13392_v49, 5 }
 0x153   : > { %vm9762_vm14 = vcmp.ge.s32.totalorder %v13373_v25, 1  ;;  %v13376_v2 = vmov %v13373_v25  ;;  %2126 = vst [vmem:[#allocation2 + $0xf0] sm:$0xff] %v2088_v61  ;;  %v2235_v18 = vshll.u32 %v2088_v61, 16  ;;  %v2239_v25 = vshrl.u32 %v2088_v61, 16 }
 0x154   : > { %v13375_v7 = vsel %vm9762_vm14, 4294967295, %v13374_v7  ;;  %vm9768_vm15 = vcmp.le.s32.totalorder %v13376_v2, 16  ;;  %v9777_v55 = vsel %vm13381_vm0, %v13380_v56, %v13379_v50  ;;  %v2048_v16 = vsel %vm9701_vm2, %v13383_v34, 0.0  ;;  %v13387_v56 = vld [vmem:[#allocation34_spill] sm:$0xff] }
 0x155   : > { %13382 = vst [vmem:[#allocation13_spill] sm:$0xff] %v9777_v55  ;;  %v2596_v4 = vrot.slane %v2088_v61, 1  ;;  %v1039_v2 = vmax.f32 %v815_v8, 0.0  ;;  %vm13388_vm9 = vnez %v13387_v56  ;;  %vm13389_vm2 = vmmov 1   ;;  %2710 = vst [vmem:[#allocation2 + $0x1f0] sm:$0xff] %v9777_v55  ;;  %v7959_v56 = vld [vmem:[%s12772_s2 + $0x30] sm:$0xff]  }
 0x156   : > { %vm8084_vm0 = vmpackc.low %vm13389_vm2, %vm13388_vm9  ;;  %v13391_v34 = vmax.f32 %v13390_v15, 0.0  ;;  %vm9803_vm14 = vcmp.ge.s32.totalorder %v13393_v10, 1  ;;  %v13394_v27 = vmov 0  ;;  %v13396_v8 = vmov %v13393_v10  ;;  %v13399_v10 = vld [vmem:[#allocation9_spill] sm:$0xff]  ;;  %3806 = vmatpush1.bf16.msra.mxu0 %v7959_v56 }
 0x157   : > { %v13395_v27 = vsel %vm9803_vm14, 4294967295, %v13394_v27  ;;  %vm9809_vm10 = vcmp.le.s32.totalorder %v13396_v8, 16  ;;  %v9817_v15 = vor.u32 %v2247_v0, %v9746_v32  ;;  %v13400_v55 = vand.u32 31, %v13399_v10  ;;  %3807 = vmatprep.subr.bf16.mxu0 %v13242_v19 }
 0x158   : > { %v8085_v61 = vpack.c.bf16 %v13104_v9, %v13391_v34  ;;  %v1037_v34 = vmax.f32 %v807_v40, 0.0  ;;  %v13401_v49 = vmov 0  ;;  %v13403_v23 = vshra.s32 %v13399_v10, 5  ;;  %v9835_v40 = vpop.f32.mrb[16].mxu1 }
 0x159   : > { %vm9823_vm8 = vcmp.le.s32.totalorder %v13400_v55, 16  ;;  %v13404_v8 = vmov 0  ;;  %vm13406_vm13 = vsmask.f32 7424  ;;  %13407 = vst [vmem:[#allocation6_spill] sm:$0xff] %v9835_v40  ;;  %vm13409_vm9 = vcmask 1046528  }
 0x15a   : > { %8086 = vmatmul.mubr.msk.bf16.gmra.mrb[48].mxu1 %vm8084_vm0, %v8085_v61  ;;  %v810_v61 = vadd.f32 %v8605_v39, %v809_v60  ;;  %v13402_v49 = vsel %vm9823_vm8, 4294967295, %v13401_v49  ;;  %vm9829_vm1 = vcmp.ge.s32.totalorder %v13403_v23, 1  ;;  %v2326_v0 = vsel %vm13406_vm13, %v2321_v26, %v9421_v14  ;;  %vm13411_vm0 = vmmov %vm13409_vm9  ;;  %v13414_v26 = vld [vmem:[#allocation7_spill] sm:$0xff] }
 0x15b   : > { %3135 = vmatprep.mubr.bf16.mxu1 %v9535_v62  ;;  %v13405_v8 = vsel %vm9829_vm1, 4294967295, %v13404_v8  ;;  %v2237_v62 = vrot.slane %v2235_v18, 1  ;;  %v13408_v60 = vrot.slane %v9472_v38, 1  ;;  %v13410_v59 = vrot.slane %v9657_v17, 1  ;;  %2516 = vst [vmem:[#allocation2 + $0x1e8] sm:$0xff] %v2326_v0 }
 0x15c   : > { %v2028_v23 = vsel %vm9755_vm6, %v1039_v2, 0.0  ;;  %vm13412_vm2 = vnez %v13307_v58  ;;  %vm13413_vm13 = vnez %v13304_v37  ;;  %v13415_v14 = vand.u32 31, %v13414_v26 }
 0x15d   : > { %v2597_v55 = vsel %vm13409_vm9, %v13408_v60, %v2596_v4  ;;  %v2599_v22 = vsel %vm13411_vm0, %v2596_v4, %v13410_v59  ;;  %v13416_v18 = vmov 0  ;;  %v13418_v38 = vshra.s32 %v13414_v26, 5  ;;  %v9862_v59 = vpop.f32.mrb[17].mxu1 }
 0x15e   : > { %vm9852_vm1 = vcmp.ge.s32.totalorder %v13415_v14, 1  ;;  %v13419_v60 = vmov 0  ;;  %2699 = vst [vmem:[#allocation2 + $0xe8] sm:$0xff] %v2597_v55  ;;  %2700 = vst [vmem:[#allocation2 + $0x100] sm:$0xff] %v2599_v22  ;;  %v9865_v44 = vpack.c.bf16 %v13104_v9, %v2028_v23  ;;  %v2026_v4 = vsel %vm9790_vm7, %v1037_v34, 0.0  ;;  %7583 = vmatmul.mubr.bf16.gmra.mrb[52].mxu0 %v2597_v55 }
 0x15f   : > { %v13417_v18 = vsel %vm9852_vm1, 4294967295, %v13416_v18  ;;  %vm9858_vm9 = vcmp.ge.s32.totalorder %v13418_v38, 1  ;;  %v1038_v2 = vmax.f32 %v810_v61, 0.0  ;;  %v9870_v14 = vpack.c.bf16 %v13104_v9, %v2048_v16  ;;  %v7537_v38 = vpop.f32.mrb[18].mxu1  ;;  %7586 = vmatprep.mubr.bf16.mxu0 %v2599_v22  ;;  %v7971_v61 = vld [vmem:[%s12772_s2 + $0xa8] sm:$0xff]   ;;  %vm13426_vm7 = vmand %vm13413_vm13, %vm13412_vm2 }
 0x160   : > { %v13420_v60 = vsel %vm9858_vm9, 4294967295, %v13419_v60  ;;  %vm13421_vm6 = vsmask.f32 7424  ;;  %v2241_v0 = vor.u32 %v2239_v25, %v2237_v62  ;;  %vm13422_vm0 = vnez %v13323_v54  ;;  %v7961_v25 = vld [vmem:[%s12772_s2 + $0x38] sm:$0xff]   ;;  %2129 = vst [vmem:[#allocation2 + $0x138] sm:$0xff] %v9865_v44  ;;  %7644 = vmatprep.subr.bf16.mxu1 %v7971_v61 }
 0x161   : > { %v9874_v40 = vsel %vm13421_vm6, %v9603_v24, %v2237_v62  ;;  %v13423_v23 = vshra.s32 %v13399_v10, 5  ;;  %v13424_v50 = vmov 0  ;;  %v9889_v34 = vadd.f32 %v8605_v39, %v9292_v51  ;;  %v9891_v24 = vpop.f32.mrb[19].mxu1  ;;  %v7508_v62 = vpop.f32.mrb[28].mxu0  ;;  %2139 = vst [vmem:[#allocation2 + $0x228] sm:$0xff] %v9870_v14  ;;  %7645 = vmatpush3.bf16.msra.mxu1 %v7971_v61  ;;  %v13451_v61 = vld [vmem:[#allocation37_spill] sm:$0xff]  ;;  %3808 = vmatpush1.bf16.msra.mxu0 %v7961_v25 }
 0x162   : > { %2505 = vst [vmem:[#allocation2 + $0xe0] sm:$0xff] %v9874_v40  ;;  %v2259_v22 = vshll.u32 %v9865_v44, 16  ;;  %v2263_v51 = vshrl.u32 %v9865_v44, 16  ;;  %v2027_v56 = vsel %vm13426_vm7, %v1038_v2, 0.0  ;;  %vm13427_vm6 = vnez %v13338_v13  ;;  %3809 = vmatprep.subr.bf16.mxu0 %v13242_v19 }
 0x163   : > { %vm9882_vm1 = vcmp.le.s32.totalorder %v13423_v23, 16  ;;  %v13428_v55 = vshra.s32 %v13414_v26, 5  ;;  %v13429_v38 = vmov 0  ;;  %vm13431_vm9 = vsmask.f32 7424  ;;  %v822_v23 = vpop.f32.mrb[29].mxu0 }
 0x164   : > { %v13425_v50 = vsel %vm9882_vm1, 4294967295, %v13424_v50  ;;  %v9923_v37 = vsel %vm13431_vm9, %v2241_v0, %v9746_v32  ;;  %v2090_v58 = vpack.c.bf16 %v2027_v56, %v2026_v4  ;;  %v831_v2 = vadd.f32 %v7508_v62, %v8605_v39  ;;  %vm13434_vm9 = vmand %vm13422_vm0, %vm9617_vm4  ;;  %v7509_v0 = vpop.f32.mrb[30].mxu0  ;;  %v13437_v56 = vld [vmem:[#allocation8_spill] sm:$0xff] }
 0x165   : > { %vm9915_vm1 = vcmp.le.s32.totalorder %v13428_v55, 16  ;;  %v2339_v16 = vshll.u32 %v9870_v14, 16  ;;  %vm13432_vm2 = vnez %v13350_v12  ;;  %vm13433_vm13 = vnez %v13347_v46  ;;  %2506 = vst [vmem:[#allocation2 + $0xf8] sm:$0xff] %v9923_v37  ;;  %vm9941_vm8 = vmand %vm13434_vm9, %vm9688_vm11 }
 0x166   : > { %v13430_v38 = vsel %vm9915_vm1, 4294967295, %v13429_v38  ;;  %v9932_v26 = vrot.slane %v2259_v22, 1  ;;  %v823_v4 = vadd.f32 %v8605_v39, %v822_v23  ;;  %v13438_v62 = vshra.s32 %v13437_v56, 5  ;;  %2128 = vst [vmem:[#allocation2 + $0x120] sm:$0xff] %v2090_v58  ;;  %vm13444_vm4 = vmand %vm13427_vm6, %vm9649_vm5 }
 0x167   : > { %v13439_v55 = vmov 0  ;;  %v13442_v54 = vmov 0  ;;  %v2343_v43 = vshrl.u32 %v9870_v14, 16  ;;  %v2251_v39 = vshll.u32 %v2090_v58, 16  ;;  %vm9967_vm11 = vmand %vm13444_vm4, %vm9728_vm3 }
 0x168   : > { %vm9948_vm7 = vcmp.ge.s32.totalorder %v13438_v62, 1  ;;  %v13441_v42 = vmov %v13438_v62  ;;  %v2255_v23 = vshrl.u32 %v2090_v58, 16  ;;  %v2600_v0 = vrot.slane %v2090_v58, 1  ;;  %v825_v62 = vpop.f32.mrb[31].mxu0  ;;  %v13453_v58 = vld [vmem:[#allocation38_spill] sm:$0xff]  ;;  %vm13469_vm6 = vmand %vm13433_vm13, %vm13432_vm2 }
 0x169   : > { %v13440_v55 = vsel %vm9948_vm7, 4294967295, %v13439_v55  ;;  %vm9954_vm1 = vcmp.le.s32.totalorder %v13441_v42, 16  ;;  %v1043_v10 = vmax.f32 %v831_v2, 0.0  ;;  %vm13447_vm0 = vnez %v13193_v28 }
 0x16a   : > { %v13443_v54 = vsel %vm9954_vm1, 4294967295, %v13442_v54  ;;  %vm13448_vm9 = vnez %v13129_v33  ;;  %vm13449_vm7 = vnez %v13132_v30  ;;  %v13452_v57 = vmax.f32 %v13451_v61, 0.0  ;;  %v7962_v30 = vld [vmem:[%s12772_s2 + $0x40] sm:$0xff]  }
 0x16b   : > { %vm13450_vm1 = vmand %vm13448_vm9, %vm13449_vm7  ;;  %v13454_v13 = vmax.f32 %v13453_v58, 0.0  ;;  %v13456_v42 = vand.u32 31, %v13455_v47  ;;  %v13459_v28 = vshra.s32 %v13455_v47, 5  ;;  %v9998_v61 = vor.u32 %v2263_v51, %v9932_v26  ;;  %v10003_v58 = vld [vmem:[%s12774_s4] ss:$0 sm:$0xff]  ;;  %3810 = vmatpush1.bf16.msra.mxu0 %v7962_v30  ;;  %v7512_v30 = vpop.f32.mrb[32].mxu0 }
 0x16c   : > { %vm8087_vm14 = vmpackc.low %vm13450_vm1, %vm13447_vm0  ;;  %vm13474_vm4 = vcmask 1046528   ;;  %v13475_v6 = vrot.slane %v9865_v44, 1  ;;  %v2032_v12 = vsel %vm9941_vm8, %v1043_v10, 0.0  ;;  %v13479_v32 = vshra.s32 %v13455_v47, 5  ;;  %3811 = vmatprep.subr.bf16.mxu0 %v13242_v19 }
 0x16d   : > { %v8088_v2 = vpack.c.bf16 %v13454_v13, %v13452_v57  ;;  %vm9984_vm5 = vcmp.ge.s32.totalorder %v13456_v42, 1  ;;  %vm9990_vm3 = vcmp.ge.s32.totalorder %v13459_v28, 1  ;;  %v1041_v57 = vmax.f32 %v823_v4, 0.0  ;;  %vm10028_vm7 = vmand %vm13469_vm6, %vm9741_vm12 }
 0x16e   : > { %v826_v13 = vadd.f32 %v10003_v58, %v825_v62  ;;  %v10019_v4 = vrot.slane %v2339_v16, 1  ;;  %v10032_v62 = vpop.f32.mrb[20].mxu1  ;;  %vm13476_vm0 = vmmov %vm13474_vm4  ;;  %vm13477_vm12 = vnez %v13375_v7  ;;  %vm10056_vm8 = vcmp.le.s32.totalorder %v13479_v32, 16 }
 0x16f   : > { %8089 = vmatmul.mubr.msk.bf16.gmra.mrb[52].mxu1 %vm8087_vm14, %v8088_v2  ;;  %v13462_v2 = vld [vmem:[#allocation12_spill] sm:$0xff]  ;;  %13472 = vst [vmem:[#allocation34_spill] sm:$0xff] %v10032_v62  ;;  %v2603_v46 = vsel %vm13476_vm0, %v2600_v0, %v13475_v6  ;;  %v10047_v62 = vpop.f32.mrb[21].mxu1  ;;  %v13480_v10 = vmov 0  ;;  %vm13482_vm13 = vnez %v13395_v27  ;;  %vm13483_vm6 = vsmask.f32 7424 }
 0x170   : > { %3143 = vmatprep.mubr.bf16.mxu1 %v9684_v63  ;;  %v13463_v42 = vand.u32 31, %v13462_v2  ;;  %v13466_v28 = vshra.s32 %v13462_v2, 5  ;;  %13478 = vst [vmem:[#allocation33_spill] sm:$0xff] %v10047_v62  ;;  %2702 = vst [vmem:[#allocation2 + $0x130] sm:$0xff] %v2603_v46  ;;  %v13481_v10 = vsel %vm10056_vm8, 4294967295, %v13480_v10  ;;  %v7541_v6 = vpop.f32.mrb[22].mxu1  ;;  %vm13493_vm0 = vnez %v13417_v18 }
 0x171   : > { %v13486_v47 = vshra.s32 %v13462_v2, 5  ;;  %v13496_v32 = vmov 0  ;;  %vm13511_vm9 = vnez %v13425_v50  ;;  %v13574_v22 = vmov 0  ;;  %v13625_v18 = vld [vmem:[#allocation44_spill] sm:$0xff] }
 0x172   : > { %vm10009_vm14 = vcmp.le.s32.totalorder %v13463_v42, 16  ;;  %vm10015_vm1 = vcmp.ge.s32.totalorder %v13466_v28, 1  ;;  %v2253_v42 = vrot.slane %v2251_v39, 1  ;;  %v13473_v28 = vrot.slane %v9657_v17, 1 }
 0x173   : > { %v10050_v17 = vpack.c.bf16 %v13104_v9, %v2032_v12  ;;  %v2030_v39 = vsel %vm9967_vm11, %v1041_v57, 0.0  ;;  %vm13484_vm11 = vnez %v13405_v8  ;;  %vm10077_vm2 = vcmp.le.s32.totalorder %v13486_v47, 16 }
 0x174   : > { %v2601_v16 = vsel %vm13474_vm4, %v13473_v28, %v2600_v0  ;;  %v1042_v28 = vmax.f32 %v826_v13, 0.0  ;;  %v10061_v0 = vor.u32 %v2343_v43, %v10019_v4  ;;  %v10069_v56 = vsel %vm13483_vm6, %v9817_v15, %v2253_v42 }
 0x175   : > { %2701 = vst [vmem:[#allocation2 + $0x118] sm:$0xff] %v2601_v16  ;;  %7587 = vmatmul.mubr.bf16.gmra.mrb[56].mxu0 %v2601_v16  ;;  %v2257_v57 = vor.u32 %v2255_v23, %v2253_v42  ;;  %vm13485_vm4 = vnez %v13402_v49  ;;  %v13487_v43 = vmov 0  ;;  %v13489_v13 = vmax.f32 %v9574_v1, 0.0  ;;  %v10086_v23 = vpop.f32.mrb[23].mxu1  ;;  %v7963_v42 = vld [vmem:[%s12772_s2 + $0x48] sm:$0xff]   ;;  %2507 = vst [vmem:[#allocation2 + $0x110] sm:$0xff] %v10069_v56 }
 0x176   : > { %v13488_v43 = vsel %vm10077_vm2, 4294967295, %v13487_v43  ;;  %7590 = vmatprep.mubr.bf16.mxu0 %v2603_v46  ;;  %v1058_v15 = vmax.f32 %v9889_v34, 0.0  ;;  %13490 = vst [vmem:[#allocation14_spill] sm:$0xff] %v10086_v23  ;;  %2131 = vst [vmem:[#allocation2 + $0x168] sm:$0xff] %v10050_v17  ;;  %v2275_v2 = vshll.u32 %v10050_v17, 16  ;;  %v2279_v1 = vshrl.u32 %v10050_v17, 16  ;;  %3812 = vmatpush1.bf16.msra.mxu0 %v7963_v42 }
 0x177   : > { %v2046_v16 = vsel %vm10028_vm7, %v13489_v13, 0.0  ;;  %vm13491_vm7 = vmand %vm13477_vm12, %vm9768_vm15  ;;  %vm13492_vm6 = vnez %v13420_v60  ;;  %v13494_v46 = vld [vmem:[#allocation15_spill] sm:$0xff]  ;;  %vm13501_vm15 = vsmask.f32 7424  ;;  %v847_v47 = vadd.f32 %v10003_v58, %v7512_v30  ;;  %v838_v13 = vpop.f32.mrb[33].mxu0  ;;  %3813 = vmatprep.subr.bf16.mxu0 %v13242_v19 }
 0x178   : > { %v2031_v34 = vsel %vm13491_vm7, %v1042_v28, 0.0  ;;  %v13495_v12 = vand.u32 31, %v13494_v46  ;;  %v13498_v6 = vshra.s32 %v13494_v46, 5  ;;  %v10120_v41 = vsel %vm13501_vm15, %v2257_v57, %v9932_v26  ;;  %vm13510_vm15 = vmand %vm13482_vm13, %vm9809_vm10  ;;  %v7513_v48 = vpop.f32.mrb[34].mxu0  ;;  %v7964_v60 = vld [vmem:[%s12772_s2 + $0x50] sm:$0xff]  }
 0x179   : > { %13502 = vst [vmem:[#allocation9_spill] sm:$0xff] %v10120_v41  ;;  %v2092_v28 = vpack.c.bf16 %v2031_v34, %v2030_v39  ;;  %v13505_v23 = vmov 0  ;;  %v2047_v26 = vsel %vm13510_vm15, %v1058_v15, 0.0  ;;  %2508 = vst [vmem:[#allocation2 + $0x128] sm:$0xff] %v10120_v41  ;;  %v10141_v39 = vrot.slane %v2275_v2, 1  ;;  %v13515_v15 = vld [vmem:[#allocation43_spill] sm:$0xff] }
 0x17a   : > { %vm10107_vm2 = vcmp.le.s32.totalorder %v13495_v12, 16  ;;  %vm10113_vm8 = vcmp.ge.s32.totalorder %v13498_v6, 1  ;;  %v13503_v12 = vld [vmem:[#allocation11_spill] sm:$0xff]  ;;  %v839_v27 = vadd.f32 %v10003_v58, %v838_v13  ;;  %v10159_v2 = vadd.f32 %v10003_v58, %v13515_v15  ;;  %v13516_v34 = vld [vmem:[#allocation16_spill] sm:$0xff]  ;;  %v841_v48 = vpop.f32.mrb[35].mxu0  ;;  %3814 = vmatpush1.bf16.msra.mxu0 %v7964_v60  ;;  %v13569_v41 = vld [vmem:[#allocation17_spill] sm:$0xff] }
 0x17b   : > { %v13497_v32 = vsel %vm10107_vm2, 4294967295, %v13496_v32  ;;  %v13504_v63 = vshra.s32 %v13503_v12, 5  ;;  %v13517_v50 = vand.u32 31, %v13516_v34  ;;  %v13518_v49 = vmov 0  ;;  %2130 = vst [vmem:[#allocation2 + $0x150] sm:$0xff] %v2092_v28  ;;  %v13527_v15 = vld [vmem:[#allocation36_spill] sm:$0xff]  ;;  %3815 = vmatprep.subr.bf16.mxu0 %v13242_v19 }
 0x17c   : > { %v13520_v8 = vshra.s32 %v13516_v34, 5  ;;  %v13521_v30 = vmov 0  ;;  %v2267_v13 = vshll.u32 %v2092_v28, 16  ;;  %v2604_v12 = vrot.slane %v2092_v28, 1 }
 0x17d   : > { %vm10125_vm12 = vcmp.ge.s32.totalorder %v13504_v63, 1  ;;  %v13507_v6 = vmov %v13504_v63  ;;  %v10155_v63 = vpack.c.bf16 %v2047_v26, %v2046_v16  ;;  %vm10163_vm10 = vcmp.ge.s32.totalorder %v13517_v50, 1  ;;  %v13530_v50 = vld [vmem:[#allocation35_spill] sm:$0xff] }
 0x17e   : > { %v13506_v23 = vsel %vm10125_vm12, 4294967295, %v13505_v23  ;;  %vm10131_vm7 = vcmp.le.s32.totalorder %v13507_v6, 16  ;;  %vm13512_vm12 = vmand %vm13485_vm4, %vm13484_vm11  ;;  %v13519_v49 = vsel %vm10163_vm10, 4294967295, %v13518_v49  ;;  %vm10169_vm13 = vcmp.ge.s32.totalorder %v13520_v8, 1 }
 0x17f   : > { %vm10150_vm2 = vmand %vm13512_vm12, %vm13511_vm9  ;;  %v13522_v30 = vsel %vm10169_vm13, 4294967295, %v13521_v30  ;;  %v2271_v16 = vshrl.u32 %v2092_v28, 16  ;;  %v1047_v6 = vmax.f32 %v847_v47, 0.0  ;;  %vm13523_vm9 = vnez %v13430_v38  ;;  %2138 = vst [vmem:[#allocation2 + $0x210] sm:$0xff] %v10155_v63 }
 0x180   : > { %vm13524_vm11 = vmand %vm13493_vm0, %vm13492_vm6  ;;  %vm13528_vm12 = vnez %v13527_v15  ;;  %vm13529_vm15 = vmmov 1   ;;  %v13531_v8 = vmax.f32 %v13530_v50, 0.0  ;;  %v13532_v38 = vshra.s32 %v13494_v46, 5 }
 0x181   : > { %vm10180_vm4 = vmand %vm13524_vm11, %vm13523_vm9  ;;  %v10200_v47 = vor.u32 %v2279_v1, %v10141_v39  ;;  %v1045_v15 = vmax.f32 %v839_v27, 0.0  ;;  %v842_v50 = vadd.f32 %v10003_v58, %v841_v48  ;;  %v2331_v46 = vshll.u32 %v10155_v63, 16 }
 0x182   : > { %vm8090_vm10 = vmpackc.low %vm13529_vm15, %vm13528_vm12  ;;  %v8091_v28 = vpack.c.bf16 %v13104_v9, %v13531_v8  ;;  %vm10192_vm13 = vcmp.le.s32.totalorder %v13532_v38, 16  ;;  %v10206_v8 = vpop.f32.mrb[24].mxu1  ;;  %v2269_v42 = vrot.slane %v2267_v13, 1  ;;  %vm13537_vm0 = vcmask 1046528  }
 0x183   : > { %13535 = vst [vmem:[#allocation7_spill] sm:$0xff] %v10206_v8  ;;  %v13538_v1 = vrot.slane %v10050_v17, 1  ;;  %vm13539_vm6 = vmmov %vm13537_vm0  ;;  %vm13541_vm9 = vnez %v13440_v55  ;;  %v13542_v48 = vshra.s32 %v13516_v34, 5  ;;  %v2034_v57 = vsel %vm10180_vm4, %v1045_v15, 0.0  ;;  %v13556_v15 = vld [vmem:[#allocation19_spill] sm:$0xff] }
 0x184   : > { %8092 = vmatmul.mubr.msk.bf16.gmra.mrb[56].mxu1 %vm8090_vm10, %v8091_v28  ;;  %v13536_v28 = vrot.slane %v9865_v44, 1  ;;  %vm13540_vm10 = vnez %v13443_v54  ;;  %v10227_v44 = vpop.f32.mrb[25].mxu1  ;;  %v2333_v34 = vrot.slane %v2331_v46, 1  ;;  %v2335_v26 = vshrl.u32 %v10155_v63, 16 }
 0x185   : > { %3151 = vmatprep.mubr.bf16.mxu1 %v9735_v29  ;;  %v2607_v27 = vsel %vm13539_vm6, %v2604_v12, %v13538_v1  ;;  %v2036_v29 = vsel %vm10150_vm2, %v1047_v6, 0.0  ;;  %vm1807_vm11 = vmand %vm13541_vm9, %vm13540_vm10  ;;  %vm10223_vm12 = vcmp.le.s32.totalorder %v13542_v48, 16  ;;  %13545 = vst [vmem:[#allocation8_spill] sm:$0xff] %v10227_v44  ;;  %v1046_v6 = vmax.f32 %v842_v50, 0.0  ;;  %v13548_v50 = vld [vmem:[#allocation18_spill] sm:$0xff] }
 0x186   : > { %v2605_v38 = vsel %vm13537_vm0, %v13536_v28, %v2604_v12  ;;  %2704 = vst [vmem:[#allocation2 + $0x160] sm:$0xff] %v2607_v27  ;;  %v10230_v12 = vpack.c.bf16 %v13104_v9, %v2036_v29  ;;  %v7545_v28 = vpop.f32.mrb[26].mxu1  ;;  %vm13546_vm0 = vsmask.f32 7424  ;;  %v2273_v48 = vor.u32 %v2271_v16, %v2269_v42  ;;  %vm13565_vm9 = vmand %vm9984_vm5, %vm9990_vm3 }
 0x187   : > { %2703 = vst [vmem:[#allocation2 + $0x148] sm:$0xff] %v2605_v38  ;;  %7591 = vmatmul.mubr.bf16.gmra.mrb[60].mxu0 %v2605_v38  ;;  %v10240_v1 = vsel %vm13546_vm0, %v9998_v61, %v2269_v42  ;;  %v13549_v29 = vand.u32 31, %v13548_v50  ;;  %v13552_v61 = vshra.s32 %v13548_v50, 5  ;;  %v10260_v42 = vpop.f32.mrb[27].mxu1  ;;  %v7965_v38 = vld [vmem:[%s12772_s2 + $0x58] sm:$0xff]   ;;  %v2035_v60 = vsel %vm1807_vm11, %v1046_v6, 0.0  ;;  %vm13577_vm3 = vmand %vm10009_vm14, %vm10015_vm1 }
 0x188   : > { %13547 = vst [vmem:[#allocation37_spill] sm:$0xff] %v10240_v1  ;;  %7594 = vmatprep.mubr.bf16.mxu0 %v2607_v27  ;;  %13555 = vst [vmem:[#allocation38_spill] sm:$0xff] %v10260_v42  ;;  %v2291_v27 = vshll.u32 %v10230_v12, 16  ;;  %v2295_v28 = vshrl.u32 %v10230_v12, 16  ;;  %v13557_v42 = vand.u32 31, %v13556_v15  ;;  %v13558_v44 = vmov 0  ;;  %3816 = vmatpush1.bf16.msra.mxu0 %v7965_v38 }
 0x189   : > { %vm10250_vm4 = vcmp.le.s32.totalorder %v13549_v29, 16  ;;  %vm10256_vm0 = vcmp.ge.s32.totalorder %v13552_v61, 1  ;;  %2509 = vst [vmem:[#allocation2 + $0x140] sm:$0xff] %v10240_v1  ;;  %2133 = vst [vmem:[#allocation2 + $0x198] sm:$0xff] %v10230_v12  ;;  %v7516_v61 = vpop.f32.mrb[36].mxu0  ;;  %v13560_v1 = vshra.s32 %v13556_v15, 5  ;;  %v2094_v54 = vpack.c.bf16 %v2035_v60, %v2034_v57  ;;  %3817 = vmatprep.subr.bf16.mxu0 %v13242_v19 }
 0x18a   : > { %vm10277_vm6 = vcmp.ge.s32.totalorder %v13557_v42, 1  ;;  %v13561_v8 = vmov 0  ;;  %vm13563_vm15 = vsmask.f32 7424  ;;  %v863_v6 = vadd.f32 %v10003_v58, %v7516_v61  ;;  %v854_v29 = vpop.f32.mrb[37].mxu0  ;;  %v13598_v38 = vld [vmem:[#allocation21_spill] sm:$0xff] }
 0x18b   : > { %v13559_v44 = vsel %vm10277_vm6, 4294967295, %v13558_v44  ;;  %vm10283_vm2 = vcmp.ge.s32.totalorder %v13560_v1, 1  ;;  %v2278_v55 = vsel %vm13563_vm15, %v2273_v48, %v10141_v39  ;;  %vm13564_vm10 = vnez %v13481_v10  ;;  %vm13568_vm6 = vmmov %vm13563_vm15  ;;  %v7517_v48 = vpop.f32.mrb[38].mxu0  ;;  %2132 = vst [vmem:[#allocation2 + $0x180] sm:$0xff] %v2094_v54 }
 0x18c   : > { %v13562_v8 = vsel %vm10283_vm2, 4294967295, %v13561_v8  ;;  %vm10298_vm11 = vmand %vm13565_vm9, %vm13564_vm10  ;;  %v2334_v42 = vsel %vm13568_vm6, %v9480_v5, %v2333_v34  ;;  %v13570_v39 = vshra.s32 %v13569_v41, 5  ;;  %v13571_v57 = vmov 0  ;;  %2510 = vst [vmem:[#allocation2 + $0x158] sm:$0xff] %v2278_v55  ;;  %v10391_v48 = vpop.f32.mrb[28].mxu1 }
 0x18d   : > { %v10316_v33 = vrot.slane %v2291_v27, 1  ;;  %vm13576_vm5 = vnez %v13488_v43  ;;  %v855_v41 = vadd.f32 %v10003_v58, %v854_v29  ;;  %v2337_v60 = vor.u32 %v2335_v26, %v2333_v34  ;;  %2517 = vst [vmem:[#allocation2 + $0x200] sm:$0xff] %v2334_v42  ;;  %v857_v34 = vpop.f32.mrb[39].mxu0  ;;  %v10418_v5 = vpop.f32.mrb[29].mxu1 }
 0x18e   : > { %vm10306_vm15 = vcmp.ge.s32.totalorder %v13570_v39, 1  ;;  %v13573_v10 = vmov %v13570_v39  ;;  %vm10325_vm6 = vmand %vm13577_vm3, %vm13576_vm5  ;;  %v13580_v61 = vrot.slane %v10155_v63, 1  ;;  %v13581_v27 = vrot.slane %v9273_v21, 1  ;;  %v7549_v1 = vpop.f32.mrb[30].mxu1 }
 0x18f   : > { %v13572_v57 = vsel %vm10306_vm15, 4294967295, %v13571_v57  ;;  %vm10312_vm2 = vcmp.le.s32.totalorder %v13573_v10, 16  ;;  %vm13582_vm10 = vcmask 1046528   ;;  %v13583_v25 = vshra.s32 %v13548_v50, 5 }
 0x190   : > { %v13575_v22 = vsel %vm10312_vm2, 4294967295, %v13574_v22  ;;  %v10335_v43 = vsel %vm13582_vm10, %v13581_v27, %v13580_v61  ;;  %v13584_v51 = vmov 0  ;;  %v2283_v55 = vshll.u32 %v2094_v54, 16 }
 0x191   : > { %vm10339_vm9 = vcmp.le.s32.totalorder %v13583_v25, 16  ;;  %v2287_v39 = vshrl.u32 %v2094_v54, 16  ;;  %v2608_v29 = vrot.slane %v2094_v54, 1  ;;  %v1051_v10 = vmax.f32 %v863_v6, 0.0  ;;  %2711 = vst [vmem:[#allocation2 + $0x208] sm:$0xff] %v10335_v43 }
 0x192   : > { %v13585_v51 = vsel %vm10339_vm9, 4294967295, %v13584_v51  ;;  %vm13586_vm14 = vnez %v13258_v36  ;;  %vm13587_vm1 = vnez %v13187_v20  ;;  %vm13588_vm5 = vnez %v13190_v45  ;;  %v7966_v45 = vld [vmem:[%s12772_s2 + $0x60] sm:$0xff]  }
 0x193   : > { %vm13589_vm3 = vmand %vm13587_vm1, %vm13588_vm5  ;;  %v13590_v21 = vmax.f32 %v9361_v53, 0.0  ;;  %v13591_v26 = vmax.f32 %v9419_v3, 0.0  ;;  %vm13592_vm9 = vnez %v13497_v32  ;;  %v13593_v36 = vshra.s32 %v13556_v15, 5  ;;  %3818 = vmatpush1.bf16.msra.mxu0 %v7966_v45 }
 0x194   : > { %vm8093_vm10 = vmpackc.low %vm13589_vm3, %vm13586_vm14  ;;  %v13594_v20 = vmov 0  ;;  %v10369_v53 = vor.u32 %v2295_v28, %v10316_v33  ;;  %v1049_v3 = vmax.f32 %v855_v41, 0.0  ;;  %v858_v54 = vadd.f32 %v10003_v58, %v857_v34  ;;  %v13611_v34 = vld [vmem:[#allocation20_spill] sm:$0xff]  ;;  %3819 = vmatprep.subr.bf16.mxu0 %v13242_v19 }
 0x195   : > { %v8094_v50 = vpack.c.bf16 %v13591_v26, %v13590_v21  ;;  %vm10361_vm2 = vcmp.le.s32.totalorder %v13593_v36, 16  ;;  %vm13596_vm14 = vnez %v13506_v23  ;;  %vm13597_vm5 = vsmask.f32 7424 }
 0x196   : > { %v13595_v20 = vsel %vm10361_vm2, 4294967295, %v13594_v20  ;;  %v2342_v15 = vsel %vm13597_vm5, %v2337_v60, %v10019_v4  ;;  %v13599_v6 = vand.u32 31, %v13598_v38  ;;  %v13600_v42 = vmov 0 }
 0x197   : > { %8095 = vmatmul.mubr.msk.bf16.gmra.mrb[60].mxu1 %vm8093_vm10, %v8094_v50  ;;  %v13602_v28 = vshra.s32 %v13598_v38, 5  ;;  %v13603_v41 = vmov 0  ;;  %v13605_v61 = vrot.slane %v10050_v17, 1  ;;  %vm13606_vm5 = vcmask 1046528   ;;  %2518 = vst [vmem:[#allocation2 + $0x218] sm:$0xff] %v2342_v15 }
 0x198   : > { %3159 = vmatprep.mubr.bf16.mxu1 %v9874_v40  ;;  %vm10381_vm3 = vcmp.le.s32.totalorder %v13599_v6, 16  ;;  %v2285_v40 = vrot.slane %v2283_v55, 1  ;;  %v13607_v60 = vrot.slane %v10230_v12, 1  ;;  %vm13608_vm1 = vmmov %vm13606_vm5  ;;  %v2040_v25 = vsel %vm10325_vm6, %v1051_v10, 0.0 }
 0x199   : > { %v13601_v42 = vsel %vm10381_vm3, 4294967295, %v13600_v42  ;;  %vm10387_vm10 = vcmp.ge.s32.totalorder %v13602_v28, 1  ;;  %v2609_v4 = vsel %vm13606_vm5, %v13605_v61, %v2608_v29  ;;  %vm13609_vm15 = vnez %v13522_v30  ;;  %vm13620_vm6 = vmmov %vm13608_vm1  ;;  %v13646_v28 = vld [vmem:[#allocation39_spill] sm:$0xff]  ;;  %v13732_v61 = vld [vmem:[#allocation42_spill] sm:$0xff] }
 0x19a   : > { %v13604_v41 = vsel %vm10387_vm10, 4294967295, %v13603_v41  ;;  %v2611_v27 = vsel %vm13608_vm1, %v2608_v29, %v13607_v60  ;;  %vm13610_vm3 = vnez %v13519_v49  ;;  %v13612_v21 = vshra.s32 %v13611_v34, 5  ;;  %2705 = vst [vmem:[#allocation2 + $0x178] sm:$0xff] %v2609_v4  ;;  %7595 = vmatmul.mubr.bf16.gmra.mrb[64].mxu0 %v2609_v4  ;;  %vm13621_vm1 = vmand %vm13592_vm9, %vm10113_vm8  ;;  %v10457_v4 = vpop.f32.mrb[31].mxu1  ;;  %v13633_v60 = vld [vmem:[#allocation22_spill] sm:$0xff] }
 0x19b   : > { %v13613_v55 = vmov 0  ;;  %v13616_v26 = vmov 0  ;;  %2706 = vst [vmem:[#allocation2 + $0x190] sm:$0xff] %v2611_v27  ;;  %v10421_v29 = vpack.c.bf16 %v13104_v9, %v2040_v25  ;;  %v2038_v10 = vsel %vm10298_vm11, %v1049_v3, 0.0  ;;  %vm10439_vm10 = vmand %vm13621_vm1, %vm10192_vm13  ;;  %7598 = vmatprep.mubr.bf16.mxu0 %v2611_v27 }
 0x19c   : > { %vm10408_vm2 = vcmp.ge.s32.totalorder %v13612_v21, 1  ;;  %v13615_v17 = vmov %v13612_v21  ;;  %v1050_v50 = vmax.f32 %v858_v54, 0.0  ;;  %v13618_v36 = vrot.slane %v9870_v14, 1  ;;  %vm13629_vm13 = vmand %vm13596_vm14, %vm10131_vm7 }
 0x19d   : > { %v13614_v55 = vsel %vm10408_vm2, 4294967295, %v13613_v55  ;;  %vm10414_vm5 = vcmp.le.s32.totalorder %v13615_v17, 16  ;;  %v13619_v15 = vrot.slane %v10155_v63, 1  ;;  %vm13624_vm11 = vsmask.f32 7424  ;;  %2135 = vst [vmem:[#allocation2 + $0x1c8] sm:$0xff] %v10421_v29  ;;  %vm13630_vm9 = vmand %vm13610_vm3, %vm13609_vm15 }
 0x19e   : > { %v13617_v26 = vsel %vm10414_vm5, 4294967295, %v13616_v26  ;;  %v2286_v3 = vsel %vm13624_vm11, %v10200_v47, %v2285_v40  ;;  %v2289_v54 = vor.u32 %v2287_v39, %v2285_v40  ;;  %v1063_v63 = vmax.f32 %v10159_v2, 0.0  ;;  %v7967_v47 = vld [vmem:[%s12772_s2 + $0x68] sm:$0xff]   ;;  %vm13640_vm15 = vmmov %vm13624_vm11 }
 0x19f   : > { %v10430_v6 = vsel %vm13620_vm6, %v13619_v15, %v13618_v36  ;;  %v10449_v32 = vadd.f32 %v10003_v58, %v13625_v18  ;;  %v13626_v7 = vshra.s32 %v13598_v38, 5  ;;  %2511 = vst [vmem:[#allocation2 + $0x170] sm:$0xff] %v2286_v3  ;;  %v2307_v2 = vshll.u32 %v10421_v29, 16  ;;  %vm10478_vm6 = vmand %vm13630_vm9, %vm10223_vm12  ;;  %3820 = vmatpush1.bf16.msra.mxu0 %v7967_v47  ;;  %v7968_v18 = vld [vmem:[%s12772_s2 + $0x70] sm:$0xff]   ;;  %v13655_v47 = vld [vmem:[#allocation24_spill] sm:$0xff] }
 0x1a0   : > { %2712 = vst [vmem:[#allocation2 + $0x220] sm:$0xff] %v10430_v6  ;;  %v2311_v39 = vshrl.u32 %v10421_v29, 16  ;;  %v2614_v38 = vrot.slane %v10421_v29, 1  ;;  %v2039_v40 = vsel %vm13629_vm13, %v1050_v50, 0.0  ;;  %v13631_v45 = vmov 0  ;;  %3821 = vmatprep.subr.bf16.mxu0 %v13242_v19 }
 0x1a1   : > { %vm10453_vm8 = vcmp.le.s32.totalorder %v13626_v7, 16  ;;  %v13632_v45 = vsel %vm10478_vm6, 4294967295, %v13631_v45  ;;  %v13634_v27 = vand.u32 31, %v13633_v60  ;;  %v13635_v25 = vmov 0 }
 0x1a2   : > { %v13637_v62 = vshra.s32 %v13633_v60, 5  ;;  %v2294_v49 = vsel %vm13640_vm15, %v2289_v54, %v10316_v33  ;;  %v2096_v30 = vpack.c.bf16 %v2039_v40, %v2038_v10  ;;  %v2052_v13 = vsel %vm10439_vm10, %v1063_v63, 0.0 }
 0x1a3   : > { %vm10484_vm1 = vcmp.ge.s32.totalorder %v13634_v27, 1  ;;  %v12942_v34 = vmax.f32 %v10449_v32, 0.0  ;;  %2512 = vst [vmem:[#allocation2 + $0x188] sm:$0xff] %v2294_v49  ;;  %v10500_v21 = vrot.slane %v2307_v2, 1  ;;  %v13641_v17 = vrot.slane %v9539_v31, 1  ;;  %v13643_v31 = vld [vmem:[#allocation40_spill] sm:$0xff]  ;;  %3822 = vmatpush1.bf16.msra.mxu0 %v7968_v18 }
 0x1a4   : > { %v13636_v25 = vsel %vm10484_vm1, 4294967295, %v13635_v25  ;;  %vm10490_vm7 = vcmp.ge.s32.totalorder %v13637_v62, 1  ;;  %vm13642_vm12 = vcmask 1046528   ;;  %v10508_v50 = vpack.c.bf16 %v13104_v9, %v2052_v13  ;;  %2134 = vst [vmem:[#allocation2 + $0x1b0] sm:$0xff] %v2096_v30  ;;  %3823 = vmatprep.subr.bf16.mxu0 %v13242_v19 }
 0x1a5   : > { %v10505_v29 = vsel %vm13642_vm12, %v2614_v38, %v13641_v17  ;;  %v10512_v33 = vadd.f32 %v10003_v58, %v9505_v35  ;;  %v2299_v10 = vshll.u32 %v2096_v30, 16  ;;  %v2303_v36 = vshrl.u32 %v2096_v30, 16 }
 0x1a6   : > { %v2612_v15 = vrot.slane %v2096_v30, 1  ;;  %2709 = vst [vmem:[#allocation2 + $0x1d8] sm:$0xff] %v10505_v29  ;;  %vm13644_vm3 = vnez %v13643_v31  ;;  %vm13645_vm10 = vmmov 1   ;;  %v13647_v1 = vmax.f32 %v13646_v28, 0.0  ;;  %2141 = vst [vmem:[#allocation2 + $0x258] sm:$0xff] %v10508_v50 }
 0x1a7   : > { %vm8096_vm11 = vmpackc.low %vm13645_vm10, %vm13644_vm3  ;;  %v2050_v3 = vsel %vm10478_vm6, %v12942_v34, 0.0  ;;  %vm13648_vm13 = vnez %v13562_v8  ;;  %vm13649_vm9 = vnez %v13559_v44  ;;  %v13650_v54 = vmov %v13637_v62  ;;  %v10771_v34 = vpop.f32.mrb[32].mxu1 }
 0x1a8   : > { %v8097_v35 = vpack.c.bf16 %v13104_v9, %v13647_v1  ;;  %vm10535_vm12 = vcmp.le.s32.totalorder %v13650_v54, 16  ;;  %v13651_v63 = vmov 0  ;;  %v2313_v7 = vor.u32 %v2311_v39, %v10500_v21 }
 0x1a9   : > { %v13652_v63 = vsel %vm10535_vm12, 4294967295, %v13651_v63  ;;  %v2355_v2 = vshll.u32 %v10508_v50, 16  ;;  %v2359_v40 = vshrl.u32 %v10508_v50, 16  ;;  %v12943_v60 = vrot.slane %v10508_v50, 1 }
 0x1aa   : > { %8098 = vmatmul.mubr.msk.bf16.gmra.mrb[64].mxu1 %vm8096_vm11, %v8097_v35  ;;  %vm13653_vm3 = vnez %v13575_v22  ;;  %vm13654_vm11 = vnez %v13572_v57  ;;  %v13656_v27 = vand.u32 31, %v13655_v47  ;;  %v13657_v62 = vmov 0  ;;  %v13677_v35 = vld [vmem:[#allocation5_spill] sm:$0xff] }
 0x1ab   : > { %3167 = vmatprep.mubr.bf16.mxu1 %v9923_v37  ;;  %v13659_v37 = vshra.s32 %v13655_v47, 5  ;;  %v13660_v39 = vmov 0  ;;  %v2301_v49 = vrot.slane %v2299_v10, 1  ;;  %v13662_v30 = vrot.slane %v10230_v12, 1  ;;  %v13669_v10 = vld [vmem:[#allocation25_spill] sm:$0xff] }
 0x1ac   : > { %vm10554_vm14 = vcmp.le.s32.totalorder %v13656_v27, 16  ;;  %vm13663_vm6 = vcmask 1046528   ;;  %v12939_v31 = vmax.f32 %v10512_v33, 0.0  ;;  %vm13665_vm12 = vnez %v13585_v51 }
 0x1ad   : > { %v13658_v62 = vsel %vm10554_vm14, 4294967295, %v13657_v62  ;;  %vm10560_vm10 = vcmp.ge.s32.totalorder %v13659_v37, 1  ;;  %v2613_v13 = vsel %vm13663_vm6, %v13662_v30, %v2612_v15  ;;  %vm13664_vm15 = vmmov %vm13663_vm6  ;;  %v13670_v1 = vand.u32 31, %v13669_v10  ;;  %v13694_v30 = vld [vmem:[#allocation4_spill] sm:$0xff] }
 0x1ae   : > { %v13661_v39 = vsel %vm10560_vm10, 4294967295, %v13660_v39  ;;  %v2615_v17 = vsel %vm13664_vm15, %v2612_v15, %v2614_v38  ;;  %vm13666_vm14 = vmand %vm10250_vm4, %vm10256_vm0  ;;  %v13671_v12 = vmov 0  ;;  %v13673_v38 = vshra.s32 %v13669_v10, 5  ;;  %2707 = vst [vmem:[#allocation2 + $0x1a8] sm:$0xff] %v2613_v13  ;;  %7599 = vmatmul.mubr.bf16.gmra.mrb[68].mxu0 %v2613_v13  ;;  %v13808_v15 = vld [vmem:[#allocation9_spill] sm:$0xff] }
 0x1af   : > { %vm10577_vm1 = vmand %vm13666_vm14, %vm13665_vm12  ;;  %vm10583_vm10 = vcmp.ge.s32.totalorder %v13670_v1, 1  ;;  %2708 = vst [vmem:[#allocation2 + $0x1c0] sm:$0xff] %v2615_v17  ;;  %vm13676_vm4 = vsmask.f32 7424  ;;  %v10595_v16 = vrot.slane %v2355_v2, 1  ;;  %v927_v51 = vadd.f32 %v10003_v58, %v9626_v52  ;;  %7602 = vmatprep.mubr.bf16.mxu0 %v2615_v17  ;;  %v7972_v17 = vld [vmem:[%s12772_s2 + $0xb0] sm:$0xff]  }
 0x1b0   : > { %v13672_v12 = vsel %vm10583_vm10, 4294967295, %v13671_v12  ;;  %vm10589_vm6 = vcmp.ge.s32.totalorder %v13673_v38, 1  ;;  %v2318_v46 = vsel %vm13676_vm4, %v2313_v7, %v9668_v11  ;;  %v10601_v54 = vadd.f32 %v10003_v58, %v13677_v35  ;;  %vm13680_vm14 = vmand %vm13649_vm9, %vm13648_vm13  ;;  %v13683_v11 = vld [vmem:[#allocation23_spill] sm:$0xff]  ;;  %7646 = vmatprep.subr.bf16.mxu1 %v7972_v17 }
 0x1b1   : > { %vm13679_vm0 = vnez %v13595_v20  ;;  %v13681_v27 = vmov 0  ;;  %v13684_v7 = vshra.s32 %v13683_v11, 5  ;;  %v13685_v2 = vmov 0  ;;  %2515 = vst [vmem:[#allocation2 + $0x1d0] sm:$0xff] %v2318_v46  ;;  %vm13693_vm13 = vmand %vm13654_vm11, %vm13653_vm3  ;;  %7647 = vmatpush3.bf16.msra.mxu1 %v7972_v17 }
 0x1b2   : > { %13678 = vst [vmem:[#allocation10_spill] sm:$0xff] %v10601_v54  ;;  %vm10610_vm15 = vmand %vm13680_vm14, %vm13679_vm0  ;;  %v13689_v37 = vmov 0  ;;  %vm13692_vm10 = vsmask.f32 7424  ;;  %v2305_v44 = vor.u32 %v2303_v36, %v2301_v49  ;;  %v2051_v20 = vsel %vm13693_vm13, %v12939_v31, 0.0 }
 0x1b3   : > { %v13682_v27 = vsel %vm10610_vm15, 4294967295, %v13681_v27  ;;  %vm10616_vm12 = vcmp.ge.s32.totalorder %v13684_v7, 1  ;;  %v13688_v52 = vmov %v13684_v7  ;;  %v2302_v8 = vsel %vm13692_vm10, %v10369_v53, %v2301_v49  ;;  %v7970_v49 = vld [vmem:[%s12772_s2 + $0x78] sm:$0xff]  }
 0x1b4   : > { %v13686_v2 = vsel %vm10616_vm12, 4294967295, %v13685_v2  ;;  %vm10622_vm4 = vcmp.le.s32.totalorder %v13688_v52, 16  ;;  %v10637_v13 = vadd.f32 %v10003_v58, %v13694_v30  ;;  %vm13696_vm9 = vnez %v13604_v41  ;;  %2513 = vst [vmem:[#allocation2 + $0x1a0] sm:$0xff] %v2302_v8  ;;  %v13730_v41 = vld [vmem:[#allocation41_spill] sm:$0xff]  ;;  %3824 = vmatpush1.bf16.msra.mxu0 %v7970_v49 }
 0x1b5   : > { %13687 = vst [vmem:[#allocation12_spill] sm:$0xff] %v13686_v2  ;;  %v13690_v37 = vsel %vm10622_vm4, 4294967295, %v13689_v37  ;;  %vm13697_vm0 = vnez %v13601_v42  ;;  %v13698_v53 = vshra.s32 %v13655_v47, 5  ;;  %v10656_v1 = vor.u32 %v2359_v40, %v10595_v16  ;;  %v13728_v42 = vld [vmem:[#allocation46_spill] sm:$0xff] }
 0x1b6   : > { %13691 = vst [vmem:[#allocation15_spill] sm:$0xff] %v13690_v37  ;;  %13695 = vst [vmem:[#allocation11_spill] sm:$0xff] %v10637_v13  ;;  %v2102_v38 = vpack.c.bf16 %v2051_v20, %v2050_v3  ;;  %v1067_v46 = vmax.f32 %v927_v51, 0.0  ;;  %v12941_v47 = vmax.f32 %v10601_v54, 0.0  ;;  %v13701_v18 = vshra.s32 %v13669_v10, 5  ;;  %v13705_v51 = vld [vmem:[#allocation6_spill] sm:$0xff]  ;;  %7603 = vmatmul.mubr.bf16.gmra.mrb[72].mxu0 %v10505_v29 }
 0x1b7   : > { %vm10645_vm14 = vcmp.le.s32.totalorder %v13698_v53, 16  ;;  %v13702_v35 = vmov 0  ;;  %vm13704_vm3 = vsmask.f32 7424  ;;  %v12940_v3 = vmax.f32 %v10637_v13, 0.0  ;;  %v13708_v10 = vld [vmem:[#allocation26_spill] sm:$0xff] }
 0x1b8   : > { %vm10665_vm10 = vcmp.le.s32.totalorder %v13701_v18, 16  ;;  %v2310_v40 = vsel %vm13704_vm3, %v2305_v44, %v10500_v21  ;;  %v10675_v11 = vadd.f32 %v10003_v58, %v13705_v51  ;;  %v10679_v7 = vadd.f32 %v10003_v58, %v9862_v59  ;;  %2140 = vst [vmem:[#allocation2 + $0x240] sm:$0xff] %v2102_v38  ;;  %vm13717_vm3 = vmand %vm13697_vm0, %vm13696_vm9  ;;  %v13721_v51 = vld [vmem:[#allocation27_spill] sm:$0xff] }
 0x1b9   : > { %v13703_v35 = vsel %vm10665_vm10, 4294967295, %v13702_v35  ;;  %v13709_v52 = vshra.s32 %v13708_v10, 5  ;;  %v13710_v8 = vmov 0  ;;  %v13714_v21 = vmov 0  ;;  %2514 = vst [vmem:[#allocation2 + $0x1b8] sm:$0xff] %v2310_v40 }
 0x1ba   : > { %13706 = vst [vmem:[#allocation43_spill] sm:$0xff] %v10675_v11  ;;  %13707 = vst [vmem:[#allocation16_spill] sm:$0xff] %v10679_v7  ;;  %v2347_v44 = vshll.u32 %v2102_v38, 16  ;;  %v2351_v30 = vshrl.u32 %v2102_v38, 16  ;;  %v2624_v53 = vrot.slane %v2102_v38, 1  ;;  %v2056_v59 = vsel %vm10577_vm1, %v1067_v46, 0.0 }
 0x1bb   : > { %vm10683_vm13 = vcmp.ge.s32.totalorder %v13709_v52, 1  ;;  %v13713_v20 = vmov %v13709_v52  ;;  %v13718_v18 = vmov 0  ;;  %v13722_v40 = vand.u32 31, %v13721_v51  ;;  %v13735_v46 = vld [vmem:[#allocation45_spill] sm:$0xff] }
 0x1bc   : > { %v13711_v8 = vsel %vm10683_vm13, 4294967295, %v13710_v8  ;;  %vm10689_vm11 = vcmp.le.s32.totalorder %v13713_v20, 16  ;;  %vm10702_vm13 = vmand %vm13717_vm3, %vm10453_vm8  ;;  %v13725_v28 = vshra.s32 %v13721_v51, 5  ;;  %vm13729_vm10 = vnez %v13728_v42  ;;  %v13737_v20 = vld [vmem:[#allocation47_spill] sm:$0xff] }
 0x1bd   : > { %13712 = vst [vmem:[#allocation36_spill] sm:$0xff] %v13711_v8  ;;  %v13715_v21 = vsel %vm10689_vm11, 4294967295, %v13714_v21  ;;  %v13719_v18 = vsel %vm10702_vm13, 4294967295, %v13718_v18  ;;  %vm10708_vm11 = vcmp.le.s32.totalorder %v13722_v40, 16  ;;  %vm13731_vm8 = vnez %v13730_v41 }
 0x1be   : > { %13716 = vst [vmem:[#allocation35_spill] sm:$0xff] %v13715_v21  ;;  %13720 = vst [vmem:[#allocation18_spill] sm:$0xff] %v13719_v18  ;;  %vm10714_vm1 = vcmp.ge.s32.totalorder %v13725_v28, 1  ;;  %vm13733_vm9 = vnez %v13732_v61  ;;  %v13736_v52 = vmax.f32 %v13735_v46, 0.0  ;;  %v13738_v40 = vmax.f32 %v13737_v20, 0.0 }
 0x1bf   : > { %vm13734_vm0 = vmand %vm13731_vm8, %vm13733_vm9  ;;  %v10730_v28 = vpack.c.bf16 %v13104_v9, %v2056_v59  ;;  %v2054_v17 = vsel %vm10610_vm15, %v12941_v47, 0.0  ;;  %v12948_v41 = vmax.f32 %v10675_v11, 0.0  ;;  %vm13740_vm8 = vnez %v13636_v25 }
 0x1c0   : > { %vm8099_vm3 = vmpackc.low %vm13734_vm0, %vm13729_vm10  ;;  %v8100_v31 = vpack.c.bf16 %v13738_v40, %v13736_v52  ;;  %v2349_v20 = vrot.slane %v2347_v44, 1  ;;  %v13748_v40 = vrot.slane %v9870_v14, 1  ;;  %v10843_v23 = vadd.f32 %v10003_v58, %v9891_v24  ;;  %v11070_v52 = vld [vmem:[#allocation2 + $0x120] sm:$0xff] }
 0x1c1   : > { %vm13739_vm10 = vmand %vm10408_vm2, %vm10414_vm5  ;;  %2143 = vst [vmem:[#allocation2 + $0x288] sm:$0xff] %v10730_v28  ;;  %v2371_v14 = vshll.u32 %v10730_v28, 16  ;;  %v2375_v49 = vshrl.u32 %v10730_v28, 16 }
 0x1c2   : > { %8101 = vmatmul.mubr.msk.bf16.gmra.mrb[68].mxu1 %vm8099_vm3, %v8100_v31  ;;  %v2055_v42 = vsel %vm13739_vm10, %v12940_v3, 0.0  ;;  %v13741_v31 = vld [vmem:[#allocation28_spill] sm:$0xff]  ;;  %vm13749_vm10 = vcmask 1046528   ;;  %vm13756_vm5 = vmand %vm13740_vm8, %vm10490_vm7  ;;  %vm13765_vm7 = vnez %v13658_v62  ;;  %13774 = vst [vmem:[#allocation17_spill] sm:$0xff] %v10843_v23 }
 0x1c3   : > { %v13742_v59 = vand.u32 31, %v13741_v31  ;;  %v13745_v46 = vshra.s32 %v13741_v31, 5  ;;  %v10763_v3 = vsel %vm13749_vm10, %v13748_v40, %v2624_v53  ;;  %vm13750_vm9 = vmmov %vm13749_vm10  ;;  %3175 = vmatprep.mubr.bf16.mxu1 %v10069_v56  ;;  %v2104_v47 = vpack.c.bf16 %v2055_v42, %v2054_v17  ;;  %v10789_v42 = vpop.f32.mrb[33].mxu1 }
 0x1c4   : > { %2713 = vst [vmem:[#allocation2 + $0x238] sm:$0xff] %v10763_v3  ;;  %v2060_v56 = vsel %vm10702_vm13, %v12948_v41, 0.0  ;;  %v13752_v17 = vmov 0  ;;  %vm13754_vm10 = vsmask.f32 7424  ;;  %v2353_v40 = vor.u32 %v2351_v30, %v2349_v20  ;;  %v7553_v29 = vpop.f32.mrb[34].mxu1 }
 0x1c5   : > { %vm10750_vm0 = vcmp.ge.s32.totalorder %v13742_v59, 1  ;;  %vm10756_vm3 = vcmp.ge.s32.totalorder %v13745_v46, 1  ;;  %v10768_v59 = vsel %vm13750_vm9, %v2624_v53, %v12943_v60  ;;  %v13751_v53 = vshra.s32 %v13721_v51, 5  ;;  %2142 = vst [vmem:[#allocation2 + $0x270] sm:$0xff] %v2104_v47 }
 0x1c6   : > { %2714 = vst [vmem:[#allocation2 + $0x250] sm:$0xff] %v10768_v59  ;;  %v10793_v46 = vsel %vm13754_vm10, %v10061_v0, %v2349_v20  ;;  %v2363_v44 = vshll.u32 %v2104_v47, 16  ;;  %v2367_v60 = vshrl.u32 %v2104_v47, 16  ;;  %vm13755_vm13 = vnez %v13652_v63 }
 0x1c7   : > { %vm10785_vm9 = vcmp.le.s32.totalorder %v13751_v53, 16  ;;  %vm10803_vm2 = vmand %vm13756_vm5, %vm13755_vm13  ;;  %v13757_v51 = vmov 0  ;;  %v13760_v0 = vshra.s32 %v13741_v31, 5  ;;  %v13761_v30 = vmov 0  ;;  %2519 = vst [vmem:[#allocation2 + $0x230] sm:$0xff] %v10793_v46  ;;  %v13763_v53 = vld [vmem:[#allocation13_spill] sm:$0xff] }
 0x1c8   : > { %v13753_v17 = vsel %vm10785_vm9, 4294967295, %v13752_v17  ;;  %v13758_v51 = vsel %vm10803_vm2, 4294967295, %v13757_v51  ;;  %v2373_v20 = vrot.slane %v2371_v14, 1  ;;  %v2628_v63 = vrot.slane %v2104_v47, 1  ;;  %7606 = vmatprep.mubr.bf16.mxu0 %v13763_v53  ;;  %v13766_v31 = vld [vmem:[#allocation29_spill] sm:$0xff] }
 0x1c9   : > { %13759 = vst [vmem:[#allocation19_spill] sm:$0xff] %v13758_v51  ;;  %vm10809_vm10 = vcmp.le.s32.totalorder %v13760_v0, 16  ;;  %v10816_v25 = vpack.c.bf16 %v13104_v9, %v2060_v56  ;;  %vm13764_vm5 = vnez %v13661_v39  ;;  %v13767_v0 = vshra.s32 %v13766_v31, 5  ;;  %v10835_v56 = vpop.f32.mrb[35].mxu1  ;;  %7607 = vmatmul.mubr.bf16.gmra.mrb[76].mxu0 %v10335_v43 }
 0x1ca   : > { %v13762_v30 = vsel %vm10809_vm10, 4294967295, %v13761_v30  ;;  %v13768_v29 = vmov 0  ;;  %v13771_v14 = vmov 0  ;;  %vm13773_vm10 = vsmask.f32 7424  ;;  %7610 = vmatprep.mubr.bf16.mxu0 %v10430_v6 }
 0x1cb   : > { %vm10825_vm8 = vcmp.ge.s32.totalorder %v13767_v0, 1  ;;  %v13770_v47 = vmov %v13767_v0  ;;  %v10839_v53 = vsel %vm13773_vm10, %v2353_v40, %v10595_v16  ;;  %v2365_v41 = vrot.slane %v2363_v44, 1  ;;  %v13775_v0 = vld [vmem:[#allocation34_spill] sm:$0xff]  ;;  %2145 = vst [vmem:[#allocation2 + $0x2b8] sm:$0xff] %v10816_v25 }
 0x1cc   : > { %v13769_v29 = vsel %vm10825_vm8, 4294967295, %v13768_v29  ;;  %vm10831_vm15 = vcmp.le.s32.totalorder %v13770_v47, 16  ;;  %v10847_v11 = vadd.f32 %v10003_v58, %v13775_v0  ;;  %vm13777_vm13 = vnez %v13672_v12  ;;  %2520 = vst [vmem:[#allocation2 + $0x248] sm:$0xff] %v10839_v53  ;;  %v13782_v47 = vld [vmem:[#allocation30_spill] sm:$0xff]  ;;  %vm13791_vm8 = vmand %vm13765_vm7, %vm13764_vm5 }
 0x1cd   : > { %v13772_v14 = vsel %vm10831_vm15, 4294967295, %v13771_v14  ;;  %v13778_v31 = vrot.slane %v10508_v50, 1  ;;  %vm13779_vm10 = vcmask 1046528   ;;  %v13780_v44 = vrot.slane %v10730_v28, 1  ;;  %vm13797_vm5 = vmand %vm13777_vm13, %vm10589_vm6 }
 0x1ce   : > { %13776 = vst [vmem:[#allocation21_spill] sm:$0xff] %v10847_v11  ;;  %vm13781_vm15 = vmmov %vm13779_vm10  ;;  %v2387_v40 = vshll.u32 %v10816_v25, 16  ;;  %v13783_v0 = vand.u32 31, %v13782_v47  ;;  %v13784_v50 = vmov 0  ;;  %v2369_v13 = vor.u32 %v2367_v60, %v2365_v41 }
 0x1cf   : > { %v10857_v16 = vsel %vm13779_vm10, %v13778_v31, %v2628_v63  ;;  %v10862_v24 = vsel %vm13781_vm15, %v2628_v63, %v13780_v44  ;;  %v13786_v31 = vshra.s32 %v13782_v47, 5  ;;  %v10882_v44 = vor.u32 %v2375_v49, %v2373_v20 }
 0x1d0   : > { %vm10872_vm9 = vcmp.le.s32.totalorder %v13783_v0, 16  ;;  %vm13789_vm15 = vsmask.f32 7424  ;;  %2715 = vst [vmem:[#allocation2 + $0x268] sm:$0xff] %v10857_v16  ;;  %2716 = vst [vmem:[#allocation2 + $0x280] sm:$0xff] %v10862_v24  ;;  %v10890_v0 = vld [vmem:[#allocation2 + $0x108] sm:$0xff]  ;;  %vm13813_vm6 = vnez %v13715_v21  ;;  %vm13814_vm13 = vnez %v13711_v8 }
 0x1d1   : > { %v13785_v50 = vsel %vm10872_vm9, 4294967295, %v13784_v50  ;;  %vm10878_vm10 = vcmp.ge.s32.totalorder %v13786_v31, 1  ;;  %v10886_v18 = vsel %vm13789_vm15, %v10656_v1, %v2365_v41  ;;  %13790 = vst [vmem:[#allocation20_spill] sm:$0xff] %v10890_v0  ;;  %v2391_v54 = vshrl.u32 %v10816_v25, 16  ;;  %vm10900_vm9 = vmand %vm13791_vm8, %vm10645_vm14  ;;  %3176 = vmatmul.mubr.bf16.gmra.mrb[72].mxu1 %v10890_v0  ;;  %v13853_v21 = vld [vmem:[#allocation37_spill] sm:$0xff]  ;;  %7611 = vmatmul.mubr.bf16.gmra.mrb[80].mxu0 %v10763_v3 }
 0x1d2   : > { %v13792_v49 = vmov 0  ;;  %2521 = vst [vmem:[#allocation2 + $0x260] sm:$0xff] %v10886_v18  ;;  %v10906_v60 = vrot.slane %v2387_v40, 1  ;;  %v13795_v1 = vmax.f32 %v10679_v7, 0.0  ;;  %vm13796_vm14 = vnez %v13703_v35  ;;  %v13800_v40 = vld [vmem:[#allocation31_spill] sm:$0xff]  ;;  %3183 = vmatprep.mubr.bf16.mxu1 %v13808_v15  ;;  %v13809_v35 = vld [vmem:[#allocation33_spill] sm:$0xff]  ;;  %7614 = vmatprep.mubr.bf16.mxu0 %v10768_v59 }
 0x1d3   : > { %v13793_v49 = vsel %vm10900_vm9, 4294967295, %v13792_v49  ;;  %vm10921_vm7 = vmand %vm13797_vm5, %vm13796_vm14  ;;  %v13798_v41 = vmov 0  ;;  %v13801_v31 = vand.u32 31, %v13800_v40  ;;  %v10943_v62 = vadd.f32 %v10003_v58, %v13809_v35  ;;  %v13811_v7 = vld [vmem:[#allocation14_spill] sm:$0xff] }
 0x1d4   : > { %13794 = vst [vmem:[#allocation44_spill] sm:$0xff] %v13793_v49  ;;  %v2058_v36 = vsel %vm10803_vm2, %v13795_v1, 0.0  ;;  %v13799_v41 = vsel %vm10921_vm7, 4294967295, %v13798_v41  ;;  %v13804_v1 = vshra.s32 %v13800_v40, 5  ;;  %vm13807_vm2 = vsmask.f32 7424  ;;  %vm13820_vm5 = vmand %vm10616_vm12, %vm10622_vm4 }
 0x1d5   : > { %vm10927_vm8 = vcmp.ge.s32.totalorder %v13801_v31, 1  ;;  %v10938_v12 = vsel %vm13807_vm2, %v2369_v13, %v2373_v20  ;;  %13810 = vst [vmem:[#allocation22_spill] sm:$0xff] %v10943_v62  ;;  %v10947_v31 = vadd.f32 %v10003_v58, %v13811_v7  ;;  %v13816_v13 = vshra.s32 %v13782_v47, 5 }
 0x1d6   : > { %vm10933_vm15 = vcmp.ge.s32.totalorder %v13804_v1, 1  ;;  %v13815_v1 = vld [vmem:[#allocation7_spill] sm:$0xff]  ;;  %2522 = vst [vmem:[#allocation2 + $0x278] sm:$0xff] %v10938_v12  ;;  %v13819_v15 = vmax.f32 %v10843_v23, 0.0  ;;  %v11001_v43 = vor.u32 %v2391_v54, %v10906_v60  ;;  %v13829_v6 = vmov 0  ;;  %v13831_v54 = vld [vmem:[#allocation32_spill] sm:$0xff] }
 0x1d7   : > { %13812 = vst [vmem:[#allocation40_spill] sm:$0xff] %v10947_v31  ;;  %v10955_v51 = vadd.f32 %v10003_v58, %v13815_v1  ;;  %vm10959_vm2 = vcmp.le.s32.totalorder %v13816_v13, 16  ;;  %v13821_v1 = vmax.f32 %v10847_v11, 0.0  ;;  %v13822_v13 = vld [vmem:[#allocation8_spill] sm:$0xff]  ;;  %v13838_v38 = vmax.f32 %v10943_v62, 0.0 }
 0x1d8   : > { %v2059_v35 = vsel %vm13820_vm5, %v13819_v15, 0.0  ;;  %v10982_v7 = vadd.f32 %v10003_v58, %v13822_v13  ;;  %v13824_v13 = vmov 0  ;;  %vm13827_vm5 = vnez %v13753_v17 }
 0x1d9   : > { %v2064_v47 = vsel %vm10900_vm9, %v13821_v1, 0.0  ;;  %v2106_v23 = vpack.c.bf16 %v2059_v35, %v2058_v36  ;;  %v13823_v1 = vshra.s32 %v13800_v40, 5  ;;  %vm13828_vm9 = vmand %vm10708_vm11, %vm10714_vm1  ;;  %v2062_v17 = vsel %vm10921_vm7, %v13838_v38, 0.0  ;;  %3184 = vmatmul.mubr.bf16.gmra.mrb[76].mxu1 %v11070_v52  ;;  %7615 = vmatmul.mubr.bf16.gmra.mrb[84].mxu0 %v10857_v16 }
 0x1da   : > { %v10986_v37 = vpack.c.bf16 %v13104_v9, %v2064_v47  ;;  %v13826_v47 = vld [vmem:[#allocation38_spill] sm:$0xff]  ;;  %vm11019_vm4 = vmand %vm13828_vm9, %vm13827_vm5  ;;  %v13839_v2 = vmax.f32 %v10947_v31, 0.0  ;;  %vm13841_vm1 = vnez %v13762_v30  ;;  %v13845_v31 = vrot.slane %v10730_v28, 1  ;;  %3191 = vmatprep.mubr.bf16.mxu1 %v13853_v21  ;;  %7618 = vmatprep.mubr.bf16.mxu0 %v10862_v24 }
 0x1db   : > { %vm10996_vm14 = vcmp.le.s32.totalorder %v13823_v1, 16  ;;  %v11008_v11 = vadd.f32 %v10003_v58, %v13826_v47  ;;  %2144 = vst [vmem:[#allocation2 + $0x2a0] sm:$0xff] %v2106_v23  ;;  %v2379_v15 = vshll.u32 %v2106_v23, 16  ;;  %v2383_v40 = vshrl.u32 %v2106_v23, 16  ;;  %vm13840_vm11 = vmand %vm13814_vm13, %vm13813_vm6 }
 0x1dc   : > { %v13825_v13 = vsel %vm10996_vm14, 4294967295, %v13824_v13  ;;  %v2632_v1 = vrot.slane %v2106_v23, 1  ;;  %2147 = vst [vmem:[#allocation2 + $0x2e8] sm:$0xff] %v10986_v37  ;;  %v2403_v49 = vshll.u32 %v10986_v37, 16  ;;  %v13830_v6 = vsel %vm11019_vm4, 4294967295, %v13829_v6  ;;  %vm13842_vm9 = vmand %vm10750_vm0, %vm10756_vm3 }
 0x1dd   : > { %v13832_v47 = vshra.s32 %v13831_v54, 5  ;;  %v2407_v10 = vshrl.u32 %v10986_v37, 16  ;;  %vm11054_vm5 = vmand %vm13842_vm9, %vm13841_vm1  ;;  %v2381_v38 = vrot.slane %v2379_v15, 1  ;;  %vm13846_vm7 = vcmask 1046528   ;;  %v7993_v54 = vld [vmem:[%s12772_s2 + $0x220] sm:$0xff]  }
 0x1de   : > { %v11063_v62 = vsel %vm13846_vm7, %v13845_v31, %v2632_v1  ;;  %v2405_v30 = vrot.slane %v2403_v49, 1  ;;  %vm13849_vm0 = vnez %v13772_v14  ;;  %vm13850_vm3 = vnez %v13769_v29 }
 0x1df   : > { %vm11025_vm12 = vcmp.ge.s32.totalorder %v13832_v47, 1  ;;  %v13835_v23 = vmov %v13832_v47  ;;  %v2063_v47 = vsel %vm13840_vm11, %v13839_v2, 0.0  ;;  %v13847_v2 = vrot.slane %v10816_v25, 1  ;;  %vm13848_vm11 = vmmov %vm13846_vm7  ;;  %2717 = vst [vmem:[#allocation2 + $0x298] sm:$0xff] %v11063_v62 }
 0x1e0   : > { %vm11031_vm14 = vcmp.le.s32.totalorder %v13835_v23, 16  ;;  %v991_v23 = vadd.f32 %v10003_v58, %v10391_v48  ;;  %vm12973_vm1 = vmand %vm13850_vm3, %vm13849_vm0  ;;  %v2638_v48 = vrot.slane %v10986_v37, 1  ;;  %v2108_v28 = vpack.c.bf16 %v2063_v47, %v2062_v17 }
 0x1e1   : > { %v11068_v61 = vsel %vm13848_vm11, %v2632_v1, %v13847_v2  ;;  %v13851_v31 = vmax.f32 %v10955_v51, 0.0  ;;  %v12975_v49 = vmax.f32 %v11008_v11, 0.0  ;;  %vm13852_vm7 = vsmask.f32 7424  ;;  %7619 = vmatmul.mubr.bf16.gmra.mrb[88].mxu0 %v11063_v62 }
 0x1e2   : > { %2718 = vst [vmem:[#allocation2 + $0x2b0] sm:$0xff] %v11068_v61  ;;  %v11087_v1 = vsel %vm13852_vm7, %v10882_v44, %v2381_v38  ;;  %v2385_v2 = vor.u32 %v2383_v40, %v2381_v38  ;;  %v13854_v37 = vmax.f32 %v10982_v7, 0.0  ;;  %vm13855_vm9 = vnez %v13785_v50  ;;  %2146 = vst [vmem:[#allocation2 + $0x2d0] sm:$0xff] %v2108_v28  ;;  %7622 = vmatprep.mubr.bf16.mxu0 %v11068_v61  ;;  %v11261_v61 = vld [vmem:[#allocation2 + $0x188] sm:$0xff] }
 0x1e3   : > { %v2068_v15 = vsel %vm11019_vm4, %v13851_v31, 0.0  ;;  %2523 = vst [vmem:[#allocation2 + $0x290] sm:$0xff] %v11087_v1  ;;  %v2395_v44 = vshll.u32 %v2108_v28, 16  ;;  %v2399_v40 = vshrl.u32 %v2108_v28, 16  ;;  %v2636_v47 = vrot.slane %v2108_v28, 1 }
 0x1e4   : > { %v11091_v8 = vpack.c.bf16 %v13104_v9, %v2068_v15  ;;  %v2066_v17 = vsel %vm11054_vm5, %v13854_v37, 0.0  ;;  %v2067_v21 = vsel %vm12973_vm1, %v12975_v49, 0.0  ;;  %v11111_v38 = vsel %vm13852_vm7, %v2385_v2, %v10906_v60  ;;  %vm13857_vm7 = vmmov %vm13848_vm11 }
 0x1e5   : > { %v2409_v31 = vor.u32 %v2407_v10, %v2405_v30  ;;  %2524 = vst [vmem:[#allocation2 + $0x2a8] sm:$0xff] %v11111_v38  ;;  %v2397_v37 = vrot.slane %v2395_v44, 1  ;;  %v13856_v60 = vrot.slane %v10816_v25, 1  ;;  %vm13858_vm1 = vmmov %vm13857_vm7  ;;  %v2110_v10 = vpack.c.bf16 %v2067_v21, %v2066_v17  ;;  %v11153_v17 = vld [vmem:[#allocation2 + $0x158] sm:$0xff] }
 0x1e6   : > { %2149 = vst [vmem:[#allocation2 + $0x318] sm:$0xff] %v11091_v8  ;;  %v2419_v15 = vshll.u32 %v11091_v8, 16  ;;  %v2423_v28 = vshrl.u32 %v11091_v8, 16  ;;  %v11128_v3 = vsel %vm13858_vm1, %v2636_v47, %v2638_v48  ;;  %vm13859_vm11 = vmand %vm13855_vm9, %vm10878_vm10  ;;  %v2642_v25 = vrot.slane %v11091_v8, 1 }
 0x1e7   : > { %v11125_v2 = vsel %vm13857_vm7, %v13856_v60, %v2636_v47  ;;  %vm11138_vm4 = vmand %vm13859_vm11, %vm10959_vm2  ;;  %2720 = vst [vmem:[#allocation2 + $0x2e0] sm:$0xff] %v11128_v3  ;;  %v1083_v47 = vmax.f32 %v991_v23, 0.0  ;;  %v983_v59 = vadd.f32 %v10003_v58, %v10418_v5  ;;  %v986_v50 = vadd.f32 %v10003_v58, %v10457_v4  ;;  %v11167_v4 = vld [vmem:[#allocation2 + $0x138] sm:$0xff] }
 0x1e8   : > { %2719 = vst [vmem:[#allocation2 + $0x2c8] sm:$0xff] %v11125_v2  ;;  %vm13862_vm1 = vsmask.f32 7424  ;;  %v2401_v20 = vor.u32 %v2399_v40, %v2397_v37  ;;  %2148 = vst [vmem:[#allocation2 + $0x300] sm:$0xff] %v2110_v10  ;;  %v2411_v21 = vshll.u32 %v2110_v10, 16  ;;  %v2415_v60 = vshrl.u32 %v2110_v10, 16  ;;  %3192 = vmatmul.mubr.bf16.gmra.mrb[80].mxu1 %v11167_v4 }
 0x1e9   : > { %v11151_v63 = vsel %vm13862_vm1, %v11001_v43, %v2397_v37  ;;  %vm13863_vm10 = vnez %v13825_v13  ;;  %vm13864_vm2 = vmand %vm10927_vm8, %vm10933_vm15  ;;  %v2421_v43 = vrot.slane %v2419_v15, 1  ;;  %v2640_v23 = vrot.slane %v2110_v10, 1  ;;  %3199 = vmatprep.mubr.bf16.mxu1 %v11153_v17  ;;  %7623 = vmatmul.mubr.bf16.gmra.mrb[92].mxu0 %v11125_v2  ;;  %v11279_v2 = vld [vmem:[#allocation2 + $0x198] sm:$0xff] }
 0x1ea   : > { %vm11162_vm9 = vmand %vm13864_vm2, %vm13863_vm10  ;;  %2525 = vst [vmem:[#allocation2 + $0x2c0] sm:$0xff] %v11151_v63  ;;  %v2072_v40 = vsel %vm11138_vm4, %v1083_v47, 0.0  ;;  %v1081_v37 = vmax.f32 %v983_v59, 0.0  ;;  %v2413_v0 = vrot.slane %v2411_v21, 1  ;;  %v1082_v49 = vmax.f32 %v986_v50, 0.0  ;;  %v13871_v59 = vld [vmem:[#allocation3_spill] sm:$0xff]  ;;  %7626 = vmatprep.mubr.bf16.mxu0 %v11128_v3 }
 0x1eb   : > { %vm13867_vm11 = vmmov %vm13862_vm1  ;;  %v11176_v39 = vpack.c.bf16 %v13104_v9, %v2072_v40  ;;  %v2425_v50 = vor.u32 %v2423_v28, %v2421_v43  ;;  %v999_v5 = vadd.f32 %v10003_v58, %v10789_v42  ;;  %v7973_v42 = vld [vmem:[%s12772_s2 + $0xb8] sm:$0xff]   ;;  %v1002_v8 = vadd.f32 %v10003_v58, %v10835_v56 }
 0x1ec   : > { %v11172_v13 = vsel %vm13867_vm11, %v2401_v20, %v2405_v30  ;;  %vm1843_vm8 = vmand %vm11025_vm12, %vm11031_vm14  ;;  %v2070_v10 = vsel %vm11162_vm9, %v1081_v37, 0.0  ;;  %v2417_v35 = vor.u32 %v2415_v60, %v2413_v0  ;;  %v11215_v37 = vld [vmem:[#allocation2 + $0x150] sm:$0xff]  ;;  %7648 = vmatprep.subr.bf16.mxu1 %v7973_v42  ;;  %v11282_v3 = vld [vmem:[#allocation2 + $0x1b8] sm:$0xff] }
 0x1ed   : > { %2526 = vst [vmem:[#allocation2 + $0x2d8] sm:$0xff] %v11172_v13  ;;  %vm13868_vm4 = vmmov %vm13857_vm7  ;;  %v2435_v44 = vshll.u32 %v11176_v39, 16  ;;  %v2071_v47 = vsel %vm1843_vm8, %v1082_v49, 0.0  ;;  %v2646_v21 = vrot.slane %v11176_v39, 1  ;;  %v1162_v49 = vadd.s32 576, %v13871_v59  ;;  %7649 = vmatpush3.bf16.msra.mxu1 %v7973_v42  ;;  %v2535_v42 = vld [vmem:[#allocation2 + $0x380] sm:$0xff] }
 0x1ee   : > { %v11185_v15 = vsel %vm13868_vm4, %v2638_v48, %v2640_v23  ;;  %vm13869_vm15 = vmmov %vm13868_vm4  ;;  %2151 = vst [vmem:[#allocation2 + $0x348] sm:$0xff] %v11176_v39  ;;  %v1007_v48 = vadd.f32 %v10003_v58, %v10771_v34  ;;  %v2112_v60 = vpack.c.bf16 %v2071_v47, %v2070_v10  ;;  %v11225_v10 = vld [vmem:[#allocation2 + $0x170] sm:$0xff]  ;;  %4660 = vmatprep.subr.bf16.mxu1 %v13242_v19  ;;  %v1086_v56 = vmax.f32 %v1002_v8, 0.0 }
 0x1ef   : > { %v11190_v30 = vsel %vm13869_vm15, %v2640_v23, %v2642_v25  ;;  %vm13870_vm7 = vmmov %vm13862_vm1  ;;  %2721 = vst [vmem:[#allocation2 + $0x2f8] sm:$0xff] %v11185_v15  ;;  %v2437_v24 = vrot.slane %v2435_v44, 1  ;;  %v1238_v47 = vand.u32 31, %v1162_v49 }
 0x1f0   : > { %v11195_v36 = vsel %vm13870_vm7, %v2409_v31, %v2413_v0  ;;  %2722 = vst [vmem:[#allocation2 + $0x310] sm:$0xff] %v11190_v30  ;;  %v1164_v31 = vadd.s32 592, %v13871_v59  ;;  %vm13872_vm12 = vmmov %vm13862_vm1  ;;  %v2427_v23 = vshll.u32 %v2112_v60, 16  ;;  %v2431_v28 = vshrl.u32 %v2112_v60, 16  ;;  %3200 = vmatmul.mubr.bf16.gmra.mrb[84].mxu1 %v11215_v37 }
 0x1f1   : > { %2527 = vst [vmem:[#allocation2 + $0x2f0] sm:$0xff] %v11195_v36  ;;  %v11207_v20 = vsel %vm13872_vm12, %v2417_v35, %v2421_v43  ;;  %2150 = vst [vmem:[#allocation2 + $0x330] sm:$0xff] %v2112_v60  ;;  %v2644_v40 = vrot.slane %v2112_v60, 1  ;;  %v1087_v43 = vmax.f32 %v1007_v48, 0.0  ;;  %3207 = vmatprep.mubr.bf16.mxu1 %v11225_v10  ;;  %v1314_v60 = vshra.s32 %v1162_v49, 5  ;;  %7627 = vmatmul.mubr.bf16.gmra.mrb[96].mxu0 %v11185_v15  ;;  %v11292_v15 = vld [vmem:[#allocation2 + $0x1d0] sm:$0xff] }
 0x1f2   : > { %2528 = vst [vmem:[#allocation2 + $0x308] sm:$0xff] %v11207_v20  ;;  %v1240_v34 = vand.u32 31, %v1164_v31  ;;  %v1316_v16 = vshra.s32 %v1164_v31, 5  ;;  %v2429_v35 = vrot.slane %v2427_v23, 1  ;;  %vm13875_vm2 = vmmov %vm13868_vm4  ;;  %v1085_v31 = vmax.f32 %v999_v5, 0.0  ;;  %7630 = vmatprep.mubr.bf16.mxu0 %v11190_v30  ;;  %v2728_v30 = vld [vmem:[#allocation2] sm:$0xff] }
 0x1f3   : > { %v11230_v48 = vsel %vm13875_vm2, %v2642_v25, %v2644_v40  ;;  %vm13876_vm9 = vmmov %vm13875_vm2  ;;  %v1163_v25 = vadd.s32 584, %v13871_v59  ;;  %vm11245_vm15 = vcmp.ge.s32.totalorder %v1238_v47, 1  ;;  %vm1770_vm12 = vcmp.le.s32.totalorder %v1314_v60, 16 }
 0x1f4   : > { %vm11217_vm14 = vcmp.le.s32.totalorder %v1240_v34, 16  ;;  %vm1620_vm1 = vcmp.ge.s32.totalorder %v1316_v16, 1  ;;  %vm1772_vm10 = vcmp.le.s32.totalorder %v1316_v16, 16  ;;  %v2647_v44 = vsel %vm13876_vm9, %v2644_v40, %v2646_v21  ;;  %2723 = vst [vmem:[#allocation2 + $0x328] sm:$0xff] %v11230_v48  ;;  %vm13877_vm4 = vmmov %vm13870_vm7  ;;  %v11270_v40 = vld [vmem:[#allocation2 + $0x180] sm:$0xff] }
 0x1f5   : > { %vm1696_vm11 = vmand %vm11217_vm14, %vm1620_vm1  ;;  %2724 = vst [vmem:[#allocation2 + $0x340] sm:$0xff] %v2647_v44  ;;  %v11243_v34 = vsel %vm13877_vm4, %v2425_v50, %v2429_v35  ;;  %v2433_v16 = vor.u32 %v2431_v28, %v2429_v35  ;;  %vm1618_vm7 = vcmp.ge.s32.totalorder %v1314_v60, 1  ;;  %v1315_v59 = vshra.s32 %v1163_v25, 5 }
 0x1f6   : > { %vm1848_vm8 = vmand %vm1696_vm11, %vm1772_vm10  ;;  %2529 = vst [vmem:[#allocation2 + $0x320] sm:$0xff] %v11243_v34  ;;  %vm2533_vm10 = vcmask 1047552   ;;  %v2439_v49 = vshrl.u32 %v11176_v39, 16  ;;  %v2729_v39 = vld [vmem:[#allocation2 + $0x8] sm:$0xff] }
 0x1f7   : > { %v2076_v23 = vsel %vm1848_vm8, %v1087_v43, 0.0  ;;  %vm13880_vm14 = vmmov %vm13877_vm4  ;;  %vm1619_vm9 = vcmp.ge.s32.totalorder %v1315_v59, 1  ;;  %vm1771_vm11 = vcmp.le.s32.totalorder %v1315_v59, 16  ;;  %v11258_v43 = vld [vmem:[#allocation2 + $0x168] sm:$0xff] }
 0x1f8   : > { %v2115_v5 = vpack.c.bf16 %v13104_v9, %v2076_v23  ;;  %v2438_v58 = vsel %vm13880_vm14, %v2433_v16, %v2437_v24  ;;  %vm1694_vm1 = vmand %vm11245_vm15, %vm1618_vm7  ;;  %3208 = vmatmul.mubr.bf16.gmra.mrb[88].mxu1 %v11258_v43  ;;  %v2441_v60 = vor.u32 %v2439_v49, %v2437_v24  ;;  %vm13881_vm7 = vcmask 1046528   ;;  %v11274_v24 = vld [vmem:[#allocation2 + $0x1a0] sm:$0xff]  ;;  %v11298_v59 = vld [vmem:[#allocation2 + $0x1e8] sm:$0xff] }
 0x1f9   : > { %2530 = vst [vmem:[#allocation2 + $0x338] sm:$0xff] %v2438_v58  ;;  %vm1846_vm2 = vmand %vm1694_vm1, %vm1770_vm12  ;;  %3215 = vmatprep.mubr.bf16.mxu1 %v11261_v61  ;;  %7631 = vmatmul.mubr.bf16.gmra.mrb[100].mxu0 %v11230_v48  ;;  %v11289_v58 = vld [vmem:[#allocation2 + $0x1b0] sm:$0xff]  ;;  %v11295_v48 = vld [vmem:[#allocation2 + $0x1c8] sm:$0xff]  ;;  %vm13883_vm14 = vnez %v13632_v45  ;;  %vm13884_vm1 = vnez %v13572_v57 }
 0x1fa   : > { %v2451_v50 = vshll.u32 %v2115_v5, 16  ;;  %v2455_v62 = vshrl.u32 %v2115_v5, 16  ;;  %v2074_v28 = vsel %vm1846_vm2, %v1085_v31, 0.0  ;;  %vm1847_vm8 = vmand %vm1619_vm9, %vm1771_vm11  ;;  %3825 = vmatprep.mubr.bf16.mxu0 %v2729_v39  ;;  %v11301_v49 = vld [vmem:[#allocation2 + $0x1e0] sm:$0xff]  ;;  %v8015_v39 = vld [vmem:[#allocation2 + $0x98] sm:$0xff]  ;;  %vm13889_vm11 = vnez %v13682_v27 }
 0x1fb   : > { %vm2534_vm15 = vmand %vm2533_vm10, %vm13877_vm4  ;;  %v2075_v35 = vsel %vm1847_vm8, %v1086_v56, 0.0  ;;  %v2732_v56 = vld [vmem:[#allocation2 + $0x20] sm:$0xff]  ;;  %vm13885_vm10 = vnez %v13575_v22  ;;  %v8018_v57 = vld [vmem:[#allocation2 + $0xa8] sm:$0xff]  ;;  %vm13890_vm8 = vnez %v13614_v55 }
 0x1fc   : > { %v2453_v0 = vrot.slane %v2451_v50, 1  ;;  %v2114_v47 = vpack.c.bf16 %v2075_v35, %v2074_v28  ;;  %vm13882_vm12 = vmmov %vm13877_vm4  ;;  %v2731_v50 = vld [vmem:[#allocation2 + $0x18] sm:$0xff]  ;;  %v11304_v28 = vld [vmem:[#allocation2 + $0x200] sm:$0xff]  ;;  %vm13891_vm4 = vnez %v13617_v26 }
 0x1fd   : > { %v11307_v35 = vld [vmem:[#allocation2 + $0x1f8] sm:$0xff]  ;;  %vm13886_vm2 = vmand %vm13884_vm1, %vm13885_vm10  ;;  %v8019_v22 = vld [vmem:[#allocation2 + $0xc8] sm:$0xff] }
 0x1fe   : > { %v2457_v44 = vor.u32 %v2455_v62, %v2453_v0  ;;  %v2443_v8 = vshll.u32 %v2114_v47, 16  ;;  %v2648_v25 = vrot.slane %v2114_v47, 1  ;;  %v8007_v62 = vld [vmem:[#allocation2 + $0x38] sm:$0xff]  ;;  %v8008_v0 = vld [vmem:[#allocation2 + $0x30] sm:$0xff]  ;;  %v8010_v47 = vld [vmem:[#allocation2 + $0x48] sm:$0xff] }
 0x1ff   : > { %vm8102_vm9 = vmpackc.low %vm13886_vm2, %vm13883_vm14  ;;  %v13893_v45 = vld [vmem:[#allocation10_spill] sm:$0xff]  ;;  %v8022_v55 = vld [vmem:[#allocation2 + $0xd8] sm:$0xff] }
 0x200   : > { %v2536_v31 = vsel %vm2534_vm15, %v2457_v44, %v2535_v42  ;;  %v2445_v16 = vrot.slane %v2443_v8, 1  ;;  %v2649_v23 = vsel %vm13881_vm7, %v2646_v21, %v2648_v25  ;;  %3216 = vmatmul.mubr.bf16.gmra.mrb[92].mxu1 %v11270_v40  ;;  %v7974_v21 = vld [vmem:[%s12772_s2 + $0x200] sm:$0xff]   ;;  %v8009_v42 = vld [vmem:[#allocation2 + $0x50] sm:$0xff]  ;;  %v11310_v44 = vld [vmem:[#allocation2 + $0x218] sm:$0xff] }
 0x201   : > { %2537 = vst [vmem:[#allocation2 + $0x380] sm:$0xff] %v2536_v31  ;;  %2725 = vst [vmem:[#allocation2 + $0x358] sm:$0xff] %v2649_v23  ;;  %3223 = vmatprep.mubr.bf16.mxu1 %v11274_v24  ;;  %7714 = vmatprep.subr.bf16.mxu0 %v7974_v21  ;;  %v7979_v31 = vld [vmem:[%s12772_s2 + $0x208] sm:$0xff]   ;;  %v11316_v8 = vld [vmem:[#allocation2 + $0x210] sm:$0xff] }
 0x202   : > { %v2446_v5 = vsel %vm13882_vm12, %v2441_v60, %v2445_v16  ;;  %3826 = vmatmul.mubr.bf16.vlgmr.msra.gmra.mrb[104].mxu0 %v2728_v30  ;;  %v8011_v60 = vld [vmem:[#allocation2 + $0x68] sm:$0xff]  ;;  %v8012_v25 = vld [vmem:[#allocation2 + $0x60] sm:$0xff]  ;;  %vm13892_vm15 = vmand %vm13890_vm8, %vm13891_vm4  ;;  %vm13914_vm4 = vnez %v13799_v41 }
 0x203   : > { %2531 = vst [vmem:[#allocation2 + $0x350] sm:$0xff] %v2446_v5  ;;  %3833 = vmatprep.mubr.bf16.mxu0 %v2732_v56  ;;  %7715 = vmatpush3.bf16.msra.mxu0 %v7974_v21  ;;  %v8013_v16 = vld [vmem:[#allocation2 + $0x80] sm:$0xff]  ;;  %v11320_v23 = vld [vmem:[#allocation2 + $0x228] sm:$0xff]  ;;  %v8014_v5 = vld [vmem:[#allocation2 + $0x78] sm:$0xff]  ;;  %v13888_v21 = vmax.f32 %v10512_v33, 0.0  ;;  %v13894_v33 = vmax.f32 %v13893_v45, 0.0 }
 0x204   : > { %7716 = vmatprep.subr.bf16.mxu0 %v7979_v31  ;;  %v8017_v56 = vld [vmem:[#allocation2 + $0xb0] sm:$0xff]  ;;  %vm8105_vm7 = vmpackc.low %vm13892_vm15, %vm13889_vm11  ;;  %v11355_v27 = vld [vmem:[#allocation2 + $0x288] sm:$0xff]  ;;  %vm13910_vm11 = vmmov 1  }
 0x205   : > { %v8023_v26 = vld [vmem:[#allocation2 + $0xf8] sm:$0xff]  ;;  %v13911_v45 = vld [vmem:[#allocation43_spill] sm:$0xff]  ;;  %vm13917_vm15 = vmand %vm13814_vm13, %vm13813_vm6 }
 0x207   : > { %7717 = vmatpush3.bf16.msra.mxu0 %v7979_v31  ;;  %v13901_v31 = vld [vmem:[#allocation15_spill] sm:$0xff] }
 0x208   : > { %3224 = vmatmul.mubr.bf16.gmra.mrb[96].mxu1 %v11279_v2  ;;  %vm13902_vm1 = vnez %v13901_v31 }
 0x209   : > { %3231 = vmatprep.mubr.bf16.mxu1 %v11282_v3 }
 0x20a   : > { %3834 = vmatmul.mubr.bf16.gmra.mrb[108].mxu0 %v2731_v50  ;;  %v11336_v50 = vld [vmem:[#allocation2 + $0x258] sm:$0xff] }
 0x20b   : > { %3841 = vmatprep.mubr.bf16.mxu0 %v8007_v62 }
 0x210   : > { %3232 = vmatmul.mubr.bf16.gmra.mrb[100].mxu1 %v11289_v58 }
 0x211   : > { %3239 = vmatprep.mubr.bf16.mxu1 %v11292_v15 }
 0x212   : > { %3842 = vmatmul.mubr.bf16.gmra.mrb[112].mxu0 %v8008_v0  ;;  %v8020_v0 = vld [vmem:[#allocation2 + $0xc0] sm:$0xff] }
 0x213   : > { %3849 = vmatprep.mubr.bf16.mxu0 %v8009_v42  ;;  %v8021_v42 = vld [vmem:[#allocation2 + $0xe0] sm:$0xff] }
 0x218   : > { %3240 = vmatmul.mubr.bf16.gmra.mrb[104].mxu1 %v11295_v48 }
 0x219   : > { %3247 = vmatprep.mubr.bf16.mxu1 %v11298_v59 }
 0x21a   : > { %3850 = vmatmul.mubr.bf16.gmra.mrb[116].mxu0 %v8010_v47  ;;  %v13897_v47 = vld [vmem:[#allocation19_spill] sm:$0xff] }
 0x21b   : > { %3857 = vmatprep.mubr.bf16.mxu0 %v8011_v60  ;;  %vm13898_vm12 = vnez %v13897_v47  ;;  %v13899_v60 = vld [vmem:[#allocation12_spill] sm:$0xff]  ;;  %v8026_v47 = vld [vmem:[#allocation2 + $0x128] sm:$0xff] }
 0x21c   : > { %vm13900_vm14 = vnez %v13899_v60 }
 0x21d   : > { %vm13903_vm10 = vmand %vm13900_vm14, %vm13902_vm1 }
 0x21e   : > { %vm8108_vm2 = vmpackc.low %vm13903_vm10, %vm13898_vm12 }
 0x21f   : > { %vm13926_vm12 = vmand %vm13850_vm3, %vm13849_vm0  ;;  %vm14021_vm3 = vcmask 1046528  }
 0x220   : > { %3248 = vmatmul.mubr.bf16.gmra.mrb[108].mxu1 %v11301_v49  ;;  %vm8120_vm14 = vmpackc.low %vm13926_vm12, %vm11054_vm5  ;;  %vm13929_vm5 = vnez %v13830_v6 }
 0x221   : > { %3255 = vmatprep.mubr.bf16.mxu1 %v11304_v28  ;;  %vm8123_vm0 = vmpackc.low %vm13910_vm11, %vm13929_vm5 }
 0x222   : > { %3858 = vmatmul.mubr.bf16.gmra.mrb[120].mxu0 %v8012_v25  ;;  %vm14022_vm1 = vmmov %vm14021_vm3 }
 0x223   : > { %3865 = vmatprep.mubr.bf16.mxu0 %v8013_v16  ;;  %v13906_v16 = vld [vmem:[#allocation17_spill] sm:$0xff]  ;;  %vm14023_vm10 = vmmov %vm14022_vm1 }
 0x224   : > { %vm14038_vm12 = vmmov %vm14022_vm1 }
 0x225   : > { %vm14040_vm5 = vmmov %vm14022_vm1 }
 0x228   : > { %3256 = vmatmul.mubr.bf16.gmra.mrb[112].mxu1 %v11307_v35 }
 0x229   : > { %3263 = vmatprep.mubr.bf16.mxu1 %v11310_v44 }
 0x22a   : > { %3866 = vmatmul.mubr.bf16.gmra.mrb[124].mxu0 %v8014_v5  ;;  %v13907_v5 = vmax.f32 %v13906_v16, 0.0  ;;  %v7989_v16 = vld [vmem:[%s12772_s2 + $0x218] sm:$0xff]  }
 0x22b   : > { %3873 = vmatprep.mubr.bf16.mxu0 %v8015_v39 }
 0x230   : > { %3264 = vmatmul.mubr.bf16.gmra.mrb[116].mxu1 %v11316_v8 }
 0x231   : > { %3271 = vmatprep.mubr.bf16.mxu1 %v10793_v46  ;;  %v13887_v46 = vmax.f32 %v10449_v32, 0.0  ;;  %v7984_v32 = vld [vmem:[%s12772_s2 + $0x210] sm:$0xff]  }
 0x232   : > { %7718 = vmatprep.subr.bf16.mxu0 %v7984_v32 }
 0x233   : > { %v8103_v30 = vpack.c.bf16 %v13888_v21, %v13887_v46  ;;  %7719 = vmatpush3.bf16.msra.mxu0 %v7984_v32  ;;  %v8024_v46 = vld [vmem:[#allocation2 + $0xf0] sm:$0xff]  ;;  %v13908_v32 = vld [vmem:[#allocation18_spill] sm:$0xff] }
 0x234   : > { %7720 = vmatprep.subr.bf16.mxu0 %v7989_v16 }
 0x237   : > { %7721 = vmatpush3.bf16.msra.mxu0 %v7989_v16 }
 0x238   : > { %3272 = vmatmul.mubr.bf16.gmra.mrb[120].mxu1 %v11320_v23  ;;  %7722 = vmatprep.subr.bf16.mxu0 %v7993_v54 }
 0x239   : > { %3279 = vmatprep.mubr.bf16.mxu1 %v10839_v53  ;;  %v8016_v53 = vld [vmem:[#allocation2 + $0x90] sm:$0xff] }
 0x23a   : > { %3874 = vmatmul.mubr.bf16.gmra.mrb[128].mxu0 %v8016_v53 }
 0x23b   : > { %3881 = vmatprep.mubr.bf16.mxu0 %v8017_v56  ;;  %7723 = vmatpush3.bf16.msra.mxu0 %v7993_v54  ;;  %v7977_v54 = vld [vmem:[%s12772_s2 + $0x190] sm:$0xff]  }
 0x240   : > { %8104 = vmatmul.mubr.msk.bf16.gmra.mrb[124].mxu1 %vm8102_vm9, %v8103_v30  ;;  %v8025_v30 = vld [vmem:[#allocation2 + $0x110] sm:$0xff]  ;;  %vm13909_vm9 = vnez %v13908_v32 }
 0x241   : > { %3287 = vmatprep.mubr.bf16.mxu1 %v10886_v18  ;;  %v13895_v18 = vld [vmem:[#allocation11_spill] sm:$0xff]  ;;  %vm8111_vm8 = vmpackc.low %vm13910_vm11, %vm13909_vm9  ;;  %vm6602_vm9 = vcmask 125952  }
 0x242   : > { %3882 = vmatmul.mubr.bf16.gmra.mrb[132].mxu0 %v8018_v57  ;;  %v7572_v57 = vpop.f32.mrb[40].mxu0 }
 0x243   : > { %3889 = vmatprep.mubr.bf16.mxu0 %v8019_v22  ;;  %v3394_v22 = vpop.f32.mrb[41].mxu0 }
 0x248   : > { %3288 = vmatmul.mubr.bf16.gmra.mrb[128].mxu1 %v11336_v50 }
 0x249   : > { %3295 = vmatprep.mubr.bf16.mxu1 %v10938_v12  ;;  %v13896_v12 = vmax.f32 %v13895_v18, 0.0 }
 0x24a   : > { %3890 = vmatmul.mubr.bf16.gmra.mrb[136].mxu0 %v8020_v0 }
 0x24b   : > { %v8106_v62 = vpack.c.bf16 %v13896_v12, %v13894_v33  ;;  %3897 = vmatprep.mubr.bf16.mxu0 %v8021_v42  ;;  %v13912_v33 = vmax.f32 %v13911_v45, 0.0  ;;  %v8027_v45 = vld [vmem:[#allocation2 + $0x140] sm:$0xff] }
 0x24d   : > { %v8112_v18 = vpack.c.bf16 %v13104_v9, %v13912_v33 }
 0x250   : > { %8107 = vmatmul.mubr.msk.bf16.gmra.mrb[132].mxu1 %vm8105_vm7, %v8106_v62  ;;  %vm8114_vm7 = vmpackc.low %vm13917_vm15, %vm13914_vm4 }
 0x251   : > { %3303 = vmatprep.mubr.bf16.mxu1 %v11087_v1  ;;  %v13904_v1 = vld [vmem:[#allocation16_spill] sm:$0xff]  ;;  %vm14031_vm4 = vmmov %vm14022_vm1 }
 0x252   : > { %3898 = vmatmul.mubr.bf16.gmra.mrb[140].mxu0 %v8022_v55  ;;  %v13905_v25 = vmax.f32 %v13904_v1, 0.0  ;;  %v13913_v55 = vld [vmem:[#allocation20_spill] sm:$0xff]  ;;  %vm14032_vm15 = vmmov %vm14022_vm1 }
 0x253   : > { %3905 = vmatprep.mubr.bf16.mxu0 %v8023_v26 }
 0x254   : > { %v8109_v39 = vpack.c.bf16 %v13907_v5, %v13905_v25 }
 0x258   : > { %3304 = vmatmul.mubr.bf16.gmra.mrb[136].mxu1 %v11355_v27 }
 0x259   : > { %3311 = vmatprep.mubr.bf16.mxu1 %v11111_v38  ;;  %v3105_v38 = vpop.f32.mrb[36].mxu1 }
 0x25a   : > { %3906 = vmatmul.mubr.bf16.gmra.mrb[144].mxu0 %v8024_v46  ;;  %v3107_v21 = vpop.f32.mrb[37].mxu1  ;;  %v11377_v12 = vadd.f32 %v3394_v22, %v3105_v38  ;;  %v13918_v46 = vld [vmem:[#allocation22_spill] sm:$0xff] }
 0x25b   : > { %3913 = vmatprep.mubr.bf16.mxu0 %v8025_v30  ;;  %v3108_v53 = vpop.f32.mrb[38].mxu1  ;;  %v13919_v21 = vmax.f32 %v13918_v46, 0.0  ;;  %v13920_v30 = vld [vmem:[#allocation40_spill] sm:$0xff] }
 0x25c   : > { %v3110_v56 = vpop.f32.mrb[39].mxu1 }
 0x25d   : > { %v3113_v42 = vpop.f32.mrb[40].mxu1 }
 0x25e   : > { %v3115_v26 = vpop.f32.mrb[41].mxu1  ;;  %v11383_v60 = vadd.f32 %v7572_v57, %v3113_v42 }
 0x25f   : > { %v3116_v31 = vpop.f32.mrb[42].mxu1  ;;  %v13922_v26 = vld [vmem:[#allocation44_spill] sm:$0xff] }
 0x260   : > { %8110 = vmatmul.mubr.msk.bf16.gmra.mrb[140].mxu1 %vm8108_vm2, %v8109_v39  ;;  %v3118_v1 = vpop.f32.mrb[43].mxu1  ;;  %vm13923_vm6 = vnez %v13922_v26  ;;  %vm14024_vm2 = vmmov %vm14022_vm1 }
 0x261   : > { %3319 = vmatprep.mubr.bf16.mxu1 %v11151_v63  ;;  %v7573_v63 = vpop.f32.mrb[42].mxu0  ;;  %v3121_v32 = vpop.f32.mrb[44].mxu1  ;;  %vm8117_vm13 = vmpackc.low %vm13910_vm11, %vm13923_vm6 }
 0x262   : > { %v3397_v62 = vpop.f32.mrb[43].mxu0  ;;  %3914 = vmatmul.mubr.bf16.gmra.mrb[148].mxu0 %v13913_v55  ;;  %v11388_v5 = vadd.f32 %v7573_v63, %v3116_v31  ;;  %v3123_v41 = vpop.f32.mrb[45].mxu1  ;;  %vm14029_vm11 = vmmov %vm14022_vm1 }
 0x263   : > { %v11380_v0 = vadd.f32 %v3397_v62, %v3108_v53  ;;  %3921 = vmatprep.mubr.bf16.mxu0 %v8026_v47  ;;  %v7576_v25 = vpop.f32.mrb[44].mxu0  ;;  %v13921_v53 = vmax.f32 %v13920_v30, 0.0  ;;  %vm14036_vm6 = vmmov %vm14022_vm1 }
 0x265   : > { %v8115_v56 = vpack.c.bf16 %v13921_v53, %v13919_v21 }
 0x268   : > { %8113 = vmatmul.mubr.msk.bf16.gmra.mrb[144].mxu1 %vm8111_vm8, %v8112_v18  ;;  %v3124_v18 = vpop.f32.mrb[46].mxu1  ;;  %vm14030_vm8 = vmmov %vm14022_vm1 }
 0x269   : > { %3327 = vmatprep.mubr.bf16.mxu1 %v11172_v13  ;;  %v3410_v13 = vpop.f32.mrb[45].mxu0  ;;  %v3126_v63 = vpop.f32.mrb[47].mxu1 }
 0x26a   : > { %v7577_v57 = vpop.f32.mrb[46].mxu0  ;;  %3922 = vmatmul.mubr.bf16.gmra.mrb[152].mxu0 %v11070_v52  ;;  %v11403_v33 = vadd.f32 %v3410_v13, %v3121_v32  ;;  %v3129_v16 = vpop.f32.mrb[48].mxu1 }
 0x26b   : > { %v3413_v22 = vpop.f32.mrb[47].mxu0  ;;  %3929 = vmatprep.mubr.bf16.mxu0 %v8027_v45  ;;  %v3131_v13 = vpop.f32.mrb[49].mxu1  ;;  %v11416_v39 = vadd.f32 %v7576_v25, %v3129_v16  ;;  %v2730_v45 = vld [vmem:[#allocation2 + $0x10] sm:$0xff]  ;;  %v2733_v16 = vld [vmem:[#allocation2 + $0x28] sm:$0xff] }
 0x26c   : > { %v7580_v62 = vpop.f32.mrb[48].mxu0  ;;  %v11405_v42 = vadd.f32 %v3413_v22, %v3124_v18  ;;  %v3132_v38 = vpop.f32.mrb[50].mxu1 }
 0x26d   : > { %v3426_v55 = vpop.f32.mrb[49].mxu0  ;;  %v3134_v46 = vpop.f32.mrb[51].mxu1  ;;  %v11420_v30 = vadd.f32 %v7577_v57, %v3132_v38  ;;  %v7976_v38 = vld [vmem:[%s12772_s2 + $0x188] sm:$0xff]  }
 0x26e   : > { %v7581_v52 = vpop.f32.mrb[50].mxu0  ;;  %v3137_v29 = vpop.f32.mrb[52].mxu1 }
 0x26f   : > { %v3429_v1 = vpop.f32.mrb[51].mxu0  ;;  %v3139_v14 = vpop.f32.mrb[53].mxu1 }
 0x270   : > { %8116 = vmatmul.mubr.msk.bf16.gmra.mrb[148].mxu1 %vm8114_vm7, %v8115_v56  ;;  %v11418_v21 = vpop.f32.mrb[52].mxu0  ;;  %vm14035_vm7 = vmmov %vm14022_vm1 }
 0x271   : > { %3335 = vmatprep.mubr.bf16.mxu1 %v11195_v36  ;;  %v13924_v36 = vld [vmem:[#allocation21_spill] sm:$0xff]  ;;  %v3442_v53 = vpop.f32.mrb[53].mxu0 }
 0x272   : > { %v13925_v47 = vmax.f32 %v13924_v36, 0.0  ;;  %3930 = vmatmul.mubr.bf16.gmra.mrb[156].mxu0 %v11167_v4  ;;  %v13927_v4 = vmax.f32 %v10982_v7, 0.0  ;;  %v11433_v25 = vpop.f32.mrb[54].mxu0  ;;  %v3140_v7 = vpop.f32.mrb[54].mxu1  ;;  %v7975_v36 = vld [vmem:[%s12772_s2 + $0x180] sm:$0xff]  }
 0x273   : > { %3937 = vmatprep.mubr.bf16.mxu0 %v11153_v17  ;;  %v13928_v17 = vmax.f32 %v11008_v11, 0.0  ;;  %v3445_v56 = vpop.f32.mrb[55].mxu0  ;;  %v11441_v11 = vadd.f32 %v3426_v55, %v3137_v29  ;;  %v3142_v57 = vpop.f32.mrb[55].mxu1  ;;  %v11448_v32 = vadd.f32 %v3429_v1, %v3140_v7  ;;  %v7996_v55 = vld [vmem:[%s12772_s2 + $0x230] sm:$0xff]  }
 0x274   : > { %v8118_v31 = vpack.c.bf16 %v13104_v9, %v13925_v47  ;;  %v11446_v22 = vpop.f32.mrb[56].mxu0  ;;  %v3145_v26 = vpop.f32.mrb[56].mxu1  ;;  %v7997_v47 = vld [vmem:[%s12772_s2 + $0x238] sm:$0xff]  }
 0x275   : > { %v11450_v41 = vpop.f32.mrb[57].mxu0  ;;  %v3147_v6 = vpop.f32.mrb[57].mxu1  ;;  %v7978_v57 = vld [vmem:[%s12772_s2 + $0x198] sm:$0xff]  }
 0x276   : > { %v11458_v18 = vpop.f32.mrb[58].mxu0 }
 0x277   : > { %v11460_v63 = vpop.f32.mrb[59].mxu0 }
 0x278   : > { %8119 = vmatmul.mubr.msk.bf16.gmra.mrb[152].mxu1 %vm8117_vm13, %v8118_v31  ;;  %v11475_v1 = vpop.f32.mrb[60].mxu0  ;;  %vm14037_vm13 = vmmov %vm14022_vm1 }
 0x279   : > { %3343 = vmatprep.mubr.bf16.mxu1 %v11207_v20  ;;  %v8121_v20 = vpack.c.bf16 %v13928_v17, %v13927_v4  ;;  %v11479_v13 = vpop.f32.mrb[61].mxu0 }
 0x27a   : > { %3938 = vmatmul.mubr.bf16.gmra.mrb[160].mxu0 %v11215_v37  ;;  %v13930_v37 = vmax.f32 %v10955_v51, 0.0  ;;  %v3148_v51 = vpop.f32.mrb[58].mxu1 }
 0x27b   : > { %3945 = vmatprep.mubr.bf16.mxu0 %v11225_v10  ;;  %v3150_v31 = vpop.f32.mrb[59].mxu1 }
 0x27c   : > { %v8124_v10 = vpack.c.bf16 %v13104_v9, %v13930_v37  ;;  %v11467_v9 = vadd.f32 %v7580_v62, %v3145_v26  ;;  %v8028_v62 = vld [vmem:[#allocation2 + $0x40] sm:$0xff]  ;;  %v7981_v31 = vld [vmem:[%s12772_s2 + $0x1a8] sm:$0xff]  }
 0x27d   : > { %v7980_v26 = vld [vmem:[%s12772_s2 + $0x1a0] sm:$0xff]  }
 0x280   : > { %8122 = vmatmul.mubr.msk.bf16.gmra.mrb[156].mxu1 %vm8120_vm14, %v8121_v20  ;;  %vm14039_vm14 = vmmov %vm14022_vm1 }
 0x281   : > { %3351 = vmatprep.mubr.bf16.mxu1 %v11243_v34  ;;  %v7994_v34 = vld [vmem:[%s12772_s2 + $0x228] sm:$0xff]  }
 0x282   : > { %7724 = vmatprep.subr.bf16.mxu0 %v7994_v34  ;;  %3946 = vmatmul.mubr.bf16.gmra.mrb[164].mxu0 %v11258_v43  ;;  %v11477_v43 = vadd.f32 %v7581_v52, %v3148_v51  ;;  %v3153_v52 = vpop.f32.mrb[60].mxu1 }
 0x283   : > { %7725 = vmatpush3.bf16.msra.mxu0 %v7994_v34  ;;  %3953 = vmatprep.mubr.bf16.mxu0 %v11261_v61  ;;  %v11481_v61 = vpop.f32.mrb[62].mxu0  ;;  %v3155_v4 = vpop.f32.mrb[61].mxu1  ;;  %v11491_v17 = vadd.f32 %v3442_v53, %v3153_v52  ;;  %v8030_v53 = vld [vmem:[#allocation2 + $0x70] sm:$0xff] }
 0x284   : > { %7726 = vmatprep.subr.bf16.mxu0 %v7996_v55  ;;  %v11486_v46 = vpop.f32.mrb[63].mxu0  ;;  %v3156_v20 = vpop.f32.mrb[62].mxu1  ;;  %v7982_v4 = vld [vmem:[%s12772_s2 + $0x1b0] sm:$0xff]  }
 0x285   : > { %v3158_v29 = vpop.f32.mrb[63].mxu1  ;;  %v11497_v14 = vpop.f32.mrb[64].mxu0  ;;  %v11499_v7 = vadd.f32 %v3445_v56, %v3156_v20 }
 0x286   : > { %v11501_v34 = vpop.f32.mrb[65].mxu0 }
 0x287   : > { %7727 = vmatpush3.bf16.msra.mxu0 %v7996_v55 }
 0x288   : > { %8125 = vmatmul.mubr.msk.bf16.gmra.mrb[160].mxu1 %vm8123_vm0, %v8124_v10  ;;  %7728 = vmatprep.subr.bf16.mxu0 %v7997_v47  ;;  %v3161_v10 = vpop.f32.mrb[64].mxu1  ;;  %vm14041_vm0 = vmmov %vm14022_vm1 }
 0x289   : > { %7650 = vmatprep.mubr.bf16.mxu1 %v2730_v45  ;;  %v3163_v56 = vpop.f32.mrb[65].mxu1  ;;  %v11514_v45 = vadd.f32 %v11418_v21, %v3161_v10 }
 0x28a   : > { %3954 = vmatmul.mubr.bf16.gmra.mrb[168].mxu0 %v11270_v40  ;;  %v8029_v40 = vld [vmem:[#allocation2 + $0x58] sm:$0xff]  ;;  %v3164_v55 = vpop.f32.mrb[66].mxu1 }
 0x28b   : > { %7729 = vmatpush3.bf16.msra.mxu0 %v7997_v47  ;;  %3961 = vmatprep.mubr.bf16.mxu0 %v11274_v24  ;;  %v11503_v24 = vpop.f32.mrb[66].mxu0  ;;  %v3166_v6 = vpop.f32.mrb[67].mxu1  ;;  %v8032_v47 = vld [vmem:[#allocation2 + $0xa0] sm:$0xff] }
 0x28c   : > { %v11508_v37 = vpop.f32.mrb[67].mxu0 }
 0x28d   : > { %v11520_v51 = vpop.f32.mrb[68].mxu0 }
 0x290   : > { %7651 = vmatmul.mubr.bf16.vlgmr.msra.gmra.mrb[164].mxu1 %v2733_v16 }
 0x291   : > { %4661 = vmatpush1.bf16.msra.mxu1 %v7975_v36  ;;  %7654 = vmatprep.mubr.bf16.mxu1 %v8028_v62  ;;  %v11523_v36 = vadd.f32 %v11433_v25, %v3164_v55 }
 0x292   : > { %4662 = vmatprep.subr.bf16.mxu1 %v13242_v19  ;;  %3962 = vmatmul.mubr.bf16.gmra.mrb[172].mxu0 %v11279_v2  ;;  %v11525_v2 = vpop.f32.mrb[69].mxu0 }
 0x293   : > { %3969 = vmatprep.mubr.bf16.mxu0 %v11282_v3  ;;  %v8031_v3 = vld [vmem:[#allocation2 + $0x88] sm:$0xff]  ;;  %v11527_v21 = vpop.f32.mrb[70].mxu0 }
 0x294   : > { %v11532_v16 = vpop.f32.mrb[71].mxu0 }
 0x295   : > { %4663 = vmatpush1.bf16.msra.mxu1 %v7976_v38  ;;  %v3169_v62 = vpop.f32.mrb[68].mxu1 }
 0x296   : > { %4664 = vmatprep.subr.bf16.mxu1 %v13242_v19  ;;  %v3171_v25 = vpop.f32.mrb[69].mxu1  ;;  %v11538_v38 = vadd.f32 %v11450_v41, %v3169_v62 }
 0x297   : > { %v3172_v52 = vpop.f32.mrb[70].mxu1  ;;  %v7986_v25 = vld [vmem:[%s12772_s2 + $0x1c8] sm:$0xff]  }
 0x298   : > { %7655 = vmatmul.mubr.bf16.gmra.mrb[168].mxu1 %v8029_v40  ;;  %v3174_v20 = vpop.f32.mrb[71].mxu1  ;;  %v11547_v29 = vadd.f32 %v11460_v63, %v3172_v52  ;;  %v8034_v40 = vld [vmem:[#allocation2 + $0xd0] sm:$0xff] }
 0x299   : > { %7658 = vmatprep.mubr.bf16.mxu1 %v8030_v53  ;;  %4665 = vmatpush1.bf16.msra.mxu1 %v7977_v54  ;;  %v11544_v54 = vpop.f32.mrb[72].mxu0  ;;  %v7983_v53 = vld [vmem:[%s12772_s2 + $0x1b8] sm:$0xff]  }
 0x29a   : > { %4666 = vmatprep.subr.bf16.mxu1 %v13242_v19  ;;  %3970 = vmatmul.mubr.bf16.gmra.mrb[176].mxu0 %v11289_v58  ;;  %v11549_v58 = vpop.f32.mrb[73].mxu0 }
 0x29b   : > { %3977 = vmatprep.mubr.bf16.mxu0 %v11292_v15  ;;  %v8033_v15 = vld [vmem:[#allocation2 + $0xb8] sm:$0xff]  ;;  %v11551_v41 = vpop.f32.mrb[74].mxu0 }
 0x29d   : > { %4667 = vmatpush1.bf16.msra.mxu1 %v7978_v57  ;;  %v11556_v57 = vpop.f32.mrb[75].mxu0 }
 0x29e   : > { %4668 = vmatprep.subr.bf16.mxu1 %v13242_v19 }
 0x2a0   : > { %7659 = vmatmul.mubr.bf16.gmra.mrb[172].mxu1 %v8031_v3  ;;  %v11567_v3 = vpop.f32.mrb[76].mxu0 }
 0x2a1   : > { %7662 = vmatprep.mubr.bf16.mxu1 %v8032_v47  ;;  %4669 = vmatpush1.bf16.msra.mxu1 %v7980_v26  ;;  %v7985_v26 = vld [vmem:[%s12772_s2 + $0x1c0] sm:$0xff]  }
 0x2a2   : > { %4670 = vmatprep.subr.bf16.mxu1 %v13242_v19  ;;  %3978 = vmatmul.mubr.bf16.gmra.mrb[180].mxu0 %v11295_v48  ;;  %v11573_v48 = vpop.f32.mrb[77].mxu0 }
 0x2a3   : > { %3985 = vmatprep.mubr.bf16.mxu0 %v11298_v59  ;;  %v8035_v59 = vld [vmem:[#allocation2 + $0xe8] sm:$0xff] }
 0x2a4   : > { %v3177_v10 = vpop.f32.mrb[72].mxu1 }
 0x2a5   : > { %4671 = vmatpush1.bf16.msra.mxu1 %v7981_v31  ;;  %v3179_v63 = vpop.f32.mrb[73].mxu1  ;;  %v11562_v56 = vadd.f32 %v11446_v22, %v3177_v10  ;;  %v11575_v22 = vpop.f32.mrb[78].mxu0  ;;  %v8036_v31 = vld [vmem:[#allocation2 + $0x100] sm:$0xff] }
 0x2a6   : > { %4672 = vmatprep.subr.bf16.mxu1 %v13242_v19  ;;  %v3180_v55 = vpop.f32.mrb[74].mxu1  ;;  %v11577_v62 = vpop.f32.mrb[79].mxu0  ;;  %v8038_v63 = vld [vmem:[#allocation2 + $0x130] sm:$0xff] }
 0x2a7   : > { %v3182_v6 = vpop.f32.mrb[75].mxu1  ;;  %v11571_v47 = vadd.f32 %v11458_v18, %v3180_v55 }
 0x2a8   : > { %7663 = vmatmul.mubr.bf16.gmra.mrb[176].mxu1 %v8033_v15  ;;  %v7987_v15 = vld [vmem:[%s12772_s2 + $0x1d0] sm:$0xff]  }
 0x2a9   : > { %7666 = vmatprep.mubr.bf16.mxu1 %v8034_v40  ;;  %4673 = vmatpush1.bf16.msra.mxu1 %v7982_v4 }
 0x2aa   : > { %4674 = vmatprep.subr.bf16.mxu1 %v13242_v19  ;;  %3986 = vmatmul.mubr.bf16.gmra.mrb[184].mxu0 %v11301_v49 }
 0x2ab   : > { %3993 = vmatprep.mubr.bf16.mxu0 %v11304_v28  ;;  %v8037_v28 = vld [vmem:[#allocation2 + $0x118] sm:$0xff] }
 0x2ac   : > { %v3185_v52 = vpop.f32.mrb[76].mxu1 }
 0x2ad   : > { %4675 = vmatpush1.bf16.msra.mxu1 %v7983_v53  ;;  %v3187_v18 = vpop.f32.mrb[77].mxu1  ;;  %v11586_v4 = vadd.f32 %v11479_v13, %v3185_v52  ;;  %v11591_v53 = vpop.f32.mrb[80].mxu0 }
 0x2ae   : > { %4676 = vmatprep.subr.bf16.mxu1 %v13242_v19  ;;  %v3188_v20 = vpop.f32.mrb[78].mxu1  ;;  %v11597_v49 = vpop.f32.mrb[81].mxu0 }
 0x2af   : > { %v3190_v40 = vpop.f32.mrb[79].mxu1  ;;  %v11595_v10 = vadd.f32 %v11486_v46, %v3188_v20  ;;  %v11599_v13 = vpop.f32.mrb[82].mxu0 }
 0x2b0   : > { %7667 = vmatmul.mubr.bf16.gmra.mrb[180].mxu1 %v8035_v59  ;;  %v11601_v55 = vpop.f32.mrb[83].mxu0 }
 0x2b1   : > { %7670 = vmatprep.mubr.bf16.mxu1 %v8036_v31  ;;  %4677 = vmatpush1.bf16.msra.mxu1 %v7985_v26  ;;  %v7988_v26 = vld [vmem:[%s12772_s2 + $0x1d8] sm:$0xff]   ;;  %v11615_v18 = vpop.f32.mrb[84].mxu0 }
 0x2b2   : > { %4678 = vmatprep.subr.bf16.mxu1 %v13242_v19  ;;  %3994 = vmatmul.mubr.bf16.gmra.mrb[188].mxu0 %v11307_v35  ;;  %v11621_v35 = vpop.f32.mrb[85].mxu0 }
 0x2b3   : > { %4001 = vmatprep.mubr.bf16.mxu0 %v11310_v44  ;;  %v8039_v44 = vld [vmem:[#allocation2 + $0x148] sm:$0xff] }
 0x2b5   : > { %4679 = vmatpush1.bf16.msra.mxu1 %v7986_v25  ;;  %v7990_v25 = vld [vmem:[%s12772_s2 + $0x1e0] sm:$0xff]  }
 0x2b6   : > { %4680 = vmatprep.subr.bf16.mxu1 %v13242_v19 }
 0x2b8   : > { %7671 = vmatmul.mubr.bf16.gmra.mrb[184].mxu1 %v8037_v28  ;;  %v7991_v28 = vld [vmem:[%s12772_s2 + $0x1e8] sm:$0xff]  }
 0x2b9   : > { %7674 = vmatprep.mubr.bf16.mxu1 %v8038_v63  ;;  %4681 = vmatpush1.bf16.msra.mxu1 %v7987_v15  ;;  %v8040_v15 = vld [vmem:[#allocation2 + $0x160] sm:$0xff] }
 0x2ba   : > { %4682 = vmatprep.subr.bf16.mxu1 %v13242_v19  ;;  %4002 = vmatmul.mubr.bf16.gmra.mrb[192].mxu0 %v11316_v8 }
 0x2bb   : > { %v3193_v6 = vpop.f32.mrb[80].mxu1 }
 0x2bc   : > { %v3195_v46 = vpop.f32.mrb[81].mxu1  ;;  %v11610_v59 = vadd.f32 %v11475_v1, %v3193_v6  ;;  %v11623_v1 = vpop.f32.mrb[86].mxu0 }
 0x2bd   : > { %v3196_v31 = vpop.f32.mrb[82].mxu1  ;;  %4683 = vmatpush1.bf16.msra.mxu1 %v7988_v26  ;;  %v11625_v40 = vpop.f32.mrb[87].mxu0  ;;  %v8041_v26 = vld [vmem:[#allocation2 + $0x230] sm:$0xff] }
 0x2be   : > { %13931 = vst [vmem:[#allocation39_spill] sm:$0xff] %v11610_v59  ;;  %v3198_v52 = vpop.f32.mrb[83].mxu1  ;;  %4684 = vmatprep.subr.bf16.mxu1 %v13242_v19  ;;  %v11619_v20 = vadd.f32 %v11481_v61, %v3196_v31  ;;  %4009 = vmatprep.mubr.bf16.mxu0 %v8041_v26  ;;  %v7992_v31 = vld [vmem:[%s12772_s2 + $0x1f0] sm:$0xff]  }
 0x2bf   : > { %v11638_v52 = vpop.f32.mrb[88].mxu0 }
 0x2c0   : > { %13932 = vst [vmem:[#allocation24_spill] sm:$0xff] %v11619_v20  ;;  %7675 = vmatmul.mubr.bf16.gmra.mrb[188].mxu1 %v8039_v44  ;;  %v11644_v8 = vpop.f32.mrb[89].mxu0 }
 0x2c1   : > { %7678 = vmatprep.mubr.bf16.mxu1 %v8040_v15  ;;  %4685 = vmatpush1.bf16.msra.mxu1 %v7990_v25  ;;  %v8042_v15 = vld [vmem:[#allocation2 + $0x178] sm:$0xff] }
 0x2c2   : > { %4686 = vmatprep.subr.bf16.mxu1 %v13242_v19  ;;  %4010 = vmatmul.mubr.bf16.gmra.mrb[196].mxu0 %v11320_v23  ;;  %v8046_v23 = vld [vmem:[#allocation2 + $0x1c0] sm:$0xff] }
 0x2c3   : > { %v3201_v63 = vpop.f32.mrb[84].mxu1 }
 0x2c4   : > { %v3203_v61 = vpop.f32.mrb[85].mxu1  ;;  %v11633_v6 = vadd.f32 %v11501_v34, %v3201_v63  ;;  %v11646_v34 = vpop.f32.mrb[90].mxu0  ;;  %v8043_v63 = vld [vmem:[#allocation2 + $0x190] sm:$0xff] }
 0x2c5   : > { %v3204_v46 = vpop.f32.mrb[86].mxu1  ;;  %4687 = vmatpush1.bf16.msra.mxu1 %v7991_v28  ;;  %v11648_v28 = vpop.f32.mrb[91].mxu0  ;;  %v7995_v61 = vld [vmem:[%s12772_s2 + $0x1f8] sm:$0xff]  }
 0x2c6   : > { %13933 = vst [vmem:[#allocation25_spill] sm:$0xff] %v11633_v6  ;;  %v3206_v25 = vpop.f32.mrb[87].mxu1  ;;  %4688 = vmatprep.subr.bf16.mxu1 %v13242_v19  ;;  %v11642_v44 = vadd.f32 %v11508_v37, %v3204_v46  ;;  %v8044_v46 = vld [vmem:[#allocation2 + $0x248] sm:$0xff] }
 0x2c7   : > { %4017 = vmatprep.mubr.bf16.mxu0 %v8044_v46  ;;  %v8048_v46 = vld [vmem:[#allocation2 + $0x260] sm:$0xff] }
 0x2c8   : > { %13934 = vst [vmem:[#allocation5_spill] sm:$0xff] %v11642_v44  ;;  %7679 = vmatmul.mubr.bf16.gmra.mrb[192].mxu1 %v8042_v15  ;;  %v11658_v44 = vpop.f32.mrb[92].mxu0 }
 0x2c9   : > { %7682 = vmatprep.mubr.bf16.mxu1 %v8043_v63  ;;  %4689 = vmatpush1.bf16.msra.mxu1 %v7992_v31  ;;  %v11663_v6 = vpop.f32.mrb[93].mxu0 }
 0x2ca   : > { %4690 = vmatprep.subr.bf16.mxu1 %v13242_v19  ;;  %v8045_v19 = vld [vmem:[#allocation2 + $0x1a8] sm:$0xff]  ;;  %v11665_v20 = vpop.f32.mrb[94].mxu0 }
 0x2cb   : > { %v3209_v26 = vpop.f32.mrb[88].mxu1 }
 0x2cc   : > { %v3211_v37 = vpop.f32.mrb[89].mxu1  ;;  %v11656_v25 = vadd.f32 %v11497_v14, %v3209_v26  ;;  %v8047_v26 = vld [vmem:[#allocation2 + $0x240] sm:$0xff] }
 0x2cd   : > { %v3212_v15 = vpop.f32.mrb[90].mxu1  ;;  %4691 = vmatpush1.bf16.msra.mxu1 %v7995_v61  ;;  %v11667_v37 = vpop.f32.mrb[95].mxu0  ;;  %4018 = vmatmul.mubr.bf16.gmra.mrb[200].mxu0 %v8047_v26  ;;  %v8050_v26 = vld [vmem:[#allocation2 + $0x1f0] sm:$0xff] }
 0x2ce   : > { %13935 = vst [vmem:[#allocation23_spill] sm:$0xff] %v11656_v25  ;;  %v3214_v63 = vpop.f32.mrb[91].mxu1  ;;  %v11661_v31 = vadd.f32 %v11503_v24, %v3212_v15  ;;  %4025 = vmatprep.mubr.bf16.mxu0 %v8048_v46 }
 0x2d0   : > { %13936 = vst [vmem:[#allocation4_spill] sm:$0xff] %v11661_v31  ;;  %7683 = vmatmul.mubr.bf16.gmra.mrb[196].mxu1 %v8045_v19  ;;  %v11672_v31 = vpop.f32.mrb[96].mxu0 }
 0x2d1   : > { %7686 = vmatprep.mubr.bf16.mxu1 %v8046_v23  ;;  %v11677_v25 = vpop.f32.mrb[97].mxu0  ;;  %v8049_v23 = vld [vmem:[#allocation2 + $0x1d8] sm:$0xff] }
 0x2d2   : > { %v11679_v59 = vpop.f32.mrb[98].mxu0 }
 0x2d3   : > { %v3217_v14 = vpop.f32.mrb[92].mxu1  ;;  %13939 = vst [vmem:[#allocation27_spill] sm:$0xff] %v11679_v59 }
 0x2d4   : > { %v3219_v61 = vpop.f32.mrb[93].mxu1  ;;  %v11670_v63 = vadd.f32 %v11525_v2, %v3217_v14  ;;  %v8051_v14 = vld [vmem:[#allocation2 + $0x278] sm:$0xff] }
 0x2d5   : > { %v3220_v24 = vpop.f32.mrb[94].mxu1  ;;  %v11681_v61 = vpop.f32.mrb[99].mxu0  ;;  %4026 = vmatmul.mubr.bf16.gmra.mrb[204].mxu0 %v11336_v50  ;;  %v8053_v50 = vld [vmem:[#allocation2 + $0x220] sm:$0xff] }
 0x2d6   : > { %13937 = vst [vmem:[#allocation6_spill] sm:$0xff] %v11670_v63  ;;  %v3222_v15 = vpop.f32.mrb[95].mxu1  ;;  %v11675_v19 = vadd.f32 %v11532_v16, %v3220_v24  ;;  %4033 = vmatprep.mubr.bf16.mxu0 %v8051_v14 }
 0x2d8   : > { %13938 = vst [vmem:[#allocation26_spill] sm:$0xff] %v11675_v19  ;;  %7687 = vmatmul.mubr.bf16.gmra.mrb[200].mxu1 %v8049_v23  ;;  %v11687_v19 = vpop.f32.mrb[100].mxu0 }
 0x2d9   : > { %7690 = vmatprep.mubr.bf16.mxu1 %v8050_v26  ;;  %13941 = vst [vmem:[#allocation41_spill] sm:$0xff] %v11687_v19  ;;  %v11692_v63 = vpop.f32.mrb[101].mxu0  ;;  %v8052_v26 = vld [vmem:[#allocation2 + $0x208] sm:$0xff] }
 0x2da   : > { %v11694_v59 = vpop.f32.mrb[102].mxu0 }
 0x2db   : > { %v3225_v46 = vpop.f32.mrb[96].mxu1  ;;  %13943 = vst [vmem:[#allocation45_spill] sm:$0xff] %v11694_v59 }
 0x2dc   : > { %v3227_v2 = vpop.f32.mrb[97].mxu1  ;;  %v11685_v15 = vadd.f32 %v11520_v51, %v3225_v46  ;;  %v8054_v51 = vld [vmem:[#allocation2 + $0x270] sm:$0xff] }
 0x2dd   : > { %v3228_v16 = vpop.f32.mrb[98].mxu1  ;;  %v11696_v2 = vpop.f32.mrb[103].mxu0  ;;  %4034 = vmatmul.mubr.bf16.gmra.mrb[208].mxu0 %v8054_v51 }
 0x2de   : > { %13940 = vst [vmem:[#allocation46_spill] sm:$0xff] %v11685_v15  ;;  %v3230_v24 = vpop.f32.mrb[99].mxu1  ;;  %v11690_v23 = vadd.f32 %v11527_v21, %v3228_v16  ;;  %13944 = vst [vmem:[#allocation47_spill] sm:$0xff] %v11696_v2  ;;  %v8055_v15 = vld [vmem:[#allocation2 + $0x290] sm:$0xff]  ;;  %v8056_v2 = vld [vmem:[#allocation2 + $0x238] sm:$0xff] }
 0x2df   : > { %4041 = vmatprep.mubr.bf16.mxu0 %v8055_v15 }
 0x2e0   : > { %13942 = vst [vmem:[#allocation42_spill] sm:$0xff] %v11690_v23  ;;  %7691 = vmatmul.mubr.bf16.gmra.mrb[204].mxu1 %v8052_v26  ;;  %v3827_v23 = vpop.f32.mrb[104].mxu0 }
 0x2e1   : > { %7694 = vmatprep.mubr.bf16.mxu1 %v8053_v50  ;;  %v11705_v59 = vadd.f32 %v3827_v23, %v11377_v12  ;;  %v3829_v50 = vpop.f32.mrb[105].mxu0 }
 0x2e2   : > { %v3830_v19 = vpop.f32.mrb[106].mxu0 }
 0x2e3   : > { %v3233_v14 = vpop.f32.mrb[100].mxu1  ;;  %v11708_v51 = vadd.f32 %v3830_v19, %v11380_v0 }
 0x2e4   : > { %v11699_v46 = vadd.f32 %v11549_v58, %v3233_v14  ;;  %v3235_v24 = vpop.f32.mrb[101].mxu1  ;;  %v3832_v58 = vpop.f32.mrb[107].mxu0  ;;  %v8057_v14 = vld [vmem:[#allocation2 + $0x250] sm:$0xff] }
 0x2e5   : > { %v3236_v21 = vpop.f32.mrb[102].mxu1  ;;  %4042 = vmatmul.mubr.bf16.gmra.mrb[212].mxu0 %v11355_v27  ;;  %v8059_v58 = vld [vmem:[#allocation2 + $0x268] sm:$0xff] }
 0x2e6   : > { %v11702_v16 = vadd.f32 %v11556_v57, %v3236_v21  ;;  %v3238_v26 = vpop.f32.mrb[103].mxu1  ;;  %v8058_v21 = vld [vmem:[#allocation2 + $0x2a8] sm:$0xff] }
 0x2e7   : > { %4049 = vmatprep.mubr.bf16.mxu0 %v8058_v21  ;;  %v3835_v26 = vpop.f32.mrb[108].mxu0 }
 0x2e8   : > { %7695 = vmatmul.mubr.bf16.gmra.mrb[208].mxu1 %v8056_v2  ;;  %v11718_v0 = vadd.f32 %v3835_v26, %v11383_v60  ;;  %v3837_v19 = vpop.f32.mrb[109].mxu0 }
 0x2e9   : > { %7698 = vmatprep.mubr.bf16.mxu1 %v8057_v14  ;;  %v3838_v50 = vpop.f32.mrb[110].mxu0  ;;  %v8060_v14 = vld [vmem:[#allocation2 + $0x280] sm:$0xff] }
 0x2ea   : > { %v11721_v27 = vadd.f32 %v3838_v50, %v11388_v5 }
 0x2eb   : > { %v3241_v15 = vpop.f32.mrb[104].mxu1 }
 0x2ec   : > { %v11712_v57 = vadd.f32 %v11544_v54, %v3241_v15  ;;  %v3243_v24 = vpop.f32.mrb[105].mxu1  ;;  %v3840_v54 = vpop.f32.mrb[111].mxu0 }
 0x2ed   : > { %v3244_v12 = vpop.f32.mrb[106].mxu1  ;;  %v8061_v24 = vld [vmem:[#allocation2 + $0x2a0] sm:$0xff]  ;;  %v3843_v19 = vpop.f32.mrb[112].mxu0  ;;  %v8063_v54 = vld [vmem:[#allocation2 + $0x298] sm:$0xff] }
 0x2ee   : > { %v11715_v23 = vadd.f32 %v11551_v41, %v3244_v12  ;;  %v3246_v2 = vpop.f32.mrb[107].mxu1  ;;  %4050 = vmatmul.mubr.bf16.gmra.mrb[216].mxu0 %v8061_v24  ;;  %v8062_v12 = vld [vmem:[#allocation2 + $0x2c0] sm:$0xff]  ;;  %v11730_v5 = vadd.f32 %v3843_v19, %v11403_v33  ;;  %v3845_v50 = vpop.f32.mrb[113].mxu0 }
 0x2ef   : > { %4057 = vmatprep.mubr.bf16.mxu0 %v8062_v12 }
 0x2f0   : > { %7699 = vmatmul.mubr.bf16.gmra.mrb[212].mxu1 %v8059_v58  ;;  %v3846_v58 = vpop.f32.mrb[114].mxu0 }
 0x2f1   : > { %7702 = vmatprep.mubr.bf16.mxu1 %v8060_v14  ;;  %v11733_v14 = vadd.f32 %v3846_v58, %v11405_v42 }
 0x2f3   : > { %v3249_v15 = vpop.f32.mrb[108].mxu1 }
 0x2f4   : > { %v11724_v41 = vadd.f32 %v11573_v48, %v3249_v15  ;;  %v3251_v21 = vpop.f32.mrb[109].mxu1  ;;  %v3848_v48 = vpop.f32.mrb[115].mxu0  ;;  %v8064_v15 = vld [vmem:[#allocation2 + $0x2b0] sm:$0xff] }
 0x2f5   : > { %v3252_v60 = vpop.f32.mrb[110].mxu1  ;;  %v8065_v21 = vld [vmem:[#allocation2 + $0x2b8] sm:$0xff]  ;;  %v3851_v50 = vpop.f32.mrb[116].mxu0  ;;  %v8067_v48 = vld [vmem:[#allocation2 + $0x2c8] sm:$0xff] }
 0x2f6   : > { %v11727_v2 = vadd.f32 %v11577_v62, %v3252_v60  ;;  %v3254_v26 = vpop.f32.mrb[111].mxu1  ;;  %4058 = vmatmul.mubr.bf16.gmra.mrb[220].mxu0 %v8065_v21  ;;  %v8066_v60 = vld [vmem:[#allocation2 + $0x2d8] sm:$0xff]  ;;  %v11742_v42 = vadd.f32 %v3851_v50, %v11416_v39  ;;  %v3853_v58 = vpop.f32.mrb[117].mxu0 }
 0x2f7   : > { %4065 = vmatprep.mubr.bf16.mxu0 %v8066_v60 }
 0x2f8   : > { %7703 = vmatmul.mubr.bf16.gmra.mrb[216].mxu1 %v8063_v54  ;;  %v3854_v54 = vpop.f32.mrb[118].mxu0 }
 0x2f9   : > { %7706 = vmatprep.mubr.bf16.mxu1 %v8064_v15  ;;  %v11745_v15 = vadd.f32 %v3854_v54, %v11420_v30 }
 0x2fb   : > { %v3257_v24 = vpop.f32.mrb[112].mxu1 }
 0x2fc   : > { %v11736_v62 = vadd.f32 %v11567_v3, %v3257_v24  ;;  %v3259_v12 = vpop.f32.mrb[113].mxu1  ;;  %v3856_v3 = vpop.f32.mrb[119].mxu0  ;;  %v8068_v24 = vld [vmem:[#allocation2 + $0x2e0] sm:$0xff] }
 0x2fd   : > { %v3260_v33 = vpop.f32.mrb[114].mxu1  ;;  %v8069_v12 = vld [vmem:[#allocation2 + $0x2d0] sm:$0xff]  ;;  %v3859_v58 = vpop.f32.mrb[120].mxu0  ;;  %v8071_v3 = vld [vmem:[#allocation2 + $0x2f8] sm:$0xff] }
 0x2fe   : > { %v11739_v26 = vadd.f32 %v11575_v22, %v3260_v33  ;;  %v3262_v19 = vpop.f32.mrb[115].mxu1  ;;  %4066 = vmatmul.mubr.bf16.gmra.mrb[224].mxu0 %v8069_v12  ;;  %v8070_v33 = vld [vmem:[#allocation2 + $0x2f0] sm:$0xff]  ;;  %v11754_v30 = vadd.f32 %v3859_v58, %v11441_v11  ;;  %v3861_v54 = vpop.f32.mrb[121].mxu0 }
 0x2ff   : > { %4073 = vmatprep.mubr.bf16.mxu0 %v8070_v33 }
 0x300   : > { %7707 = vmatmul.mubr.bf16.gmra.mrb[220].mxu1 %v8067_v48  ;;  %v3862_v48 = vpop.f32.mrb[122].mxu0 }
 0x301   : > { %7710 = vmatprep.mubr.bf16.mxu1 %v8068_v24  ;;  %v4372_v24 = vld [vmem:[#allocation2 + $0x68] sm:$0xff] }
 0x303   : > { %v3265_v21 = vpop.f32.mrb[116].mxu1 }
 0x304   : > { %v11748_v22 = vadd.f32 %v11597_v49, %v3265_v21  ;;  %v3267_v60 = vpop.f32.mrb[117].mxu1  ;;  %v11757_v49 = vadd.f32 %v3862_v48, %v11448_v32  ;;  %v3864_v21 = vpop.f32.mrb[123].mxu0 }
 0x305   : > { %v3268_v39 = vpop.f32.mrb[118].mxu1  ;;  %v8072_v60 = vld [vmem:[#allocation2 + $0x2e8] sm:$0xff]  ;;  %v3867_v54 = vpop.f32.mrb[124].mxu0  ;;  %v4375_v21 = vld [vmem:[#allocation2 + $0x80] sm:$0xff] }
 0x306   : > { %v11751_v19 = vadd.f32 %v11601_v55, %v3268_v39  ;;  %v3270_v50 = vpop.f32.mrb[119].mxu1  ;;  %4074 = vmatmul.mubr.bf16.gmra.mrb[228].mxu0 %v8072_v60  ;;  %v4373_v55 = vld [vmem:[#allocation2 + $0x70] sm:$0xff]  ;;  %v11766_v32 = vadd.f32 %v3867_v54, %v11467_v9  ;;  %v3869_v48 = vpop.f32.mrb[125].mxu0 }
 0x307   : > { %7730 = vmatprep.mubr.bf16.mxu0 %v4373_v55 }
 0x308   : > { %7711 = vmatmul.mubr.bf16.gmra.mrb[224].mxu1 %v8071_v3  ;;  %v4371_v3 = vld [vmem:[#allocation2 + $0x60] sm:$0xff] }
 0x309   : > { %4692 = vmatprep.mubr.bf16.mxu1 %v4372_v24  ;;  %v3870_v24 = vpop.f32.mrb[126].mxu0 }
 0x30a   : > { %v11769_v60 = vadd.f32 %v3870_v24, %v11477_v43  ;;  %v4374_v24 = vld [vmem:[#allocation2 + $0x78] sm:$0xff] }
 0x30b   : > { %v3273_v12 = vpop.f32.mrb[120].mxu1 }
 0x30c   : > { %v11760_v33 = vadd.f32 %v11591_v53, %v3273_v12  ;;  %v3275_v39 = vpop.f32.mrb[121].mxu1  ;;  %v3872_v53 = vpop.f32.mrb[127].mxu0  ;;  %v4376_v12 = vld [vmem:[#allocation2 + $0x88] sm:$0xff] }
 0x30d   : > { %v3276_v11 = vpop.f32.mrb[122].mxu1  ;;  %v3875_v48 = vpop.f32.mrb[128].mxu0  ;;  %v4378_v53 = vld [vmem:[#allocation2 + $0x98] sm:$0xff] }
 0x30e   : > { %v11763_v50 = vadd.f32 %v11599_v13, %v3276_v11  ;;  %v3278_v58 = vpop.f32.mrb[123].mxu1  ;;  %7731 = vmatmul.mubr.bf16.vlgmr.msra.gmra.mrb[232].mxu0 %v4376_v12  ;;  %v4379_v13 = vld [vmem:[#allocation2 + $0xa0] sm:$0xff]  ;;  %v11778_v43 = vadd.f32 %v3875_v48, %v11491_v17 }
 0x30f   : > { %7734 = vmatprep.mubr.bf16.mxu0 %v4379_v13 }
 0x310   : > { %4693 = vmatmul.mubr.bf16.vlgmr.msra.gmra.mrb[228].mxu1 %v4371_v3  ;;  %v3877_v3 = vpop.f32.mrb[129].mxu0 }
 0x311   : > { %4700 = vmatprep.mubr.bf16.mxu1 %v4375_v21  ;;  %v3878_v21 = vpop.f32.mrb[130].mxu0 }
 0x312   : > { %v11781_v12 = vadd.f32 %v3878_v21, %v11499_v7  ;;  %v4377_v21 = vld [vmem:[#allocation2 + $0x90] sm:$0xff] }
 0x313   : > { %v3281_v55 = vpop.f32.mrb[124].mxu1 }
 0x314   : > { %v11772_v39 = vadd.f32 %v11621_v35, %v3281_v55  ;;  %v3283_v11 = vpop.f32.mrb[125].mxu1  ;;  %v3880_v35 = vpop.f32.mrb[131].mxu0  ;;  %v4382_v55 = vld [vmem:[#allocation2 + $0xb8] sm:$0xff] }
 0x315   : > { %v3284_v9 = vpop.f32.mrb[126].mxu1  ;;  %v3883_v3 = vpop.f32.mrb[132].mxu0  ;;  %v4381_v35 = vld [vmem:[#allocation2 + $0xb0] sm:$0xff] }
 0x316   : > { %v11775_v58 = vadd.f32 %v11625_v40, %v3284_v9  ;;  %v3286_v54 = vpop.f32.mrb[127].mxu1  ;;  %7735 = vmatmul.mubr.bf16.gmra.mrb[236].mxu0 %v4382_v55  ;;  %v4385_v40 = vld [vmem:[#allocation2 + $0xd0] sm:$0xff]  ;;  %v11790_v7 = vadd.f32 %v3883_v3, %v11514_v45 }
 0x317   : > { %7738 = vmatprep.mubr.bf16.mxu0 %v4385_v40 }
 0x318   : > { %4701 = vmatmul.mubr.bf16.gmra.mrb[232].mxu1 %v4374_v24  ;;  %v3885_v24 = vpop.f32.mrb[133].mxu0 }
 0x319   : > { %4708 = vmatprep.mubr.bf16.mxu1 %v4378_v53  ;;  %v3886_v53 = vpop.f32.mrb[134].mxu0 }
 0x31a   : > { %v11793_v55 = vadd.f32 %v3886_v53, %v11523_v36  ;;  %v4380_v53 = vld [vmem:[#allocation2 + $0xa8] sm:$0xff] }
 0x31b   : > { %v3289_v13 = vpop.f32.mrb[128].mxu1 }
 0x31c   : > { %v11784_v11 = vadd.f32 %v11615_v18, %v3289_v13  ;;  %v3291_v9 = vpop.f32.mrb[129].mxu1  ;;  %v3888_v18 = vpop.f32.mrb[135].mxu0  ;;  %v4388_v13 = vld [vmem:[#allocation2 + $0xe8] sm:$0xff] }
 0x31d   : > { %v3292_v17 = vpop.f32.mrb[130].mxu1  ;;  %v3891_v24 = vpop.f32.mrb[136].mxu0  ;;  %v4384_v18 = vld [vmem:[#allocation2 + $0xc8] sm:$0xff] }
 0x31e   : > { %v11787_v54 = vadd.f32 %v11623_v1, %v3292_v17  ;;  %v3294_v48 = vpop.f32.mrb[131].mxu1  ;;  %7739 = vmatmul.mubr.bf16.gmra.mrb[240].mxu0 %v4388_v13  ;;  %v4391_v1 = vld [vmem:[#allocation2 + $0x100] sm:$0xff]  ;;  %v11802_v36 = vadd.f32 %v3891_v24, %v11538_v38 }
 0x31f   : > { %7742 = vmatprep.mubr.bf16.mxu0 %v4391_v1 }
 0x320   : > { %4709 = vmatmul.mubr.bf16.gmra.mrb[236].mxu1 %v4377_v21  ;;  %v3893_v21 = vpop.f32.mrb[137].mxu0 }
 0x321   : > { %4716 = vmatprep.mubr.bf16.mxu1 %v4381_v35  ;;  %v3894_v35 = vpop.f32.mrb[138].mxu0 }
 0x322   : > { %v11805_v13 = vadd.f32 %v3894_v35, %v11547_v29  ;;  %v4383_v35 = vld [vmem:[#allocation2 + $0xc0] sm:$0xff] }
 0x323   : > { %v3297_v40 = vpop.f32.mrb[132].mxu1 }
 0x324   : > { %v11796_v9 = vadd.f32 %v11644_v8, %v3297_v40  ;;  %v3299_v17 = vpop.f32.mrb[133].mxu1  ;;  %v3896_v8 = vpop.f32.mrb[139].mxu0  ;;  %v4394_v40 = vld [vmem:[#allocation2 + $0x118] sm:$0xff] }
 0x325   : > { %v3300_v45 = vpop.f32.mrb[134].mxu1  ;;  %v3899_v21 = vpop.f32.mrb[140].mxu0  ;;  %v4387_v8 = vld [vmem:[#allocation2 + $0xe0] sm:$0xff] }
 0x326   : > { %v11799_v48 = vadd.f32 %v11648_v28, %v3300_v45  ;;  %v3302_v3 = vpop.f32.mrb[135].mxu1  ;;  %7743 = vmatmul.mubr.bf16.gmra.mrb[244].mxu0 %v4394_v40  ;;  %v4397_v28 = vld [vmem:[#allocation2 + $0x130] sm:$0xff]  ;;  %v11814_v29 = vadd.f32 %v3899_v21, %v11562_v56 }
 0x327   : > { %7746 = vmatprep.mubr.bf16.mxu0 %v4397_v28 }
 0x328   : > { %4717 = vmatmul.mubr.bf16.gmra.mrb[240].mxu1 %v4380_v53  ;;  %v3901_v53 = vpop.f32.mrb[141].mxu0 }
 0x329   : > { %4724 = vmatprep.mubr.bf16.mxu1 %v4384_v18  ;;  %v3902_v18 = vpop.f32.mrb[142].mxu0 }
 0x32a   : > { %v11817_v40 = vadd.f32 %v3902_v18, %v11571_v47  ;;  %v4386_v18 = vld [vmem:[#allocation2 + $0xd8] sm:$0xff] }
 0x32b   : > { %v3305_v1 = vpop.f32.mrb[136].mxu1 }
 0x32c   : > { %v11808_v17 = vadd.f32 %v11638_v52, %v3305_v1  ;;  %v3307_v45 = vpop.f32.mrb[137].mxu1  ;;  %v3904_v52 = vpop.f32.mrb[143].mxu0  ;;  %v4400_v1 = vld [vmem:[#allocation2 + $0x148] sm:$0xff] }
 0x32d   : > { %v3308_v38 = vpop.f32.mrb[138].mxu1  ;;  %v3907_v53 = vpop.f32.mrb[144].mxu0  ;;  %v4390_v52 = vld [vmem:[#allocation2 + $0xf8] sm:$0xff] }
 0x32e   : > { %v11811_v3 = vadd.f32 %v11646_v34, %v3308_v38  ;;  %v3310_v24 = vpop.f32.mrb[139].mxu1  ;;  %7747 = vmatmul.mubr.bf16.gmra.mrb[248].mxu0 %v4400_v1  ;;  %v4403_v34 = vld [vmem:[#allocation2 + $0x160] sm:$0xff]  ;;  %v11826_v47 = vadd.f32 %v3907_v53, %v11586_v4 }
 0x32f   : > { %7750 = vmatprep.mubr.bf16.mxu0 %v4403_v34 }
 0x330   : > { %13945 = vst [vmem:[#allocation28_spill] sm:$0xff] %v11811_v3  ;;  %4725 = vmatmul.mubr.bf16.gmra.mrb[244].mxu1 %v4383_v35  ;;  %v3909_v35 = vpop.f32.mrb[145].mxu0 }
 0x331   : > { %4732 = vmatprep.mubr.bf16.mxu1 %v4387_v8  ;;  %v3910_v8 = vpop.f32.mrb[146].mxu0 }
 0x332   : > { %v11829_v1 = vadd.f32 %v3910_v8, %v11595_v10 }
 0x333   : > { %v3313_v28 = vpop.f32.mrb[140].mxu1 }
 0x334   : > { %v11820_v45 = vadd.f32 %v11663_v6, %v3313_v28  ;;  %v3315_v38 = vpop.f32.mrb[141].mxu1  ;;  %v3912_v6 = vpop.f32.mrb[147].mxu0  ;;  %v4406_v28 = vld [vmem:[#allocation2 + $0x178] sm:$0xff] }
 0x335   : > { %v3316_v56 = vpop.f32.mrb[142].mxu1  ;;  %v3915_v35 = vpop.f32.mrb[148].mxu0 }
 0x336   : > { %13946 = vst [vmem:[#allocation13_spill] sm:$0xff] %v11820_v45  ;;  %v11823_v24 = vadd.f32 %v11667_v37, %v3316_v56  ;;  %v3318_v21 = vpop.f32.mrb[143].mxu1  ;;  %7751 = vmatmul.mubr.bf16.gmra.mrb[252].mxu0 %v4406_v28  ;;  %v4409_v37 = vld [vmem:[#allocation2 + $0x190] sm:$0xff]  ;;  %v3917_v8 = vpop.f32.mrb[149].mxu0 }
 0x337   : > { %7754 = vmatprep.mubr.bf16.mxu0 %v4409_v37  ;;  %v3918_v6 = vpop.f32.mrb[150].mxu0  ;;  %v4393_v28 = vld [vmem:[#allocation2 + $0x110] sm:$0xff] }
 0x338   : > { %13947 = vst [vmem:[#allocation29_spill] sm:$0xff] %v11823_v24  ;;  %4733 = vmatmul.mubr.bf16.gmra.mrb[248].mxu1 %v4386_v18  ;;  %v13950_v18 = vld [vmem:[#allocation39_spill] sm:$0xff]  ;;  %v13951_v24 = vld [vmem:[#allocation24_spill] sm:$0xff] }
 0x339   : > { %4740 = vmatprep.mubr.bf16.mxu1 %v4390_v52  ;;  %v11838_v10 = vadd.f32 %v3915_v35, %v13950_v18  ;;  %v4389_v52 = vld [vmem:[#allocation2 + $0xf0] sm:$0xff]  ;;  %v11841_v45 = vadd.f32 %v3918_v6, %v13951_v24 }
 0x33b   : > { %v3321_v34 = vpop.f32.mrb[144].mxu1 }
 0x33c   : > { %v11832_v38 = vadd.f32 %v11658_v44, %v3321_v34  ;;  %v3323_v56 = vpop.f32.mrb[145].mxu1  ;;  %v3920_v44 = vpop.f32.mrb[151].mxu0  ;;  %v4412_v34 = vld [vmem:[#allocation2 + $0x1a8] sm:$0xff] }
 0x33d   : > { %v3324_v4 = vpop.f32.mrb[146].mxu1  ;;  %v3923_v8 = vpop.f32.mrb[152].mxu0 }
 0x33e   : > { %13948 = vst [vmem:[#allocation34_spill] sm:$0xff] %v11832_v38  ;;  %v11835_v21 = vadd.f32 %v11665_v20, %v3324_v4  ;;  %v3326_v53 = vpop.f32.mrb[147].mxu1  ;;  %7755 = vmatmul.mubr.bf16.gmra.mrb[0].mxu0 %v4412_v34  ;;  %v4415_v20 = vld [vmem:[#allocation2 + $0x1c0] sm:$0xff]  ;;  %v3925_v6 = vpop.f32.mrb[153].mxu0  ;;  %v4396_v34 = vld [vmem:[#allocation2 + $0x128] sm:$0xff] }
 0x33f   : > { %7758 = vmatprep.mubr.bf16.mxu0 %v4415_v20  ;;  %v3926_v44 = vpop.f32.mrb[154].mxu0 }
 0x340   : > { %13949 = vst [vmem:[#allocation30_spill] sm:$0xff] %v11835_v21  ;;  %4741 = vmatmul.mubr.bf16.gmra.mrb[252].mxu1 %v4389_v52  ;;  %v13954_v52 = vld [vmem:[#allocation25_spill] sm:$0xff] }
 0x341   : > { %4748 = vmatprep.mubr.bf16.mxu1 %v4393_v28  ;;  %v11850_v24 = vadd.f32 %v3923_v8, %v13954_v52  ;;  %v4392_v28 = vld [vmem:[#allocation2 + $0x108] sm:$0xff]  ;;  %v13955_v21 = vld [vmem:[#allocation5_spill] sm:$0xff]  ;;  %v13957_v8 = vld [vmem:[#allocation27_spill] sm:$0xff] }
 0x342   : > { %v11853_v38 = vadd.f32 %v3926_v44, %v13955_v21 }
 0x343   : > { %v3329_v37 = vpop.f32.mrb[148].mxu1 }
 0x344   : > { %v11844_v56 = vadd.f32 %v11677_v25, %v3329_v37  ;;  %v3331_v4 = vpop.f32.mrb[149].mxu1  ;;  %v3928_v25 = vpop.f32.mrb[155].mxu0  ;;  %v4418_v37 = vld [vmem:[#allocation2 + $0x1d8] sm:$0xff] }
 0x345   : > { %v3332_v53 = vpop.f32.mrb[150].mxu1 }
 0x346   : > { %13952 = vst [vmem:[#allocation31_spill] sm:$0xff] %v11844_v56  ;;  %v11847_v35 = vadd.f32 %v11681_v61, %v3332_v53  ;;  %v3334_v18 = vpop.f32.mrb[151].mxu1  ;;  %7759 = vmatmul.mubr.bf16.gmra.mrb[4].mxu0 %v4418_v37  ;;  %v4421_v61 = vld [vmem:[#allocation2 + $0x1f0] sm:$0xff]  ;;  %v4399_v37 = vld [vmem:[#allocation2 + $0x140] sm:$0xff]  ;;  %v13960_v56 = vld [vmem:[#allocation4_spill] sm:$0xff] }
 0x347   : > { %7762 = vmatprep.mubr.bf16.mxu0 %v4421_v61 }
 0x348   : > { %13953 = vst [vmem:[#allocation9_spill] sm:$0xff] %v11847_v35  ;;  %4749 = vmatmul.mubr.bf16.gmra.mrb[0].mxu1 %v4392_v28  ;;  %v3931_v28 = vpop.f32.mrb[156].mxu0  ;;  %v13959_v35 = vld [vmem:[#allocation23_spill] sm:$0xff] }
 0x349   : > { %4756 = vmatprep.mubr.bf16.mxu1 %v4396_v34  ;;  %v11862_v21 = vadd.f32 %v3931_v28, %v13959_v35  ;;  %v3933_v44 = vpop.f32.mrb[157].mxu0  ;;  %v4395_v34 = vld [vmem:[#allocation2 + $0x120] sm:$0xff] }
 0x34a   : > { %v3934_v25 = vpop.f32.mrb[158].mxu0 }
 0x34b   : > { %v3337_v20 = vpop.f32.mrb[152].mxu1  ;;  %v11865_v3 = vadd.f32 %v3934_v25, %v13960_v56  ;;  %v7998_v56 = vld [vmem:[%s12773_s3] sm:$0xff]   ;;  %v13964_v25 = vld [vmem:[#allocation6_spill] sm:$0xff] }
 0x34c   : > { %v11856_v4 = vadd.f32 %v11672_v31, %v3337_v20  ;;  %v3339_v53 = vpop.f32.mrb[153].mxu1  ;;  %v3936_v31 = vpop.f32.mrb[159].mxu0  ;;  %v4424_v20 = vld [vmem:[#allocation2 + $0x208] sm:$0xff]  ;;  %7794 = vmatprep.subr.bf16.mxu0 %v7998_v56 }
 0x34d   : > { %v3340_v18 = vpop.f32.mrb[154].mxu1  ;;  %v4427_v53 = vld [vmem:[#allocation2 + $0x220] sm:$0xff]  ;;  %7795 = vmatpush3.bf16.msra.mxu0 %v7998_v56 }
 0x34e   : > { %13956 = vst [vmem:[#allocation33_spill] sm:$0xff] %v11856_v4  ;;  %v11859_v52 = vadd.f32 %v13957_v8, %v3340_v18  ;;  %v3342_v6 = vpop.f32.mrb[155].mxu1  ;;  %7763 = vmatmul.mubr.bf16.gmra.mrb[8].mxu0 %v4424_v20  ;;  %v4398_v20 = vld [vmem:[#allocation2 + $0x138] sm:$0xff] }
 0x34f   : > { %7766 = vmatprep.mubr.bf16.mxu0 %v4427_v53  ;;  %v13962_v6 = vld [vmem:[#allocation47_spill] sm:$0xff] }
 0x350   : > { %13958 = vst [vmem:[#allocation14_spill] sm:$0xff] %v11859_v52  ;;  %4757 = vmatmul.mubr.bf16.gmra.mrb[4].mxu1 %v4395_v34  ;;  %v3939_v34 = vpop.f32.mrb[160].mxu0 }
 0x351   : > { %4764 = vmatprep.mubr.bf16.mxu1 %v4399_v37  ;;  %v11877_v37 = vadd.f32 %v3939_v34, %v13964_v25  ;;  %v3941_v31 = vpop.f32.mrb[161].mxu0  ;;  %v4433_v34 = vld [vmem:[#allocation2 + $0x250] sm:$0xff]  ;;  %v13966_v25 = vld [vmem:[#allocation41_spill] sm:$0xff] }
 0x352   : > { %v3942_v52 = vpop.f32.mrb[162].mxu0 }
 0x353   : > { %v3345_v61 = vpop.f32.mrb[156].mxu1 }
 0x354   : > { %v11868_v18 = vadd.f32 %v11692_v63, %v3345_v61  ;;  %v3347_v8 = vpop.f32.mrb[157].mxu1  ;;  %v4402_v63 = vld [vmem:[#allocation2 + $0x158] sm:$0xff]  ;;  %v13965_v61 = vld [vmem:[#allocation26_spill] sm:$0xff] }
 0x355   : > { %v3348_v35 = vpop.f32.mrb[158].mxu1  ;;  %v11880_v53 = vadd.f32 %v3942_v52, %v13965_v61  ;;  %v3944_v8 = vpop.f32.mrb[163].mxu0  ;;  %v13967_v52 = vld [vmem:[#allocation45_spill] sm:$0xff] }
 0x356   : > { %13961 = vst [vmem:[#allocation7_spill] sm:$0xff] %v11868_v18  ;;  %v11871_v28 = vadd.f32 %v13962_v6, %v3348_v35  ;;  %v3350_v44 = vpop.f32.mrb[159].mxu1  ;;  %v4430_v35 = vld [vmem:[#allocation2 + $0x238] sm:$0xff]  ;;  %v7999_v6 = vld [vmem:[%s12773_s3 + $0x8] sm:$0xff]   ;;  %v8000_v8 = vld [vmem:[%s12773_s3 + $0x10] sm:$0xff]  }
 0x357   : > { %7767 = vmatmul.mubr.bf16.gmra.mrb[12].mxu0 %v4430_v35  ;;  %7796 = vmatprep.subr.bf16.mxu0 %v7999_v6  ;;  %v13969_v18 = vld [vmem:[#allocation46_spill] sm:$0xff] }
 0x358   : > { %13963 = vst [vmem:[#allocation8_spill] sm:$0xff] %v11871_v28  ;;  %4765 = vmatmul.mubr.bf16.gmra.mrb[8].mxu1 %v4398_v20  ;;  %7770 = vmatprep.mubr.bf16.mxu0 %v4433_v34  ;;  %v4405_v34 = vld [vmem:[#allocation2 + $0x170] sm:$0xff] }
 0x359   : > { %4772 = vmatprep.mubr.bf16.mxu1 %v4402_v63  ;;  %7797 = vmatpush3.bf16.msra.mxu0 %v7999_v6  ;;  %v3947_v63 = vpop.f32.mrb[164].mxu0 }
 0x35a   : > { %v11895_v35 = vadd.f32 %v3947_v63, %v13969_v18  ;;  %v3949_v4 = vpop.f32.mrb[165].mxu0  ;;  %7798 = vmatprep.subr.bf16.mxu0 %v8000_v8  ;;  %v4439_v18 = vld [vmem:[#allocation2 + $0x280] sm:$0xff] }
 0x35b   : > { %v3353_v44 = vpop.f32.mrb[160].mxu1 }
 0x35c   : > { %v11886_v31 = vadd.f32 %v13966_v25, %v3353_v44  ;;  %v3355_v20 = vpop.f32.mrb[161].mxu1  ;;  %v4401_v44 = vld [vmem:[#allocation2 + $0x150] sm:$0xff]  ;;  %v3950_v25 = vpop.f32.mrb[166].mxu0 }
 0x35d   : > { %v3356_v28 = vpop.f32.mrb[162].mxu1  ;;  %v13970_v20 = vld [vmem:[#allocation42_spill] sm:$0xff]  ;;  %7799 = vmatpush3.bf16.msra.mxu0 %v8000_v8 }
 0x35e   : > { %v11889_v61 = vadd.f32 %v13967_v52, %v3356_v28  ;;  %v3358_v56 = vpop.f32.mrb[163].mxu1  ;;  %v11898_v6 = vadd.f32 %v3950_v25, %v13970_v20  ;;  %v3952_v28 = vpop.f32.mrb[167].mxu0  ;;  %v4436_v52 = vld [vmem:[#allocation2 + $0x268] sm:$0xff] }
 0x35f   : > { %v8001_v56 = vld [vmem:[%s12773_s3 + $0x18] sm:$0xff]   ;;  %7771 = vmatmul.mubr.bf16.gmra.mrb[16].mxu0 %v4436_v52  ;;  %v8002_v28 = vld [vmem:[%s12773_s3 + $0x20] sm:$0xff]  }
 0x360   : > { %13968 = vst [vmem:[#allocation38_spill] sm:$0xff] %v11889_v61  ;;  %4773 = vmatmul.mubr.bf16.gmra.mrb[12].mxu1 %v4401_v44  ;;  %7774 = vmatprep.mubr.bf16.mxu0 %v4439_v18 }
 0x361   : > { %4780 = vmatprep.mubr.bf16.mxu1 %v4405_v34  ;;  %7800 = vmatprep.subr.bf16.mxu0 %v8001_v56  ;;  %v3955_v34 = vpop.f32.mrb[168].mxu0 }
 0x362   : > { %7801 = vmatpush3.bf16.msra.mxu0 %v8001_v56  ;;  %v3957_v52 = vpop.f32.mrb[169].mxu0  ;;  %v4408_v56 = vld [vmem:[#allocation2 + $0x188] sm:$0xff] }
 0x363   : > { %v7652_v61 = vpop.f32.mrb[164].mxu1  ;;  %v3958_v18 = vpop.f32.mrb[170].mxu0  ;;  %7802 = vmatprep.subr.bf16.mxu0 %v8002_v28 }
 0x364   : > { %v11904_v4 = vadd.f32 %v7652_v61, %v11718_v0  ;;  %v4116_v63 = vpop.f32.mrb[165].mxu1  ;;  %v11916_v0 = vadd.f32 %v3955_v34, %v11699_v46  ;;  %v8003_v46 = vld [vmem:[%s12773_s3 + $0x28] sm:$0xff]  }
 0x365   : > { %v11907_v44 = vadd.f32 %v4116_v63, %v11705_v59  ;;  %v7653_v25 = vpop.f32.mrb[166].mxu1  ;;  %v4404_v59 = vld [vmem:[#allocation2 + $0x168] sm:$0xff]  ;;  %v3960_v63 = vpop.f32.mrb[171].mxu0 }
 0x366   : > { %v11910_v8 = vadd.f32 %v7653_v25, %v11721_v27  ;;  %v4119_v20 = vpop.f32.mrb[167].mxu1  ;;  %v11922_v27 = vadd.f32 %v3958_v18, %v11702_v16  ;;  %7803 = vmatpush3.bf16.msra.mxu0 %v8002_v28  ;;  %v4442_v25 = vld [vmem:[#allocation2 + $0x298] sm:$0xff]  ;;  %v3963_v18 = vpop.f32.mrb[172].mxu0  ;;  %v8004_v63 = vld [vmem:[%s12773_s3 + $0x30] sm:$0xff]  }
 0x367   : > { %v11919_v61 = vadd.f32 %v4119_v20, %v11708_v51  ;;  %7775 = vmatmul.mubr.bf16.gmra.mrb[20].mxu0 %v4442_v25  ;;  %v4445_v51 = vld [vmem:[#allocation2 + $0x2b0] sm:$0xff]  ;;  %7804 = vmatprep.subr.bf16.mxu0 %v8003_v46 }
 0x368   : > { %4781 = vmatmul.mubr.bf16.gmra.mrb[16].mxu1 %v4404_v59  ;;  %7778 = vmatprep.mubr.bf16.mxu0 %v4445_v51 }
 0x369   : > { %4788 = vmatprep.mubr.bf16.mxu1 %v4408_v56 }
 0x36a   : > { %7805 = vmatpush3.bf16.msra.mxu0 %v8003_v46  ;;  %v4411_v46 = vld [vmem:[#allocation2 + $0x1a0] sm:$0xff] }
 0x36b   : > { %v7656_v34 = vpop.f32.mrb[168].mxu1  ;;  %7806 = vmatprep.subr.bf16.mxu0 %v8004_v63 }
 0x36c   : > { %v11928_v20 = vadd.f32 %v7656_v34, %v11742_v42  ;;  %v4132_v52 = vpop.f32.mrb[169].mxu1  ;;  %v11940_v42 = vadd.f32 %v3963_v18, %v11712_v57  ;;  %v3965_v34 = vpop.f32.mrb[173].mxu0  ;;  %v8005_v57 = vld [vmem:[%s12773_s3 + $0x38] sm:$0xff]  }
 0x36d   : > { %v11931_v16 = vadd.f32 %v4132_v52, %v11730_v5  ;;  %v7657_v59 = vpop.f32.mrb[170].mxu1  ;;  %v4407_v5 = vld [vmem:[#allocation2 + $0x180] sm:$0xff]  ;;  %v3966_v51 = vpop.f32.mrb[174].mxu0 }
 0x36e   : > { %v11934_v28 = vadd.f32 %v7657_v59, %v11745_v15  ;;  %v4135_v56 = vpop.f32.mrb[171].mxu1  ;;  %v11946_v15 = vadd.f32 %v3966_v51, %v11715_v23  ;;  %v3968_v52 = vpop.f32.mrb[175].mxu0  ;;  %7807 = vmatpush3.bf16.msra.mxu0 %v8004_v63  ;;  %v4448_v59 = vld [vmem:[#allocation2 + $0x2c8] sm:$0xff] }
 0x36f   : > { %v11943_v25 = vadd.f32 %v4135_v56, %v11733_v14  ;;  %7779 = vmatmul.mubr.bf16.gmra.mrb[24].mxu0 %v4448_v59  ;;  %v4451_v14 = vld [vmem:[#allocation2 + $0x2e0] sm:$0xff]  ;;  %7808 = vmatprep.subr.bf16.mxu0 %v8005_v57  ;;  %v3971_v51 = vpop.f32.mrb[176].mxu0 }
 0x370   : > { %4789 = vmatmul.mubr.bf16.gmra.mrb[20].mxu1 %v4407_v5  ;;  %7782 = vmatprep.mubr.bf16.mxu0 %v4451_v14  ;;  %v11961_v52 = vadd.f32 %v3971_v51, %v11724_v41 }
 0x371   : > { %4796 = vmatprep.mubr.bf16.mxu1 %v4411_v46 }
 0x372   : > { %7809 = vmatpush3.bf16.msra.mxu0 %v8005_v57 }
 0x373   : > { %v7660_v18 = vpop.f32.mrb[172].mxu1 }
 0x374   : > { %v11952_v56 = vadd.f32 %v7660_v18, %v11766_v32  ;;  %v4148_v34 = vpop.f32.mrb[173].mxu1  ;;  %v3973_v32 = vpop.f32.mrb[177].mxu0  ;;  %v4410_v18 = vld [vmem:[#allocation2 + $0x198] sm:$0xff] }
 0x375   : > { %v11955_v23 = vadd.f32 %v4148_v34, %v11754_v30  ;;  %v7661_v5 = vpop.f32.mrb[174].mxu1  ;;  %v3974_v14 = vpop.f32.mrb[178].mxu0 }
 0x376   : > { %13971 = vst [vmem:[#allocation32_spill] sm:$0xff] %v11952_v56  ;;  %v11958_v63 = vadd.f32 %v7661_v5, %v11769_v60  ;;  %v4151_v46 = vpop.f32.mrb[175].mxu1  ;;  %v4414_v56 = vld [vmem:[#allocation2 + $0x1b8] sm:$0xff]  ;;  %v11967_v30 = vadd.f32 %v3974_v14, %v11727_v2  ;;  %v3976_v57 = vpop.f32.mrb[179].mxu0  ;;  %v4457_v5 = vld [vmem:[#allocation2 + $0x310] sm:$0xff] }
 0x377   : > { %v11964_v59 = vadd.f32 %v4151_v46, %v11757_v49  ;;  %v4454_v60 = vld [vmem:[#allocation2 + $0x2f8] sm:$0xff]  ;;  %v3979_v2 = vpop.f32.mrb[180].mxu0 }
 0x378   : > { %4797 = vmatmul.mubr.bf16.gmra.mrb[24].mxu1 %v4410_v18  ;;  %7783 = vmatmul.mubr.bf16.gmra.mrb[28].mxu0 %v4454_v60  ;;  %v3981_v57 = vpop.f32.mrb[181].mxu0 }
 0x379   : > { %4804 = vmatprep.mubr.bf16.mxu1 %v4414_v56  ;;  %7786 = vmatprep.mubr.bf16.mxu0 %v4457_v5  ;;  %v11979_v56 = vadd.f32 %v3979_v2, %v11736_v62  ;;  %v3982_v60 = vpop.f32.mrb[182].mxu0 }
 0x37a   : > { %v3984_v5 = vpop.f32.mrb[183].mxu0 }
 0x37b   : > { %v7664_v34 = vpop.f32.mrb[176].mxu1 }
 0x37c   : > { %v11970_v41 = vadd.f32 %v7664_v34, %v11790_v7  ;;  %v4164_v51 = vpop.f32.mrb[177].mxu1  ;;  %v4413_v7 = vld [vmem:[#allocation2 + $0x1b0] sm:$0xff] }
 0x37d   : > { %v11973_v49 = vadd.f32 %v4164_v51, %v11778_v43  ;;  %v7665_v46 = vpop.f32.mrb[178].mxu1  ;;  %v4417_v34 = vld [vmem:[#allocation2 + $0x1d0] sm:$0xff]  ;;  %v11985_v43 = vadd.f32 %v3982_v60, %v11739_v26  ;;  %v3987_v26 = vpop.f32.mrb[184].mxu0 }
 0x37e   : > { %v11976_v32 = vadd.f32 %v7665_v46, %v11793_v55  ;;  %v4167_v18 = vpop.f32.mrb[179].mxu1  ;;  %v4460_v55 = vld [vmem:[#allocation2 + $0x328] sm:$0xff]  ;;  %v4463_v46 = vld [vmem:[#allocation2 + $0x340] sm:$0xff]  ;;  %v11997_v60 = vadd.f32 %v3987_v26, %v11748_v22  ;;  %v3989_v5 = vpop.f32.mrb[185].mxu0 }
 0x37f   : > { %v11982_v14 = vadd.f32 %v4167_v18, %v11781_v12 }
 0x380   : > { %4805 = vmatmul.mubr.bf16.gmra.mrb[28].mxu1 %v4413_v7  ;;  %7787 = vmatmul.mubr.bf16.gmra.mrb[32].mxu0 %v4460_v55  ;;  %v3990_v55 = vpop.f32.mrb[186].mxu0 }
 0x381   : > { %4812 = vmatprep.mubr.bf16.mxu1 %v4417_v34  ;;  %7790 = vmatprep.mubr.bf16.mxu0 %v4463_v46  ;;  %v3992_v46 = vpop.f32.mrb[187].mxu0 }
 0x382   : > { %v4419_v46 = vld [vmem:[#allocation2 + $0x1e0] sm:$0xff] }
 0x383   : > { %v7668_v51 = vpop.f32.mrb[180].mxu1 }
 0x384   : > { %v11988_v62 = vadd.f32 %v7668_v51, %v11814_v29  ;;  %v4180_v2 = vpop.f32.mrb[181].mxu1  ;;  %v4416_v29 = vld [vmem:[#allocation2 + $0x1c8] sm:$0xff] }
 0x385   : > { %v11991_v12 = vadd.f32 %v4180_v2, %v11802_v36  ;;  %v7669_v18 = vpop.f32.mrb[182].mxu1  ;;  %v4420_v51 = vld [vmem:[#allocation2 + $0x1e8] sm:$0xff]  ;;  %v12003_v36 = vadd.f32 %v3990_v55, %v11751_v19  ;;  %v3995_v5 = vpop.f32.mrb[188].mxu0 }
 0x386   : > { %v11994_v57 = vadd.f32 %v7669_v18, %v11817_v40  ;;  %v4183_v7 = vpop.f32.mrb[183].mxu1  ;;  %v4466_v40 = vld [vmem:[#allocation2 + $0x358] sm:$0xff]  ;;  %v12015_v19 = vadd.f32 %v3995_v5, %v11760_v33 }
 0x387   : > { %v12000_v34 = vadd.f32 %v4183_v7, %v11805_v13 }
 0x388   : > { %4813 = vmatmul.mubr.bf16.gmra.mrb[32].mxu1 %v4416_v29  ;;  %7791 = vmatmul.mubr.bf16.gmra.mrb[36].mxu0 %v4466_v40  ;;  %v4423_v40 = vld [vmem:[#allocation2 + $0x200] sm:$0xff] }
 0x389   : > { %4820 = vmatprep.mubr.bf16.mxu1 %v4420_v51  ;;  %v3997_v51 = vpop.f32.mrb[189].mxu0 }
 0x38b   : > { %v7672_v2 = vpop.f32.mrb[184].mxu1 }
 0x38c   : > { %v12006_v18 = vadd.f32 %v7672_v2, %v11838_v10  ;;  %v4196_v22 = vpop.f32.mrb[185].mxu1  ;;  %v3998_v10 = vpop.f32.mrb[190].mxu0 }
 0x38d   : > { %v12009_v13 = vadd.f32 %v4196_v22, %v11826_v47  ;;  %v7673_v26 = vpop.f32.mrb[186].mxu1  ;;  %v12021_v47 = vadd.f32 %v3998_v10, %v11763_v50  ;;  %v4000_v2 = vpop.f32.mrb[191].mxu0 }
 0x38e   : > { %v12012_v7 = vadd.f32 %v7673_v26, %v11841_v45  ;;  %v4199_v29 = vpop.f32.mrb[187].mxu1  ;;  %v4426_v2 = vld [vmem:[#allocation2 + $0x218] sm:$0xff] }
 0x38f   : > { %v12018_v55 = vadd.f32 %v4199_v29, %v11829_v1  ;;  %v4003_v29 = vpop.f32.mrb[192].mxu0 }
 0x390   : > { %4821 = vmatmul.mubr.bf16.gmra.mrb[36].mxu1 %v4419_v46  ;;  %v12033_v46 = vadd.f32 %v4003_v29, %v11772_v39  ;;  %v4005_v10 = vpop.f32.mrb[193].mxu0 }
 0x391   : > { %4828 = vmatprep.mubr.bf16.mxu1 %v4423_v40  ;;  %v4422_v40 = vld [vmem:[#allocation2 + $0x1f8] sm:$0xff] }
 0x393   : > { %v7676_v45 = vpop.f32.mrb[188].mxu1 }
 0x394   : > { %v12024_v22 = vadd.f32 %v7676_v45, %v11862_v21  ;;  %v4212_v26 = vpop.f32.mrb[189].mxu1  ;;  %v4006_v21 = vpop.f32.mrb[194].mxu0 }
 0x395   : > { %v12027_v33 = vadd.f32 %v4212_v26, %v11850_v24  ;;  %v7677_v1 = vpop.f32.mrb[190].mxu1  ;;  %v12039_v24 = vadd.f32 %v4006_v21, %v11775_v58  ;;  %v4008_v45 = vpop.f32.mrb[195].mxu0 }
 0x396   : > { %v12030_v5 = vadd.f32 %v7677_v1, %v11865_v3  ;;  %v4215_v51 = vpop.f32.mrb[191].mxu1  ;;  %v4429_v45 = vld [vmem:[#allocation2 + $0x230] sm:$0xff] }
 0x397   : > { %v12036_v50 = vadd.f32 %v4215_v51, %v11853_v38  ;;  %v4011_v51 = vpop.f32.mrb[196].mxu0 }
 0x398   : > { %4829 = vmatmul.mubr.bf16.gmra.mrb[40].mxu1 %v4422_v40  ;;  %v12051_v40 = vadd.f32 %v4011_v51, %v11784_v11  ;;  %v4013_v21 = vpop.f32.mrb[197].mxu0 }
 0x399   : > { %4836 = vmatprep.mubr.bf16.mxu1 %v4426_v2  ;;  %v4425_v2 = vld [vmem:[#allocation2 + $0x210] sm:$0xff] }
 0x39b   : > { %v7680_v3 = vpop.f32.mrb[192].mxu1 }
 0x39c   : > { %v12042_v26 = vadd.f32 %v7680_v3, %v11895_v35  ;;  %v4228_v1 = vpop.f32.mrb[193].mxu1  ;;  %v4014_v35 = vpop.f32.mrb[198].mxu0 }
 0x39d   : > { %v12045_v39 = vadd.f32 %v4228_v1, %v11877_v37  ;;  %v7681_v38 = vpop.f32.mrb[194].mxu1  ;;  %v4015_v37 = vadd.f32 %v4014_v35, %v11787_v54  ;;  %v4016_v3 = vpop.f32.mrb[199].mxu0 }
 0x39e   : > { %v12048_v29 = vadd.f32 %v7681_v38, %v11898_v6  ;;  %v4231_v10 = vpop.f32.mrb[195].mxu1  ;;  %v4432_v3 = vld [vmem:[#allocation2 + $0x248] sm:$0xff] }
 0x39f   : > { %v12054_v58 = vadd.f32 %v4231_v10, %v11880_v53 }
 0x3a0   : > { %4837 = vmatmul.mubr.bf16.gmra.mrb[44].mxu1 %v4425_v2  ;;  %v4019_v10 = vpop.f32.mrb[200].mxu0 }
 0x3a1   : > { %4844 = vmatprep.mubr.bf16.mxu1 %v4429_v45  ;;  %v12067_v2 = vadd.f32 %v4019_v10, %v11796_v9  ;;  %v4021_v35 = vpop.f32.mrb[201].mxu0  ;;  %v4428_v45 = vld [vmem:[#allocation2 + $0x228] sm:$0xff] }
 0x3a3   : > { %v7684_v1 = vpop.f32.mrb[196].mxu1 }
 0x3a4   : > { %v12058_v6 = vadd.f32 %v7684_v1, %v11940_v42  ;;  %v4244_v38 = vpop.f32.mrb[197].mxu1  ;;  %v4022_v42 = vpop.f32.mrb[202].mxu0 }
 0x3a5   : > { %v12061_v11 = vadd.f32 %v4244_v38, %v11916_v0  ;;  %v7685_v51 = vpop.f32.mrb[198].mxu1  ;;  %v12073_v0 = vadd.f32 %v4022_v42, %v11799_v48  ;;  %v4024_v1 = vpop.f32.mrb[203].mxu0 }
 0x3a6   : > { %v12064_v53 = vadd.f32 %v7685_v51, %v11946_v15  ;;  %v4247_v21 = vpop.f32.mrb[199].mxu1 }
 0x3a7   : > { %v12070_v54 = vadd.f32 %v4247_v21, %v11922_v27 }
 0x3a8   : > { %4845 = vmatmul.mubr.bf16.gmra.mrb[48].mxu1 %v4428_v45  ;;  %v4027_v21 = vpop.f32.mrb[204].mxu0 }
 0x3a9   : > { %4852 = vmatprep.mubr.bf16.mxu1 %v4432_v3  ;;  %v4028_v45 = vadd.f32 %v4027_v21, %v11808_v17  ;;  %v4029_v42 = vpop.f32.mrb[205].mxu0  ;;  %v4431_v3 = vld [vmem:[#allocation2 + $0x240] sm:$0xff] }
 0x3aa   : > { %v4030_v1 = vpop.f32.mrb[206].mxu0  ;;  %v13977_v42 = vld [vmem:[#allocation13_spill] sm:$0xff] }
 0x3ab   : > { %v7688_v15 = vpop.f32.mrb[200].mxu1 }
 0x3ac   : > { %v12076_v38 = vadd.f32 %v7688_v15, %v11979_v56  ;;  %v4260_v51 = vpop.f32.mrb[201].mxu1  ;;  %v4435_v56 = vld [vmem:[#allocation2 + $0x260] sm:$0xff]  ;;  %v13974_v15 = vld [vmem:[#allocation28_spill] sm:$0xff] }
 0x3ad   : > { %v12079_v9 = vadd.f32 %v4260_v51, %v11961_v52  ;;  %v7689_v27 = vpop.f32.mrb[202].mxu1  ;;  %v4032_v52 = vpop.f32.mrb[207].mxu0 }
 0x3ae   : > { %13972 = vst [vmem:[#allocation37_spill] sm:$0xff] %v12076_v38  ;;  %v12082_v10 = vadd.f32 %v7689_v27, %v11985_v43  ;;  %v4263_v35 = vpop.f32.mrb[203].mxu1  ;;  %v4031_v38 = vadd.f32 %v4030_v1, %v13974_v15  ;;  %v4434_v15 = vld [vmem:[#allocation2 + $0x258] sm:$0xff] }
 0x3af   : > { %v12086_v48 = vadd.f32 %v4263_v35, %v11967_v30 }
 0x3b0   : > { %13973 = vst [vmem:[#allocation3_spill] sm:$0xff] %v12082_v10  ;;  %4853 = vmatmul.mubr.bf16.gmra.mrb[52].mxu1 %v4431_v3  ;;  %v4035_v21 = vpop.f32.mrb[208].mxu0 }
 0x3b1   : > { %4860 = vmatprep.mubr.bf16.mxu1 %v4435_v56  ;;  %v4036_v3 = vadd.f32 %v4035_v21, %v13977_v42  ;;  %v4037_v56 = vpop.f32.mrb[209].mxu0 }
 0x3b2   : > { %v4038_v52 = vpop.f32.mrb[210].mxu0  ;;  %v13982_v56 = vld [vmem:[#allocation34_spill] sm:$0xff] }
 0x3b3   : > { %v7692_v51 = vpop.f32.mrb[204].mxu1 }
 0x3b4   : > { %v12090_v43 = vadd.f32 %v7692_v51, %v12015_v19  ;;  %v4276_v27 = vpop.f32.mrb[205].mxu1  ;;  %v4438_v19 = vld [vmem:[#allocation2 + $0x278] sm:$0xff]  ;;  %v13979_v51 = vld [vmem:[#allocation29_spill] sm:$0xff] }
 0x3b5   : > { %v12093_v10 = vadd.f32 %v4276_v27, %v11997_v60  ;;  %v7693_v17 = vpop.f32.mrb[206].mxu1  ;;  %v4040_v60 = vpop.f32.mrb[211].mxu0 }
 0x3b6   : > { %13975 = vst [vmem:[#allocation10_spill] sm:$0xff] %v12090_v43  ;;  %v12096_v30 = vadd.f32 %v7693_v17, %v12021_v47  ;;  %v4279_v35 = vpop.f32.mrb[207].mxu1  ;;  %v4039_v43 = vadd.f32 %v4038_v52, %v13979_v51  ;;  %v13983_v60 = vld [vmem:[#allocation30_spill] sm:$0xff] }
 0x3b7   : > { %v12100_v1 = vadd.f32 %v4279_v35, %v12003_v36 }
 0x3b8   : > { %13976 = vst [vmem:[#allocation11_spill] sm:$0xff] %v12096_v30  ;;  %4861 = vmatmul.mubr.bf16.gmra.mrb[56].mxu1 %v4434_v15  ;;  %v4043_v35 = vpop.f32.mrb[212].mxu0 }
 0x3b9   : > { %13978 = vst [vmem:[#allocation19_spill] sm:$0xff] %v12100_v1  ;;  %4868 = vmatprep.mubr.bf16.mxu1 %v4438_v19  ;;  %v4044_v15 = vadd.f32 %v4043_v35, %v13982_v56  ;;  %v4045_v52 = vpop.f32.mrb[213].mxu0  ;;  %v4437_v19 = vld [vmem:[#allocation2 + $0x270] sm:$0xff] }
 0x3ba   : > { %v4046_v51 = vpop.f32.mrb[214].mxu0  ;;  %v13987_v52 = vld [vmem:[#allocation31_spill] sm:$0xff] }
 0x3bb   : > { %v7696_v27 = vpop.f32.mrb[208].mxu1 }
 0x3bc   : > { %v12104_v47 = vadd.f32 %v7696_v27, %v12051_v40  ;;  %v4292_v17 = vpop.f32.mrb[209].mxu1  ;;  %v4441_v40 = vld [vmem:[#allocation2 + $0x290] sm:$0xff]  ;;  %v4047_v27 = vadd.f32 %v4046_v51, %v13983_v60  ;;  %v13989_v60 = vld [vmem:[#allocation9_spill] sm:$0xff] }
 0x3bd   : > { %v12107_v30 = vadd.f32 %v4292_v17, %v12033_v46  ;;  %v7697_v21 = vpop.f32.mrb[210].mxu1 }
 0x3be   : > { %13980 = vst [vmem:[#allocation12_spill] sm:$0xff] %v12104_v47  ;;  %v12109_v36 = vadd.f32 %v7697_v21, %v4015_v37  ;;  %v4295_v42 = vpop.f32.mrb[211].mxu1  ;;  %v4048_v47 = vpop.f32.mrb[215].mxu0 }
 0x3bf   : > { %v12113_v1 = vadd.f32 %v4295_v42, %v12039_v24  ;;  %v4440_v47 = vld [vmem:[#allocation2 + $0x288] sm:$0xff] }
 0x3c0   : > { %13981 = vst [vmem:[#allocation15_spill] sm:$0xff] %v12109_v36  ;;  %4869 = vmatmul.mubr.bf16.gmra.mrb[60].mxu1 %v4437_v19 }
 0x3c1   : > { %4876 = vmatprep.mubr.bf16.mxu1 %v4441_v40  ;;  %v4051_v24 = vpop.f32.mrb[216].mxu0 }
 0x3c2   : > { %v4052_v36 = vadd.f32 %v4051_v24, %v13987_v52  ;;  %v4053_v51 = vpop.f32.mrb[217].mxu0  ;;  %v13992_v52 = vld [vmem:[#allocation33_spill] sm:$0xff] }
 0x3c3   : > { %v7700_v46 = vpop.f32.mrb[212].mxu1  ;;  %v4054_v40 = vpop.f32.mrb[218].mxu0 }
 0x3c4   : > { %v12116_v17 = vadd.f32 %v7700_v46, %v4028_v45  ;;  %v4308_v37 = vpop.f32.mrb[213].mxu1  ;;  %v4444_v45 = vld [vmem:[#allocation2 + $0x2a8] sm:$0xff]  ;;  %v4055_v46 = vadd.f32 %v4054_v40, %v13989_v60 }
 0x3c5   : > { %v12119_v21 = vadd.f32 %v4308_v37, %v12067_v2  ;;  %v7701_v35 = vpop.f32.mrb[214].mxu1 }
 0x3c6   : > { %13984 = vst [vmem:[#allocation16_spill] sm:$0xff] %v12116_v17  ;;  %v12121_v56 = vadd.f32 %v7701_v35, %v4031_v38  ;;  %v4311_v42 = vpop.f32.mrb[215].mxu1  ;;  %v4056_v17 = vpop.f32.mrb[219].mxu0 }
 0x3c7   : > { %13985 = vst [vmem:[#allocation17_spill] sm:$0xff] %v12119_v21  ;;  %v12125_v19 = vadd.f32 %v4311_v42, %v12073_v0  ;;  %v4443_v21 = vld [vmem:[#allocation2 + $0x2a0] sm:$0xff] }
 0x3c8   : > { %13986 = vst [vmem:[#allocation18_spill] sm:$0xff] %v12121_v56  ;;  %4877 = vmatmul.mubr.bf16.gmra.mrb[64].mxu1 %v4440_v47  ;;  %v4447_v17 = vld [vmem:[#allocation2 + $0x2c0] sm:$0xff] }
 0x3c9   : > { %13988 = vst [vmem:[#allocation43_spill] sm:$0xff] %v12125_v19  ;;  %4884 = vmatprep.mubr.bf16.mxu1 %v4444_v45  ;;  %v4059_v0 = vpop.f32.mrb[220].mxu0  ;;  %v13993_v45 = vld [vmem:[#allocation14_spill] sm:$0xff] }
 0x3ca   : > { %v4060_v51 = vadd.f32 %v4059_v0, %v13992_v52  ;;  %v4061_v47 = vpop.f32.mrb[221].mxu0 }
 0x3cb   : > { %v7704_v2 = vpop.f32.mrb[216].mxu1  ;;  %v4062_v40 = vpop.f32.mrb[222].mxu0 }
 0x3cc   : > { %v12128_v37 = vadd.f32 %v7704_v2, %v4044_v15  ;;  %v4324_v38 = vpop.f32.mrb[217].mxu1  ;;  %v4063_v15 = vadd.f32 %v4062_v40, %v13993_v45  ;;  %v4064_v60 = vpop.f32.mrb[223].mxu0  ;;  %v13999_v45 = vld [vmem:[#allocation8_spill] sm:$0xff] }
 0x3cd   : > { %v12130_v35 = vadd.f32 %v4324_v38, %v4036_v3  ;;  %v7705_v56 = vpop.f32.mrb[218].mxu1 }
 0x3ce   : > { %13990 = vst [vmem:[#allocation20_spill] sm:$0xff] %v12128_v37  ;;  %v12132_v24 = vadd.f32 %v7705_v56, %v4047_v27  ;;  %v4327_v42 = vpop.f32.mrb[219].mxu1  ;;  %v4446_v37 = vld [vmem:[#allocation2 + $0x2b8] sm:$0xff] }
 0x3cf   : > { %v12135_v19 = vadd.f32 %v4327_v42, %v4039_v43  ;;  %v13997_v42 = vld [vmem:[#allocation7_spill] sm:$0xff] }
 0x3d0   : > { %13991 = vst [vmem:[#allocation36_spill] sm:$0xff] %v12132_v24  ;;  %4885 = vmatmul.mubr.bf16.gmra.mrb[68].mxu1 %v4443_v21 }
 0x3d1   : > { %4892 = vmatprep.mubr.bf16.mxu1 %v4447_v17  ;;  %v4067_v43 = vpop.f32.mrb[224].mxu0  ;;  %v4450_v17 = vld [vmem:[#allocation2 + $0x2d8] sm:$0xff] }
 0x3d2   : > { %v4068_v52 = vadd.f32 %v4067_v43, %v13997_v42  ;;  %v4069_v21 = vpop.f32.mrb[225].mxu0  ;;  %v4449_v42 = vld [vmem:[#allocation2 + $0x2d0] sm:$0xff] }
 0x3d3   : > { %v7708_v3 = vpop.f32.mrb[220].mxu1  ;;  %v4070_v40 = vpop.f32.mrb[226].mxu0 }
 0x3d4   : > { %v12138_v2 = vadd.f32 %v7708_v3, %v4060_v51  ;;  %v4340_v27 = vpop.f32.mrb[221].mxu1  ;;  %v4071_v51 = vadd.f32 %v4070_v40, %v13999_v45  ;;  %v4072_v60 = vpop.f32.mrb[227].mxu0  ;;  %v14003_v40 = vld [vmem:[#allocation38_spill] sm:$0xff] }
 0x3d5   : > { %v12140_v56 = vadd.f32 %v4340_v27, %v4052_v36  ;;  %v7709_v38 = vpop.f32.mrb[222].mxu1 }
 0x3d6   : > { %13994 = vst [vmem:[#allocation35_spill] sm:$0xff] %v12138_v2  ;;  %v12142_v24 = vadd.f32 %v7709_v38, %v4063_v15  ;;  %v4343_v0 = vpop.f32.mrb[223].mxu1 }
 0x3d7   : > { %13995 = vst [vmem:[#allocation22_spill] sm:$0xff] %v12140_v56  ;;  %v12145_v47 = vadd.f32 %v4343_v0, %v4055_v46 }
 0x3d8   : > { %13996 = vst [vmem:[#allocation40_spill] sm:$0xff] %v12142_v24  ;;  %4893 = vmatmul.mubr.bf16.gmra.mrb[72].mxu1 %v4446_v37  ;;  %v4453_v37 = vld [vmem:[#allocation2 + $0x2f0] sm:$0xff] }
 0x3d9   : > { %13998 = vst [vmem:[#allocation44_spill] sm:$0xff] %v12145_v47  ;;  %4900 = vmatprep.mubr.bf16.mxu1 %v4450_v17  ;;  %v4075_v38 = vpop.f32.mrb[228].mxu0 }
 0x3da   : > { %v4076_v43 = vadd.f32 %v4075_v38, %v11886_v31  ;;  %v4077_v0 = vpop.f32.mrb[229].mxu0 }
 0x3db   : > { %v7712_v36 = vpop.f32.mrb[224].mxu1  ;;  %v4078_v21 = vpop.f32.mrb[230].mxu0 }
 0x3dc   : > { %v4356_v3 = vpop.f32.mrb[225].mxu1  ;;  %v12153_v2 = vadd.f32 %v7712_v36, %v4076_v43  ;;  %v4079_v17 = vadd.f32 %v4078_v21, %v14003_v40  ;;  %v4080_v45 = vpop.f32.mrb[231].mxu0  ;;  %v12161_v36 = vld [vmem:[%s12775_s5] ss:$0 sm:$0xff] }
 0x3dd   : > { %v12148_v27 = vadd.f32 %v4356_v3, %v4068_v52  ;;  %v7713_v15 = vpop.f32.mrb[226].mxu1 }
 0x3de   : > { %v4359_v24 = vpop.f32.mrb[227].mxu1  ;;  %14002 = vst [vmem:[#allocation24_spill] sm:$0xff] %v12153_v2  ;;  %v12156_v52 = vadd.f32 %v7713_v15, %v4079_v17 }
 0x3df   : > { %14000 = vst [vmem:[#allocation21_spill] sm:$0xff] %v12148_v27  ;;  %v12151_v46 = vadd.f32 %v4359_v24, %v4071_v51  ;;  %v4452_v51 = vld [vmem:[#allocation2 + $0x2e8] sm:$0xff] }
 0x3e0   : > { %4901 = vmatmul.mubr.bf16.gmra.mrb[76].mxu1 %v4449_v42  ;;  %14004 = vst [vmem:[#allocation25_spill] sm:$0xff] %v12156_v52  ;;  %v4456_v42 = vld [vmem:[#allocation2 + $0x308] sm:$0xff] }
 0x3e1   : > { %14001 = vst [vmem:[#allocation39_spill] sm:$0xff] %v12151_v46  ;;  %4908 = vmatprep.mubr.bf16.mxu1 %v4453_v37  ;;  %v7732_v31 = vpop.f32.mrb[232].mxu0  ;;  %v4455_v46 = vld [vmem:[#allocation2 + $0x300] sm:$0xff] }
 0x3e2   : > { %v4983_v24 = vpop.f32.mrb[233].mxu0 }
 0x3e3   : > { %v4694_v60 = vpop.f32.mrb[228].mxu1  ;;  %v7733_v0 = vpop.f32.mrb[234].mxu0 }
 0x3e4   : > { %v4696_v3 = vpop.f32.mrb[229].mxu1  ;;  %v4984_v38 = vadd.f32 %v4983_v24, %v4694_v60  ;;  %v4986_v43 = vpop.f32.mrb[235].mxu0 }
 0x3e5   : > { %v4697_v27 = vpop.f32.mrb[230].mxu1 }
 0x3e6   : > { %v4699_v47 = vpop.f32.mrb[231].mxu1  ;;  %v5238_v15 = vadd.f32 %v4984_v38, %v11907_v44  ;;  %v4987_v21 = vadd.f32 %v4986_v43, %v4697_v27 }
 0x3e8   : > { %4909 = vmatmul.mubr.bf16.gmra.mrb[80].mxu1 %v4452_v51  ;;  %v5309_v47 = vadd.f32 %v12161_v36, %v5238_v15  ;;  %v5239_v40 = vadd.f32 %v4987_v21, %v11919_v61 }
 0x3e9   : > { %4916 = vmatprep.mubr.bf16.mxu1 %v4456_v42  ;;  %v7736_v2 = vpop.f32.mrb[236].mxu0 }
 0x3ea   : > { %v5310_v3 = vadd.f32 %v12161_v36, %v5239_v40  ;;  %v4999_v42 = vpop.f32.mrb[237].mxu0  ;;  %v5373_v56 = vmax.f32 %v5309_v47, 0.0 }
 0x3eb   : > { %v4702_v37 = vpop.f32.mrb[232].mxu1  ;;  %v7737_v61 = vpop.f32.mrb[238].mxu0 }
 0x3ec   : > { %v4992_v17 = vadd.f32 %v7732_v31, %v4702_v37  ;;  %v4704_v45 = vpop.f32.mrb[233].mxu1  ;;  %v5374_v44 = vmax.f32 %v5310_v3, 0.0  ;;  %v4459_v31 = vld [vmem:[#allocation2 + $0x320] sm:$0xff]  ;;  %v5002_v43 = vpop.f32.mrb[239].mxu0 }
 0x3ed   : > { %v4705_v60 = vpop.f32.mrb[234].mxu1 }
 0x3ee   : > { %v5240_v24 = vadd.f32 %v4992_v17, %v11904_v4  ;;  %v4995_v51 = vadd.f32 %v7733_v0, %v4705_v60  ;;  %v4707_v52 = vpop.f32.mrb[235].mxu1  ;;  %v5437_v21 = vpack.c.bf16 %v5374_v44, %v5373_v56  ;;  %v4462_v44 = vld [vmem:[#allocation2 + $0x338] sm:$0xff] }
 0x3f0   : > { %v5311_v27 = vadd.f32 %v12161_v36, %v5240_v24  ;;  %v5241_v38 = vadd.f32 %v4995_v51, %v11910_v8  ;;  %4917 = vmatmul.mubr.bf16.gmra.mrb[84].mxu1 %v4455_v46  ;;  %7810 = vmatprep.mubr.bf16.mxu0 %v5437_v21  ;;  %v4458_v24 = vld [vmem:[#allocation2 + $0x318] sm:$0xff] }
 0x3f1   : > { %4924 = vmatprep.mubr.bf16.mxu1 %v4459_v31  ;;  %v7740_v46 = vpop.f32.mrb[240].mxu0 }
 0x3f2   : > { %v5312_v15 = vadd.f32 %v12161_v36, %v5241_v38  ;;  %v5375_v0 = vmax.f32 %v5311_v27, 0.0  ;;  %v5015_v3 = vpop.f32.mrb[241].mxu0 }
 0x3f3   : > { %v4710_v4 = vpop.f32.mrb[236].mxu1  ;;  %v7741_v56 = vpop.f32.mrb[242].mxu0 }
 0x3f4   : > { %v5376_v52 = vmax.f32 %v5312_v15, 0.0  ;;  %v5000_v37 = vadd.f32 %v4999_v42, %v4710_v4  ;;  %v4712_v40 = vpop.f32.mrb[237].mxu1  ;;  %v5018_v42 = vpop.f32.mrb[243].mxu0 }
 0x3f5   : > { %v4713_v47 = vpop.f32.mrb[238].mxu1 }
 0x3f6   : > { %v5438_v17 = vpack.c.bf16 %v5376_v52, %v5375_v0  ;;  %v5242_v45 = vadd.f32 %v5000_v37, %v11931_v16  ;;  %v5003_v60 = vadd.f32 %v5002_v43, %v4713_v47  ;;  %v4715_v8 = vpop.f32.mrb[239].mxu1 }
 0x3f8   : > { %v5313_v51 = vadd.f32 %v12161_v36, %v5242_v45  ;;  %v5243_v38 = vadd.f32 %v5003_v60, %v11943_v25  ;;  %4925 = vmatmul.mubr.bf16.gmra.mrb[88].mxu1 %v4458_v24  ;;  %7811 = vmatmul.mubr.bf16.vlgmr.msra.gmra.mrb[40].mxu0 %v5438_v17  ;;  %v4461_v17 = vld [vmem:[#allocation2 + $0x330] sm:$0xff] }
 0x3f9   : > { %4932 = vmatprep.mubr.bf16.mxu1 %v4462_v44  ;;  %v12176_v40 = vpop.f32.mrb[244].mxu0 }
 0x3fa   : > { %v5314_v27 = vadd.f32 %v12161_v36, %v5243_v38  ;;  %v5377_v15 = vmax.f32 %v5313_v51, 0.0  ;;  %v5031_v47 = vpop.f32.mrb[245].mxu0 }
 0x3fb   : > { %v4718_v31 = vpop.f32.mrb[240].mxu1  ;;  %v12180_v8 = vpop.f32.mrb[246].mxu0 }
 0x3fc   : > { %v5378_v16 = vmax.f32 %v5314_v27, 0.0  ;;  %v5008_v43 = vadd.f32 %v7736_v2, %v4718_v31  ;;  %v4720_v21 = vpop.f32.mrb[241].mxu1  ;;  %v4465_v2 = vld [vmem:[#allocation2 + $0x350] sm:$0xff]  ;;  %v5034_v24 = vpop.f32.mrb[247].mxu0 }
 0x3fd   : > { %v4721_v4 = vpop.f32.mrb[242].mxu1 }
 0x3fe   : > { %v5244_v0 = vadd.f32 %v5008_v43, %v11928_v20  ;;  %v5011_v52 = vadd.f32 %v7737_v61, %v4721_v4  ;;  %v4723_v37 = vpop.f32.mrb[243].mxu1  ;;  %v5439_v25 = vpack.c.bf16 %v5378_v16, %v5377_v15 }
 0x400   : > { %v5315_v45 = vadd.f32 %v12161_v36, %v5244_v0  ;;  %v5245_v60 = vadd.f32 %v5011_v52, %v11934_v28  ;;  %4933 = vmatmul.mubr.bf16.gmra.mrb[92].mxu1 %v4461_v17  ;;  %7814 = vmatprep.mubr.bf16.mxu0 %v5439_v25  ;;  %v4464_v0 = vld [vmem:[#allocation2 + $0x348] sm:$0xff] }
 0x401   : > { %4940 = vmatprep.mubr.bf16.mxu1 %v4465_v2  ;;  %v12184_v21 = vpop.f32.mrb[248].mxu0 }
 0x402   : > { %v5316_v20 = vadd.f32 %v12161_v36, %v5245_v60  ;;  %v5379_v51 = vmax.f32 %v5315_v45, 0.0  ;;  %v12186_v4 = vpop.f32.mrb[249].mxu0 }
 0x403   : > { %v4726_v61 = vpop.f32.mrb[244].mxu1  ;;  %v12190_v25 = vpop.f32.mrb[250].mxu0 }
 0x404   : > { %v5380_v38 = vmax.f32 %v5316_v20, 0.0  ;;  %v5016_v44 = vadd.f32 %v5015_v3, %v4726_v61  ;;  %v4728_v27 = vpop.f32.mrb[245].mxu1  ;;  %v12192_v3 = vpop.f32.mrb[251].mxu0  ;;  %v14005_v61 = vld [vmem:[#allocation32_spill] sm:$0xff] }
 0x405   : > { %v4729_v31 = vpop.f32.mrb[246].mxu1 }
 0x406   : > { %v5440_v15 = vpack.c.bf16 %v5380_v38, %v5379_v51  ;;  %v5246_v16 = vadd.f32 %v5016_v44, %v11955_v23  ;;  %v5019_v43 = vadd.f32 %v5018_v42, %v4729_v31  ;;  %v4731_v28 = vpop.f32.mrb[247].mxu1 }
 0x408   : > { %v5317_v52 = vadd.f32 %v12161_v36, %v5246_v16  ;;  %v5247_v37 = vadd.f32 %v5019_v43, %v11964_v59  ;;  %4941 = vmatmul.mubr.bf16.gmra.mrb[96].mxu1 %v4464_v0  ;;  %7815 = vmatmul.mubr.bf16.gmra.mrb[44].mxu0 %v5440_v15 }
 0x409   : > { %v12196_v27 = vpop.f32.mrb[252].mxu0 }
 0x40a   : > { %v5318_v17 = vadd.f32 %v12161_v36, %v5247_v37  ;;  %v5381_v42 = vmax.f32 %v5317_v52, 0.0  ;;  %v12198_v31 = vpop.f32.mrb[253].mxu0 }
 0x40b   : > { %v4734_v23 = vpop.f32.mrb[248].mxu1  ;;  %v12202_v43 = vpop.f32.mrb[254].mxu0 }
 0x40c   : > { %v5382_v45 = vmax.f32 %v5318_v17, 0.0  ;;  %v5024_v60 = vadd.f32 %v7740_v46, %v4734_v23  ;;  %v4736_v2 = vpop.f32.mrb[249].mxu1  ;;  %v12204_v28 = vpop.f32.mrb[255].mxu0 }
 0x40d   : > { %v4737_v20 = vpop.f32.mrb[250].mxu1 }
 0x40e   : > { %v5248_v51 = vadd.f32 %v5024_v60, %v14005_v61  ;;  %v5027_v38 = vadd.f32 %v7741_v56, %v4737_v20  ;;  %v4739_v44 = vpop.f32.mrb[251].mxu1  ;;  %v5441_v59 = vpack.c.bf16 %v5382_v45, %v5381_v42 }
 0x410   : > { %v5319_v15 = vadd.f32 %v12161_v36, %v5248_v51  ;;  %v5249_v16 = vadd.f32 %v5027_v38, %v11958_v63  ;;  %7818 = vmatprep.mubr.bf16.mxu0 %v5441_v59 }
 0x411   : > { %v12208_v20 = vpop.f32.mrb[0].mxu0 }
 0x412   : > { %v5320_v46 = vadd.f32 %v12161_v36, %v5249_v16  ;;  %v5383_v52 = vmax.f32 %v5319_v15, 0.0  ;;  %v12210_v63 = vpop.f32.mrb[1].mxu0 }
 0x413   : > { %v4742_v0 = vpop.f32.mrb[252].mxu1  ;;  %v12214_v38 = vpop.f32.mrb[2].mxu0 }
 0x414   : > { %v5384_v56 = vmax.f32 %v5320_v46, 0.0  ;;  %v5032_v37 = vadd.f32 %v5031_v47, %v4742_v0  ;;  %v4744_v17 = vpop.f32.mrb[253].mxu1  ;;  %v12216_v44 = vpop.f32.mrb[3].mxu0 }
 0x415   : > { %v4745_v23 = vpop.f32.mrb[254].mxu1 }
 0x416   : > { %v5442_v42 = vpack.c.bf16 %v5384_v56, %v5383_v52  ;;  %v5250_v45 = vadd.f32 %v5032_v37, %v11973_v49  ;;  %v5035_v60 = vadd.f32 %v5034_v24, %v4745_v23  ;;  %v4747_v2 = vpop.f32.mrb[255].mxu1 }
 0x418   : > { %v5321_v61 = vadd.f32 %v12161_v36, %v5250_v45  ;;  %v5251_v51 = vadd.f32 %v5035_v60, %v11982_v14  ;;  %7819 = vmatmul.mubr.bf16.gmra.mrb[48].mxu0 %v5442_v42 }
 0x419   : > { %v12222_v14 = vpop.f32.mrb[4].mxu0 }
 0x41a   : > { %v5322_v47 = vadd.f32 %v12161_v36, %v5251_v51  ;;  %v5385_v15 = vmax.f32 %v5321_v61, 0.0  ;;  %v12224_v17 = vpop.f32.mrb[5].mxu0 }
 0x41b   : > { %v4750_v59 = vpop.f32.mrb[0].mxu1  ;;  %v12228_v45 = vpop.f32.mrb[6].mxu0 }
 0x41c   : > { %v5386_v49 = vmax.f32 %v5322_v47, 0.0  ;;  %v5040_v24 = vadd.f32 %v12176_v40, %v4750_v59  ;;  %v4752_v16 = vpop.f32.mrb[1].mxu1  ;;  %v12230_v40 = vpop.f32.mrb[7].mxu0 }
 0x41d   : > { %v4753_v46 = vpop.f32.mrb[2].mxu1 }
 0x41e   : > { %v5252_v0 = vadd.f32 %v5040_v24, %v11970_v41  ;;  %v5043_v52 = vadd.f32 %v12180_v8, %v4753_v46  ;;  %v4755_v56 = vpop.f32.mrb[3].mxu1  ;;  %v5443_v37 = vpack.c.bf16 %v5386_v49, %v5385_v15 }
 0x420   : > { %v5323_v23 = vadd.f32 %v12161_v36, %v5252_v0  ;;  %v5253_v42 = vadd.f32 %v5043_v52, %v11976_v32  ;;  %7822 = vmatprep.mubr.bf16.mxu0 %v5443_v37 }
 0x421   : > { %v12236_v24 = vpop.f32.mrb[8].mxu0 }
 0x422   : > { %v5324_v60 = vadd.f32 %v12161_v36, %v5253_v42  ;;  %v5387_v2 = vmax.f32 %v5323_v23, 0.0  ;;  %v12238_v16 = vpop.f32.mrb[9].mxu0 }
 0x423   : > { %v4758_v41 = vpop.f32.mrb[4].mxu1  ;;  %v12242_v52 = vpop.f32.mrb[10].mxu0 }
 0x424   : > { %v5388_v8 = vmax.f32 %v5324_v60, 0.0  ;;  %v5048_v61 = vadd.f32 %v12186_v4, %v4758_v41  ;;  %v4760_v51 = vpop.f32.mrb[5].mxu1  ;;  %v12244_v4 = vpop.f32.mrb[11].mxu0 }
 0x425   : > { %v4761_v47 = vpop.f32.mrb[6].mxu1 }
 0x426   : > { %v5444_v59 = vpack.c.bf16 %v5388_v8, %v5387_v2  ;;  %v5254_v15 = vadd.f32 %v5048_v61, %v11991_v12  ;;  %v5051_v49 = vadd.f32 %v12192_v3, %v4761_v47  ;;  %v4763_v32 = vpop.f32.mrb[7].mxu1 }
 0x428   : > { %v5325_v46 = vadd.f32 %v12161_v36, %v5254_v15  ;;  %v5255_v0 = vadd.f32 %v5051_v49, %v12000_v34  ;;  %7823 = vmatmul.mubr.bf16.gmra.mrb[52].mxu0 %v5444_v59 }
 0x42a   : > { %v5326_v56 = vadd.f32 %v12161_v36, %v5255_v0  ;;  %v5389_v12 = vmax.f32 %v5325_v46, 0.0  ;;  %v12250_v34 = vpop.f32.mrb[12].mxu0 }
 0x42b   : > { %v4766_v37 = vpop.f32.mrb[8].mxu1  ;;  %v12252_v51 = vpop.f32.mrb[13].mxu0 }
 0x42c   : > { %v5390_v23 = vmax.f32 %v5326_v56, 0.0  ;;  %v5056_v3 = vadd.f32 %v12184_v21, %v4766_v37  ;;  %v4768_v42 = vpop.f32.mrb[9].mxu1  ;;  %v12256_v15 = vpop.f32.mrb[14].mxu0 }
 0x42d   : > { %v4769_v60 = vpop.f32.mrb[10].mxu1  ;;  %v12258_v21 = vpop.f32.mrb[15].mxu0 }
 0x42e   : > { %v5256_v41 = vadd.f32 %v5056_v3, %v11988_v62  ;;  %v5059_v2 = vadd.f32 %v12190_v25, %v4769_v60  ;;  %v4771_v8 = vpop.f32.mrb[11].mxu1  ;;  %v5445_v61 = vpack.c.bf16 %v5390_v23, %v5389_v12 }
 0x430   : > { %v5327_v47 = vadd.f32 %v12161_v36, %v5256_v41  ;;  %v5257_v59 = vadd.f32 %v5059_v2, %v11994_v57  ;;  %7826 = vmatprep.mubr.bf16.mxu0 %v5445_v61 }
 0x432   : > { %v5328_v49 = vadd.f32 %v12161_v36, %v5257_v59  ;;  %v5391_v32 = vmax.f32 %v5327_v47, 0.0  ;;  %v12264_v3 = vpop.f32.mrb[16].mxu0 }
 0x433   : > { %v4774_v62 = vpop.f32.mrb[12].mxu1  ;;  %v12266_v42 = vpop.f32.mrb[17].mxu0 }
 0x434   : > { %v5392_v25 = vmax.f32 %v5328_v49, 0.0  ;;  %v5064_v46 = vadd.f32 %v12198_v31, %v4774_v62  ;;  %v4776_v0 = vpop.f32.mrb[13].mxu1  ;;  %v12270_v2 = vpop.f32.mrb[18].mxu0 }
 0x435   : > { %v4777_v56 = vpop.f32.mrb[14].mxu1  ;;  %v12272_v31 = vpop.f32.mrb[19].mxu0 }
 0x436   : > { %v5446_v37 = vpack.c.bf16 %v5392_v25, %v5391_v32  ;;  %v5258_v12 = vadd.f32 %v5064_v46, %v12009_v13  ;;  %v5067_v23 = vadd.f32 %v12204_v28, %v4777_v56  ;;  %v4779_v57 = vpop.f32.mrb[15].mxu1 }
 0x438   : > { %v5329_v60 = vadd.f32 %v12161_v36, %v5258_v12  ;;  %v5259_v41 = vadd.f32 %v5067_v23, %v12018_v55  ;;  %7827 = vmatmul.mubr.bf16.gmra.mrb[56].mxu0 %v5446_v37 }
 0x43a   : > { %v5330_v8 = vadd.f32 %v12161_v36, %v5259_v41  ;;  %v5393_v13 = vmax.f32 %v5329_v60, 0.0  ;;  %v12278_v55 = vpop.f32.mrb[20].mxu0 }
 0x43b   : > { %v4782_v61 = vpop.f32.mrb[16].mxu1  ;;  %v12280_v0 = vpop.f32.mrb[21].mxu0 }
 0x43c   : > { %v5394_v47 = vmax.f32 %v5330_v8, 0.0  ;;  %v5072_v28 = vadd.f32 %v12196_v27, %v4782_v61  ;;  %v4784_v59 = vpop.f32.mrb[17].mxu1  ;;  %v12284_v12 = vpop.f32.mrb[22].mxu0 }
 0x43d   : > { %v4785_v49 = vpop.f32.mrb[18].mxu1  ;;  %v12286_v27 = vpop.f32.mrb[23].mxu0 }
 0x43e   : > { %v5260_v62 = vadd.f32 %v5072_v28, %v12006_v18  ;;  %v5075_v32 = vadd.f32 %v12202_v43, %v4785_v49  ;;  %v4787_v25 = vpop.f32.mrb[19].mxu1  ;;  %v5447_v46 = vpack.c.bf16 %v5394_v47, %v5393_v13 }
 0x440   : > { %v5331_v56 = vadd.f32 %v12161_v36, %v5260_v62  ;;  %v5261_v37 = vadd.f32 %v5075_v32, %v12012_v7  ;;  %7830 = vmatprep.mubr.bf16.mxu0 %v5447_v46 }
 0x442   : > { %v5332_v23 = vadd.f32 %v12161_v36, %v5261_v37  ;;  %v5395_v57 = vmax.f32 %v5331_v56, 0.0  ;;  %v12292_v28 = vpop.f32.mrb[24].mxu0 }
 0x443   : > { %v4790_v18 = vpop.f32.mrb[20].mxu1  ;;  %v12294_v59 = vpop.f32.mrb[25].mxu0 }
 0x444   : > { %v5396_v43 = vmax.f32 %v5332_v23, 0.0  ;;  %v5080_v60 = vadd.f32 %v12210_v63, %v4790_v18  ;;  %v4792_v41 = vpop.f32.mrb[21].mxu1  ;;  %v12298_v32 = vpop.f32.mrb[26].mxu0 }
 0x445   : > { %v4793_v8 = vpop.f32.mrb[22].mxu1  ;;  %v12300_v63 = vpop.f32.mrb[27].mxu0 }
 0x446   : > { %v5448_v61 = vpack.c.bf16 %v5396_v43, %v5395_v57  ;;  %v5262_v13 = vadd.f32 %v5080_v60, %v12027_v33  ;;  %v5083_v47 = vadd.f32 %v12216_v44, %v4793_v8  ;;  %v4795_v7 = vpop.f32.mrb[23].mxu1 }
 0x448   : > { %v5333_v49 = vadd.f32 %v12161_v36, %v5262_v13  ;;  %v5263_v62 = vadd.f32 %v5083_v47, %v12036_v50  ;;  %7831 = vmatmul.mubr.bf16.gmra.mrb[60].mxu0 %v5448_v61 }
 0x44a   : > { %v5334_v25 = vadd.f32 %v12161_v36, %v5263_v62  ;;  %v5397_v33 = vmax.f32 %v5333_v49, 0.0 }
 0x44b   : > { %v4798_v46 = vpop.f32.mrb[24].mxu1  ;;  %v12306_v50 = vpop.f32.mrb[28].mxu0 }
 0x44c   : > { %v5398_v56 = vmax.f32 %v5334_v25, 0.0  ;;  %v5088_v44 = vadd.f32 %v12208_v20, %v4798_v46  ;;  %v4800_v37 = vpop.f32.mrb[25].mxu1  ;;  %v12308_v41 = vpop.f32.mrb[29].mxu0 }
 0x44d   : > { %v4801_v23 = vpop.f32.mrb[26].mxu1  ;;  %v12312_v13 = vpop.f32.mrb[30].mxu0 }
 0x44e   : > { %v5264_v18 = vadd.f32 %v5088_v44, %v12024_v22  ;;  %v5091_v57 = vadd.f32 %v12214_v38, %v4801_v23  ;;  %v4803_v43 = vpop.f32.mrb[27].mxu1  ;;  %v5449_v60 = vpack.c.bf16 %v5398_v56, %v5397_v33  ;;  %v12314_v20 = vpop.f32.mrb[31].mxu0 }
 0x450   : > { %v5335_v8 = vadd.f32 %v12161_v36, %v5264_v18  ;;  %v5265_v61 = vadd.f32 %v5091_v57, %v12030_v5  ;;  %7834 = vmatprep.mubr.bf16.mxu0 %v5449_v60 }
 0x452   : > { %v5336_v47 = vadd.f32 %v12161_v36, %v5265_v61  ;;  %v5399_v7 = vmax.f32 %v5335_v8, 0.0 }
 0x453   : > { %v4806_v22 = vpop.f32.mrb[28].mxu1  ;;  %v12320_v44 = vpop.f32.mrb[32].mxu0 }
 0x454   : > { %v5400_v38 = vmax.f32 %v5336_v47, 0.0  ;;  %v5096_v49 = vadd.f32 %v12224_v17, %v4806_v22  ;;  %v4808_v62 = vpop.f32.mrb[29].mxu1  ;;  %v12322_v37 = vpop.f32.mrb[33].mxu0 }
 0x455   : > { %v4809_v25 = vpop.f32.mrb[30].mxu1  ;;  %v12326_v57 = vpop.f32.mrb[34].mxu0 }
 0x456   : > { %v5450_v46 = vpack.c.bf16 %v5400_v38, %v5399_v7  ;;  %v5266_v33 = vadd.f32 %v5096_v49, %v12045_v39  ;;  %v5099_v56 = vadd.f32 %v12230_v40, %v4809_v25  ;;  %v4811_v5 = vpop.f32.mrb[31].mxu1  ;;  %v12328_v17 = vpop.f32.mrb[35].mxu0 }
 0x458   : > { %v5337_v23 = vadd.f32 %v12161_v36, %v5266_v33  ;;  %v5267_v18 = vadd.f32 %v5099_v56, %v12054_v58  ;;  %7835 = vmatmul.mubr.bf16.gmra.mrb[64].mxu0 %v5450_v46 }
 0x45a   : > { %v5338_v43 = vadd.f32 %v12161_v36, %v5267_v18  ;;  %v5401_v39 = vmax.f32 %v5337_v23, 0.0 }
 0x45b   : > { %v4814_v60 = vpop.f32.mrb[32].mxu1  ;;  %v12334_v58 = vpop.f32.mrb[36].mxu0 }
 0x45c   : > { %v5402_v8 = vmax.f32 %v5338_v43, 0.0  ;;  %v5104_v40 = vadd.f32 %v12222_v14, %v4814_v60  ;;  %v4816_v61 = vpop.f32.mrb[33].mxu1  ;;  %v12336_v62 = vpop.f32.mrb[37].mxu0 }
 0x45d   : > { %v4817_v47 = vpop.f32.mrb[34].mxu1  ;;  %v12340_v33 = vpop.f32.mrb[38].mxu0 }
 0x45e   : > { %v5268_v22 = vadd.f32 %v5104_v40, %v12042_v26  ;;  %v5107_v7 = vadd.f32 %v12228_v45, %v4817_v47  ;;  %v4819_v38 = vpop.f32.mrb[35].mxu1  ;;  %v5451_v49 = vpack.c.bf16 %v5402_v8, %v5401_v39  ;;  %v12342_v14 = vpop.f32.mrb[39].mxu0 }
 0x460   : > { %v5339_v25 = vadd.f32 %v12161_v36, %v5268_v22  ;;  %v5269_v46 = vadd.f32 %v5107_v7, %v12048_v29  ;;  %7838 = vmatprep.mubr.bf16.mxu0 %v5451_v49 }
 0x462   : > { %v5340_v56 = vadd.f32 %v12161_v36, %v5269_v46  ;;  %v5403_v5 = vmax.f32 %v5339_v25, 0.0 }
 0x463   : > { %v4822_v26 = vpop.f32.mrb[36].mxu1 }
 0x464   : > { %v5404_v45 = vmax.f32 %v5340_v56, 0.0  ;;  %v5112_v23 = vadd.f32 %v12238_v16, %v4822_v26  ;;  %v4824_v18 = vpop.f32.mrb[37].mxu1 }
 0x465   : > { %v4825_v43 = vpop.f32.mrb[38].mxu1 }
 0x466   : > { %v5452_v60 = vpack.c.bf16 %v5404_v45, %v5403_v5  ;;  %v5270_v39 = vadd.f32 %v5112_v23, %v12061_v11  ;;  %v5115_v8 = vadd.f32 %v12244_v4, %v4825_v43  ;;  %v4827_v29 = vpop.f32.mrb[39].mxu1 }
 0x468   : > { %v5341_v40 = vadd.f32 %v12161_v36, %v5270_v39  ;;  %v5271_v61 = vadd.f32 %v5115_v8, %v12070_v54  ;;  %7839 = vmatmul.mubr.bf16.gmra.mrb[68].mxu0 %v5452_v60 }
 0x46a   : > { %v5342_v47 = vadd.f32 %v12161_v36, %v5271_v61  ;;  %v5405_v7 = vmax.f32 %v5341_v40, 0.0 }
 0x46b   : > { %v4830_v22 = vpop.f32.mrb[40].mxu1 }
 0x46c   : > { %v5406_v38 = vmax.f32 %v5342_v47, 0.0  ;;  %v5120_v16 = vadd.f32 %v12236_v24, %v4830_v22  ;;  %v4832_v49 = vpop.f32.mrb[41].mxu1 }
 0x46d   : > { %v4833_v25 = vpop.f32.mrb[42].mxu1 }
 0x46e   : > { %v5272_v46 = vadd.f32 %v5120_v16, %v12058_v6  ;;  %v5123_v11 = vadd.f32 %v12242_v52, %v4833_v25  ;;  %v4835_v4 = vpop.f32.mrb[43].mxu1  ;;  %v5453_v56 = vpack.c.bf16 %v5406_v38, %v5405_v7  ;;  %v14006_v16 = vld [vmem:[#allocation37_spill] sm:$0xff] }
 0x470   : > { %v5343_v26 = vadd.f32 %v12161_v36, %v5272_v46  ;;  %v5273_v54 = vadd.f32 %v5123_v11, %v12064_v53  ;;  %7842 = vmatprep.mubr.bf16.mxu0 %v5453_v56  ;;  %v14007_v11 = vld [vmem:[#allocation3_spill] sm:$0xff] }
 0x472   : > { %v5344_v5 = vadd.f32 %v12161_v36, %v5273_v54  ;;  %v5407_v23 = vmax.f32 %v5343_v26, 0.0 }
 0x473   : > { %v4838_v45 = vpop.f32.mrb[44].mxu1 }
 0x474   : > { %v5408_v18 = vmax.f32 %v5344_v5, 0.0  ;;  %v5128_v24 = vadd.f32 %v12252_v51, %v4838_v45  ;;  %v4840_v43 = vpop.f32.mrb[45].mxu1 }
 0x475   : > { %v4841_v60 = vpop.f32.mrb[46].mxu1 }
 0x476   : > { %v5454_v39 = vpack.c.bf16 %v5408_v18, %v5407_v23  ;;  %v5274_v6 = vadd.f32 %v5128_v24, %v12079_v9  ;;  %v5131_v52 = vadd.f32 %v12258_v21, %v4841_v60  ;;  %v4843_v8 = vpop.f32.mrb[47].mxu1  ;;  %v14008_v60 = vld [vmem:[#allocation19_spill] sm:$0xff] }
 0x478   : > { %v5345_v29 = vadd.f32 %v12161_v36, %v5274_v6  ;;  %v5275_v53 = vadd.f32 %v5131_v52, %v12086_v48  ;;  %7843 = vmatmul.mubr.bf16.gmra.mrb[72].mxu0 %v5454_v39 }
 0x47a   : > { %v5346_v40 = vadd.f32 %v12161_v36, %v5275_v53  ;;  %v5409_v47 = vmax.f32 %v5345_v29, 0.0 }
 0x47b   : > { %v4846_v61 = vpop.f32.mrb[48].mxu1 }
 0x47c   : > { %v5410_v22 = vmax.f32 %v5346_v40, 0.0  ;;  %v5136_v51 = vadd.f32 %v12250_v34, %v4846_v61  ;;  %v4848_v7 = vpop.f32.mrb[49].mxu1  ;;  %v14009_v61 = vld [vmem:[#allocation10_spill] sm:$0xff] }
 0x47d   : > { %v4849_v38 = vpop.f32.mrb[50].mxu1  ;;  %v14010_v7 = vld [vmem:[#allocation11_spill] sm:$0xff] }
 0x47e   : > { %v5276_v49 = vadd.f32 %v5136_v51, %v14006_v16  ;;  %v5139_v9 = vadd.f32 %v12256_v15, %v4849_v38  ;;  %v4851_v21 = vpop.f32.mrb[51].mxu1  ;;  %v5455_v25 = vpack.c.bf16 %v5410_v22, %v5409_v47 }
 0x480   : > { %v5347_v46 = vadd.f32 %v12161_v36, %v5276_v49  ;;  %v5277_v48 = vadd.f32 %v5139_v9, %v14007_v11  ;;  %7846 = vmatprep.mubr.bf16.mxu0 %v5455_v25 }
 0x482   : > { %v5348_v4 = vadd.f32 %v12161_v36, %v5277_v48  ;;  %v5411_v26 = vmax.f32 %v5347_v46, 0.0 }
 0x483   : > { %v4854_v56 = vpop.f32.mrb[52].mxu1 }
 0x484   : > { %v5412_v54 = vmax.f32 %v5348_v4, 0.0  ;;  %v5144_v34 = vadd.f32 %v12266_v42, %v4854_v56  ;;  %v4856_v5 = vpop.f32.mrb[53].mxu1 }
 0x485   : > { %v4857_v45 = vpop.f32.mrb[54].mxu1 }
 0x486   : > { %v5456_v23 = vpack.c.bf16 %v5412_v54, %v5411_v26  ;;  %v5278_v18 = vadd.f32 %v5144_v34, %v12093_v10  ;;  %v5147_v15 = vadd.f32 %v12272_v31, %v4857_v45  ;;  %v4859_v24 = vpop.f32.mrb[55].mxu1 }
 0x488   : > { %v5349_v43 = vadd.f32 %v12161_v36, %v5278_v18  ;;  %v5279_v39 = vadd.f32 %v5147_v15, %v14008_v60  ;;  %7847 = vmatmul.mubr.bf16.gmra.mrb[76].mxu0 %v5456_v23  ;;  %v14011_v15 = vld [vmem:[#allocation12_spill] sm:$0xff] }
 0x48a   : > { %v5350_v6 = vadd.f32 %v12161_v36, %v5279_v39  ;;  %v5413_v8 = vmax.f32 %v5349_v43, 0.0  ;;  %v14012_v39 = vld [vmem:[#allocation15_spill] sm:$0xff] }
 0x48b   : > { %v4862_v52 = vpop.f32.mrb[56].mxu1 }
 0x48c   : > { %v5414_v29 = vmax.f32 %v5350_v6, 0.0  ;;  %v5152_v42 = vadd.f32 %v12264_v3, %v4862_v52  ;;  %v4864_v53 = vpop.f32.mrb[57].mxu1 }
 0x48d   : > { %v4865_v40 = vpop.f32.mrb[58].mxu1 }
 0x48e   : > { %v5280_v47 = vadd.f32 %v5152_v42, %v14009_v61  ;;  %v5155_v10 = vadd.f32 %v12270_v2, %v4865_v40  ;;  %v4867_v31 = vpop.f32.mrb[59].mxu1  ;;  %v5457_v22 = vpack.c.bf16 %v5414_v29, %v5413_v8  ;;  %v14013_v61 = vld [vmem:[#allocation17_spill] sm:$0xff] }
 0x490   : > { %v5351_v51 = vadd.f32 %v12161_v36, %v5280_v47  ;;  %v5281_v38 = vadd.f32 %v5155_v10, %v14010_v7  ;;  %7850 = vmatprep.mubr.bf16.mxu0 %v5457_v22  ;;  %v14014_v22 = vld [vmem:[#allocation43_spill] sm:$0xff] }
 0x492   : > { %v5352_v16 = vadd.f32 %v12161_v36, %v5281_v38  ;;  %v5415_v9 = vmax.f32 %v5351_v51, 0.0 }
 0x493   : > { %v4870_v49 = vpop.f32.mrb[60].mxu1 }
 0x494   : > { %v5416_v21 = vmax.f32 %v5352_v16, 0.0  ;;  %v5160_v3 = vadd.f32 %v12280_v0, %v4870_v49  ;;  %v4872_v25 = vpop.f32.mrb[61].mxu1 }
 0x495   : > { %v4873_v46 = vpop.f32.mrb[62].mxu1 }
 0x496   : > { %v5458_v11 = vpack.c.bf16 %v5416_v21, %v5415_v9  ;;  %v5282_v48 = vadd.f32 %v5160_v3, %v12107_v30  ;;  %v5163_v2 = vadd.f32 %v12286_v27, %v4873_v46  ;;  %v4875_v4 = vpop.f32.mrb[63].mxu1  ;;  %v14015_v3 = vld [vmem:[#allocation16_spill] sm:$0xff] }
 0x498   : > { %v5353_v56 = vadd.f32 %v12161_v36, %v5282_v48  ;;  %v5283_v26 = vadd.f32 %v5163_v2, %v12113_v1  ;;  %7851 = vmatmul.mubr.bf16.gmra.mrb[80].mxu0 %v5458_v11  ;;  %v14016_v2 = vld [vmem:[#allocation18_spill] sm:$0xff] }
 0x49a   : > { %v5354_v54 = vadd.f32 %v12161_v36, %v5283_v26  ;;  %v5417_v5 = vmax.f32 %v5353_v56, 0.0 }
 0x49b   : > { %v4878_v34 = vpop.f32.mrb[64].mxu1 }
 0x49c   : > { %v5418_v45 = vmax.f32 %v5354_v54, 0.0  ;;  %v5168_v0 = vadd.f32 %v12278_v55, %v4878_v34  ;;  %v4880_v23 = vpop.f32.mrb[65].mxu1 }
 0x49d   : > { %v4881_v18 = vpop.f32.mrb[66].mxu1 }
 0x49e   : > { %v5284_v24 = vadd.f32 %v5168_v0, %v14011_v15  ;;  %v5171_v30 = vadd.f32 %v12284_v12, %v4881_v18  ;;  %v4883_v27 = vpop.f32.mrb[67].mxu1  ;;  %v5459_v43 = vpack.c.bf16 %v5418_v45, %v5417_v5 }
 0x4a0   : > { %v5355_v60 = vadd.f32 %v12161_v36, %v5284_v24  ;;  %v5285_v1 = vadd.f32 %v5171_v30, %v14012_v39  ;;  %7854 = vmatprep.mubr.bf16.mxu0 %v5459_v43 }
 0x4a2   : > { %v5356_v6 = vadd.f32 %v12161_v36, %v5285_v1  ;;  %v5419_v8 = vmax.f32 %v5355_v60, 0.0  ;;  %v14017_v1 = vld [vmem:[#allocation20_spill] sm:$0xff] }
 0x4a3   : > { %v4886_v52 = vpop.f32.mrb[68].mxu1 }
 0x4a4   : > { %v5420_v29 = vmax.f32 %v5356_v6, 0.0  ;;  %v5176_v55 = vadd.f32 %v12294_v59, %v4886_v52  ;;  %v4888_v42 = vpop.f32.mrb[69].mxu1 }
 0x4a5   : > { %v4889_v53 = vpop.f32.mrb[70].mxu1  ;;  %v7246_v42 = vld [vmem:[%s8195_s8 + $0x18] sm:$0xff]  }
 0x4a6   : > { %v5460_v40 = vpack.c.bf16 %v5420_v29, %v5419_v8  ;;  %v5286_v47 = vadd.f32 %v5176_v55, %v14013_v61  ;;  %v5179_v12 = vadd.f32 %v12300_v63, %v4889_v53  ;;  %v4891_v10 = vpop.f32.mrb[71].mxu1  ;;  %v14018_v29 = vld [vmem:[#allocation36_spill] sm:$0xff]  ;;  %v7245_v53 = vld [vmem:[%s8195_s8 + $0x10] sm:$0xff]   ;;  %v12420_v61 = vld [vmem:[%s8195_s8 + $0x20] sm:$0xff]  }
 0x4a7   : > { %v7119_v10 = vunpack.c.l.bf16 %v7245_v53 }
 0x4a8   : > { %v5357_v31 = vadd.f32 %v12161_v36, %v5286_v47  ;;  %v5287_v51 = vadd.f32 %v5179_v12, %v14014_v22  ;;  %7855 = vmatmul.mubr.bf16.gmra.mrb[84].mxu0 %v5460_v40  ;;  %v7123_v47 = vunpack.c.l.bf16 %v7246_v42  ;;  %v7124_v12 = vunpack.c.h.bf16 %v7246_v42  ;;  %v14026_v42 = vld [vmem:[#allocation40_spill] sm:$0xff] }
 0x4aa   : > { %v5358_v7 = vadd.f32 %v12161_v36, %v5287_v51  ;;  %v5421_v16 = vmax.f32 %v5357_v31, 0.0 }
 0x4ab   : > { %v4894_v38 = vpop.f32.mrb[72].mxu1 }
 0x4ac   : > { %v5422_v49 = vmax.f32 %v5358_v7, 0.0  ;;  %v5184_v59 = vadd.f32 %v12292_v28, %v4894_v38  ;;  %v4896_v9 = vpop.f32.mrb[73].mxu1  ;;  %v7120_v7 = vunpack.c.h.bf16 %v7245_v53 }
 0x4ad   : > { %v4897_v21 = vpop.f32.mrb[74].mxu1 }
 0x4ae   : > { %v5288_v25 = vadd.f32 %v5184_v59, %v14015_v3  ;;  %v5187_v46 = vadd.f32 %v12298_v32, %v4897_v21  ;;  %v4899_v63 = vpop.f32.mrb[75].mxu1  ;;  %v5461_v11 = vpack.c.bf16 %v5422_v49, %v5421_v16  ;;  %v7127_v16 = vunpack.c.l.bf16 %v12420_v61  ;;  %v14019_v59 = vld [vmem:[#allocation22_spill] sm:$0xff] }
 0x4af   : > { %v14020_v63 = vld [vmem:[#allocation44_spill] sm:$0xff] }
 0x4b0   : > { %v5359_v48 = vadd.f32 %v12161_v36, %v5288_v25  ;;  %v5289_v4 = vadd.f32 %v5187_v46, %v14016_v2  ;;  %7858 = vmatprep.mubr.bf16.mxu0 %v5461_v11  ;;  %v6028_v25 = vrot.slane %v7123_v47, 1  ;;  %v6030_v46 = vrot.slane %v7124_v12, 1 }
 0x4b1   : > { %v6026_v2 = vrot.slane %v7120_v7, 1 }
 0x4b2   : > { %v5360_v56 = vadd.f32 %v12161_v36, %v5289_v4  ;;  %v5423_v54 = vmax.f32 %v5359_v48, 0.0  ;;  %v6025_v48 = vrot.slane %v7119_v10, 1  ;;  %v12431_v4 = vld [vmem:[%s12776_s6] ss:$0 sm:$0xff] }
 0x4b3   : > { %v4902_v26 = vpop.f32.mrb[76].mxu1 }
 0x4b4   : > { %v5424_v34 = vmax.f32 %v5360_v56, 0.0  ;;  %v5192_v28 = vadd.f32 %v12308_v41, %v4902_v26  ;;  %v4904_v5 = vpop.f32.mrb[77].mxu1  ;;  %v12433_v56 = vrot.slane %v7127_v16, 1  ;;  %v7128_v16 = vunpack.c.h.bf16 %v12420_v61 }
 0x4b5   : > { %v4905_v45 = vpop.f32.mrb[78].mxu1 }
 0x4b6   : > { %v5462_v0 = vpack.c.bf16 %v5424_v34, %v5423_v54  ;;  %v5290_v23 = vadd.f32 %v5192_v28, %v12130_v35  ;;  %v5195_v32 = vadd.f32 %v12314_v20, %v4905_v45  ;;  %v4907_v18 = vpop.f32.mrb[79].mxu1  ;;  %v6031_v34 = vsel %vm14021_vm3, %v6028_v25, %v6030_v46  ;;  %vm14042_vm3 = vmmov %vm14041_vm0 }
 0x4b8   : > { %v5361_v15 = vadd.f32 %v12161_v36, %v5290_v23  ;;  %v5291_v24 = vadd.f32 %v5195_v32, %v12135_v19  ;;  %7859 = vmatmul.mubr.bf16.gmra.mrb[88].mxu0 %v5462_v0  ;;  %v6027_v32 = vsel %vm14022_vm1, %v6025_v48, %v6026_v2  ;;  %v14027_v48 = vld [vmem:[#allocation21_spill] sm:$0xff]  ;;  %vm14043_vm1 = vmmov %vm14041_vm0 }
 0x4ba   : > { %v5362_v30 = vadd.f32 %v12161_v36, %v5291_v24  ;;  %v5425_v41 = vmax.f32 %v5361_v15, 0.0 }
 0x4bb   : > { %v4910_v27 = vpop.f32.mrb[80].mxu1 }
 0x4bc   : > { %v5426_v43 = vmax.f32 %v5362_v30, 0.0  ;;  %v5200_v60 = vadd.f32 %v12306_v50, %v4910_v27  ;;  %v4912_v39 = vpop.f32.mrb[81].mxu1  ;;  %v6033_v30 = vsel %vm14023_vm10, %v6030_v46, %v12433_v56  ;;  %v6029_v27 = vsel %vm14024_vm2, %v6026_v2, %v6028_v25  ;;  %vm14044_vm10 = vmmov %vm14041_vm0 }
 0x4bd   : > { %v4913_v35 = vpop.f32.mrb[82].mxu1  ;;  %vm14045_vm2 = vmmov %vm14041_vm0 }
 0x4be   : > { %v5292_v20 = vadd.f32 %v5200_v60, %v14017_v1  ;;  %v5203_v6 = vadd.f32 %v12312_v13, %v4913_v35  ;;  %v4915_v52 = vpop.f32.mrb[83].mxu1  ;;  %v5463_v8 = vpack.c.bf16 %v5426_v43, %v5425_v41  ;;  %v14025_v41 = vld [vmem:[#allocation35_spill] sm:$0xff] }
 0x4c0   : > { %v5363_v19 = vadd.f32 %v12161_v36, %v5292_v20  ;;  %v5293_v55 = vadd.f32 %v5203_v6, %v14018_v29  ;;  %7862 = vmatprep.mubr.bf16.mxu0 %v5463_v8  ;;  %v7248_v8 = vld [vmem:[%s8195_s8 + $0x28] sm:$0xff]  }
 0x4c2   : > { %v5364_v40 = vadd.f32 %v12161_v36, %v5293_v55  ;;  %v5427_v31 = vmax.f32 %v5363_v19, 0.0  ;;  %v12453_v19 = vld [vmem:[%s12775_s5] ss:$0 sm:$0xff] }
 0x4c3   : > { %v4918_v50 = vpop.f32.mrb[84].mxu1 }
 0x4c4   : > { %v5428_v22 = vmax.f32 %v5364_v40, 0.0  ;;  %v5208_v13 = vadd.f32 %v12322_v37, %v4918_v50  ;;  %v4920_v51 = vpop.f32.mrb[85].mxu1 }
 0x4c5   : > { %v4921_v38 = vpop.f32.mrb[86].mxu1 }
 0x4c6   : > { %v5464_v49 = vpack.c.bf16 %v5428_v22, %v5427_v31  ;;  %v5294_v9 = vadd.f32 %v5208_v13, %v14019_v59  ;;  %v5211_v21 = vadd.f32 %v12328_v17, %v4921_v38  ;;  %v4923_v3 = vpop.f32.mrb[87].mxu1  ;;  %v7131_v31 = vunpack.c.l.bf16 %v7248_v8  ;;  %v12464_v22 = vld [vmem:[%s8195_s8 + $0x30] sm:$0xff]  }
 0x4c7   : > { %v7132_v38 = vunpack.c.h.bf16 %v7248_v8 }
 0x4c8   : > { %v5295_v11 = vadd.f32 %v5211_v21, %v14020_v63  ;;  %7863 = vmatmul.mubr.bf16.gmra.mrb[92].mxu0 %v5464_v49  ;;  %v5365_v37 = vadd.f32 %v12161_v36, %v5294_v9  ;;  %v7135_v63 = vunpack.c.l.bf16 %v12464_v22 }
 0x4ca   : > { %v5366_v26 = vadd.f32 %v12161_v36, %v5295_v11  ;;  %v5429_v18 = vmax.f32 %v5365_v37, 0.0 }
 0x4cb   : > { %v4926_v17 = vpop.f32.mrb[88].mxu1  ;;  %v7812_v54 = vpop.f32.mrb[40].mxu0 }
 0x4cc   : > { %v5430_v28 = vmax.f32 %v5366_v26, 0.0  ;;  %v5216_v5 = vadd.f32 %v12320_v44, %v4926_v17  ;;  %v5713_v45 = vadd.f32 %v7812_v54, %v12431_v4  ;;  %v4928_v0 = vpop.f32.mrb[89].mxu1  ;;  %v5704_v23 = vpop.f32.mrb[41].mxu0  ;;  %v6036_v26 = vrot.slane %v7131_v31, 1 }
 0x4cd   : > { %v5705_v15 = vadd.f32 %v12431_v4, %v5704_v23  ;;  %v4929_v24 = vpop.f32.mrb[90].mxu1  ;;  %v7813_v36 = vpop.f32.mrb[42].mxu0  ;;  %v6038_v17 = vrot.slane %v7132_v38, 1 }
 0x4ce   : > { %v5296_v43 = vadd.f32 %v5216_v5, %v14025_v41  ;;  %v6220_v44 = vadd.f32 %v6031_v34, %v5713_v45  ;;  %v5219_v60 = vadd.f32 %v12326_v57, %v4929_v24  ;;  %v5716_v39 = vadd.f32 %v7813_v36, %v12431_v4  ;;  %v4931_v35 = vpop.f32.mrb[91].mxu1  ;;  %v5707_v1 = vpop.f32.mrb[43].mxu0 }
 0x4cf   : > { %v6218_v20 = vadd.f32 %v6027_v32, %v5705_v15  ;;  %v5708_v6 = vadd.f32 %v12431_v4, %v5707_v1  ;;  %v5465_v52 = vpack.c.bf16 %v5430_v28, %v5429_v18  ;;  %v6034_v34 = vrot.slane %v7128_v16, 1  ;;  %v14033_v35 = vld [vmem:[#allocation24_spill] sm:$0xff] }
 0x4d0   : > { %v5367_v29 = vadd.f32 %v12453_v19, %v5296_v43  ;;  %v6284_v55 = vmax.f32 %v6220_v44, 0.0  ;;  %v5297_v57 = vadd.f32 %v5219_v60, %v14026_v42  ;;  %v6221_v53 = vadd.f32 %v6033_v30, %v5716_v39 }
 0x4d1   : > { %v6282_v40 = vmax.f32 %v6218_v20, 0.0  ;;  %v6219_v50 = vadd.f32 %v6029_v27, %v5708_v6  ;;  %7866 = vmatprep.mubr.bf16.mxu0 %v5465_v52  ;;  %v12481_v5 = vrot.slane %v7135_v63, 1  ;;  %v6039_v32 = vsel %vm14029_vm11, %v6036_v26, %v6038_v17  ;;  %vm14046_vm11 = vmmov %vm14041_vm0 }
 0x4d2   : > { %v7055_v47 = vpack.c.bf16 %v6284_v55, %v6284_v55  ;;  %v5368_v12 = vadd.f32 %v12453_v19, %v5297_v57  ;;  %v6285_v10 = vmax.f32 %v6221_v53, 0.0  ;;  %v5431_v49 = vmax.f32 %v5367_v29, 0.0  ;;  %v14034_v53 = vld [vmem:[#allocation25_spill] sm:$0xff] }
 0x4d3   : > { %v7053_v13 = vpack.c.bf16 %v6282_v40, %v6282_v40  ;;  %v6283_v51 = vmax.f32 %v6219_v50, 0.0  ;;  %v4934_v7 = vpop.f32.mrb[92].mxu1  ;;  %v6035_v30 = vsel %vm14030_vm8, %v12433_v56, %v6034_v34  ;;  %v6041_v60 = vsel %vm14031_vm4, %v6038_v17, %v12481_v5  ;;  %vm14047_vm8 = vmmov %vm14041_vm0 }
 0x4d4   : > { %6605 = vst.msk [vmem:[%s12460_s21 + $0x8] sm:$0xf] %vm6602_vm9, %v7055_v47  ;;  %v5432_v59 = vmax.f32 %v5368_v12, 0.0  ;;  %v7056_v9 = vpack.c.bf16 %v6285_v10, %v6285_v10  ;;  %v5224_v21 = vadd.f32 %v12336_v62, %v4934_v7  ;;  %v4936_v3 = vpop.f32.mrb[93].mxu1  ;;  %v14028_v62 = vld [vmem:[#allocation39_spill] sm:$0xff]  ;;  %v6037_v39 = vsel %vm14032_vm15, %v6034_v34, %v6036_v26  ;;  %v7250_v47 = vld [vmem:[%s8195_s8 + $0x38] sm:$0xff]   ;;  %vm14048_vm4 = vmmov %vm14041_vm0 }
 0x4d5   : > { %6603 = vst.msk [vmem:[%s12460_s21] sm:$0xf] %vm6602_vm9, %v7053_v13  ;;  %v7054_v25 = vpack.c.bf16 %v6283_v51, %v6283_v51  ;;  %v4937_v46 = vpop.f32.mrb[94].mxu1  ;;  %v7251_v51 = vld [vmem:[%s8195_s8 + $0x40] sm:$0xff]   ;;  %v7139_v16 = vunpack.c.l.bf16 %v7250_v47  ;;  %v7136_v3 = vunpack.c.h.bf16 %v12464_v22  ;;  %vm14049_vm15 = vmmov %vm14041_vm0 }
 0x4d6   : > { %v5466_v11 = vpack.c.bf16 %v5432_v59, %v5431_v49  ;;  %6606 = vst.msk [vmem:[%s12460_s21 + $0xc] sm:$0xf] %vm6602_vm9, %v7056_v9  ;;  %v5298_v61 = vadd.f32 %v5224_v21, %v14027_v48  ;;  %v5227_v2 = vadd.f32 %v12342_v14, %v4937_v46  ;;  %v4939_v37 = vpop.f32.mrb[95].mxu1  ;;  %v7140_v49 = vunpack.c.h.bf16 %v7250_v47 }
 0x4d7   : > { %6604 = vst.msk [vmem:[%s12460_s21 + $0x4] sm:$0xf] %vm6602_vm9, %v7054_v25  ;;  %v7143_v46 = vunpack.c.l.bf16 %v7251_v51  ;;  %v6044_v63 = vrot.slane %v7139_v16, 1  ;;  %v6042_v48 = vrot.slane %v7136_v3, 1  ;;  %v7254_v16 = vld [vmem:[%s8195_s8 + $0x58] sm:$0xff]   ;;  %v7255_v3 = vld [vmem:[%s8195_s8 + $0x60] sm:$0xff]  }
 0x4d8   : > { %v5299_v54 = vadd.f32 %v5227_v2, %v14028_v62  ;;  %7867 = vmatmul.mubr.bf16.gmra.mrb[96].mxu0 %v5466_v11  ;;  %v5369_v28 = vadd.f32 %v12453_v19, %v5298_v61  ;;  %v6046_v11 = vrot.slane %v7140_v49, 1 }
 0x4d9   : > { %v6048_v61 = vrot.slane %v7143_v46, 1  ;;  %v6043_v17 = vsel %vm14036_vm6, %v12481_v5, %v6042_v48  ;;  %v7252_v5 = vld [vmem:[%s8195_s8 + $0x48] sm:$0xff]   ;;  %vm14051_vm6 = vmmov %vm14041_vm0 }
 0x4da   : > { %v5370_v45 = vadd.f32 %v12453_v19, %v5299_v54  ;;  %v5433_v27 = vmax.f32 %v5369_v28, 0.0  ;;  %v6047_v37 = vsel %vm14035_vm7, %v6044_v63, %v6046_v11  ;;  %vm14050_vm7 = vmmov %vm14041_vm0 }
 0x4db   : > { %v4942_v0 = vpop.f32.mrb[96].mxu1  ;;  %v7816_v23 = vpop.f32.mrb[44].mxu0  ;;  %v6049_v34 = vsel %vm14037_vm13, %v6046_v11, %v6048_v61  ;;  %vm14052_vm13 = vmmov %vm14041_vm0 }
 0x4dc   : > { %v5434_v14 = vmax.f32 %v5370_v45, 0.0  ;;  %v5232_v18 = vadd.f32 %v12334_v58, %v4942_v0  ;;  %v5729_v15 = vadd.f32 %v7816_v23, %v12431_v4  ;;  %v4944_v24 = vpop.f32.mrb[97].mxu1  ;;  %v5720_v36 = vpop.f32.mrb[45].mxu0  ;;  %v6045_v23 = vsel %vm14038_vm12, %v6042_v48, %v6044_v63  ;;  %vm14053_vm12 = vmmov %vm14041_vm0 }
 0x4dd   : > { %v5721_v41 = vadd.f32 %v12431_v4, %v5720_v36  ;;  %v4945_v43 = vpop.f32.mrb[98].mxu1  ;;  %v7817_v44 = vpop.f32.mrb[46].mxu0  ;;  %v7156_v63 = vunpack.c.h.bf16 %v7254_v16 }
 0x4de   : > { %v5300_v58 = vadd.f32 %v5232_v18, %v14033_v35  ;;  %v6224_v1 = vadd.f32 %v6039_v32, %v5729_v15  ;;  %v5235_v20 = vadd.f32 %v12340_v33, %v4945_v43  ;;  %v5732_v6 = vadd.f32 %v7817_v44, %v12431_v4  ;;  %v4947_v52 = vpop.f32.mrb[99].mxu1  ;;  %v5723_v56 = vpop.f32.mrb[47].mxu0 }
 0x4df   : > { %v6222_v8 = vadd.f32 %v6035_v30, %v5721_v41  ;;  %v5724_v29 = vadd.f32 %v12431_v4, %v5723_v56  ;;  %v5467_v55 = vpack.c.bf16 %v5434_v14, %v5433_v27  ;;  %v7253_v41 = vld [vmem:[%s8195_s8 + $0x50] sm:$0xff]  }
 0x4e0   : > { %v5371_v42 = vadd.f32 %v12453_v19, %v5300_v58  ;;  %v6288_v57 = vmax.f32 %v6224_v1, 0.0  ;;  %v5301_v40 = vadd.f32 %v5235_v20, %v14034_v53  ;;  %v6225_v50 = vadd.f32 %v6041_v60, %v5732_v6 }
 0x4e1   : > { %v6286_v12 = vmax.f32 %v6222_v8, 0.0  ;;  %v6223_v33 = vadd.f32 %v6037_v39, %v5724_v29  ;;  %7870 = vmatprep.mubr.bf16.mxu0 %v5467_v55  ;;  %v7147_v60 = vunpack.c.l.bf16 %v7252_v5  ;;  %v7148_v39 = vunpack.c.h.bf16 %v7252_v5 }
 0x4e2   : > { %v7059_v10 = vpack.c.bf16 %v6288_v57, %v6288_v57  ;;  %v5372_v31 = vadd.f32 %v12453_v19, %v5301_v40  ;;  %v6289_v13 = vmax.f32 %v6225_v50, 0.0  ;;  %v5435_v59 = vmax.f32 %v5371_v42, 0.0 }
 0x4e3   : > { %v7057_v7 = vpack.c.bf16 %v6286_v12, %v6286_v12  ;;  %v6287_v38 = vmax.f32 %v6223_v33, 0.0  ;;  %v7144_v58 = vunpack.c.h.bf16 %v7251_v51  ;;  %v7151_v20 = vunpack.c.l.bf16 %v7253_v41 }
 0x4e4   : > { %6609 = vst.msk [vmem:[%s12460_s21 + $0x18] sm:$0xf] %vm6602_vm9, %v7059_v10  ;;  %v5436_v9 = vmax.f32 %v5372_v31, 0.0  ;;  %v7060_v21 = vpack.c.bf16 %v6289_v13, %v6289_v13  ;;  %v6052_v6 = vrot.slane %v7147_v60, 1  ;;  %v6054_v52 = vrot.slane %v7148_v39, 1 }
 0x4e5   : > { %6607 = vst.msk [vmem:[%s12460_s21 + $0x10] sm:$0xf] %vm6602_vm9, %v7057_v7  ;;  %v7058_v25 = vpack.c.bf16 %v6287_v38, %v6287_v38  ;;  %v6050_v56 = vrot.slane %v7144_v58, 1  ;;  %v6056_v8 = vrot.slane %v7151_v20, 1  ;;  %v7152_v48 = vunpack.c.h.bf16 %v7253_v41  ;;  %v7256_v41 = vld [vmem:[%s8195_s8 + $0x68] sm:$0xff]  }
 0x4e6   : > { %v5468_v19 = vpack.c.bf16 %v5436_v9, %v5435_v59  ;;  %6610 = vst.msk [vmem:[%s12460_s21 + $0x1c] sm:$0xf] %vm6602_vm9, %v7060_v21  ;;  %v6055_v55 = vsel %vm14039_vm14, %v6052_v6, %v6054_v52  ;;  %v7163_v20 = vunpack.c.l.bf16 %v7256_v41  ;;  %vm14054_vm14 = vmmov %vm14041_vm0 }
 0x4e7   : > { %6608 = vst.msk [vmem:[%s12460_s21 + $0x14] sm:$0xf] %vm6602_vm9, %v7058_v25  ;;  %v6051_v53 = vsel %vm14040_vm5, %v6048_v61, %v6050_v56  ;;  %v6057_v47 = vsel %vm14041_vm0, %v6054_v52, %v6056_v8  ;;  %v6053_v31 = vsel %vm14042_vm3, %v6050_v56, %v6052_v6  ;;  %v7164_v6 = vunpack.c.h.bf16 %v7256_v41  ;;  %vm14055_vm5 = vmmov %vm14041_vm0 }
 0x4e8   : > { %7871 = vmatmul.mubr.bf16.gmra.mrb[100].mxu0 %v5468_v19  ;;  %v7155_v19 = vunpack.c.l.bf16 %v7254_v16  ;;  %v7160_v56 = vunpack.c.h.bf16 %v7255_v3  ;;  %vm14056_vm3 = vmmov %vm14041_vm0 }
 0x4eb   : > { %v7820_v2 = vpop.f32.mrb[48].mxu0 }
 0x4ec   : > { %v5745_v22 = vadd.f32 %v7820_v2, %v12431_v4  ;;  %v5736_v26 = vpop.f32.mrb[49].mxu0  ;;  %v7159_v2 = vunpack.c.l.bf16 %v7255_v3  ;;  %v7258_v3 = vld [vmem:[%s8195_s8 + $0x78] sm:$0xff]  }
 0x4ed   : > { %v5737_v62 = vadd.f32 %v12431_v4, %v5736_v26  ;;  %v7821_v54 = vpop.f32.mrb[50].mxu0  ;;  %v6058_v26 = vrot.slane %v7152_v48, 1 }
 0x4ee   : > { %v6228_v28 = vadd.f32 %v6047_v37, %v5745_v22  ;;  %v5748_v45 = vadd.f32 %v7821_v54, %v12431_v4  ;;  %v5739_v0 = vpop.f32.mrb[51].mxu0  ;;  %v6060_v37 = vrot.slane %v7155_v19, 1  ;;  %v6062_v22 = vrot.slane %v7156_v63, 1 }
 0x4ef   : > { %v6226_v32 = vadd.f32 %v6043_v17, %v5737_v62  ;;  %v5740_v14 = vadd.f32 %v12431_v4, %v5739_v0  ;;  %v6064_v17 = vrot.slane %v7159_v2, 1  ;;  %v7171_v2 = vunpack.c.l.bf16 %v7258_v3 }
 0x4f0   : > { %v6292_v18 = vmax.f32 %v6228_v28, 0.0  ;;  %v6229_v15 = vadd.f32 %v6049_v34, %v5748_v45  ;;  %v6063_v54 = vsel %vm14043_vm1, %v6060_v37, %v6062_v22  ;;  %v6059_v45 = vsel %vm14044_vm10, %v6056_v8, %v6058_v26  ;;  %vm14057_vm1 = vmmov %vm14041_vm0 }
 0x4f1   : > { %v6290_v24 = vmax.f32 %v6226_v32, 0.0  ;;  %v6227_v36 = vadd.f32 %v6045_v23, %v5740_v14  ;;  %v6065_v32 = vsel %vm14045_vm2, %v6062_v22, %v6064_v17  ;;  %v6061_v5 = vsel %vm14046_vm11, %v6058_v26, %v6060_v37  ;;  %vm14058_vm10 = vmmov %vm14041_vm0 }
 0x4f2   : > { %v7063_v30 = vpack.c.bf16 %v6292_v18, %v6292_v18  ;;  %v6293_v27 = vmax.f32 %v6229_v15, 0.0  ;;  %v7172_v37 = vunpack.c.h.bf16 %v7258_v3  ;;  %vm14059_vm2 = vmmov %vm14041_vm0 }
 0x4f3   : > { %v7061_v43 = vpack.c.bf16 %v6290_v24, %v6290_v24  ;;  %v6291_v44 = vmax.f32 %v6227_v36, 0.0  ;;  %vm14060_vm11 = vmmov %vm14041_vm0 }
 0x4f4   : > { %6613 = vst.msk [vmem:[%s12460_s21 + $0x28] sm:$0xf] %vm6602_vm9, %v7063_v30  ;;  %v7064_v35 = vpack.c.bf16 %v6293_v27, %v6293_v27 }
 0x4f5   : > { %6611 = vst.msk [vmem:[%s12460_s21 + $0x20] sm:$0xf] %vm6602_vm9, %v7061_v43  ;;  %v7062_v1 = vpack.c.bf16 %v6291_v44, %v6291_v44 }
 0x4f6   : > { %6614 = vst.msk [vmem:[%s12460_s21 + $0x2c] sm:$0xf] %vm6602_vm9, %v7064_v35  ;;  %v7257_v35 = vld [vmem:[%s8195_s8 + $0x70] sm:$0xff]  }
 0x4f7   : > { %6612 = vst.msk [vmem:[%s12460_s21 + $0x24] sm:$0xf] %vm6602_vm9, %v7062_v1  ;;  %v7168_v26 = vunpack.c.h.bf16 %v7257_v35 }
 0x4fb   : > { %v7824_v29 = vpop.f32.mrb[52].mxu0 }
 0x4fc   : > { %v5761_v42 = vadd.f32 %v7824_v29, %v12431_v4  ;;  %v5752_v57 = vpop.f32.mrb[53].mxu0  ;;  %v7167_v29 = vunpack.c.l.bf16 %v7257_v35  ;;  %v7260_v35 = vld [vmem:[%s8195_s8 + $0x88] sm:$0xff]  }
 0x4fd   : > { %v5753_v40 = vadd.f32 %v12431_v4, %v5752_v57  ;;  %v7825_v50 = vpop.f32.mrb[54].mxu0  ;;  %v6066_v57 = vrot.slane %v7160_v56, 1 }
 0x4fe   : > { %v6232_v12 = vadd.f32 %v6055_v55, %v5761_v42  ;;  %v5764_v33 = vadd.f32 %v7825_v50, %v12431_v4  ;;  %v5755_v10 = vpop.f32.mrb[55].mxu0  ;;  %v6068_v55 = vrot.slane %v7163_v20, 1  ;;  %v6070_v42 = vrot.slane %v7164_v6, 1 }
 0x4ff   : > { %v6230_v13 = vadd.f32 %v6051_v53, %v5753_v40  ;;  %v5756_v51 = vadd.f32 %v12431_v4, %v5755_v10  ;;  %v6072_v53 = vrot.slane %v7167_v29, 1  ;;  %v7179_v29 = vunpack.c.l.bf16 %v7260_v35 }
 0x500   : > { %v6296_v7 = vmax.f32 %v6232_v12, 0.0  ;;  %v6233_v38 = vadd.f32 %v6057_v47, %v5764_v33  ;;  %v6071_v50 = vsel %vm14047_vm8, %v6068_v55, %v6070_v42  ;;  %v6067_v33 = vsel %vm14048_vm4, %v6064_v17, %v6066_v57  ;;  %vm14061_vm8 = vmmov %vm14041_vm0 }
 0x501   : > { %v6294_v49 = vmax.f32 %v6230_v13, 0.0  ;;  %v6231_v59 = vadd.f32 %v6053_v31, %v5756_v51  ;;  %v6073_v13 = vsel %vm14049_vm15, %v6070_v42, %v6072_v53  ;;  %v6069_v16 = vsel %vm14050_vm7, %v6066_v57, %v6068_v55  ;;  %vm14062_vm4 = vmmov %vm14041_vm0 }
 0x502   : > { %v7067_v9 = vpack.c.bf16 %v6296_v7, %v6296_v7  ;;  %v6297_v21 = vmax.f32 %v6233_v38, 0.0  ;;  %v7180_v55 = vunpack.c.h.bf16 %v7260_v35  ;;  %vm14063_vm15 = vmmov %vm14041_vm0 }
 0x503   : > { %v7065_v25 = vpack.c.bf16 %v6294_v49, %v6294_v49  ;;  %v6295_v46 = vmax.f32 %v6231_v59, 0.0  ;;  %vm14064_vm7 = vmmov %vm14041_vm0 }
 0x504   : > { %6617 = vst.msk [vmem:[%s12460_s21 + $0x38] sm:$0xf] %vm6602_vm9, %v7067_v9  ;;  %v7068_v11 = vpack.c.bf16 %v6297_v21, %v6297_v21 }
 0x505   : > { %6615 = vst.msk [vmem:[%s12460_s21 + $0x30] sm:$0xf] %vm6602_vm9, %v7065_v25  ;;  %v7066_v61 = vpack.c.bf16 %v6295_v46, %v6295_v46 }
 0x506   : > { %6618 = vst.msk [vmem:[%s12460_s21 + $0x3c] sm:$0xf] %vm6602_vm9, %v7068_v11  ;;  %v7259_v11 = vld [vmem:[%s8195_s8 + $0x80] sm:$0xff]  }
 0x507   : > { %6616 = vst.msk [vmem:[%s12460_s21 + $0x34] sm:$0xf] %vm6602_vm9, %v7066_v61  ;;  %v7176_v57 = vunpack.c.h.bf16 %v7259_v11 }
 0x50b   : > { %v7828_v62 = vpop.f32.mrb[56].mxu0 }
 0x50c   : > { %v5777_v34 = vadd.f32 %v7828_v62, %v12431_v4  ;;  %v5768_v28 = vpop.f32.mrb[57].mxu0  ;;  %v7175_v62 = vunpack.c.l.bf16 %v7259_v11  ;;  %v7262_v11 = vld [vmem:[%s8195_s8 + $0x98] sm:$0xff]  }
 0x50d   : > { %v5769_v0 = vadd.f32 %v12431_v4, %v5768_v28  ;;  %v7829_v23 = vpop.f32.mrb[58].mxu0  ;;  %v6074_v28 = vrot.slane %v7168_v26, 1 }
 0x50e   : > { %v6236_v14 = vadd.f32 %v6063_v54, %v5777_v34  ;;  %v5780_v18 = vadd.f32 %v7829_v23, %v12431_v4  ;;  %v5771_v15 = vpop.f32.mrb[59].mxu0  ;;  %v6076_v54 = vrot.slane %v7171_v2, 1  ;;  %v6078_v34 = vrot.slane %v7172_v37, 1 }
 0x50f   : > { %v6234_v24 = vadd.f32 %v6059_v45, %v5769_v0  ;;  %v5772_v36 = vadd.f32 %v12431_v4, %v5771_v15  ;;  %v6080_v45 = vrot.slane %v7175_v62, 1  ;;  %v7187_v62 = vunpack.c.l.bf16 %v7262_v11 }
 0x510   : > { %v6300_v30 = vmax.f32 %v6236_v14, 0.0  ;;  %v6237_v27 = vadd.f32 %v6065_v32, %v5780_v18  ;;  %v6079_v23 = vsel %vm14051_vm6, %v6076_v54, %v6078_v34  ;;  %v6075_v18 = vsel %vm14052_vm13, %v6072_v53, %v6074_v28  ;;  %vm14065_vm6 = vmmov %vm14041_vm0 }
 0x511   : > { %v6298_v43 = vmax.f32 %v6234_v24, 0.0  ;;  %v6235_v44 = vadd.f32 %v6061_v5, %v5772_v36  ;;  %v6081_v24 = vsel %vm14053_vm12, %v6078_v34, %v6080_v45  ;;  %v6077_v41 = vsel %vm14054_vm14, %v6074_v28, %v6076_v54  ;;  %vm14066_vm13 = vmmov %vm14041_vm0 }
 0x512   : > { %v7071_v60 = vpack.c.bf16 %v6300_v30, %v6300_v30  ;;  %v6301_v39 = vmax.f32 %v6237_v27, 0.0  ;;  %v7188_v54 = vunpack.c.h.bf16 %v7262_v11  ;;  %vm14067_vm12 = vmmov %vm14041_vm0 }
 0x513   : > { %v7069_v58 = vpack.c.bf16 %v6298_v43, %v6298_v43  ;;  %v6299_v1 = vmax.f32 %v6235_v44, 0.0  ;;  %vm14068_vm14 = vmmov %vm14041_vm0 }
 0x514   : > { %6621 = vst.msk [vmem:[%s12460_s21 + $0x48] sm:$0xf] %vm6602_vm9, %v7071_v60  ;;  %v7072_v52 = vpack.c.bf16 %v6301_v39, %v6301_v39 }
 0x515   : > { %6619 = vst.msk [vmem:[%s12460_s21 + $0x40] sm:$0xf] %vm6602_vm9, %v7069_v58  ;;  %v7070_v8 = vpack.c.bf16 %v6299_v1, %v6299_v1 }
 0x516   : > { %6622 = vst.msk [vmem:[%s12460_s21 + $0x4c] sm:$0xf] %vm6602_vm9, %v7072_v52  ;;  %v7261_v52 = vld [vmem:[%s8195_s8 + $0x90] sm:$0xff]  }
 0x517   : > { %6620 = vst.msk [vmem:[%s12460_s21 + $0x44] sm:$0xf] %vm6602_vm9, %v7070_v8  ;;  %v7184_v28 = vunpack.c.h.bf16 %v7261_v52 }
 0x51b   : > { %v7832_v40 = vpop.f32.mrb[60].mxu0 }
 0x51c   : > { %v5793_v47 = vadd.f32 %v7832_v40, %v12431_v4  ;;  %v5784_v12 = vpop.f32.mrb[61].mxu0  ;;  %v7183_v40 = vunpack.c.l.bf16 %v7261_v52  ;;  %v7264_v52 = vld [vmem:[%s8195_s8 + $0xa8] sm:$0xff]  }
 0x51d   : > { %v5785_v10 = vadd.f32 %v12431_v4, %v5784_v12  ;;  %v7833_v31 = vpop.f32.mrb[62].mxu0  ;;  %v6082_v12 = vrot.slane %v7176_v57, 1 }
 0x51e   : > { %v6240_v51 = vadd.f32 %v6071_v50, %v5793_v47  ;;  %v5796_v7 = vadd.f32 %v7833_v31, %v12431_v4  ;;  %v5787_v38 = vpop.f32.mrb[63].mxu0  ;;  %v6084_v50 = vrot.slane %v7179_v29, 1  ;;  %v6086_v47 = vrot.slane %v7180_v55, 1 }
 0x51f   : > { %v6238_v49 = vadd.f32 %v6067_v33, %v5785_v10  ;;  %v5788_v59 = vadd.f32 %v12431_v4, %v5787_v38  ;;  %v6088_v33 = vrot.slane %v7183_v40, 1  ;;  %v7195_v40 = vunpack.c.l.bf16 %v7264_v52 }
 0x520   : > { %v6304_v9 = vmax.f32 %v6240_v51, 0.0  ;;  %v6241_v21 = vadd.f32 %v6073_v13, %v5796_v7  ;;  %v6087_v31 = vsel %vm14055_vm5, %v6084_v50, %v6086_v47  ;;  %v6083_v7 = vsel %vm14041_vm0, %v6080_v45, %v6082_v12  ;;  %vm14069_vm5 = vmmov %vm14041_vm0 }
 0x521   : > { %v6302_v25 = vmax.f32 %v6238_v49, 0.0  ;;  %v6239_v46 = vadd.f32 %v6069_v16, %v5788_v59  ;;  %v6089_v49 = vsel %vm14056_vm3, %v6086_v47, %v6088_v33  ;;  %v6085_v3 = vsel %vm14057_vm1, %v6082_v12, %v6084_v50  ;;  %vm14070_vm3 = vmmov %vm14041_vm0 }
 0x522   : > { %v7075_v19 = vpack.c.bf16 %v6304_v9, %v6304_v9  ;;  %v6305_v63 = vmax.f32 %v6241_v21, 0.0  ;;  %v7196_v50 = vunpack.c.h.bf16 %v7264_v52  ;;  %vm14071_vm1 = vmmov %vm14041_vm0 }
 0x523   : > { %v7073_v48 = vpack.c.bf16 %v6302_v25, %v6302_v25  ;;  %v6303_v61 = vmax.f32 %v6239_v46, 0.0 }
 0x524   : > { %6625 = vst.msk [vmem:[%s12460_s21 + $0x58] sm:$0xf] %vm6602_vm9, %v7075_v19  ;;  %v7076_v22 = vpack.c.bf16 %v6305_v63, %v6305_v63 }
 0x525   : > { %6623 = vst.msk [vmem:[%s12460_s21 + $0x50] sm:$0xf] %vm6602_vm9, %v7073_v48  ;;  %v7074_v17 = vpack.c.bf16 %v6303_v61, %v6303_v61 }
 0x526   : > { %6626 = vst.msk [vmem:[%s12460_s21 + $0x5c] sm:$0xf] %vm6602_vm9, %v7076_v22  ;;  %v7263_v22 = vld [vmem:[%s8195_s8 + $0xa0] sm:$0xff]  }
 0x527   : > { %6624 = vst.msk [vmem:[%s12460_s21 + $0x54] sm:$0xf] %vm6602_vm9, %v7074_v17  ;;  %v7192_v12 = vunpack.c.h.bf16 %v7263_v22 }
 0x52b   : > { %v7836_v0 = vpop.f32.mrb[64].mxu0 }
 0x52c   : > { %v5809_v32 = vadd.f32 %v7836_v0, %v12431_v4  ;;  %v5800_v14 = vpop.f32.mrb[65].mxu0  ;;  %v7191_v0 = vunpack.c.l.bf16 %v7263_v22  ;;  %v7266_v22 = vld [vmem:[%s8195_s8 + $0xb8] sm:$0xff]  }
 0x52d   : > { %v5801_v15 = vadd.f32 %v12431_v4, %v5800_v14  ;;  %v7837_v5 = vpop.f32.mrb[66].mxu0  ;;  %v6090_v14 = vrot.slane %v7184_v28, 1 }
 0x52e   : > { %v6244_v36 = vadd.f32 %v6079_v23, %v5809_v32  ;;  %v5812_v30 = vadd.f32 %v7837_v5, %v12431_v4  ;;  %v5803_v27 = vpop.f32.mrb[67].mxu0  ;;  %v6092_v23 = vrot.slane %v7187_v62, 1  ;;  %v6094_v32 = vrot.slane %v7188_v54, 1 }
 0x52f   : > { %v6242_v43 = vadd.f32 %v6075_v18, %v5801_v15  ;;  %v5804_v44 = vadd.f32 %v12431_v4, %v5803_v27  ;;  %v6096_v18 = vrot.slane %v7191_v0, 1  ;;  %v7203_v0 = vunpack.c.l.bf16 %v7266_v22 }
 0x530   : > { %v6308_v60 = vmax.f32 %v6244_v36, 0.0  ;;  %v6245_v39 = vadd.f32 %v6081_v24, %v5812_v30  ;;  %v6095_v5 = vsel %vm14058_vm10, %v6092_v23, %v6094_v32  ;;  %v6091_v30 = vsel %vm14059_vm2, %v6088_v33, %v6090_v14  ;;  %vm14072_vm10 = vmmov %vm14041_vm0 }
 0x531   : > { %v6306_v58 = vmax.f32 %v6242_v43, 0.0  ;;  %v6243_v1 = vadd.f32 %v6077_v41, %v5804_v44  ;;  %v6097_v43 = vsel %vm14060_vm11, %v6094_v32, %v6096_v18  ;;  %v6093_v35 = vsel %vm14061_vm8, %v6090_v14, %v6092_v23  ;;  %vm14073_vm2 = vmmov %vm14041_vm0 }
 0x532   : > { %v7079_v20 = vpack.c.bf16 %v6308_v60, %v6308_v60  ;;  %v6309_v6 = vmax.f32 %v6245_v39, 0.0  ;;  %v7204_v23 = vunpack.c.h.bf16 %v7266_v22  ;;  %vm14074_vm11 = vmmov %vm14041_vm0 }
 0x533   : > { %v7077_v56 = vpack.c.bf16 %v6306_v58, %v6306_v58  ;;  %v6307_v8 = vmax.f32 %v6243_v1, 0.0  ;;  %vm14075_vm8 = vmmov %vm14041_vm0 }
 0x534   : > { %6629 = vst.msk [vmem:[%s12460_s21 + $0x68] sm:$0xf] %vm6602_vm9, %v7079_v20  ;;  %v7080_v42 = vpack.c.bf16 %v6309_v6, %v6309_v6 }
 0x535   : > { %6627 = vst.msk [vmem:[%s12460_s21 + $0x60] sm:$0xf] %vm6602_vm9, %v7077_v56  ;;  %v7078_v53 = vpack.c.bf16 %v6307_v8, %v6307_v8 }
 0x536   : > { %6630 = vst.msk [vmem:[%s12460_s21 + $0x6c] sm:$0xf] %vm6602_vm9, %v7080_v42  ;;  %v7265_v42 = vld [vmem:[%s8195_s8 + $0xb0] sm:$0xff]  }
 0x537   : > { %6628 = vst.msk [vmem:[%s12460_s21 + $0x64] sm:$0xf] %vm6602_vm9, %v7078_v53  ;;  %v7200_v14 = vunpack.c.h.bf16 %v7265_v42 }
 0x53b   : > { %v7840_v10 = vpop.f32.mrb[68].mxu0 }
 0x53c   : > { %v5825_v13 = vadd.f32 %v7840_v10, %v12431_v4  ;;  %v5816_v51 = vpop.f32.mrb[69].mxu0  ;;  %v7199_v10 = vunpack.c.l.bf16 %v7265_v42  ;;  %v7268_v42 = vld [vmem:[%s8195_s8 + $0xc8] sm:$0xff]  }
 0x53d   : > { %v5817_v38 = vadd.f32 %v12431_v4, %v5816_v51  ;;  %v7841_v16 = vpop.f32.mrb[70].mxu0  ;;  %v6098_v51 = vrot.slane %v7192_v12, 1 }
 0x53e   : > { %v6248_v59 = vadd.f32 %v6087_v31, %v5825_v13  ;;  %v5828_v9 = vadd.f32 %v7841_v16, %v12431_v4  ;;  %v5819_v21 = vpop.f32.mrb[71].mxu0  ;;  %v6100_v31 = vrot.slane %v7195_v40, 1  ;;  %v6102_v13 = vrot.slane %v7196_v50, 1 }
 0x53f   : > { %v6246_v25 = vadd.f32 %v6083_v7, %v5817_v38  ;;  %v5820_v46 = vadd.f32 %v12431_v4, %v5819_v21  ;;  %v6104_v7 = vrot.slane %v7199_v10, 1  ;;  %v7211_v10 = vunpack.c.l.bf16 %v7268_v42 }
 0x540   : > { %v6312_v19 = vmax.f32 %v6248_v59, 0.0  ;;  %v6249_v63 = vadd.f32 %v6089_v49, %v5828_v9  ;;  %v6103_v16 = vsel %vm14062_vm4, %v6100_v31, %v6102_v13  ;;  %v6099_v9 = vsel %vm14063_vm15, %v6096_v18, %v6098_v51  ;;  %vm14076_vm4 = vmmov %vm14041_vm0 }
 0x541   : > { %v6310_v48 = vmax.f32 %v6246_v25, 0.0  ;;  %v6247_v61 = vadd.f32 %v6085_v3, %v5820_v46  ;;  %v6105_v25 = vsel %vm14064_vm7, %v6102_v13, %v6104_v7  ;;  %v6101_v11 = vsel %vm14065_vm6, %v6098_v51, %v6100_v31  ;;  %vm14077_vm15 = vmmov %vm14041_vm0 }
 0x542   : > { %v7083_v2 = vpack.c.bf16 %v6312_v19, %v6312_v19  ;;  %v6313_v37 = vmax.f32 %v6249_v63, 0.0  ;;  %v7212_v31 = vunpack.c.h.bf16 %v7268_v42  ;;  %vm14078_vm7 = vmmov %vm14041_vm0 }
 0x543   : > { %v7081_v26 = vpack.c.bf16 %v6310_v48, %v6310_v48  ;;  %v6311_v17 = vmax.f32 %v6247_v61, 0.0  ;;  %vm14079_vm6 = vmmov %vm14041_vm0 }
 0x544   : > { %6633 = vst.msk [vmem:[%s12460_s21 + $0x78] sm:$0xf] %vm6602_vm9, %v7083_v2  ;;  %v7084_v34 = vpack.c.bf16 %v6313_v37, %v6313_v37 }
 0x545   : > { %6631 = vst.msk [vmem:[%s12460_s21 + $0x70] sm:$0xf] %vm6602_vm9, %v7081_v26  ;;  %v7082_v45 = vpack.c.bf16 %v6311_v17, %v6311_v17 }
 0x546   : > { %6634 = vst.msk [vmem:[%s12460_s21 + $0x7c] sm:$0xf] %vm6602_vm9, %v7084_v34  ;;  %v7267_v34 = vld [vmem:[%s8195_s8 + $0xc0] sm:$0xff]  }
 0x547   : > { %6632 = vst.msk [vmem:[%s12460_s21 + $0x74] sm:$0xf] %vm6602_vm9, %v7082_v45  ;;  %v7208_v51 = vunpack.c.h.bf16 %v7267_v34 }
 0x54b   : > { %v7844_v15 = vpop.f32.mrb[72].mxu0 }
 0x54c   : > { %v5841_v24 = vadd.f32 %v7844_v15, %v12431_v4  ;;  %v5832_v36 = vpop.f32.mrb[73].mxu0  ;;  %v7207_v15 = vunpack.c.l.bf16 %v7267_v34  ;;  %v7270_v34 = vld [vmem:[%s8195_s8 + $0xd8] sm:$0xff]  }
 0x54d   : > { %v5833_v27 = vadd.f32 %v12431_v4, %v5832_v36  ;;  %v7845_v41 = vpop.f32.mrb[74].mxu0  ;;  %v6106_v36 = vrot.slane %v7200_v14, 1 }
 0x54e   : > { %v6252_v44 = vadd.f32 %v6095_v5, %v5841_v24  ;;  %v5844_v60 = vadd.f32 %v7845_v41, %v12431_v4  ;;  %v5835_v39 = vpop.f32.mrb[75].mxu0  ;;  %v6108_v5 = vrot.slane %v7203_v0, 1  ;;  %v6110_v24 = vrot.slane %v7204_v23, 1 }
 0x54f   : > { %v6250_v58 = vadd.f32 %v6091_v30, %v5833_v27  ;;  %v5836_v1 = vadd.f32 %v12431_v4, %v5835_v39  ;;  %v6112_v30 = vrot.slane %v7207_v15, 1  ;;  %v7219_v15 = vunpack.c.l.bf16 %v7270_v34 }
 0x550   : > { %v6316_v20 = vmax.f32 %v6252_v44, 0.0  ;;  %v6253_v6 = vadd.f32 %v6097_v43, %v5844_v60  ;;  %v6111_v41 = vsel %vm14066_vm13, %v6108_v5, %v6110_v24  ;;  %v6107_v60 = vsel %vm14067_vm12, %v6104_v7, %v6106_v36  ;;  %vm14080_vm13 = vmmov %vm14041_vm0 }
 0x551   : > { %v6314_v56 = vmax.f32 %v6250_v58, 0.0  ;;  %v6251_v8 = vadd.f32 %v6093_v35, %v5836_v1  ;;  %v6113_v58 = vsel %vm14068_vm14, %v6110_v24, %v6112_v30  ;;  %v6109_v52 = vsel %vm14069_vm5, %v6106_v36, %v6108_v5  ;;  %vm14081_vm12 = vmmov %vm14041_vm0 }
 0x552   : > { %v7087_v29 = vpack.c.bf16 %v6316_v20, %v6316_v20  ;;  %v6317_v55 = vmax.f32 %v6253_v6, 0.0  ;;  %v7220_v5 = vunpack.c.h.bf16 %v7270_v34  ;;  %vm14082_vm14 = vmmov %vm14041_vm0 }
 0x553   : > { %v7085_v57 = vpack.c.bf16 %v6314_v56, %v6314_v56  ;;  %v6315_v53 = vmax.f32 %v6251_v8, 0.0  ;;  %vm14083_vm5 = vmmov %vm14041_vm0 }
 0x554   : > { %6637 = vst.msk [vmem:[%s12460_s21 + $0x88] sm:$0xf] %vm6602_vm9, %v7087_v29  ;;  %v7088_v47 = vpack.c.bf16 %v6317_v55, %v6317_v55 }
 0x555   : > { %6635 = vst.msk [vmem:[%s12460_s21 + $0x80] sm:$0xf] %vm6602_vm9, %v7085_v57  ;;  %v7086_v33 = vpack.c.bf16 %v6315_v53, %v6315_v53 }
 0x556   : > { %6638 = vst.msk [vmem:[%s12460_s21 + $0x8c] sm:$0xf] %vm6602_vm9, %v7088_v47  ;;  %v7269_v47 = vld [vmem:[%s8195_s8 + $0xd0] sm:$0xff]  }
 0x557   : > { %6636 = vst.msk [vmem:[%s12460_s21 + $0x84] sm:$0xf] %vm6602_vm9, %v7086_v33  ;;  %v7216_v36 = vunpack.c.h.bf16 %v7269_v47 }
 0x55b   : > { %v7848_v38 = vpop.f32.mrb[76].mxu0 }
 0x55c   : > { %v5857_v49 = vadd.f32 %v7848_v38, %v12431_v4  ;;  %v5848_v59 = vpop.f32.mrb[77].mxu0  ;;  %v7215_v38 = vunpack.c.l.bf16 %v7269_v47  ;;  %v7272_v47 = vld [vmem:[%s8195_s8 + $0xe8] sm:$0xff]  }
 0x55d   : > { %v5849_v21 = vadd.f32 %v12431_v4, %v5848_v59  ;;  %v7849_v3 = vpop.f32.mrb[78].mxu0  ;;  %v6114_v59 = vrot.slane %v7208_v51, 1 }
 0x55e   : > { %v6256_v46 = vadd.f32 %v6103_v16, %v5857_v49  ;;  %v5860_v19 = vadd.f32 %v7849_v3, %v12431_v4  ;;  %v5851_v63 = vpop.f32.mrb[79].mxu0  ;;  %v6116_v16 = vrot.slane %v7211_v10, 1  ;;  %v6118_v49 = vrot.slane %v7212_v31, 1 }
 0x55f   : > { %v6254_v48 = vadd.f32 %v6099_v9, %v5849_v21  ;;  %v5852_v61 = vadd.f32 %v12431_v4, %v5851_v63  ;;  %v6120_v9 = vrot.slane %v7215_v38, 1  ;;  %v7227_v38 = vunpack.c.l.bf16 %v7272_v47 }
 0x560   : > { %v6320_v2 = vmax.f32 %v6256_v46, 0.0  ;;  %v6257_v37 = vadd.f32 %v6105_v25, %v5860_v19  ;;  %v6119_v3 = vsel %vm14041_vm0, %v6116_v16, %v6118_v49  ;;  %v6115_v19 = vsel %vm14070_vm3, %v6112_v30, %v6114_v59  ;;  %vm14084_vm3 = vmmov %vm14041_vm0 }
 0x561   : > { %v6318_v26 = vmax.f32 %v6254_v48, 0.0  ;;  %v6255_v17 = vadd.f32 %v6101_v11, %v5852_v61  ;;  %v6121_v48 = vsel %vm14071_vm1, %v6118_v49, %v6120_v9  ;;  %v6117_v22 = vsel %vm14072_vm10, %v6114_v59, %v6116_v16  ;;  %vm14085_vm1 = vmmov %vm14041_vm0 }
 0x562   : > { %v7091_v62 = vpack.c.bf16 %v6320_v2, %v6320_v2  ;;  %v6321_v54 = vmax.f32 %v6257_v37, 0.0  ;;  %v7228_v16 = vunpack.c.h.bf16 %v7272_v47  ;;  %vm14086_vm10 = vmmov %vm14041_vm0 }
 0x563   : > { %v7089_v28 = vpack.c.bf16 %v6318_v26, %v6318_v26  ;;  %v6319_v45 = vmax.f32 %v6255_v17, 0.0 }
 0x564   : > { %6641 = vst.msk [vmem:[%s12460_s21 + $0x98] sm:$0xf] %vm6602_vm9, %v7091_v62  ;;  %v7092_v32 = vpack.c.bf16 %v6321_v54, %v6321_v54 }
 0x565   : > { %6639 = vst.msk [vmem:[%s12460_s21 + $0x90] sm:$0xf] %vm6602_vm9, %v7089_v28  ;;  %v7090_v18 = vpack.c.bf16 %v6319_v45, %v6319_v45 }
 0x566   : > { %6642 = vst.msk [vmem:[%s12460_s21 + $0x9c] sm:$0xf] %vm6602_vm9, %v7092_v32  ;;  %v7271_v32 = vld [vmem:[%s8195_s8 + $0xe0] sm:$0xff]  }
 0x567   : > { %6640 = vst.msk [vmem:[%s12460_s21 + $0x94] sm:$0xf] %vm6602_vm9, %v7090_v18  ;;  %v7224_v59 = vunpack.c.h.bf16 %v7271_v32 }
 0x56b   : > { %v7852_v27 = vpop.f32.mrb[80].mxu0 }
 0x56c   : > { %v5873_v43 = vadd.f32 %v7852_v27, %v12431_v4  ;;  %v5864_v44 = vpop.f32.mrb[81].mxu0  ;;  %v7223_v27 = vunpack.c.l.bf16 %v7271_v32  ;;  %v7274_v32 = vld [vmem:[%s8195_s8 + $0xf8] sm:$0xff]  }
 0x56d   : > { %v5865_v39 = vadd.f32 %v12431_v4, %v5864_v44  ;;  %v7853_v35 = vpop.f32.mrb[82].mxu0  ;;  %v6122_v44 = vrot.slane %v7216_v36, 1 }
 0x56e   : > { %v6260_v1 = vadd.f32 %v6111_v41, %v5873_v43  ;;  %v5876_v20 = vadd.f32 %v7853_v35, %v12431_v4  ;;  %v5867_v6 = vpop.f32.mrb[83].mxu0  ;;  %v6124_v41 = vrot.slane %v7219_v15, 1  ;;  %v6126_v43 = vrot.slane %v7220_v5, 1 }
 0x56f   : > { %v6258_v56 = vadd.f32 %v6107_v60, %v5865_v39  ;;  %v5868_v8 = vadd.f32 %v12431_v4, %v5867_v6  ;;  %v6128_v60 = vrot.slane %v7223_v27, 1  ;;  %v12698_v6 = vld [vmem:[%s12776_s6] ss:$0 sm:$0xff]  ;;  %v7235_v27 = vunpack.c.l.bf16 %v7274_v32 }
 0x570   : > { %v6324_v29 = vmax.f32 %v6260_v1, 0.0  ;;  %v6261_v55 = vadd.f32 %v6113_v58, %v5876_v20  ;;  %v6127_v35 = vsel %vm14073_vm2, %v6124_v41, %v6126_v43  ;;  %v6123_v20 = vsel %vm14074_vm11, %v6120_v9, %v6122_v44  ;;  %vm14087_vm2 = vmmov %vm14041_vm0 }
 0x571   : > { %v6322_v57 = vmax.f32 %v6258_v56, 0.0  ;;  %v6259_v53 = vadd.f32 %v6109_v52, %v5868_v8  ;;  %v6129_v8 = vsel %vm14075_vm8, %v6126_v43, %v6128_v60 }
 0x572   : > { %v7095_v40 = vpack.c.bf16 %v6324_v29, %v6324_v29  ;;  %v6325_v50 = vmax.f32 %v6261_v55, 0.0 }
 0x573   : > { %v7093_v12 = vpack.c.bf16 %v6322_v57, %v6322_v57  ;;  %v6323_v33 = vmax.f32 %v6259_v53, 0.0 }
 0x574   : > { %6645 = vst.msk [vmem:[%s12460_s21 + $0xa8] sm:$0xf] %vm6602_vm9, %v7095_v40  ;;  %v7096_v13 = vpack.c.bf16 %v6325_v50, %v6325_v50 }
 0x575   : > { %6643 = vst.msk [vmem:[%s12460_s21 + $0xa0] sm:$0xf] %vm6602_vm9, %v7093_v12  ;;  %v7094_v7 = vpack.c.bf16 %v6323_v33, %v6323_v33 }
 0x576   : > { %6646 = vst.msk [vmem:[%s12460_s21 + $0xac] sm:$0xf] %vm6602_vm9, %v7096_v13  ;;  %v7273_v13 = vld [vmem:[%s8195_s8 + $0xf0] sm:$0xff]  }
 0x577   : > { %6644 = vst.msk [vmem:[%s12460_s21 + $0xa4] sm:$0xf] %vm6602_vm9, %v7094_v7 }
 0x57b   : > { %v7856_v21 = vpop.f32.mrb[84].mxu0 }
 0x57c   : > { %v5889_v25 = vadd.f32 %v7856_v21, %v12431_v4  ;;  %v5880_v46 = vpop.f32.mrb[85].mxu0  ;;  %v7231_v21 = vunpack.c.l.bf16 %v7273_v13 }
 0x57d   : > { %v5881_v63 = vadd.f32 %v12431_v4, %v5880_v46  ;;  %v7857_v11 = vpop.f32.mrb[86].mxu0  ;;  %v6130_v46 = vrot.slane %v7224_v59, 1 }
 0x57e   : > { %v6264_v61 = vadd.f32 %v6119_v3, %v5889_v25  ;;  %v5892_v2 = vadd.f32 %v7857_v11, %v12431_v4  ;;  %v5883_v37 = vpop.f32.mrb[87].mxu0  ;;  %v6132_v3 = vrot.slane %v7227_v38, 1  ;;  %v6134_v25 = vrot.slane %v7228_v16, 1 }
 0x57f   : > { %v6262_v26 = vadd.f32 %v6115_v19, %v5881_v63  ;;  %v5884_v17 = vadd.f32 %v12431_v4, %v5883_v37  ;;  %v6136_v19 = vrot.slane %v7231_v21, 1 }
 0x580   : > { %v6328_v62 = vmax.f32 %v6264_v61, 0.0  ;;  %v6265_v54 = vadd.f32 %v6121_v48, %v5892_v2  ;;  %v6135_v11 = vsel %vm14077_vm15, %v6132_v3, %v6134_v25  ;;  %v6131_v2 = vsel %vm14078_vm7, %v6128_v60, %v6130_v46 }
 0x581   : > { %v6326_v28 = vmax.f32 %v6262_v26, 0.0  ;;  %v6263_v45 = vadd.f32 %v6117_v22, %v5884_v17  ;;  %v6137_v26 = vsel %vm14079_vm6, %v6134_v25, %v6136_v19  ;;  %v6133_v34 = vsel %vm14080_vm13, %v6130_v46, %v6132_v3 }
 0x582   : > { %v7099_v0 = vpack.c.bf16 %v6328_v62, %v6328_v62  ;;  %v6329_v23 = vmax.f32 %v6265_v54, 0.0 }
 0x583   : > { %v7097_v14 = vpack.c.bf16 %v6326_v28, %v6326_v28  ;;  %v6327_v18 = vmax.f32 %v6263_v45, 0.0 }
 0x584   : > { %6649 = vst.msk [vmem:[%s12460_s21 + $0xb8] sm:$0xf] %vm6602_vm9, %v7099_v0  ;;  %v7100_v24 = vpack.c.bf16 %v6329_v23, %v6329_v23 }
 0x585   : > { %6647 = vst.msk [vmem:[%s12460_s21 + $0xb0] sm:$0xf] %vm6602_vm9, %v7097_v14  ;;  %v7098_v30 = vpack.c.bf16 %v6327_v18, %v6327_v18 }
 0x586   : > { %6650 = vst.msk [vmem:[%s12460_s21 + $0xbc] sm:$0xf] %vm6602_vm9, %v7100_v24  ;;  %v7275_v24 = vld [vmem:[%s8195_s8 + $0x100] sm:$0xff]  }
 0x587   : > { %6648 = vst.msk [vmem:[%s12460_s21 + $0xb4] sm:$0xf] %vm6602_vm9, %v7098_v30  ;;  %v7240_v46 = vunpack.c.h.bf16 %v7275_v24 }
 0x58b   : > { %v7860_v39 = vpop.f32.mrb[88].mxu0 }
 0x58c   : > { %v5905_v58 = vadd.f32 %v7860_v39, %v12431_v4  ;;  %v5896_v1 = vpop.f32.mrb[89].mxu0  ;;  %v6125_v4 = vsel %vm14076_vm4, %v6122_v44, %v6124_v41  ;;  %v7236_v41 = vunpack.c.h.bf16 %v7274_v32  ;;  %v7232_v44 = vunpack.c.h.bf16 %v7273_v13  ;;  %v7276_v13 = vld [vmem:[%s8195_s8 + $0x108] sm:$0xff]  }
 0x58d   : > { %v5897_v52 = vadd.f32 %v12698_v6, %v5896_v1  ;;  %v7861_v56 = vpop.f32.mrb[90].mxu0  ;;  %v7239_v39 = vunpack.c.l.bf16 %v7275_v24  ;;  %v7243_v21 = vunpack.c.l.bf16 %v7276_v13  ;;  %v7244_v3 = vunpack.c.h.bf16 %v7276_v13 }
 0x58e   : > { %v6268_v29 = vadd.f32 %v6127_v35, %v5905_v58  ;;  %v5908_v55 = vadd.f32 %v12698_v6, %v7861_v56  ;;  %v5899_v42 = vpop.f32.mrb[91].mxu0  ;;  %v6140_v35 = vrot.slane %v7235_v27, 1  ;;  %v6142_v58 = vrot.slane %v7236_v41, 1 }
 0x58f   : > { %v6266_v57 = vadd.f32 %v6123_v20, %v5897_v52  ;;  %v5900_v53 = vadd.f32 %v12698_v6, %v5899_v42  ;;  %v6138_v1 = vrot.slane %v7232_v44, 1  ;;  %v6144_v20 = vrot.slane %v7239_v39, 1 }
 0x590   : > { %v6332_v40 = vmax.f32 %v6268_v29, 0.0  ;;  %v6269_v50 = vadd.f32 %v6129_v8, %v5908_v55  ;;  %v6143_v56 = vsel %vm14081_vm12, %v6140_v35, %v6142_v58 }
 0x591   : > { %v6330_v12 = vmax.f32 %v6266_v57, 0.0  ;;  %v6267_v33 = vadd.f32 %v6125_v4, %v5900_v53  ;;  %v6139_v55 = vsel %vm14082_vm14, %v6136_v19, %v6138_v1  ;;  %v6145_v57 = vsel %vm14083_vm5, %v6142_v58, %v6144_v20 }
 0x592   : > { %v7103_v10 = vpack.c.bf16 %v6332_v40, %v6332_v40  ;;  %v6333_v31 = vmax.f32 %v6269_v50, 0.0  ;;  %v6141_v47 = vsel %vm14041_vm0, %v6138_v1, %v6140_v35 }
 0x593   : > { %v7101_v51 = vpack.c.bf16 %v6330_v12, %v6330_v12  ;;  %v6331_v7 = vmax.f32 %v6267_v33, 0.0 }
 0x594   : > { %6653 = vst.msk [vmem:[%s12460_s21 + $0xc8] sm:$0xf] %vm6602_vm9, %v7103_v10  ;;  %v7104_v49 = vpack.c.bf16 %v6333_v31, %v6333_v31 }
 0x595   : > { %6651 = vst.msk [vmem:[%s12460_s21 + $0xc0] sm:$0xf] %vm6602_vm9, %v7101_v51  ;;  %v7102_v9 = vpack.c.bf16 %v6331_v7, %v6331_v7 }
 0x596   : > { %6654 = vst.msk [vmem:[%s12460_s21 + $0xcc] sm:$0xf] %vm6602_vm9, %v7104_v49  ;;  %v5549_v49 = vld [vmem:[%s8195_s8 + $0x110] sm:$0x1] }
 0x597   : > { %6652 = vst.msk [vmem:[%s12460_s21 + $0xc4] sm:$0xf] %vm6602_vm9, %v7102_v9 }
 0x59b   : > { %v7864_v63 = vpop.f32.mrb[92].mxu0 }
 0x59c   : > { %v5921_v48 = vadd.f32 %v12698_v6, %v7864_v63  ;;  %v5912_v61 = vpop.f32.mrb[93].mxu0  ;;  %v5614_v63 = vunpack.c.l.bf16 %v5549_v49 }
 0x59d   : > { %v5913_v37 = vadd.f32 %v12698_v6, %v5912_v61  ;;  %v7865_v22 = vpop.f32.mrb[94].mxu0  ;;  %v6146_v61 = vrot.slane %v7240_v46, 1 }
 0x59e   : > { %v6272_v17 = vadd.f32 %v6135_v11, %v5921_v48  ;;  %v5924_v62 = vadd.f32 %v12698_v6, %v7865_v22  ;;  %v5915_v54 = vpop.f32.mrb[95].mxu0  ;;  %v6148_v11 = vrot.slane %v7243_v21, 1  ;;  %v6150_v48 = vrot.slane %v7244_v3, 1 }
 0x59f   : > { %v6270_v28 = vadd.f32 %v6131_v2, %v5913_v37  ;;  %v5916_v45 = vadd.f32 %v12698_v6, %v5915_v54  ;;  %v6152_v2 = vrot.slane %v5614_v63, 1 }
 0x5a0   : > { %v6336_v0 = vmax.f32 %v6272_v17, 0.0  ;;  %v6273_v23 = vadd.f32 %v6137_v26, %v5924_v62  ;;  %v6151_v22 = vsel %vm14084_vm3, %v6148_v11, %v6150_v48  ;;  %v6147_v62 = vsel %vm14085_vm1, %v6144_v20, %v6146_v61 }
 0x5a1   : > { %v6334_v14 = vmax.f32 %v6270_v28, 0.0  ;;  %v6271_v18 = vadd.f32 %v6133_v34, %v5916_v45  ;;  %v6153_v28 = vsel %vm14086_vm10, %v6150_v48, %v6152_v2  ;;  %v6149_v32 = vsel %vm14087_vm2, %v6146_v61, %v6148_v11 }
 0x5a2   : > { %v7107_v15 = vpack.c.bf16 %v6336_v0, %v6336_v0  ;;  %v6337_v5 = vmax.f32 %v6273_v23, 0.0 }
 0x5a3   : > { %v7105_v36 = vpack.c.bf16 %v6334_v14, %v6334_v14  ;;  %v6335_v30 = vmax.f32 %v6271_v18, 0.0 }
 0x5a4   : > { %6657 = vst.msk [vmem:[%s12460_s21 + $0xd8] sm:$0xf] %vm6602_vm9, %v7107_v15  ;;  %v7108_v43 = vpack.c.bf16 %v6337_v5, %v6337_v5 }
 0x5a5   : > { %6655 = vst.msk [vmem:[%s12460_s21 + $0xd0] sm:$0xf] %vm6602_vm9, %v7105_v36  ;;  %v7106_v60 = vpack.c.bf16 %v6335_v30, %v6335_v30 }
 0x5a6   : > { %6658 = vst.msk [vmem:[%s12460_s21 + $0xdc] sm:$0xf] %vm6602_vm9, %v7108_v43 }
 0x5a7   : > { %6656 = vst.msk [vmem:[%s12460_s21 + $0xd4] sm:$0xf] %vm6602_vm9, %v7106_v60 }
 0x5ab   : > { %v7868_v52 = vpop.f32.mrb[96].mxu0 }
 0x5ac   : > { %v5937_v8 = vadd.f32 %v12698_v6, %v7868_v52  ;;  %v5928_v29 = vpop.f32.mrb[97].mxu0 }
 0x5ad   : > { %v5929_v42 = vadd.f32 %v12698_v6, %v5928_v29  ;;  %v7869_v4 = vpop.f32.mrb[98].mxu0 }
 0x5ae   : > { %v6276_v53 = vadd.f32 %v6143_v56, %v5937_v8  ;;  %v5940_v40 = vadd.f32 %v12698_v6, %v7869_v4  ;;  %v5931_v50 = vpop.f32.mrb[99].mxu0 }
 0x5af   : > { %v6274_v12 = vadd.f32 %v6139_v55, %v5929_v42  ;;  %v5932_v33 = vadd.f32 %v12698_v6, %v5931_v50 }
 0x5b0   : > { %v6340_v10 = vmax.f32 %v6276_v53, 0.0  ;;  %v6277_v31 = vadd.f32 %v6145_v57, %v5940_v40 }
 0x5b1   : > { %v6338_v51 = vmax.f32 %v6274_v12, 0.0  ;;  %v6275_v7 = vadd.f32 %v6141_v47, %v5932_v33 }
 0x5b2   : > { %v7111_v38 = vpack.c.bf16 %v6340_v10, %v6340_v10  ;;  %v6341_v16 = vmax.f32 %v6277_v31, 0.0 }
 0x5b3   : > { %v7109_v59 = vpack.c.bf16 %v6338_v51, %v6338_v51  ;;  %v6339_v9 = vmax.f32 %v6275_v7, 0.0 }
 0x5b4   : > { %6661 = vst.msk [vmem:[%s12460_s21 + $0xe8] sm:$0xf] %vm6602_vm9, %v7111_v38  ;;  %v7112_v25 = vpack.c.bf16 %v6341_v16, %v6341_v16 }
 0x5b5   : > { %6659 = vst.msk [vmem:[%s12460_s21 + $0xe0] sm:$0xf] %vm6602_vm9, %v7109_v59  ;;  %v7110_v19 = vpack.c.bf16 %v6339_v9, %v6339_v9 }
 0x5b6   : > { %6662 = vst.msk [vmem:[%s12460_s21 + $0xec] sm:$0xf] %vm6602_vm9, %v7112_v25 }
 0x5b7   : > { %6660 = vst.msk [vmem:[%s12460_s21 + $0xe4] sm:$0xf] %vm6602_vm9, %v7110_v19 }
 0x5bb   : > { %v7872_v37 = vpop.f32.mrb[100].mxu0 }
 0x5bc   : > { %v5953_v26 = vadd.f32 %v12698_v6, %v7872_v37  ;;  %v5944_v17 = vpop.f32.mrb[101].mxu0 }
 0x5bd   : > { %v5945_v54 = vadd.f32 %v12698_v6, %v5944_v17  ;;  %v7873_v34 = vpop.f32.mrb[102].mxu0 }
 0x5be   : > { %v6280_v45 = vadd.f32 %v6151_v22, %v5953_v26  ;;  %v5956_v0 = vadd.f32 %v12698_v6, %v7873_v34  ;;  %v5947_v23 = vpop.f32.mrb[103].mxu0 }
 0x5bf   : > { %v6278_v14 = vadd.f32 %v6147_v62, %v5945_v54  ;;  %v5948_v18 = vadd.f32 %v12698_v6, %v5947_v23 }
 0x5c0   : > { %v6344_v15 = vmax.f32 %v6280_v45, 0.0  ;;  %v6281_v5 = vadd.f32 %v6153_v28, %v5956_v0 }
 0x5c1   : > { %v6342_v24 = vmax.f32 %v6278_v14, 0.0  ;;  %v6279_v36 = vadd.f32 %v6149_v32, %v5948_v18 }
 0x5c2   : > { %v7115_v30 = vpack.c.bf16 %v6344_v15, %v6344_v15  ;;  %v6345_v27 = vmax.f32 %v6281_v5, 0.0 }
 0x5c3   : > { %v7113_v41 = vpack.c.bf16 %v6342_v24, %v6342_v24  ;;  %v6343_v43 = vmax.f32 %v6279_v36, 0.0 }
 0x5c4   : > { %6665 = vst.msk [vmem:[%s12460_s21 + $0xf8] sm:$0xf] %vm6602_vm9, %v7115_v30  ;;  %v7116_v44 = vpack.c.bf16 %v6345_v27, %v6345_v27 }
 0x5c5   : > { %6663 = vst.msk [vmem:[%s12460_s21 + $0xf0] sm:$0xf] %vm6602_vm9, %v7113_v41  ;;  %v7114_v60 = vpack.c.bf16 %v6343_v43, %v6343_v43 }
 0x5c6   : > { %6666 = vst.msk [vmem:[%s12460_s21 + $0xfc] sm:$0xf] %vm6602_vm9, %v7116_v44 }
 0x5c7   : > { %6664 = vst.msk [vmem:[%s12460_s21 + $0xf4] sm:$0xf] %vm6602_vm9, %v7114_v60 }
 0x5c8 PF: > { %s17_s24 = sadd.s32 1, %s8132_s24  }
 0x5c9   : > { %p14_p4 = scmp.ge.s32.totalorder %s17_s24, 4  }
 0x5cb   :  { %16 = sbr.rel (!%p14_p4) target bundleno = 1 (0x1), region = 80 }

</bundles_post_ra>
